<compile_context>
chip_gen: v5e
topology: v5e:2x2
jax: 0.10.0
libtpu: 0.0.40
codegen_flags: <defaults>
</compile_context>

<pallas_src>
import functools

import jax
import jax.numpy as jnp
from jax import lax
from jax.experimental import pallas as pl
from jax.experimental.pallas import tpu as pltpu


_P = 128                      # lane-padded width for input / hidden / each gate block
_GATE_PERM = (0, 1, 3, 2)     # packed gate block -> torch gate index  => (i, f, o, g)


# ---------------------------------------------------------------------------
# Pallas kernel: multi-layer LSTM over one unbatched sequence
# ---------------------------------------------------------------------------
def _lstm_kernel(x_ref, wih_ref, whh_ref, b_ref, o_ref, seq_ref, gx_ref,
                 *, num_layers, steps_per_seq):
    """x_ref:(T,P) bf16   wih_ref/whh_ref:(L,P,4P) bf16   b_ref:(L,1,4P) f32
       o_ref:(N,P) f32 compact output (N = T // steps_per_seq)
       seq_ref:(T,P) f32 scratch (inter-layer hidden sequence)
       gx_ref:(T,4P) f32 scratch (hoisted input projection)."""
    T, P = seq_ref.shape

    for l in range(num_layers):                   # static unroll over layers
        last = (l == num_layers - 1)

        # Hoisted input projection for ALL timesteps: one lane-dense
        # (T,128)@(128,512) bf16 matmul per layer, off the serial recurrence.
        x_l = x_ref[...] if l == 0 else seq_ref[...].astype(jnp.bfloat16)
        gx_ref[...] = (
            jnp.dot(x_l, wih_ref[l], preferred_element_type=jnp.float32)
            + b_ref[l]
        )

        whh = whh_ref[l]                          # (P, 4P) bf16, loop-invariant RHS
        h = jnp.zeros((1, P), jnp.float32)        # pad lanes stay exactly 0
        c = jnp.zeros((1, P), jnp.float32)

        # Fully unrolled recurrence: T is small and static, so a static Python
        # loop == full unroll; every slice below is a static slice.
        # TODO(synk): for large T (>~1K) chunk the sequence over an "arbitrary"
        # grid axis (carry h/c in scratch) and drive W_hh weight-stationary via
        # pltpu.matmul_push_rhs/matmul_acc_lhs once the bundle dump confirms the
        # RHS is re-pushed per step.
        for t in range(T):
            # Only the (1,128)@(128,512) hidden->gate matvec stays inside the
            # recurrence; keep h in bf16 for the MXU (f32 accumulation).
            g = gx_ref[pl.ds(t, 1), :] + jnp.dot(
                h.astype(jnp.bfloat16), whh, preferred_element_type=jnp.float32)
            # Packed gate order (i, f, o, g): one wide sigmoid covers all three
            # sigmoid gates, one tanh covers the cell candidate (2 EUP pushes).
            sig = jax.nn.sigmoid(g[:, 0:3 * P])
            i_g = sig[:, 0 * P:1 * P]
            f_g = sig[:, 1 * P:2 * P]
            o_g = sig[:, 2 * P:3 * P]
            g_g = jnp.tanh(g[:, 3 * P:4 * P])
            c = f_g * c + i_g * g_g
            h = o_g * jnp.tanh(c)
            if not last:
                seq_ref[pl.ds(t, 1), :] = h       # feeds the next layer
            elif (t + 1) % steps_per_seq == 0:
                # Only the final timestep of each length-W window is consumed.
                o_ref[pl.ds((t + 1) // steps_per_seq - 1, 1), :] = h


def lstm_forward(seq_bf16, wih, whh, bias, steps_per_seq):
    """Run the multi-layer LSTM over one lane-padded (T, 128) bf16 sequence.

    Returns the compact (N, 128) buffer holding the final hidden state of every
    length-`steps_per_seq` window (N = T // steps_per_seq)."""
    T, P = seq_bf16.shape
    L = wih.shape[0]
    N = T // steps_per_seq
    return pl.pallas_call(
        functools.partial(_lstm_kernel, num_layers=L, steps_per_seq=steps_per_seq),
        out_shape=jax.ShapeDtypeStruct((N, P), jnp.float32),
        grid=(1,),
        in_specs=[
            pl.BlockSpec((T, P), lambda i: (0, 0)),
            pl.BlockSpec((L, P, 4 * P), lambda i: (0, 0, 0)),
            pl.BlockSpec((L, P, 4 * P), lambda i: (0, 0, 0)),
            pl.BlockSpec((L, 1, 4 * P), lambda i: (0, 0, 0)),
        ],
        out_specs=pl.BlockSpec((N, P), lambda i: (0, 0)),
        scratch_shapes=[
            pltpu.VMEM((T, P), jnp.float32),      # inter-layer hidden sequence
            pltpu.VMEM((T, 4 * P), jnp.float32),  # hoisted input projection
        ],
        compiler_params=pltpu.CompilerParams(
            dimension_semantics=("arbitrary",)),
    )(seq_bf16, wih, whh, bias)


# ---------------------------------------------------------------------------
# Parameter init (torch.nn.LSTM default init) + lane-aligned (i,f,o,g) packing
# ---------------------------------------------------------------------------
def init_lstm_params(key, input_size, hidden_size, n_layers, P=_P):
    assert input_size <= P and hidden_size <= P
    s = 1.0 / float(hidden_size) ** 0.5
    keys = jax.random.split(key, 4 * n_layers)

    wih_l, whh_l, b_l, raw = [], [], [], []
    for l in range(n_layers):
        d_in = input_size if l == 0 else hidden_size
        k0, k1, k2, k3 = keys[4 * l:4 * l + 4]
        w_ih = jax.random.uniform(k0, (4 * hidden_size, d_in), jnp.float32, -s, s)
        w_hh = jax.random.uniform(k1, (4 * hidden_size, hidden_size), jnp.float32, -s, s)
        b_ih = jax.random.uniform(k2, (4 * hidden_size,), jnp.float32, -s, s)
        b_hh = jax.random.uniform(k3, (4 * hidden_size,), jnp.float32, -s, s)
        raw.append(dict(w_ih=w_ih, w_hh=w_hh, b_ih=b_ih, b_hh=b_hh))

        wih_p = jnp.zeros((P, 4 * P), jnp.float32)
        whh_p = jnp.zeros((P, 4 * P), jnp.float32)
        b_p = jnp.zeros((1, 4 * P), jnp.float32)
        # Repack torch gate order (i, f, g, o) into lane blocks (i, f, o, g) so
        # the three sigmoid gates sit in contiguous lanes 0..3*128.
        for gp, gt in enumerate(_GATE_PERM):
            rows = slice(gt * hidden_size, (gt + 1) * hidden_size)
            cols = slice(gp * P, gp * P + hidden_size)
            wih_p = wih_p.at[:d_in, cols].set(w_ih[rows, :].T)
            whh_p = whh_p.at[:hidden_size, cols].set(w_hh[rows, :].T)
            b_p = b_p.at[0, cols].set(b_ih[rows] + b_hh[rows])
        wih_l.append(wih_p)
        whh_l.append(whh_p)
        b_l.append(b_p)

    packed = dict(
        wih=jnp.stack(wih_l).astype(jnp.bfloat16),   # bf16 MXU operands
        whh=jnp.stack(whh_l).astype(jnp.bfloat16),
        b=jnp.stack(b_l),                            # bias stays f32
    )
    return packed, raw


# ---------------------------------------------------------------------------
# Forward pass of the PyTorch RNN module
# ---------------------------------------------------------------------------
def rnn_forward(x_nchw, packed, hidden_size):
    N, C, H, W = x_nchw.shape
    assert H == 1, "forward() requires squeeze(dim=2), i.e. spatial height == 1"
    # squeeze(2) + permute(0,2,1) + TimeDistributed flatten -> one (N*W, C) sequence
    seq = jnp.transpose(x_nchw[:, :, 0, :], (0, 2, 1)).reshape(N * W, C)
    seq_p = jnp.pad(seq, ((0, 0), (0, _P - C))).astype(jnp.bfloat16)
    y = lstm_forward(seq_p, packed["wih"], packed["whh"], packed["b"], W)  # (N, 128)
    return y[:, :hidden_size]                                              # out[:, -1, :]


# ---------------------------------------------------------------------------
# Pure-JAX f32 reference (for correctness check; torch gate order)
# ---------------------------------------------------------------------------
def lstm_reference(seq, raw_layers, hidden):
    x = seq.astype(jnp.float32)
    for lyr in raw_layers:
        w_ih, w_hh = lyr["w_ih"], lyr["w_hh"]
        b = lyr["b_ih"] + lyr["b_hh"]

        def step(carry, x_t, w_ih=w_ih, w_hh=w_hh, b=b):
            h, c = carry
            g = w_ih @ x_t + w_hh @ h + b
            i = jax.nn.sigmoid(g[0 * hidden:1 * hidden])
            f = jax.nn.sigmoid(g[1 * hidden:2 * hidden])
            gg = jnp.tanh(g[2 * hidden:3 * hidden])
            o = jax.nn.sigmoid(g[3 * hidden:4 * hidden])
            c = f * c + i * gg
            h = o * jnp.tanh(c)
            return (h, c), h

        init = (jnp.zeros((hidden,), jnp.float32), jnp.zeros((hidden,), jnp.float32))
        _, x = lax.scan(step, init, x)
    return x


if __name__ == "__main__":
    key = jax.random.PRNGKey(0)
    k_x, k_p = jax.random.split(key)

    input_size, hidden_size, n_layers = 16, 64, 2
    N, W = 2, 12
    # PyTorch NCHW input with H == 1 (required by x.squeeze(dim=2))
    x = jax.random.normal(k_x, (N, input_size, 1, W), jnp.float32)

    packed, raw = init_lstm_params(k_p, input_size, hidden_size, n_layers)

    out = rnn_forward(x, packed, hidden_size)
    jax.block_until_ready(out)
    assert out.shape == (N, hidden_size)

    # Reference check (loose tolerance: kernel matmuls use bf16 operands).
    seq = jnp.transpose(x[:, :, 0, :], (0, 2, 1)).reshape(N * W, input_size)
    ref = lstm_reference(seq, raw, hidden_size).reshape(N, W, hidden_size)[:, -1, :]
    err = float(jnp.max(jnp.abs(out - ref)))
    assert jnp.allclose(out, ref, atol=5e-2, rtol=5e-2), f"max abs err {err}"

    print("KERNEL_OK")
</pallas_src>

<mosaic_0001>
module attributes {stable_mosaic.version = 11 : i64} {
  func.func @_lstm_kernel(%arg0: i32, %arg1: memref<24x128xbf16, #tpu.memory_space<vmem>>, %arg2: memref<2x128x512xbf16, #tpu.memory_space<vmem>>, %arg3: memref<2x128x512xbf16, #tpu.memory_space<vmem>>, %arg4: memref<2x1x512xf32, #tpu.memory_space<vmem>>, %arg5: memref<2x128xf32, #tpu.memory_space<vmem>>, %arg6: memref<24x128xf32, #tpu.memory_space<vmem>>, %arg7: memref<24x512xf32, #tpu.memory_space<vmem>>) attributes {dimension_semantics = [#tpu.dimension_semantics<arbitrary>], iteration_bounds = array<i64: 1>, scalar_prefetch = 0 : i64, scratch_operands = 2 : i64, tpu.core_type = #tpu.core_type<tc>, window_params = [{pipeline_mode = #tpu.pipeline_mode<synchronous>, transform_indices = @transform_0, window_bounds = array<i64: 24, 128>}, {pipeline_mode = #tpu.pipeline_mode<synchronous>, transform_indices = @transform_1, window_bounds = array<i64: 2, 128, 512>}, {pipeline_mode = #tpu.pipeline_mode<synchronous>, transform_indices = @transform_2, window_bounds = array<i64: 2, 128, 512>}, {pipeline_mode = #tpu.pipeline_mode<synchronous>, transform_indices = @transform_3, window_bounds = array<i64: 2, 1, 512>}, {pipeline_mode = #tpu.pipeline_mode<synchronous>, transform_indices = @transform_4, window_bounds = array<i64: 2, 128>}]} {
    %c0 = arith.constant 0 : index
    %c0_0 = arith.constant 0 : index
    %0 = vector.load %arg1[%c0, %c0_0] : memref<24x128xbf16, #tpu.memory_space<vmem>>, vector<24x128xbf16>
    %c0_1 = arith.constant 0 : index
    %c0_2 = arith.constant 0 : index
    %c0_3 = arith.constant 0 : index
    %1 = vector.load %arg2[%c0_1, %c0_2, %c0_3] : memref<2x128x512xbf16, #tpu.memory_space<vmem>>, vector<1x128x512xbf16>
    %2 = vector.shape_cast %1 : vector<1x128x512xbf16> to vector<128x512xbf16>
    %cst = arith.constant dense<0.000000e+00> : vector<24x512xf32>
    %3 = tpu.matmul %0, %2, %cst {dimension_numbers = #tpu.dot_dimension_numbers<[1], [0], [0], [1], [0, 0, 1, 1], [], []>} : vector<24x128xbf16>, vector<128x512xbf16>, vector<24x512xf32> -> vector<24x512xf32>
    %c0_4 = arith.constant 0 : index
    %c0_5 = arith.constant 0 : index
    %c0_6 = arith.constant 0 : index
    %4 = vector.load %arg4[%c0_4, %c0_5, %c0_6] : memref<2x1x512xf32, #tpu.memory_space<vmem>>, vector<1x1x512xf32>
    %5 = vector.shape_cast %4 : vector<1x1x512xf32> to vector<1x512xf32>
    %6 = vector.broadcast %5 : vector<1x512xf32> to vector<24x512xf32>
    %7 = arith.addf %3, %6 : vector<24x512xf32>
    %c0_7 = arith.constant 0 : index
    %c0_8 = arith.constant 0 : index
    %8 = vector.load %arg7[%c0_7, %c0_8] : memref<24x512xf32, #tpu.memory_space<vmem>>, vector<24x512xf32>
    tpu.vector_store %arg7[%c0_7, %c0_8], %7 {strides = array<i32>} : memref<24x512xf32, #tpu.memory_space<vmem>>, vector<24x512xf32>,
    %c0_9 = arith.constant 0 : index
    %c0_10 = arith.constant 0 : index
    %c0_11 = arith.constant 0 : index
    %9 = vector.load %arg3[%c0_9, %c0_10, %c0_11] : memref<2x128x512xbf16, #tpu.memory_space<vmem>>, vector<1x128x512xbf16>
    %10 = vector.shape_cast %9 : vector<1x128x512xbf16> to vector<128x512xbf16>
    %cst_12 = arith.constant 0.000000e+00 : f32
    %11 = vector.broadcast %cst_12 : f32 to vector<1x128xf32>
    %cst_13 = arith.constant 0.000000e+00 : f32
    %12 = vector.broadcast %cst_13 : f32 to vector<1x128xf32>
    %c0_14 = arith.constant 0 : index
    %c0_15 = arith.constant 0 : index
    %13 = vector.load %arg7[%c0_14, %c0_15] : memref<24x512xf32, #tpu.memory_space<vmem>>, vector<1x512xf32>
    %14 = arith.truncf %11 : vector<1x128xf32> to vector<1x128xbf16>
    %cst_16 = arith.constant dense<0.000000e+00> : vector<1x512xf32>
    %15 = tpu.matmul %14, %10, %cst_16 {dimension_numbers = #tpu.dot_dimension_numbers<[1], [0], [0], [1], [0, 0, 1, 1], [], []>} : vector<1x128xbf16>, vector<128x512xbf16>, vector<1x512xf32> -> vector<1x512xf32>
    %16 = arith.addf %13, %15 : vector<1x512xf32>
    %17 = vector.extract_strided_slice %16 {offsets = [0, 0], sizes = [1, 384], strides = [1, 1]} : vector<1x512xf32> to vector<1x384xf32>
    %18 = arith.negf %17 : vector<1x384xf32>
    %19 = math.exp %18 : vector<1x384xf32>
    %cst_17 = arith.constant 1.000000e+00 : f32
    %20 = vector.broadcast %cst_17 : f32 to vector<1x384xf32>
    %21 = arith.addf %20, %19 : vector<1x384xf32>
    %22 = arith.divf %20, %21 : vector<1x384xf32>
    %23 = vector.extract_strided_slice %22 {offsets = [0, 0], sizes = [1, 128], strides = [1, 1]} : vector<1x384xf32> to vector<1x128xf32>
    %24 = vector.extract_strided_slice %22 {offsets = [0, 128], sizes = [1, 128], strides = [1, 1]} : vector<1x384xf32> to vector<1x128xf32>
    %25 = vector.extract_strided_slice %22 {offsets = [0, 256], sizes = [1, 128], strides = [1, 1]} : vector<1x384xf32> to vector<1x128xf32>
    %26 = vector.extract_strided_slice %16 {offsets = [0, 384], sizes = [1, 128], strides = [1, 1]} : vector<1x512xf32> to vector<1x128xf32>
    %27 = math.tanh %26 : vector<1x128xf32>
    %28 = arith.mulf %24, %12 : vector<1x128xf32>
    %29 = arith.mulf %23, %27 : vector<1x128xf32>
    %30 = arith.addf %28, %29 : vector<1x128xf32>
    %31 = math.tanh %30 : vector<1x128xf32>
    %32 = arith.mulf %25, %31 : vector<1x128xf32>
    %c0_18 = arith.constant 0 : index
    %c0_19 = arith.constant 0 : index
    %33 = vector.load %arg6[%c0_18, %c0_19] : memref<24x128xf32, #tpu.memory_space<vmem>>, vector<1x128xf32>
    tpu.vector_store %arg6[%c0_18, %c0_19], %32 {strides = array<i32>} : memref<24x128xf32, #tpu.memory_space<vmem>>, vector<1x128xf32>,
    %c1 = arith.constant 1 : index
    %c0_20 = arith.constant 0 : index
    %34 = vector.load %arg7[%c1, %c0_20] : memref<24x512xf32, #tpu.memory_space<vmem>>, vector<1x512xf32>
    %35 = arith.truncf %32 : vector<1x128xf32> to vector<1x128xbf16>
    %cst_21 = arith.constant dense<0.000000e+00> : vector<1x512xf32>
    %36 = tpu.matmul %35, %10, %cst_21 {dimension_numbers = #tpu.dot_dimension_numbers<[1], [0], [0], [1], [0, 0, 1, 1], [], []>} : vector<1x128xbf16>, vector<128x512xbf16>, vector<1x512xf32> -> vector<1x512xf32>
    %37 = arith.addf %34, %36 : vector<1x512xf32>
    %38 = vector.extract_strided_slice %37 {offsets = [0, 0], sizes = [1, 384], strides = [1, 1]} : vector<1x512xf32> to vector<1x384xf32>
    %39 = arith.negf %38 : vector<1x384xf32>
    %40 = math.exp %39 : vector<1x384xf32>
    %cst_22 = arith.constant 1.000000e+00 : f32
    %41 = vector.broadcast %cst_22 : f32 to vector<1x384xf32>
    %42 = arith.addf %41, %40 : vector<1x384xf32>
    %43 = arith.divf %41, %42 : vector<1x384xf32>
    %44 = vector.extract_strided_slice %43 {offsets = [0, 0], sizes = [1, 128], strides = [1, 1]} : vector<1x384xf32> to vector<1x128xf32>
    %45 = vector.extract_strided_slice %43 {offsets = [0, 128], sizes = [1, 128], strides = [1, 1]} : vector<1x384xf32> to vector<1x128xf32>
    %46 = vector.extract_strided_slice %43 {offsets = [0, 256], sizes = [1, 128], strides = [1, 1]} : vector<1x384xf32> to vector<1x128xf32>
    %47 = vector.extract_strided_slice %37 {offsets = [0, 384], sizes = [1, 128], strides = [1, 1]} : vector<1x512xf32> to vector<1x128xf32>
    %48 = math.tanh %47 : vector<1x128xf32>
    %49 = arith.mulf %45, %30 : vector<1x128xf32>
    %50 = arith.mulf %44, %48 : vector<1x128xf32>
    %51 = arith.addf %49, %50 : vector<1x128xf32>
    %52 = math.tanh %51 : vector<1x128xf32>
    %53 = arith.mulf %46, %52 : vector<1x128xf32>
    %c1_23 = arith.constant 1 : index
    %c0_24 = arith.constant 0 : index
    %54 = vector.load %arg6[%c1_23, %c0_24] : memref<24x128xf32, #tpu.memory_space<vmem>>, vector<1x128xf32>
    tpu.vector_store %arg6[%c1_23, %c0_24], %53 {strides = array<i32>} : memref<24x128xf32, #tpu.memory_space<vmem>>, vector<1x128xf32>,
    %c2 = arith.constant 2 : index
    %c0_25 = arith.constant 0 : index
    %55 = vector.load %arg7[%c2, %c0_25] : memref<24x512xf32, #tpu.memory_space<vmem>>, vector<1x512xf32>
    %56 = arith.truncf %53 : vector<1x128xf32> to vector<1x128xbf16>
    %cst_26 = arith.constant dense<0.000000e+00> : vector<1x512xf32>
    %57 = tpu.matmul %56, %10, %cst_26 {dimension_numbers = #tpu.dot_dimension_numbers<[1], [0], [0], [1], [0, 0, 1, 1], [], []>} : vector<1x128xbf16>, vector<128x512xbf16>, vector<1x512xf32> -> vector<1x512xf32>
    %58 = arith.addf %55, %57 : vector<1x512xf32>
    %59 = vector.extract_strided_slice %58 {offsets = [0, 0], sizes = [1, 384], strides = [1, 1]} : vector<1x512xf32> to vector<1x384xf32>
    %60 = arith.negf %59 : vector<1x384xf32>
    %61 = math.exp %60 : vector<1x384xf32>
    %cst_27 = arith.constant 1.000000e+00 : f32
    %62 = vector.broadcast %cst_27 : f32 to vector<1x384xf32>
    %63 = arith.addf %62, %61 : vector<1x384xf32>
    %64 = arith.divf %62, %63 : vector<1x384xf32>
    %65 = vector.extract_strided_slice %64 {offsets = [0, 0], sizes = [1, 128], strides = [1, 1]} : vector<1x384xf32> to vector<1x128xf32>
    %66 = vector.extract_strided_slice %64 {offsets = [0, 128], sizes = [1, 128], strides = [1, 1]} : vector<1x384xf32> to vector<1x128xf32>
    %67 = vector.extract_strided_slice %64 {offsets = [0, 256], sizes = [1, 128], strides = [1, 1]} : vector<1x384xf32> to vector<1x128xf32>
    %68 = vector.extract_strided_slice %58 {offsets = [0, 384], sizes = [1, 128], strides = [1, 1]} : vector<1x512xf32> to vector<1x128xf32>
    %69 = math.tanh %68 : vector<1x128xf32>
    %70 = arith.mulf %66, %51 : vector<1x128xf32>
    %71 = arith.mulf %65, %69 : vector<1x128xf32>
    %72 = arith.addf %70, %71 : vector<1x128xf32>
    %73 = math.tanh %72 : vector<1x128xf32>
    %74 = arith.mulf %67, %73 : vector<1x128xf32>
    %c2_28 = arith.constant 2 : index
    %c0_29 = arith.constant 0 : index
    %75 = vector.load %arg6[%c2_28, %c0_29] : memref<24x128xf32, #tpu.memory_space<vmem>>, vector<1x128xf32>
    tpu.vector_store %arg6[%c2_28, %c0_29], %74 {strides = array<i32>} : memref<24x128xf32, #tpu.memory_space<vmem>>, vector<1x128xf32>,
    %c3 = arith.constant 3 : index
    %c0_30 = arith.constant 0 : index
    %76 = vector.load %arg7[%c3, %c0_30] : memref<24x512xf32, #tpu.memory_space<vmem>>, vector<1x512xf32>
    %77 = arith.truncf %74 : vector<1x128xf32> to vector<1x128xbf16>
    %cst_31 = arith.constant dense<0.000000e+00> : vector<1x512xf32>
    %78 = tpu.matmul %77, %10, %cst_31 {dimension_numbers = #tpu.dot_dimension_numbers<[1], [0], [0], [1], [0, 0, 1, 1], [], []>} : vector<1x128xbf16>, vector<128x512xbf16>, vector<1x512xf32> -> vector<1x512xf32>
    %79 = arith.addf %76, %78 : vector<1x512xf32>
    %80 = vector.extract_strided_slice %79 {offsets = [0, 0], sizes = [1, 384], strides = [1, 1]} : vector<1x512xf32> to vector<1x384xf32>
    %81 = arith.negf %80 : vector<1x384xf32>
    %82 = math.exp %81 : vector<1x384xf32>
    %cst_32 = arith.constant 1.000000e+00 : f32
    %83 = vector.broadcast %cst_32 : f32 to vector<1x384xf32>
    %84 = arith.addf %83, %82 : vector<1x384xf32>
    %85 = arith.divf %83, %84 : vector<1x384xf32>
    %86 = vector.extract_strided_slice %85 {offsets = [0, 0], sizes = [1, 128], strides = [1, 1]} : vector<1x384xf32> to vector<1x128xf32>
    %87 = vector.extract_strided_slice %85 {offsets = [0, 128], sizes = [1, 128], strides = [1, 1]} : vector<1x384xf32> to vector<1x128xf32>
    %88 = vector.extract_strided_slice %85 {offsets = [0, 256], sizes = [1, 128], strides = [1, 1]} : vector<1x384xf32> to vector<1x128xf32>
    %89 = vector.extract_strided_slice %79 {offsets = [0, 384], sizes = [1, 128], strides = [1, 1]} : vector<1x512xf32> to vector<1x128xf32>
    %90 = math.tanh %89 : vector<1x128xf32>
    %91 = arith.mulf %87, %72 : vector<1x128xf32>
    %92 = arith.mulf %86, %90 : vector<1x128xf32>
    %93 = arith.addf %91, %92 : vector<1x128xf32>
    %94 = math.tanh %93 : vector<1x128xf32>
    %95 = arith.mulf %88, %94 : vector<1x128xf32>
    %c3_33 = arith.constant 3 : index
    %c0_34 = arith.constant 0 : index
    %96 = vector.load %arg6[%c3_33, %c0_34] : memref<24x128xf32, #tpu.memory_space<vmem>>, vector<1x128xf32>
    tpu.vector_store %arg6[%c3_33, %c0_34], %95 {strides = array<i32>} : memref<24x128xf32, #tpu.memory_space<vmem>>, vector<1x128xf32>,
    %c4 = arith.constant 4 : index
    %c0_35 = arith.constant 0 : index
    %97 = vector.load %arg7[%c4, %c0_35] : memref<24x512xf32, #tpu.memory_space<vmem>>, vector<1x512xf32>
    %98 = arith.truncf %95 : vector<1x128xf32> to vector<1x128xbf16>
    %cst_36 = arith.constant dense<0.000000e+00> : vector<1x512xf32>
    %99 = tpu.matmul %98, %10, %cst_36 {dimension_numbers = #tpu.dot_dimension_numbers<[1], [0], [0], [1], [0, 0, 1, 1], [], []>} : vector<1x128xbf16>, vector<128x512xbf16>, vector<1x512xf32> -> vector<1x512xf32>
    %100 = arith.addf %97, %99 : vector<1x512xf32>
    %101 = vector.extract_strided_slice %100 {offsets = [0, 0], sizes = [1, 384], strides = [1, 1]} : vector<1x512xf32> to vector<1x384xf32>
    %102 = arith.negf %101 : vector<1x384xf32>
    %103 = math.exp %102 : vector<1x384xf32>
    %cst_37 = arith.constant 1.000000e+00 : f32
    %104 = vector.broadcast %cst_37 : f32 to vector<1x384xf32>
    %105 = arith.addf %104, %103 : vector<1x384xf32>
    %106 = arith.divf %104, %105 : vector<1x384xf32>
    %107 = vector.extract_strided_slice %106 {offsets = [0, 0], sizes = [1, 128], strides = [1, 1]} : vector<1x384xf32> to vector<1x128xf32>
    %108 = vector.extract_strided_slice %106 {offsets = [0, 128], sizes = [1, 128], strides = [1, 1]} : vector<1x384xf32> to vector<1x128xf32>
    %109 = vector.extract_strided_slice %106 {offsets = [0, 256], sizes = [1, 128], strides = [1, 1]} : vector<1x384xf32> to vector<1x128xf32>
    %110 = vector.extract_strided_slice %100 {offsets = [0, 384], sizes = [1, 128], strides = [1, 1]} : vector<1x512xf32> to vector<1x128xf32>
    %111 = math.tanh %110 : vector<1x128xf32>
    %112 = arith.mulf %108, %93 : vector<1x128xf32>
    %113 = arith.mulf %107, %111 : vector<1x128xf32>
    %114 = arith.addf %112, %113 : vector<1x128xf32>
    %115 = math.tanh %114 : vector<1x128xf32>
    %116 = arith.mulf %109, %115 : vector<1x128xf32>
    %c4_38 = arith.constant 4 : index
    %c0_39 = arith.constant 0 : index
    %117 = vector.load %arg6[%c4_38, %c0_39] : memref<24x128xf32, #tpu.memory_space<vmem>>, vector<1x128xf32>
    tpu.vector_store %arg6[%c4_38, %c0_39], %116 {strides = array<i32>} : memref<24x128xf32, #tpu.memory_space<vmem>>, vector<1x128xf32>,
    %c5 = arith.constant 5 : index
    %c0_40 = arith.constant 0 : index
    %118 = vector.load %arg7[%c5, %c0_40] : memref<24x512xf32, #tpu.memory_space<vmem>>, vector<1x512xf32>
    %119 = arith.truncf %116 : vector<1x128xf32> to vector<1x128xbf16>
    %cst_41 = arith.constant dense<0.000000e+00> : vector<1x512xf32>
    %120 = tpu.matmul %119, %10, %cst_41 {dimension_numbers = #tpu.dot_dimension_numbers<[1], [0], [0], [1], [0, 0, 1, 1], [], []>} : vector<1x128xbf16>, vector<128x512xbf16>, vector<1x512xf32> -> vector<1x512xf32>
    %121 = arith.addf %118, %120 : vector<1x512xf32>
    %122 = vector.extract_strided_slice %121 {offsets = [0, 0], sizes = [1, 384], strides = [1, 1]} : vector<1x512xf32> to vector<1x384xf32>
    %123 = arith.negf %122 : vector<1x384xf32>
    %124 = math.exp %123 : vector<1x384xf32>
    %cst_42 = arith.constant 1.000000e+00 : f32
    %125 = vector.broadcast %cst_42 : f32 to vector<1x384xf32>
    %126 = arith.addf %125, %124 : vector<1x384xf32>
    %127 = arith.divf %125, %126 : vector<1x384xf32>
    %128 = vector.extract_strided_slice %127 {offsets = [0, 0], sizes = [1, 128], strides = [1, 1]} : vector<1x384xf32> to vector<1x128xf32>
    %129 = vector.extract_strided_slice %127 {offsets = [0, 128], sizes = [1, 128], strides = [1, 1]} : vector<1x384xf32> to vector<1x128xf32>
    %130 = vector.extract_strided_slice %127 {offsets = [0, 256], sizes = [1, 128], strides = [1, 1]} : vector<1x384xf32> to vector<1x128xf32>
    %131 = vector.extract_strided_slice %121 {offsets = [0, 384], sizes = [1, 128], strides = [1, 1]} : vector<1x512xf32> to vector<1x128xf32>
    %132 = math.tanh %131 : vector<1x128xf32>
    %133 = arith.mulf %129, %114 : vector<1x128xf32>
    %134 = arith.mulf %128, %132 : vector<1x128xf32>
    %135 = arith.addf %133, %134 : vector<1x128xf32>
    %136 = math.tanh %135 : vector<1x128xf32>
    %137 = arith.mulf %130, %136 : vector<1x128xf32>
    %c5_43 = arith.constant 5 : index
    %c0_44 = arith.constant 0 : index
    %138 = vector.load %arg6[%c5_43, %c0_44] : memref<24x128xf32, #tpu.memory_space<vmem>>, vector<1x128xf32>
    tpu.vector_store %arg6[%c5_43, %c0_44], %137 {strides = array<i32>} : memref<24x128xf32, #tpu.memory_space<vmem>>, vector<1x128xf32>,
    %c6 = arith.constant 6 : index
    %c0_45 = arith.constant 0 : index
    %139 = vector.load %arg7[%c6, %c0_45] : memref<24x512xf32, #tpu.memory_space<vmem>>, vector<1x512xf32>
    %140 = arith.truncf %137 : vector<1x128xf32> to vector<1x128xbf16>
    %cst_46 = arith.constant dense<0.000000e+00> : vector<1x512xf32>
    %141 = tpu.matmul %140, %10, %cst_46 {dimension_numbers = #tpu.dot_dimension_numbers<[1], [0], [0], [1], [0, 0, 1, 1], [], []>} : vector<1x128xbf16>, vector<128x512xbf16>, vector<1x512xf32> -> vector<1x512xf32>
    %142 = arith.addf %139, %141 : vector<1x512xf32>
    %143 = vector.extract_strided_slice %142 {offsets = [0, 0], sizes = [1, 384], strides = [1, 1]} : vector<1x512xf32> to vector<1x384xf32>
    %144 = arith.negf %143 : vector<1x384xf32>
    %145 = math.exp %144 : vector<1x384xf32>
    %cst_47 = arith.constant 1.000000e+00 : f32
    %146 = vector.broadcast %cst_47 : f32 to vector<1x384xf32>
    %147 = arith.addf %146, %145 : vector<1x384xf32>
    %148 = arith.divf %146, %147 : vector<1x384xf32>
    %149 = vector.extract_strided_slice %148 {offsets = [0, 0], sizes = [1, 128], strides = [1, 1]} : vector<1x384xf32> to vector<1x128xf32>
    %150 = vector.extract_strided_slice %148 {offsets = [0, 128], sizes = [1, 128], strides = [1, 1]} : vector<1x384xf32> to vector<1x128xf32>
    %151 = vector.extract_strided_slice %148 {offsets = [0, 256], sizes = [1, 128], strides = [1, 1]} : vector<1x384xf32> to vector<1x128xf32>
    %152 = vector.extract_strided_slice %142 {offsets = [0, 384], sizes = [1, 128], strides = [1, 1]} : vector<1x512xf32> to vector<1x128xf32>
    %153 = math.tanh %152 : vector<1x128xf32>
    %154 = arith.mulf %150, %135 : vector<1x128xf32>
    %155 = arith.mulf %149, %153 : vector<1x128xf32>
    %156 = arith.addf %154, %155 : vector<1x128xf32>
    %157 = math.tanh %156 : vector<1x128xf32>
    %158 = arith.mulf %151, %157 : vector<1x128xf32>
    %c6_48 = arith.constant 6 : index
    %c0_49 = arith.constant 0 : index
    %159 = vector.load %arg6[%c6_48, %c0_49] : memref<24x128xf32, #tpu.memory_space<vmem>>, vector<1x128xf32>
    tpu.vector_store %arg6[%c6_48, %c0_49], %158 {strides = array<i32>} : memref<24x128xf32, #tpu.memory_space<vmem>>, vector<1x128xf32>,
    %c7 = arith.constant 7 : index
    %c0_50 = arith.constant 0 : index
    %160 = vector.load %arg7[%c7, %c0_50] : memref<24x512xf32, #tpu.memory_space<vmem>>, vector<1x512xf32>
    %161 = arith.truncf %158 : vector<1x128xf32> to vector<1x128xbf16>
    %cst_51 = arith.constant dense<0.000000e+00> : vector<1x512xf32>
    %162 = tpu.matmul %161, %10, %cst_51 {dimension_numbers = #tpu.dot_dimension_numbers<[1], [0], [0], [1], [0, 0, 1, 1], [], []>} : vector<1x128xbf16>, vector<128x512xbf16>, vector<1x512xf32> -> vector<1x512xf32>
    %163 = arith.addf %160, %162 : vector<1x512xf32>
    %164 = vector.extract_strided_slice %163 {offsets = [0, 0], sizes = [1, 384], strides = [1, 1]} : vector<1x512xf32> to vector<1x384xf32>
    %165 = arith.negf %164 : vector<1x384xf32>
    %166 = math.exp %165 : vector<1x384xf32>
    %cst_52 = arith.constant 1.000000e+00 : f32
    %167 = vector.broadcast %cst_52 : f32 to vector<1x384xf32>
    %168 = arith.addf %167, %166 : vector<1x384xf32>
    %169 = arith.divf %167, %168 : vector<1x384xf32>
    %170 = vector.extract_strided_slice %169 {offsets = [0, 0], sizes = [1, 128], strides = [1, 1]} : vector<1x384xf32> to vector<1x128xf32>
    %171 = vector.extract_strided_slice %169 {offsets = [0, 128], sizes = [1, 128], strides = [1, 1]} : vector<1x384xf32> to vector<1x128xf32>
    %172 = vector.extract_strided_slice %169 {offsets = [0, 256], sizes = [1, 128], strides = [1, 1]} : vector<1x384xf32> to vector<1x128xf32>
    %173 = vector.extract_strided_slice %163 {offsets = [0, 384], sizes = [1, 128], strides = [1, 1]} : vector<1x512xf32> to vector<1x128xf32>
    %174 = math.tanh %173 : vector<1x128xf32>
    %175 = arith.mulf %171, %156 : vector<1x128xf32>
    %176 = arith.mulf %170, %174 : vector<1x128xf32>
    %177 = arith.addf %175, %176 : vector<1x128xf32>
    %178 = math.tanh %177 : vector<1x128xf32>
    %179 = arith.mulf %172, %178 : vector<1x128xf32>
    %c7_53 = arith.constant 7 : index
    %c0_54 = arith.constant 0 : index
    %180 = vector.load %arg6[%c7_53, %c0_54] : memref<24x128xf32, #tpu.memory_space<vmem>>, vector<1x128xf32>
    tpu.vector_store %arg6[%c7_53, %c0_54], %179 {strides = array<i32>} : memref<24x128xf32, #tpu.memory_space<vmem>>, vector<1x128xf32>,
    %c8 = arith.constant 8 : index
    %c0_55 = arith.constant 0 : index
    %181 = vector.load %arg7[%c8, %c0_55] : memref<24x512xf32, #tpu.memory_space<vmem>>, vector<1x512xf32>
    %182 = arith.truncf %179 : vector<1x128xf32> to vector<1x128xbf16>
    %cst_56 = arith.constant dense<0.000000e+00> : vector<1x512xf32>
    %183 = tpu.matmul %182, %10, %cst_56 {dimension_numbers = #tpu.dot_dimension_numbers<[1], [0], [0], [1], [0, 0, 1, 1], [], []>} : vector<1x128xbf16>, vector<128x512xbf16>, vector<1x512xf32> -> vector<1x512xf32>
    %184 = arith.addf %181, %183 : vector<1x512xf32>
    %185 = vector.extract_strided_slice %184 {offsets = [0, 0], sizes = [1, 384], strides = [1, 1]} : vector<1x512xf32> to vector<1x384xf32>
    %186 = arith.negf %185 : vector<1x384xf32>
    %187 = math.exp %186 : vector<1x384xf32>
    %cst_57 = arith.constant 1.000000e+00 : f32
    %188 = vector.broadcast %cst_57 : f32 to vector<1x384xf32>
    %189 = arith.addf %188, %187 : vector<1x384xf32>
    %190 = arith.divf %188, %189 : vector<1x384xf32>
    %191 = vector.extract_strided_slice %190 {offsets = [0, 0], sizes = [1, 128], strides = [1, 1]} : vector<1x384xf32> to vector<1x128xf32>
    %192 = vector.extract_strided_slice %190 {offsets = [0, 128], sizes = [1, 128], strides = [1, 1]} : vector<1x384xf32> to vector<1x128xf32>
    %193 = vector.extract_strided_slice %190 {offsets = [0, 256], sizes = [1, 128], strides = [1, 1]} : vector<1x384xf32> to vector<1x128xf32>
    %194 = vector.extract_strided_slice %184 {offsets = [0, 384], sizes = [1, 128], strides = [1, 1]} : vector<1x512xf32> to vector<1x128xf32>
    %195 = math.tanh %194 : vector<1x128xf32>
    %196 = arith.mulf %192, %177 : vector<1x128xf32>
    %197 = arith.mulf %191, %195 : vector<1x128xf32>
    %198 = arith.addf %196, %197 : vector<1x128xf32>
    %199 = math.tanh %198 : vector<1x128xf32>
    %200 = arith.mulf %193, %199 : vector<1x128xf32>
    %c8_58 = arith.constant 8 : index
    %c0_59 = arith.constant 0 : index
    %201 = vector.load %arg6[%c8_58, %c0_59] : memref<24x128xf32, #tpu.memory_space<vmem>>, vector<1x128xf32>
    tpu.vector_store %arg6[%c8_58, %c0_59], %200 {strides = array<i32>} : memref<24x128xf32, #tpu.memory_space<vmem>>, vector<1x128xf32>,
    %c9 = arith.constant 9 : index
    %c0_60 = arith.constant 0 : index
    %202 = vector.load %arg7[%c9, %c0_60] : memref<24x512xf32, #tpu.memory_space<vmem>>, vector<1x512xf32>
    %203 = arith.truncf %200 : vector<1x128xf32> to vector<1x128xbf16>
    %cst_61 = arith.constant dense<0.000000e+00> : vector<1x512xf32>
    %204 = tpu.matmul %203, %10, %cst_61 {dimension_numbers = #tpu.dot_dimension_numbers<[1], [0], [0], [1], [0, 0, 1, 1], [], []>} : vector<1x128xbf16>, vector<128x512xbf16>, vector<1x512xf32> -> vector<1x512xf32>
    %205 = arith.addf %202, %204 : vector<1x512xf32>
    %206 = vector.extract_strided_slice %205 {offsets = [0, 0], sizes = [1, 384], strides = [1, 1]} : vector<1x512xf32> to vector<1x384xf32>
    %207 = arith.negf %206 : vector<1x384xf32>
    %208 = math.exp %207 : vector<1x384xf32>
    %cst_62 = arith.constant 1.000000e+00 : f32
    %209 = vector.broadcast %cst_62 : f32 to vector<1x384xf32>
    %210 = arith.addf %209, %208 : vector<1x384xf32>
    %211 = arith.divf %209, %210 : vector<1x384xf32>
    %212 = vector.extract_strided_slice %211 {offsets = [0, 0], sizes = [1, 128], strides = [1, 1]} : vector<1x384xf32> to vector<1x128xf32>
    %213 = vector.extract_strided_slice %211 {offsets = [0, 128], sizes = [1, 128], strides = [1, 1]} : vector<1x384xf32> to vector<1x128xf32>
    %214 = vector.extract_strided_slice %211 {offsets = [0, 256], sizes = [1, 128], strides = [1, 1]} : vector<1x384xf32> to vector<1x128xf32>
    %215 = vector.extract_strided_slice %205 {offsets = [0, 384], sizes = [1, 128], strides = [1, 1]} : vector<1x512xf32> to vector<1x128xf32>
    %216 = math.tanh %215 : vector<1x128xf32>
    %217 = arith.mulf %213, %198 : vector<1x128xf32>
    %218 = arith.mulf %212, %216 : vector<1x128xf32>
    %219 = arith.addf %217, %218 : vector<1x128xf32>
    %220 = math.tanh %219 : vector<1x128xf32>
    %221 = arith.mulf %214, %220 : vector<1x128xf32>
    %c9_63 = arith.constant 9 : index
    %c0_64 = arith.constant 0 : index
    %222 = vector.load %arg6[%c9_63, %c0_64] : memref<24x128xf32, #tpu.memory_space<vmem>>, vector<1x128xf32>
    tpu.vector_store %arg6[%c9_63, %c0_64], %221 {strides = array<i32>} : memref<24x128xf32, #tpu.memory_space<vmem>>, vector<1x128xf32>,
    %c10 = arith.constant 10 : index
    %c0_65 = arith.constant 0 : index
    %223 = vector.load %arg7[%c10, %c0_65] : memref<24x512xf32, #tpu.memory_space<vmem>>, vector<1x512xf32>
    %224 = arith.truncf %221 : vector<1x128xf32> to vector<1x128xbf16>
    %cst_66 = arith.constant dense<0.000000e+00> : vector<1x512xf32>
    %225 = tpu.matmul %224, %10, %cst_66 {dimension_numbers = #tpu.dot_dimension_numbers<[1], [0], [0], [1], [0, 0, 1, 1], [], []>} : vector<1x128xbf16>, vector<128x512xbf16>, vector<1x512xf32> -> vector<1x512xf32>
    %226 = arith.addf %223, %225 : vector<1x512xf32>
    %227 = vector.extract_strided_slice %226 {offsets = [0, 0], sizes = [1, 384], strides = [1, 1]} : vector<1x512xf32> to vector<1x384xf32>
    %228 = arith.negf %227 : vector<1x384xf32>
    %229 = math.exp %228 : vector<1x384xf32>
    %cst_67 = arith.constant 1.000000e+00 : f32
    %230 = vector.broadcast %cst_67 : f32 to vector<1x384xf32>
    %231 = arith.addf %230, %229 : vector<1x384xf32>
    %232 = arith.divf %230, %231 : vector<1x384xf32>
    %233 = vector.extract_strided_slice %232 {offsets = [0, 0], sizes = [1, 128], strides = [1, 1]} : vector<1x384xf32> to vector<1x128xf32>
    %234 = vector.extract_strided_slice %232 {offsets = [0, 128], sizes = [1, 128], strides = [1, 1]} : vector<1x384xf32> to vector<1x128xf32>
    %235 = vector.extract_strided_slice %232 {offsets = [0, 256], sizes = [1, 128], strides = [1, 1]} : vector<1x384xf32> to vector<1x128xf32>
    %236 = vector.extract_strided_slice %226 {offsets = [0, 384], sizes = [1, 128], strides = [1, 1]} : vector<1x512xf32> to vector<1x128xf32>
    %237 = math.tanh %236 : vector<1x128xf32>
    %238 = arith.mulf %234, %219 : vector<1x128xf32>
    %239 = arith.mulf %233, %237 : vector<1x128xf32>
    %240 = arith.addf %238, %239 : vector<1x128xf32>
    %241 = math.tanh %240 : vector<1x128xf32>
    %242 = arith.mulf %235, %241 : vector<1x128xf32>
    %c10_68 = arith.constant 10 : index
    %c0_69 = arith.constant 0 : index
    %243 = vector.load %arg6[%c10_68, %c0_69] : memref<24x128xf32, #tpu.memory_space<vmem>>, vector<1x128xf32>
    tpu.vector_store %arg6[%c10_68, %c0_69], %242 {strides = array<i32>} : memref<24x128xf32, #tpu.memory_space<vmem>>, vector<1x128xf32>,
    %c11 = arith.constant 11 : index
    %c0_70 = arith.constant 0 : index
    %244 = vector.load %arg7[%c11, %c0_70] : memref<24x512xf32, #tpu.memory_space<vmem>>, vector<1x512xf32>
    %245 = arith.truncf %242 : vector<1x128xf32> to vector<1x128xbf16>
    %cst_71 = arith.constant dense<0.000000e+00> : vector<1x512xf32>
    %246 = tpu.matmul %245, %10, %cst_71 {dimension_numbers = #tpu.dot_dimension_numbers<[1], [0], [0], [1], [0, 0, 1, 1], [], []>} : vector<1x128xbf16>, vector<128x512xbf16>, vector<1x512xf32> -> vector<1x512xf32>
    %247 = arith.addf %244, %246 : vector<1x512xf32>
    %248 = vector.extract_strided_slice %247 {offsets = [0, 0], sizes = [1, 384], strides = [1, 1]} : vector<1x512xf32> to vector<1x384xf32>
    %249 = arith.negf %248 : vector<1x384xf32>
    %250 = math.exp %249 : vector<1x384xf32>
    %cst_72 = arith.constant 1.000000e+00 : f32
    %251 = vector.broadcast %cst_72 : f32 to vector<1x384xf32>
    %252 = arith.addf %251, %250 : vector<1x384xf32>
    %253 = arith.divf %251, %252 : vector<1x384xf32>
    %254 = vector.extract_strided_slice %253 {offsets = [0, 0], sizes = [1, 128], strides = [1, 1]} : vector<1x384xf32> to vector<1x128xf32>
    %255 = vector.extract_strided_slice %253 {offsets = [0, 128], sizes = [1, 128], strides = [1, 1]} : vector<1x384xf32> to vector<1x128xf32>
    %256 = vector.extract_strided_slice %253 {offsets = [0, 256], sizes = [1, 128], strides = [1, 1]} : vector<1x384xf32> to vector<1x128xf32>
    %257 = vector.extract_strided_slice %247 {offsets = [0, 384], sizes = [1, 128], strides = [1, 1]} : vector<1x512xf32> to vector<1x128xf32>
    %258 = math.tanh %257 : vector<1x128xf32>
    %259 = arith.mulf %255, %240 : vector<1x128xf32>
    %260 = arith.mulf %254, %258 : vector<1x128xf32>
    %261 = arith.addf %259, %260 : vector<1x128xf32>
    %262 = math.tanh %261 : vector<1x128xf32>
    %263 = arith.mulf %256, %262 : vector<1x128xf32>
    %c11_73 = arith.constant 11 : index
    %c0_74 = arith.constant 0 : index
    %264 = vector.load %arg6[%c11_73, %c0_74] : memref<24x128xf32, #tpu.memory_space<vmem>>, vector<1x128xf32>
    tpu.vector_store %arg6[%c11_73, %c0_74], %263 {strides = array<i32>} : memref<24x128xf32, #tpu.memory_space<vmem>>, vector<1x128xf32>,
    %c12 = arith.constant 12 : index
    %c0_75 = arith.constant 0 : index
    %265 = vector.load %arg7[%c12, %c0_75] : memref<24x512xf32, #tpu.memory_space<vmem>>, vector<1x512xf32>
    %266 = arith.truncf %263 : vector<1x128xf32> to vector<1x128xbf16>
    %cst_76 = arith.constant dense<0.000000e+00> : vector<1x512xf32>
    %267 = tpu.matmul %266, %10, %cst_76 {dimension_numbers = #tpu.dot_dimension_numbers<[1], [0], [0], [1], [0, 0, 1, 1], [], []>} : vector<1x128xbf16>, vector<128x512xbf16>, vector<1x512xf32> -> vector<1x512xf32>
    %268 = arith.addf %265, %267 : vector<1x512xf32>
    %269 = vector.extract_strided_slice %268 {offsets = [0, 0], sizes = [1, 384], strides = [1, 1]} : vector<1x512xf32> to vector<1x384xf32>
    %270 = arith.negf %269 : vector<1x384xf32>
    %271 = math.exp %270 : vector<1x384xf32>
    %cst_77 = arith.constant 1.000000e+00 : f32
    %272 = vector.broadcast %cst_77 : f32 to vector<1x384xf32>
    %273 = arith.addf %272, %271 : vector<1x384xf32>
    %274 = arith.divf %272, %273 : vector<1x384xf32>
    %275 = vector.extract_strided_slice %274 {offsets = [0, 0], sizes = [1, 128], strides = [1, 1]} : vector<1x384xf32> to vector<1x128xf32>
    %276 = vector.extract_strided_slice %274 {offsets = [0, 128], sizes = [1, 128], strides = [1, 1]} : vector<1x384xf32> to vector<1x128xf32>
    %277 = vector.extract_strided_slice %274 {offsets = [0, 256], sizes = [1, 128], strides = [1, 1]} : vector<1x384xf32> to vector<1x128xf32>
    %278 = vector.extract_strided_slice %268 {offsets = [0, 384], sizes = [1, 128], strides = [1, 1]} : vector<1x512xf32> to vector<1x128xf32>
    %279 = math.tanh %278 : vector<1x128xf32>
    %280 = arith.mulf %276, %261 : vector<1x128xf32>
    %281 = arith.mulf %275, %279 : vector<1x128xf32>
    %282 = arith.addf %280, %281 : vector<1x128xf32>
    %283 = math.tanh %282 : vector<1x128xf32>
    %284 = arith.mulf %277, %283 : vector<1x128xf32>
    %c12_78 = arith.constant 12 : index
    %c0_79 = arith.constant 0 : index
    %285 = vector.load %arg6[%c12_78, %c0_79] : memref<24x128xf32, #tpu.memory_space<vmem>>, vector<1x128xf32>
    tpu.vector_store %arg6[%c12_78, %c0_79], %284 {strides = array<i32>} : memref<24x128xf32, #tpu.memory_space<vmem>>, vector<1x128xf32>,
    %c13 = arith.constant 13 : index
    %c0_80 = arith.constant 0 : index
    %286 = vector.load %arg7[%c13, %c0_80] : memref<24x512xf32, #tpu.memory_space<vmem>>, vector<1x512xf32>
    %287 = arith.truncf %284 : vector<1x128xf32> to vector<1x128xbf16>
    %cst_81 = arith.constant dense<0.000000e+00> : vector<1x512xf32>
    %288 = tpu.matmul %287, %10, %cst_81 {dimension_numbers = #tpu.dot_dimension_numbers<[1], [0], [0], [1], [0, 0, 1, 1], [], []>} : vector<1x128xbf16>, vector<128x512xbf16>, vector<1x512xf32> -> vector<1x512xf32>
    %289 = arith.addf %286, %288 : vector<1x512xf32>
    %290 = vector.extract_strided_slice %289 {offsets = [0, 0], sizes = [1, 384], strides = [1, 1]} : vector<1x512xf32> to vector<1x384xf32>
    %291 = arith.negf %290 : vector<1x384xf32>
    %292 = math.exp %291 : vector<1x384xf32>
    %cst_82 = arith.constant 1.000000e+00 : f32
    %293 = vector.broadcast %cst_82 : f32 to vector<1x384xf32>
    %294 = arith.addf %293, %292 : vector<1x384xf32>
    %295 = arith.divf %293, %294 : vector<1x384xf32>
    %296 = vector.extract_strided_slice %295 {offsets = [0, 0], sizes = [1, 128], strides = [1, 1]} : vector<1x384xf32> to vector<1x128xf32>
    %297 = vector.extract_strided_slice %295 {offsets = [0, 128], sizes = [1, 128], strides = [1, 1]} : vector<1x384xf32> to vector<1x128xf32>
    %298 = vector.extract_strided_slice %295 {offsets = [0, 256], sizes = [1, 128], strides = [1, 1]} : vector<1x384xf32> to vector<1x128xf32>
    %299 = vector.extract_strided_slice %289 {offsets = [0, 384], sizes = [1, 128], strides = [1, 1]} : vector<1x512xf32> to vector<1x128xf32>
    %300 = math.tanh %299 : vector<1x128xf32>
    %301 = arith.mulf %297, %282 : vector<1x128xf32>
    %302 = arith.mulf %296, %300 : vector<1x128xf32>
    %303 = arith.addf %301, %302 : vector<1x128xf32>
    %304 = math.tanh %303 : vector<1x128xf32>
    %305 = arith.mulf %298, %304 : vector<1x128xf32>
    %c13_83 = arith.constant 13 : index
    %c0_84 = arith.constant 0 : index
    %306 = vector.load %arg6[%c13_83, %c0_84] : memref<24x128xf32, #tpu.memory_space<vmem>>, vector<1x128xf32>
    tpu.vector_store %arg6[%c13_83, %c0_84], %305 {strides = array<i32>} : memref<24x128xf32, #tpu.memory_space<vmem>>, vector<1x128xf32>,
    %c14 = arith.constant 14 : index
    %c0_85 = arith.constant 0 : index
    %307 = vector.load %arg7[%c14, %c0_85] : memref<24x512xf32, #tpu.memory_space<vmem>>, vector<1x512xf32>
    %308 = arith.truncf %305 : vector<1x128xf32> to vector<1x128xbf16>
    %cst_86 = arith.constant dense<0.000000e+00> : vector<1x512xf32>
    %309 = tpu.matmul %308, %10, %cst_86 {dimension_numbers = #tpu.dot_dimension_numbers<[1], [0], [0], [1], [0, 0, 1, 1], [], []>} : vector<1x128xbf16>, vector<128x512xbf16>, vector<1x512xf32> -> vector<1x512xf32>
    %310 = arith.addf %307, %309 : vector<1x512xf32>
    %311 = vector.extract_strided_slice %310 {offsets = [0, 0], sizes = [1, 384], strides = [1, 1]} : vector<1x512xf32> to vector<1x384xf32>
    %312 = arith.negf %311 : vector<1x384xf32>
    %313 = math.exp %312 : vector<1x384xf32>
    %cst_87 = arith.constant 1.000000e+00 : f32
    %314 = vector.broadcast %cst_87 : f32 to vector<1x384xf32>
    %315 = arith.addf %314, %313 : vector<1x384xf32>
    %316 = arith.divf %314, %315 : vector<1x384xf32>
    %317 = vector.extract_strided_slice %316 {offsets = [0, 0], sizes = [1, 128], strides = [1, 1]} : vector<1x384xf32> to vector<1x128xf32>
    %318 = vector.extract_strided_slice %316 {offsets = [0, 128], sizes = [1, 128], strides = [1, 1]} : vector<1x384xf32> to vector<1x128xf32>
    %319 = vector.extract_strided_slice %316 {offsets = [0, 256], sizes = [1, 128], strides = [1, 1]} : vector<1x384xf32> to vector<1x128xf32>
    %320 = vector.extract_strided_slice %310 {offsets = [0, 384], sizes = [1, 128], strides = [1, 1]} : vector<1x512xf32> to vector<1x128xf32>
    %321 = math.tanh %320 : vector<1x128xf32>
    %322 = arith.mulf %318, %303 : vector<1x128xf32>
    %323 = arith.mulf %317, %321 : vector<1x128xf32>
    %324 = arith.addf %322, %323 : vector<1x128xf32>
    %325 = math.tanh %324 : vector<1x128xf32>
    %326 = arith.mulf %319, %325 : vector<1x128xf32>
    %c14_88 = arith.constant 14 : index
    %c0_89 = arith.constant 0 : index
    %327 = vector.load %arg6[%c14_88, %c0_89] : memref<24x128xf32, #tpu.memory_space<vmem>>, vector<1x128xf32>
    tpu.vector_store %arg6[%c14_88, %c0_89], %326 {strides = array<i32>} : memref<24x128xf32, #tpu.memory_space<vmem>>, vector<1x128xf32>,
    %c15 = arith.constant 15 : index
    %c0_90 = arith.constant 0 : index
    %328 = vector.load %arg7[%c15, %c0_90] : memref<24x512xf32, #tpu.memory_space<vmem>>, vector<1x512xf32>
    %329 = arith.truncf %326 : vector<1x128xf32> to vector<1x128xbf16>
    %cst_91 = arith.constant dense<0.000000e+00> : vector<1x512xf32>
    %330 = tpu.matmul %329, %10, %cst_91 {dimension_numbers = #tpu.dot_dimension_numbers<[1], [0], [0], [1], [0, 0, 1, 1], [], []>} : vector<1x128xbf16>, vector<128x512xbf16>, vector<1x512xf32> -> vector<1x512xf32>
    %331 = arith.addf %328, %330 : vector<1x512xf32>
    %332 = vector.extract_strided_slice %331 {offsets = [0, 0], sizes = [1, 384], strides = [1, 1]} : vector<1x512xf32> to vector<1x384xf32>
    %333 = arith.negf %332 : vector<1x384xf32>
    %334 = math.exp %333 : vector<1x384xf32>
    %cst_92 = arith.constant 1.000000e+00 : f32
    %335 = vector.broadcast %cst_92 : f32 to vector<1x384xf32>
    %336 = arith.addf %335, %334 : vector<1x384xf32>
    %337 = arith.divf %335, %336 : vector<1x384xf32>
    %338 = vector.extract_strided_slice %337 {offsets = [0, 0], sizes = [1, 128], strides = [1, 1]} : vector<1x384xf32> to vector<1x128xf32>
    %339 = vector.extract_strided_slice %337 {offsets = [0, 128], sizes = [1, 128], strides = [1, 1]} : vector<1x384xf32> to vector<1x128xf32>
    %340 = vector.extract_strided_slice %337 {offsets = [0, 256], sizes = [1, 128], strides = [1, 1]} : vector<1x384xf32> to vector<1x128xf32>
    %341 = vector.extract_strided_slice %331 {offsets = [0, 384], sizes = [1, 128], strides = [1, 1]} : vector<1x512xf32> to vector<1x128xf32>
    %342 = math.tanh %341 : vector<1x128xf32>
    %343 = arith.mulf %339, %324 : vector<1x128xf32>
    %344 = arith.mulf %338, %342 : vector<1x128xf32>
    %345 = arith.addf %343, %344 : vector<1x128xf32>
    %346 = math.tanh %345 : vector<1x128xf32>
    %347 = arith.mulf %340, %346 : vector<1x128xf32>
    %c15_93 = arith.constant 15 : index
    %c0_94 = arith.constant 0 : index
    %348 = vector.load %arg6[%c15_93, %c0_94] : memref<24x128xf32, #tpu.memory_space<vmem>>, vector<1x128xf32>
    tpu.vector_store %arg6[%c15_93, %c0_94], %347 {strides = array<i32>} : memref<24x128xf32, #tpu.memory_space<vmem>>, vector<1x128xf32>,
    %c16 = arith.constant 16 : index
    %c0_95 = arith.constant 0 : index
    %349 = vector.load %arg7[%c16, %c0_95] : memref<24x512xf32, #tpu.memory_space<vmem>>, vector<1x512xf32>
    %350 = arith.truncf %347 : vector<1x128xf32> to vector<1x128xbf16>
    %cst_96 = arith.constant dense<0.000000e+00> : vector<1x512xf32>
    %351 = tpu.matmul %350, %10, %cst_96 {dimension_numbers = #tpu.dot_dimension_numbers<[1], [0], [0], [1], [0, 0, 1, 1], [], []>} : vector<1x128xbf16>, vector<128x512xbf16>, vector<1x512xf32> -> vector<1x512xf32>
    %352 = arith.addf %349, %351 : vector<1x512xf32>
    %353 = vector.extract_strided_slice %352 {offsets = [0, 0], sizes = [1, 384], strides = [1, 1]} : vector<1x512xf32> to vector<1x384xf32>
    %354 = arith.negf %353 : vector<1x384xf32>
    %355 = math.exp %354 : vector<1x384xf32>
    %cst_97 = arith.constant 1.000000e+00 : f32
    %356 = vector.broadcast %cst_97 : f32 to vector<1x384xf32>
    %357 = arith.addf %356, %355 : vector<1x384xf32>
    %358 = arith.divf %356, %357 : vector<1x384xf32>
    %359 = vector.extract_strided_slice %358 {offsets = [0, 0], sizes = [1, 128], strides = [1, 1]} : vector<1x384xf32> to vector<1x128xf32>
    %360 = vector.extract_strided_slice %358 {offsets = [0, 128], sizes = [1, 128], strides = [1, 1]} : vector<1x384xf32> to vector<1x128xf32>
    %361 = vector.extract_strided_slice %358 {offsets = [0, 256], sizes = [1, 128], strides = [1, 1]} : vector<1x384xf32> to vector<1x128xf32>
    %362 = vector.extract_strided_slice %352 {offsets = [0, 384], sizes = [1, 128], strides = [1, 1]} : vector<1x512xf32> to vector<1x128xf32>
    %363 = math.tanh %362 : vector<1x128xf32>
    %364 = arith.mulf %360, %345 : vector<1x128xf32>
    %365 = arith.mulf %359, %363 : vector<1x128xf32>
    %366 = arith.addf %364, %365 : vector<1x128xf32>
    %367 = math.tanh %366 : vector<1x128xf32>
    %368 = arith.mulf %361, %367 : vector<1x128xf32>
    %c16_98 = arith.constant 16 : index
    %c0_99 = arith.constant 0 : index
    %369 = vector.load %arg6[%c16_98, %c0_99] : memref<24x128xf32, #tpu.memory_space<vmem>>, vector<1x128xf32>
    tpu.vector_store %arg6[%c16_98, %c0_99], %368 {strides = array<i32>} : memref<24x128xf32, #tpu.memory_space<vmem>>, vector<1x128xf32>,
    %c17 = arith.constant 17 : index
    %c0_100 = arith.constant 0 : index
    %370 = vector.load %arg7[%c17, %c0_100] : memref<24x512xf32, #tpu.memory_space<vmem>>, vector<1x512xf32>
    %371 = arith.truncf %368 : vector<1x128xf32> to vector<1x128xbf16>
    %cst_101 = arith.constant dense<0.000000e+00> : vector<1x512xf32>
    %372 = tpu.matmul %371, %10, %cst_101 {dimension_numbers = #tpu.dot_dimension_numbers<[1], [0], [0], [1], [0, 0, 1, 1], [], []>} : vector<1x128xbf16>, vector<128x512xbf16>, vector<1x512xf32> -> vector<1x512xf32>
    %373 = arith.addf %370, %372 : vector<1x512xf32>
    %374 = vector.extract_strided_slice %373 {offsets = [0, 0], sizes = [1, 384], strides = [1, 1]} : vector<1x512xf32> to vector<1x384xf32>
    %375 = arith.negf %374 : vector<1x384xf32>
    %376 = math.exp %375 : vector<1x384xf32>
    %cst_102 = arith.constant 1.000000e+00 : f32
    %377 = vector.broadcast %cst_102 : f32 to vector<1x384xf32>
    %378 = arith.addf %377, %376 : vector<1x384xf32>
    %379 = arith.divf %377, %378 : vector<1x384xf32>
    %380 = vector.extract_strided_slice %379 {offsets = [0, 0], sizes = [1, 128], strides = [1, 1]} : vector<1x384xf32> to vector<1x128xf32>
    %381 = vector.extract_strided_slice %379 {offsets = [0, 128], sizes = [1, 128], strides = [1, 1]} : vector<1x384xf32> to vector<1x128xf32>
    %382 = vector.extract_strided_slice %379 {offsets = [0, 256], sizes = [1, 128], strides = [1, 1]} : vector<1x384xf32> to vector<1x128xf32>
    %383 = vector.extract_strided_slice %373 {offsets = [0, 384], sizes = [1, 128], strides = [1, 1]} : vector<1x512xf32> to vector<1x128xf32>
    %384 = math.tanh %383 : vector<1x128xf32>
    %385 = arith.mulf %381, %366 : vector<1x128xf32>
    %386 = arith.mulf %380, %384 : vector<1x128xf32>
    %387 = arith.addf %385, %386 : vector<1x128xf32>
    %388 = math.tanh %387 : vector<1x128xf32>
    %389 = arith.mulf %382, %388 : vector<1x128xf32>
    %c17_103 = arith.constant 17 : index
    %c0_104 = arith.constant 0 : index
    %390 = vector.load %arg6[%c17_103, %c0_104] : memref<24x128xf32, #tpu.memory_space<vmem>>, vector<1x128xf32>
    tpu.vector_store %arg6[%c17_103, %c0_104], %389 {strides = array<i32>} : memref<24x128xf32, #tpu.memory_space<vmem>>, vector<1x128xf32>,
    %c18 = arith.constant 18 : index
    %c0_105 = arith.constant 0 : index
    %391 = vector.load %arg7[%c18, %c0_105] : memref<24x512xf32, #tpu.memory_space<vmem>>, vector<1x512xf32>
    %392 = arith.truncf %389 : vector<1x128xf32> to vector<1x128xbf16>
    %cst_106 = arith.constant dense<0.000000e+00> : vector<1x512xf32>
    %393 = tpu.matmul %392, %10, %cst_106 {dimension_numbers = #tpu.dot_dimension_numbers<[1], [0], [0], [1], [0, 0, 1, 1], [], []>} : vector<1x128xbf16>, vector<128x512xbf16>, vector<1x512xf32> -> vector<1x512xf32>
    %394 = arith.addf %391, %393 : vector<1x512xf32>
    %395 = vector.extract_strided_slice %394 {offsets = [0, 0], sizes = [1, 384], strides = [1, 1]} : vector<1x512xf32> to vector<1x384xf32>
    %396 = arith.negf %395 : vector<1x384xf32>
    %397 = math.exp %396 : vector<1x384xf32>
    %cst_107 = arith.constant 1.000000e+00 : f32
    %398 = vector.broadcast %cst_107 : f32 to vector<1x384xf32>
    %399 = arith.addf %398, %397 : vector<1x384xf32>
    %400 = arith.divf %398, %399 : vector<1x384xf32>
    %401 = vector.extract_strided_slice %400 {offsets = [0, 0], sizes = [1, 128], strides = [1, 1]} : vector<1x384xf32> to vector<1x128xf32>
    %402 = vector.extract_strided_slice %400 {offsets = [0, 128], sizes = [1, 128], strides = [1, 1]} : vector<1x384xf32> to vector<1x128xf32>
    %403 = vector.extract_strided_slice %400 {offsets = [0, 256], sizes = [1, 128], strides = [1, 1]} : vector<1x384xf32> to vector<1x128xf32>
    %404 = vector.extract_strided_slice %394 {offsets = [0, 384], sizes = [1, 128], strides = [1, 1]} : vector<1x512xf32> to vector<1x128xf32>
    %405 = math.tanh %404 : vector<1x128xf32>
    %406 = arith.mulf %402, %387 : vector<1x128xf32>
    %407 = arith.mulf %401, %405 : vector<1x128xf32>
    %408 = arith.addf %406, %407 : vector<1x128xf32>
    %409 = math.tanh %408 : vector<1x128xf32>
    %410 = arith.mulf %403, %409 : vector<1x128xf32>
    %c18_108 = arith.constant 18 : index
    %c0_109 = arith.constant 0 : index
    %411 = vector.load %arg6[%c18_108, %c0_109] : memref<24x128xf32, #tpu.memory_space<vmem>>, vector<1x128xf32>
    tpu.vector_store %arg6[%c18_108, %c0_109], %410 {strides = array<i32>} : memref<24x128xf32, #tpu.memory_space<vmem>>, vector<1x128xf32>,
    %c19 = arith.constant 19 : index
    %c0_110 = arith.constant 0 : index
    %412 = vector.load %arg7[%c19, %c0_110] : memref<24x512xf32, #tpu.memory_space<vmem>>, vector<1x512xf32>
    %413 = arith.truncf %410 : vector<1x128xf32> to vector<1x128xbf16>
    %cst_111 = arith.constant dense<0.000000e+00> : vector<1x512xf32>
    %414 = tpu.matmul %413, %10, %cst_111 {dimension_numbers = #tpu.dot_dimension_numbers<[1], [0], [0], [1], [0, 0, 1, 1], [], []>} : vector<1x128xbf16>, vector<128x512xbf16>, vector<1x512xf32> -> vector<1x512xf32>
    %415 = arith.addf %412, %414 : vector<1x512xf32>
    %416 = vector.extract_strided_slice %415 {offsets = [0, 0], sizes = [1, 384], strides = [1, 1]} : vector<1x512xf32> to vector<1x384xf32>
    %417 = arith.negf %416 : vector<1x384xf32>
    %418 = math.exp %417 : vector<1x384xf32>
    %cst_112 = arith.constant 1.000000e+00 : f32
    %419 = vector.broadcast %cst_112 : f32 to vector<1x384xf32>
    %420 = arith.addf %419, %418 : vector<1x384xf32>
    %421 = arith.divf %419, %420 : vector<1x384xf32>
    %422 = vector.extract_strided_slice %421 {offsets = [0, 0], sizes = [1, 128], strides = [1, 1]} : vector<1x384xf32> to vector<1x128xf32>
    %423 = vector.extract_strided_slice %421 {offsets = [0, 128], sizes = [1, 128], strides = [1, 1]} : vector<1x384xf32> to vector<1x128xf32>
    %424 = vector.extract_strided_slice %421 {offsets = [0, 256], sizes = [1, 128], strides = [1, 1]} : vector<1x384xf32> to vector<1x128xf32>
    %425 = vector.extract_strided_slice %415 {offsets = [0, 384], sizes = [1, 128], strides = [1, 1]} : vector<1x512xf32> to vector<1x128xf32>
    %426 = math.tanh %425 : vector<1x128xf32>
    %427 = arith.mulf %423, %408 : vector<1x128xf32>
    %428 = arith.mulf %422, %426 : vector<1x128xf32>
    %429 = arith.addf %427, %428 : vector<1x128xf32>
    %430 = math.tanh %429 : vector<1x128xf32>
    %431 = arith.mulf %424, %430 : vector<1x128xf32>
    %c19_113 = arith.constant 19 : index
    %c0_114 = arith.constant 0 : index
    %432 = vector.load %arg6[%c19_113, %c0_114] : memref<24x128xf32, #tpu.memory_space<vmem>>, vector<1x128xf32>
    tpu.vector_store %arg6[%c19_113, %c0_114], %431 {strides = array<i32>} : memref<24x128xf32, #tpu.memory_space<vmem>>, vector<1x128xf32>,
    %c20 = arith.constant 20 : index
    %c0_115 = arith.constant 0 : index
    %433 = vector.load %arg7[%c20, %c0_115] : memref<24x512xf32, #tpu.memory_space<vmem>>, vector<1x512xf32>
    %434 = arith.truncf %431 : vector<1x128xf32> to vector<1x128xbf16>
    %cst_116 = arith.constant dense<0.000000e+00> : vector<1x512xf32>
    %435 = tpu.matmul %434, %10, %cst_116 {dimension_numbers = #tpu.dot_dimension_numbers<[1], [0], [0], [1], [0, 0, 1, 1], [], []>} : vector<1x128xbf16>, vector<128x512xbf16>, vector<1x512xf32> -> vector<1x512xf32>
    %436 = arith.addf %433, %435 : vector<1x512xf32>
    %437 = vector.extract_strided_slice %436 {offsets = [0, 0], sizes = [1, 384], strides = [1, 1]} : vector<1x512xf32> to vector<1x384xf32>
    %438 = arith.negf %437 : vector<1x384xf32>
    %439 = math.exp %438 : vector<1x384xf32>
    %cst_117 = arith.constant 1.000000e+00 : f32
    %440 = vector.broadcast %cst_117 : f32 to vector<1x384xf32>
    %441 = arith.addf %440, %439 : vector<1x384xf32>
    %442 = arith.divf %440, %441 : vector<1x384xf32>
    %443 = vector.extract_strided_slice %442 {offsets = [0, 0], sizes = [1, 128], strides = [1, 1]} : vector<1x384xf32> to vector<1x128xf32>
    %444 = vector.extract_strided_slice %442 {offsets = [0, 128], sizes = [1, 128], strides = [1, 1]} : vector<1x384xf32> to vector<1x128xf32>
    %445 = vector.extract_strided_slice %442 {offsets = [0, 256], sizes = [1, 128], strides = [1, 1]} : vector<1x384xf32> to vector<1x128xf32>
    %446 = vector.extract_strided_slice %436 {offsets = [0, 384], sizes = [1, 128], strides = [1, 1]} : vector<1x512xf32> to vector<1x128xf32>
    %447 = math.tanh %446 : vector<1x128xf32>
    %448 = arith.mulf %444, %429 : vector<1x128xf32>
    %449 = arith.mulf %443, %447 : vector<1x128xf32>
    %450 = arith.addf %448, %449 : vector<1x128xf32>
    %451 = math.tanh %450 : vector<1x128xf32>
    %452 = arith.mulf %445, %451 : vector<1x128xf32>
    %c20_118 = arith.constant 20 : index
    %c0_119 = arith.constant 0 : index
    %453 = vector.load %arg6[%c20_118, %c0_119] : memref<24x128xf32, #tpu.memory_space<vmem>>, vector<1x128xf32>
    tpu.vector_store %arg6[%c20_118, %c0_119], %452 {strides = array<i32>} : memref<24x128xf32, #tpu.memory_space<vmem>>, vector<1x128xf32>,
    %c21 = arith.constant 21 : index
    %c0_120 = arith.constant 0 : index
    %454 = vector.load %arg7[%c21, %c0_120] : memref<24x512xf32, #tpu.memory_space<vmem>>, vector<1x512xf32>
    %455 = arith.truncf %452 : vector<1x128xf32> to vector<1x128xbf16>
    %cst_121 = arith.constant dense<0.000000e+00> : vector<1x512xf32>
    %456 = tpu.matmul %455, %10, %cst_121 {dimension_numbers = #tpu.dot_dimension_numbers<[1], [0], [0], [1], [0, 0, 1, 1], [], []>} : vector<1x128xbf16>, vector<128x512xbf16>, vector<1x512xf32> -> vector<1x512xf32>
    %457 = arith.addf %454, %456 : vector<1x512xf32>
    %458 = vector.extract_strided_slice %457 {offsets = [0, 0], sizes = [1, 384], strides = [1, 1]} : vector<1x512xf32> to vector<1x384xf32>
    %459 = arith.negf %458 : vector<1x384xf32>
    %460 = math.exp %459 : vector<1x384xf32>
    %cst_122 = arith.constant 1.000000e+00 : f32
    %461 = vector.broadcast %cst_122 : f32 to vector<1x384xf32>
    %462 = arith.addf %461, %460 : vector<1x384xf32>
    %463 = arith.divf %461, %462 : vector<1x384xf32>
    %464 = vector.extract_strided_slice %463 {offsets = [0, 0], sizes = [1, 128], strides = [1, 1]} : vector<1x384xf32> to vector<1x128xf32>
    %465 = vector.extract_strided_slice %463 {offsets = [0, 128], sizes = [1, 128], strides = [1, 1]} : vector<1x384xf32> to vector<1x128xf32>
    %466 = vector.extract_strided_slice %463 {offsets = [0, 256], sizes = [1, 128], strides = [1, 1]} : vector<1x384xf32> to vector<1x128xf32>
    %467 = vector.extract_strided_slice %457 {offsets = [0, 384], sizes = [1, 128], strides = [1, 1]} : vector<1x512xf32> to vector<1x128xf32>
    %468 = math.tanh %467 : vector<1x128xf32>
    %469 = arith.mulf %465, %450 : vector<1x128xf32>
    %470 = arith.mulf %464, %468 : vector<1x128xf32>
    %471 = arith.addf %469, %470 : vector<1x128xf32>
    %472 = math.tanh %471 : vector<1x128xf32>
    %473 = arith.mulf %466, %472 : vector<1x128xf32>
    %c21_123 = arith.constant 21 : index
    %c0_124 = arith.constant 0 : index
    %474 = vector.load %arg6[%c21_123, %c0_124] : memref<24x128xf32, #tpu.memory_space<vmem>>, vector<1x128xf32>
    tpu.vector_store %arg6[%c21_123, %c0_124], %473 {strides = array<i32>} : memref<24x128xf32, #tpu.memory_space<vmem>>, vector<1x128xf32>,
    %c22 = arith.constant 22 : index
    %c0_125 = arith.constant 0 : index
    %475 = vector.load %arg7[%c22, %c0_125] : memref<24x512xf32, #tpu.memory_space<vmem>>, vector<1x512xf32>
    %476 = arith.truncf %473 : vector<1x128xf32> to vector<1x128xbf16>
    %cst_126 = arith.constant dense<0.000000e+00> : vector<1x512xf32>
    %477 = tpu.matmul %476, %10, %cst_126 {dimension_numbers = #tpu.dot_dimension_numbers<[1], [0], [0], [1], [0, 0, 1, 1], [], []>} : vector<1x128xbf16>, vector<128x512xbf16>, vector<1x512xf32> -> vector<1x512xf32>
    %478 = arith.addf %475, %477 : vector<1x512xf32>
    %479 = vector.extract_strided_slice %478 {offsets = [0, 0], sizes = [1, 384], strides = [1, 1]} : vector<1x512xf32> to vector<1x384xf32>
    %480 = arith.negf %479 : vector<1x384xf32>
    %481 = math.exp %480 : vector<1x384xf32>
    %cst_127 = arith.constant 1.000000e+00 : f32
    %482 = vector.broadcast %cst_127 : f32 to vector<1x384xf32>
    %483 = arith.addf %482, %481 : vector<1x384xf32>
    %484 = arith.divf %482, %483 : vector<1x384xf32>
    %485 = vector.extract_strided_slice %484 {offsets = [0, 0], sizes = [1, 128], strides = [1, 1]} : vector<1x384xf32> to vector<1x128xf32>
    %486 = vector.extract_strided_slice %484 {offsets = [0, 128], sizes = [1, 128], strides = [1, 1]} : vector<1x384xf32> to vector<1x128xf32>
    %487 = vector.extract_strided_slice %484 {offsets = [0, 256], sizes = [1, 128], strides = [1, 1]} : vector<1x384xf32> to vector<1x128xf32>
    %488 = vector.extract_strided_slice %478 {offsets = [0, 384], sizes = [1, 128], strides = [1, 1]} : vector<1x512xf32> to vector<1x128xf32>
    %489 = math.tanh %488 : vector<1x128xf32>
    %490 = arith.mulf %486, %471 : vector<1x128xf32>
    %491 = arith.mulf %485, %489 : vector<1x128xf32>
    %492 = arith.addf %490, %491 : vector<1x128xf32>
    %493 = math.tanh %492 : vector<1x128xf32>
    %494 = arith.mulf %487, %493 : vector<1x128xf32>
    %c22_128 = arith.constant 22 : index
    %c0_129 = arith.constant 0 : index
    %495 = vector.load %arg6[%c22_128, %c0_129] : memref<24x128xf32, #tpu.memory_space<vmem>>, vector<1x128xf32>
    tpu.vector_store %arg6[%c22_128, %c0_129], %494 {strides = array<i32>} : memref<24x128xf32, #tpu.memory_space<vmem>>, vector<1x128xf32>,
    %c23 = arith.constant 23 : index
    %c0_130 = arith.constant 0 : index
    %496 = vector.load %arg7[%c23, %c0_130] : memref<24x512xf32, #tpu.memory_space<vmem>>, vector<1x512xf32>
    %497 = arith.truncf %494 : vector<1x128xf32> to vector<1x128xbf16>
    %cst_131 = arith.constant dense<0.000000e+00> : vector<1x512xf32>
    %498 = tpu.matmul %497, %10, %cst_131 {dimension_numbers = #tpu.dot_dimension_numbers<[1], [0], [0], [1], [0, 0, 1, 1], [], []>} : vector<1x128xbf16>, vector<128x512xbf16>, vector<1x512xf32> -> vector<1x512xf32>
    %499 = arith.addf %496, %498 : vector<1x512xf32>
    %500 = vector.extract_strided_slice %499 {offsets = [0, 0], sizes = [1, 384], strides = [1, 1]} : vector<1x512xf32> to vector<1x384xf32>
    %501 = arith.negf %500 : vector<1x384xf32>
    %502 = math.exp %501 : vector<1x384xf32>
    %cst_132 = arith.constant 1.000000e+00 : f32
    %503 = vector.broadcast %cst_132 : f32 to vector<1x384xf32>
    %504 = arith.addf %503, %502 : vector<1x384xf32>
    %505 = arith.divf %503, %504 : vector<1x384xf32>
    %506 = vector.extract_strided_slice %505 {offsets = [0, 0], sizes = [1, 128], strides = [1, 1]} : vector<1x384xf32> to vector<1x128xf32>
    %507 = vector.extract_strided_slice %505 {offsets = [0, 128], sizes = [1, 128], strides = [1, 1]} : vector<1x384xf32> to vector<1x128xf32>
    %508 = vector.extract_strided_slice %505 {offsets = [0, 256], sizes = [1, 128], strides = [1, 1]} : vector<1x384xf32> to vector<1x128xf32>
    %509 = vector.extract_strided_slice %499 {offsets = [0, 384], sizes = [1, 128], strides = [1, 1]} : vector<1x512xf32> to vector<1x128xf32>
    %510 = math.tanh %509 : vector<1x128xf32>
    %511 = arith.mulf %507, %492 : vector<1x128xf32>
    %512 = arith.mulf %506, %510 : vector<1x128xf32>
    %513 = arith.addf %511, %512 : vector<1x128xf32>
    %514 = math.tanh %513 : vector<1x128xf32>
    %515 = arith.mulf %508, %514 : vector<1x128xf32>
    %c23_133 = arith.constant 23 : index
    %c0_134 = arith.constant 0 : index
    %516 = vector.load %arg6[%c23_133, %c0_134] : memref<24x128xf32, #tpu.memory_space<vmem>>, vector<1x128xf32>
    tpu.vector_store %arg6[%c23_133, %c0_134], %515 {strides = array<i32>} : memref<24x128xf32, #tpu.memory_space<vmem>>, vector<1x128xf32>,
    %c0_135 = arith.constant 0 : index
    %c0_136 = arith.constant 0 : index
    %517 = vector.load %arg6[%c0_135, %c0_136] : memref<24x128xf32, #tpu.memory_space<vmem>>, vector<24x128xf32>
    %518 = arith.truncf %517 : vector<24x128xf32> to vector<24x128xbf16>
    %c1_137 = arith.constant 1 : index
    %c0_138 = arith.constant 0 : index
    %c0_139 = arith.constant 0 : index
    %519 = vector.load %arg2[%c1_137, %c0_138, %c0_139] : memref<2x128x512xbf16, #tpu.memory_space<vmem>>, vector<1x128x512xbf16>
    %520 = vector.shape_cast %519 : vector<1x128x512xbf16> to vector<128x512xbf16>
    %cst_140 = arith.constant dense<0.000000e+00> : vector<24x512xf32>
    %521 = tpu.matmul %518, %520, %cst_140 {dimension_numbers = #tpu.dot_dimension_numbers<[1], [0], [0], [1], [0, 0, 1, 1], [], []>} : vector<24x128xbf16>, vector<128x512xbf16>, vector<24x512xf32> -> vector<24x512xf32>
    %c1_141 = arith.constant 1 : index
    %c0_142 = arith.constant 0 : index
    %c0_143 = arith.constant 0 : index
    %522 = vector.load %arg4[%c1_141, %c0_142, %c0_143] : memref<2x1x512xf32, #tpu.memory_space<vmem>>, vector<1x1x512xf32>
    %523 = vector.shape_cast %522 : vector<1x1x512xf32> to vector<1x512xf32>
    %524 = vector.broadcast %523 : vector<1x512xf32> to vector<24x512xf32>
    %525 = arith.addf %521, %524 : vector<24x512xf32>
    %c0_144 = arith.constant 0 : index
    %c0_145 = arith.constant 0 : index
    %526 = vector.load %arg7[%c0_144, %c0_145] : memref<24x512xf32, #tpu.memory_space<vmem>>, vector<24x512xf32>
    tpu.vector_store %arg7[%c0_144, %c0_145], %525 {strides = array<i32>} : memref<24x512xf32, #tpu.memory_space<vmem>>, vector<24x512xf32>,
    %c1_146 = arith.constant 1 : index
    %c0_147 = arith.constant 0 : index
    %c0_148 = arith.constant 0 : index
    %527 = vector.load %arg3[%c1_146, %c0_147, %c0_148] : memref<2x128x512xbf16, #tpu.memory_space<vmem>>, vector<1x128x512xbf16>
    %528 = vector.shape_cast %527 : vector<1x128x512xbf16> to vector<128x512xbf16>
    %cst_149 = arith.constant 0.000000e+00 : f32
    %529 = vector.broadcast %cst_149 : f32 to vector<1x128xf32>
    %cst_150 = arith.constant 0.000000e+00 : f32
    %530 = vector.broadcast %cst_150 : f32 to vector<1x128xf32>
    %c0_151 = arith.constant 0 : index
    %c0_152 = arith.constant 0 : index
    %531 = vector.load %arg7[%c0_151, %c0_152] : memref<24x512xf32, #tpu.memory_space<vmem>>, vector<1x512xf32>
    %532 = arith.truncf %529 : vector<1x128xf32> to vector<1x128xbf16>
    %cst_153 = arith.constant dense<0.000000e+00> : vector<1x512xf32>
    %533 = tpu.matmul %532, %528, %cst_153 {dimension_numbers = #tpu.dot_dimension_numbers<[1], [0], [0], [1], [0, 0, 1, 1], [], []>} : vector<1x128xbf16>, vector<128x512xbf16>, vector<1x512xf32> -> vector<1x512xf32>
    %534 = arith.addf %531, %533 : vector<1x512xf32>
    %535 = vector.extract_strided_slice %534 {offsets = [0, 0], sizes = [1, 384], strides = [1, 1]} : vector<1x512xf32> to vector<1x384xf32>
    %536 = arith.negf %535 : vector<1x384xf32>
    %537 = math.exp %536 : vector<1x384xf32>
    %cst_154 = arith.constant 1.000000e+00 : f32
    %538 = vector.broadcast %cst_154 : f32 to vector<1x384xf32>
    %539 = arith.addf %538, %537 : vector<1x384xf32>
    %540 = arith.divf %538, %539 : vector<1x384xf32>
    %541 = vector.extract_strided_slice %540 {offsets = [0, 0], sizes = [1, 128], strides = [1, 1]} : vector<1x384xf32> to vector<1x128xf32>
    %542 = vector.extract_strided_slice %540 {offsets = [0, 128], sizes = [1, 128], strides = [1, 1]} : vector<1x384xf32> to vector<1x128xf32>
    %543 = vector.extract_strided_slice %540 {offsets = [0, 256], sizes = [1, 128], strides = [1, 1]} : vector<1x384xf32> to vector<1x128xf32>
    %544 = vector.extract_strided_slice %534 {offsets = [0, 384], sizes = [1, 128], strides = [1, 1]} : vector<1x512xf32> to vector<1x128xf32>
    %545 = math.tanh %544 : vector<1x128xf32>
    %546 = arith.mulf %542, %530 : vector<1x128xf32>
    %547 = arith.mulf %541, %545 : vector<1x128xf32>
    %548 = arith.addf %546, %547 : vector<1x128xf32>
    %549 = math.tanh %548 : vector<1x128xf32>
    %550 = arith.mulf %543, %549 : vector<1x128xf32>
    %c1_155 = arith.constant 1 : index
    %c0_156 = arith.constant 0 : index
    %551 = vector.load %arg7[%c1_155, %c0_156] : memref<24x512xf32, #tpu.memory_space<vmem>>, vector<1x512xf32>
    %552 = arith.truncf %550 : vector<1x128xf32> to vector<1x128xbf16>
    %cst_157 = arith.constant dense<0.000000e+00> : vector<1x512xf32>
    %553 = tpu.matmul %552, %528, %cst_157 {dimension_numbers = #tpu.dot_dimension_numbers<[1], [0], [0], [1], [0, 0, 1, 1], [], []>} : vector<1x128xbf16>, vector<128x512xbf16>, vector<1x512xf32> -> vector<1x512xf32>
    %554 = arith.addf %551, %553 : vector<1x512xf32>
    %555 = vector.extract_strided_slice %554 {offsets = [0, 0], sizes = [1, 384], strides = [1, 1]} : vector<1x512xf32> to vector<1x384xf32>
    %556 = arith.negf %555 : vector<1x384xf32>
    %557 = math.exp %556 : vector<1x384xf32>
    %cst_158 = arith.constant 1.000000e+00 : f32
    %558 = vector.broadcast %cst_158 : f32 to vector<1x384xf32>
    %559 = arith.addf %558, %557 : vector<1x384xf32>
    %560 = arith.divf %558, %559 : vector<1x384xf32>
    %561 = vector.extract_strided_slice %560 {offsets = [0, 0], sizes = [1, 128], strides = [1, 1]} : vector<1x384xf32> to vector<1x128xf32>
    %562 = vector.extract_strided_slice %560 {offsets = [0, 128], sizes = [1, 128], strides = [1, 1]} : vector<1x384xf32> to vector<1x128xf32>
    %563 = vector.extract_strided_slice %560 {offsets = [0, 256], sizes = [1, 128], strides = [1, 1]} : vector<1x384xf32> to vector<1x128xf32>
    %564 = vector.extract_strided_slice %554 {offsets = [0, 384], sizes = [1, 128], strides = [1, 1]} : vector<1x512xf32> to vector<1x128xf32>
    %565 = math.tanh %564 : vector<1x128xf32>
    %566 = arith.mulf %562, %548 : vector<1x128xf32>
    %567 = arith.mulf %561, %565 : vector<1x128xf32>
    %568 = arith.addf %566, %567 : vector<1x128xf32>
    %569 = math.tanh %568 : vector<1x128xf32>
    %570 = arith.mulf %563, %569 : vector<1x128xf32>
    %c2_159 = arith.constant 2 : index
    %c0_160 = arith.constant 0 : index
    %571 = vector.load %arg7[%c2_159, %c0_160] : memref<24x512xf32, #tpu.memory_space<vmem>>, vector<1x512xf32>
    %572 = arith.truncf %570 : vector<1x128xf32> to vector<1x128xbf16>
    %cst_161 = arith.constant dense<0.000000e+00> : vector<1x512xf32>
    %573 = tpu.matmul %572, %528, %cst_161 {dimension_numbers = #tpu.dot_dimension_numbers<[1], [0], [0], [1], [0, 0, 1, 1], [], []>} : vector<1x128xbf16>, vector<128x512xbf16>, vector<1x512xf32> -> vector<1x512xf32>
    %574 = arith.addf %571, %573 : vector<1x512xf32>
    %575 = vector.extract_strided_slice %574 {offsets = [0, 0], sizes = [1, 384], strides = [1, 1]} : vector<1x512xf32> to vector<1x384xf32>
    %576 = arith.negf %575 : vector<1x384xf32>
    %577 = math.exp %576 : vector<1x384xf32>
    %cst_162 = arith.constant 1.000000e+00 : f32
    %578 = vector.broadcast %cst_162 : f32 to vector<1x384xf32>
    %579 = arith.addf %578, %577 : vector<1x384xf32>
    %580 = arith.divf %578, %579 : vector<1x384xf32>
    %581 = vector.extract_strided_slice %580 {offsets = [0, 0], sizes = [1, 128], strides = [1, 1]} : vector<1x384xf32> to vector<1x128xf32>
    %582 = vector.extract_strided_slice %580 {offsets = [0, 128], sizes = [1, 128], strides = [1, 1]} : vector<1x384xf32> to vector<1x128xf32>
    %583 = vector.extract_strided_slice %580 {offsets = [0, 256], sizes = [1, 128], strides = [1, 1]} : vector<1x384xf32> to vector<1x128xf32>
    %584 = vector.extract_strided_slice %574 {offsets = [0, 384], sizes = [1, 128], strides = [1, 1]} : vector<1x512xf32> to vector<1x128xf32>
    %585 = math.tanh %584 : vector<1x128xf32>
    %586 = arith.mulf %582, %568 : vector<1x128xf32>
    %587 = arith.mulf %581, %585 : vector<1x128xf32>
    %588 = arith.addf %586, %587 : vector<1x128xf32>
    %589 = math.tanh %588 : vector<1x128xf32>
    %590 = arith.mulf %583, %589 : vector<1x128xf32>
    %c3_163 = arith.constant 3 : index
    %c0_164 = arith.constant 0 : index
    %591 = vector.load %arg7[%c3_163, %c0_164] : memref<24x512xf32, #tpu.memory_space<vmem>>, vector<1x512xf32>
    %592 = arith.truncf %590 : vector<1x128xf32> to vector<1x128xbf16>
    %cst_165 = arith.constant dense<0.000000e+00> : vector<1x512xf32>
    %593 = tpu.matmul %592, %528, %cst_165 {dimension_numbers = #tpu.dot_dimension_numbers<[1], [0], [0], [1], [0, 0, 1, 1], [], []>} : vector<1x128xbf16>, vector<128x512xbf16>, vector<1x512xf32> -> vector<1x512xf32>
    %594 = arith.addf %591, %593 : vector<1x512xf32>
    %595 = vector.extract_strided_slice %594 {offsets = [0, 0], sizes = [1, 384], strides = [1, 1]} : vector<1x512xf32> to vector<1x384xf32>
    %596 = arith.negf %595 : vector<1x384xf32>
    %597 = math.exp %596 : vector<1x384xf32>
    %cst_166 = arith.constant 1.000000e+00 : f32
    %598 = vector.broadcast %cst_166 : f32 to vector<1x384xf32>
    %599 = arith.addf %598, %597 : vector<1x384xf32>
    %600 = arith.divf %598, %599 : vector<1x384xf32>
    %601 = vector.extract_strided_slice %600 {offsets = [0, 0], sizes = [1, 128], strides = [1, 1]} : vector<1x384xf32> to vector<1x128xf32>
    %602 = vector.extract_strided_slice %600 {offsets = [0, 128], sizes = [1, 128], strides = [1, 1]} : vector<1x384xf32> to vector<1x128xf32>
    %603 = vector.extract_strided_slice %600 {offsets = [0, 256], sizes = [1, 128], strides = [1, 1]} : vector<1x384xf32> to vector<1x128xf32>
    %604 = vector.extract_strided_slice %594 {offsets = [0, 384], sizes = [1, 128], strides = [1, 1]} : vector<1x512xf32> to vector<1x128xf32>
    %605 = math.tanh %604 : vector<1x128xf32>
    %606 = arith.mulf %602, %588 : vector<1x128xf32>
    %607 = arith.mulf %601, %605 : vector<1x128xf32>
    %608 = arith.addf %606, %607 : vector<1x128xf32>
    %609 = math.tanh %608 : vector<1x128xf32>
    %610 = arith.mulf %603, %609 : vector<1x128xf32>
    %c4_167 = arith.constant 4 : index
    %c0_168 = arith.constant 0 : index
    %611 = vector.load %arg7[%c4_167, %c0_168] : memref<24x512xf32, #tpu.memory_space<vmem>>, vector<1x512xf32>
    %612 = arith.truncf %610 : vector<1x128xf32> to vector<1x128xbf16>
    %cst_169 = arith.constant dense<0.000000e+00> : vector<1x512xf32>
    %613 = tpu.matmul %612, %528, %cst_169 {dimension_numbers = #tpu.dot_dimension_numbers<[1], [0], [0], [1], [0, 0, 1, 1], [], []>} : vector<1x128xbf16>, vector<128x512xbf16>, vector<1x512xf32> -> vector<1x512xf32>
    %614 = arith.addf %611, %613 : vector<1x512xf32>
    %615 = vector.extract_strided_slice %614 {offsets = [0, 0], sizes = [1, 384], strides = [1, 1]} : vector<1x512xf32> to vector<1x384xf32>
    %616 = arith.negf %615 : vector<1x384xf32>
    %617 = math.exp %616 : vector<1x384xf32>
    %cst_170 = arith.constant 1.000000e+00 : f32
    %618 = vector.broadcast %cst_170 : f32 to vector<1x384xf32>
    %619 = arith.addf %618, %617 : vector<1x384xf32>
    %620 = arith.divf %618, %619 : vector<1x384xf32>
    %621 = vector.extract_strided_slice %620 {offsets = [0, 0], sizes = [1, 128], strides = [1, 1]} : vector<1x384xf32> to vector<1x128xf32>
    %622 = vector.extract_strided_slice %620 {offsets = [0, 128], sizes = [1, 128], strides = [1, 1]} : vector<1x384xf32> to vector<1x128xf32>
    %623 = vector.extract_strided_slice %620 {offsets = [0, 256], sizes = [1, 128], strides = [1, 1]} : vector<1x384xf32> to vector<1x128xf32>
    %624 = vector.extract_strided_slice %614 {offsets = [0, 384], sizes = [1, 128], strides = [1, 1]} : vector<1x512xf32> to vector<1x128xf32>
    %625 = math.tanh %624 : vector<1x128xf32>
    %626 = arith.mulf %622, %608 : vector<1x128xf32>
    %627 = arith.mulf %621, %625 : vector<1x128xf32>
    %628 = arith.addf %626, %627 : vector<1x128xf32>
    %629 = math.tanh %628 : vector<1x128xf32>
    %630 = arith.mulf %623, %629 : vector<1x128xf32>
    %c5_171 = arith.constant 5 : index
    %c0_172 = arith.constant 0 : index
    %631 = vector.load %arg7[%c5_171, %c0_172] : memref<24x512xf32, #tpu.memory_space<vmem>>, vector<1x512xf32>
    %632 = arith.truncf %630 : vector<1x128xf32> to vector<1x128xbf16>
    %cst_173 = arith.constant dense<0.000000e+00> : vector<1x512xf32>
    %633 = tpu.matmul %632, %528, %cst_173 {dimension_numbers = #tpu.dot_dimension_numbers<[1], [0], [0], [1], [0, 0, 1, 1], [], []>} : vector<1x128xbf16>, vector<128x512xbf16>, vector<1x512xf32> -> vector<1x512xf32>
    %634 = arith.addf %631, %633 : vector<1x512xf32>
    %635 = vector.extract_strided_slice %634 {offsets = [0, 0], sizes = [1, 384], strides = [1, 1]} : vector<1x512xf32> to vector<1x384xf32>
    %636 = arith.negf %635 : vector<1x384xf32>
    %637 = math.exp %636 : vector<1x384xf32>
    %cst_174 = arith.constant 1.000000e+00 : f32
    %638 = vector.broadcast %cst_174 : f32 to vector<1x384xf32>
    %639 = arith.addf %638, %637 : vector<1x384xf32>
    %640 = arith.divf %638, %639 : vector<1x384xf32>
    %641 = vector.extract_strided_slice %640 {offsets = [0, 0], sizes = [1, 128], strides = [1, 1]} : vector<1x384xf32> to vector<1x128xf32>
    %642 = vector.extract_strided_slice %640 {offsets = [0, 128], sizes = [1, 128], strides = [1, 1]} : vector<1x384xf32> to vector<1x128xf32>
    %643 = vector.extract_strided_slice %640 {offsets = [0, 256], sizes = [1, 128], strides = [1, 1]} : vector<1x384xf32> to vector<1x128xf32>
    %644 = vector.extract_strided_slice %634 {offsets = [0, 384], sizes = [1, 128], strides = [1, 1]} : vector<1x512xf32> to vector<1x128xf32>
    %645 = math.tanh %644 : vector<1x128xf32>
    %646 = arith.mulf %642, %628 : vector<1x128xf32>
    %647 = arith.mulf %641, %645 : vector<1x128xf32>
    %648 = arith.addf %646, %647 : vector<1x128xf32>
    %649 = math.tanh %648 : vector<1x128xf32>
    %650 = arith.mulf %643, %649 : vector<1x128xf32>
    %c6_175 = arith.constant 6 : index
    %c0_176 = arith.constant 0 : index
    %651 = vector.load %arg7[%c6_175, %c0_176] : memref<24x512xf32, #tpu.memory_space<vmem>>, vector<1x512xf32>
    %652 = arith.truncf %650 : vector<1x128xf32> to vector<1x128xbf16>
    %cst_177 = arith.constant dense<0.000000e+00> : vector<1x512xf32>
    %653 = tpu.matmul %652, %528, %cst_177 {dimension_numbers = #tpu.dot_dimension_numbers<[1], [0], [0], [1], [0, 0, 1, 1], [], []>} : vector<1x128xbf16>, vector<128x512xbf16>, vector<1x512xf32> -> vector<1x512xf32>
    %654 = arith.addf %651, %653 : vector<1x512xf32>
    %655 = vector.extract_strided_slice %654 {offsets = [0, 0], sizes = [1, 384], strides = [1, 1]} : vector<1x512xf32> to vector<1x384xf32>
    %656 = arith.negf %655 : vector<1x384xf32>
    %657 = math.exp %656 : vector<1x384xf32>
    %cst_178 = arith.constant 1.000000e+00 : f32
    %658 = vector.broadcast %cst_178 : f32 to vector<1x384xf32>
    %659 = arith.addf %658, %657 : vector<1x384xf32>
    %660 = arith.divf %658, %659 : vector<1x384xf32>
    %661 = vector.extract_strided_slice %660 {offsets = [0, 0], sizes = [1, 128], strides = [1, 1]} : vector<1x384xf32> to vector<1x128xf32>
    %662 = vector.extract_strided_slice %660 {offsets = [0, 128], sizes = [1, 128], strides = [1, 1]} : vector<1x384xf32> to vector<1x128xf32>
    %663 = vector.extract_strided_slice %660 {offsets = [0, 256], sizes = [1, 128], strides = [1, 1]} : vector<1x384xf32> to vector<1x128xf32>
    %664 = vector.extract_strided_slice %654 {offsets = [0, 384], sizes = [1, 128], strides = [1, 1]} : vector<1x512xf32> to vector<1x128xf32>
    %665 = math.tanh %664 : vector<1x128xf32>
    %666 = arith.mulf %662, %648 : vector<1x128xf32>
    %667 = arith.mulf %661, %665 : vector<1x128xf32>
    %668 = arith.addf %666, %667 : vector<1x128xf32>
    %669 = math.tanh %668 : vector<1x128xf32>
    %670 = arith.mulf %663, %669 : vector<1x128xf32>
    %c7_179 = arith.constant 7 : index
    %c0_180 = arith.constant 0 : index
    %671 = vector.load %arg7[%c7_179, %c0_180] : memref<24x512xf32, #tpu.memory_space<vmem>>, vector<1x512xf32>
    %672 = arith.truncf %670 : vector<1x128xf32> to vector<1x128xbf16>
    %cst_181 = arith.constant dense<0.000000e+00> : vector<1x512xf32>
    %673 = tpu.matmul %672, %528, %cst_181 {dimension_numbers = #tpu.dot_dimension_numbers<[1], [0], [0], [1], [0, 0, 1, 1], [], []>} : vector<1x128xbf16>, vector<128x512xbf16>, vector<1x512xf32> -> vector<1x512xf32>
    %674 = arith.addf %671, %673 : vector<1x512xf32>
    %675 = vector.extract_strided_slice %674 {offsets = [0, 0], sizes = [1, 384], strides = [1, 1]} : vector<1x512xf32> to vector<1x384xf32>
    %676 = arith.negf %675 : vector<1x384xf32>
    %677 = math.exp %676 : vector<1x384xf32>
    %cst_182 = arith.constant 1.000000e+00 : f32
    %678 = vector.broadcast %cst_182 : f32 to vector<1x384xf32>
    %679 = arith.addf %678, %677 : vector<1x384xf32>
    %680 = arith.divf %678, %679 : vector<1x384xf32>
    %681 = vector.extract_strided_slice %680 {offsets = [0, 0], sizes = [1, 128], strides = [1, 1]} : vector<1x384xf32> to vector<1x128xf32>
    %682 = vector.extract_strided_slice %680 {offsets = [0, 128], sizes = [1, 128], strides = [1, 1]} : vector<1x384xf32> to vector<1x128xf32>
    %683 = vector.extract_strided_slice %680 {offsets = [0, 256], sizes = [1, 128], strides = [1, 1]} : vector<1x384xf32> to vector<1x128xf32>
    %684 = vector.extract_strided_slice %674 {offsets = [0, 384], sizes = [1, 128], strides = [1, 1]} : vector<1x512xf32> to vector<1x128xf32>
    %685 = math.tanh %684 : vector<1x128xf32>
    %686 = arith.mulf %682, %668 : vector<1x128xf32>
    %687 = arith.mulf %681, %685 : vector<1x128xf32>
    %688 = arith.addf %686, %687 : vector<1x128xf32>
    %689 = math.tanh %688 : vector<1x128xf32>
    %690 = arith.mulf %683, %689 : vector<1x128xf32>
    %c8_183 = arith.constant 8 : index
    %c0_184 = arith.constant 0 : index
    %691 = vector.load %arg7[%c8_183, %c0_184] : memref<24x512xf32, #tpu.memory_space<vmem>>, vector<1x512xf32>
    %692 = arith.truncf %690 : vector<1x128xf32> to vector<1x128xbf16>
    %cst_185 = arith.constant dense<0.000000e+00> : vector<1x512xf32>
    %693 = tpu.matmul %692, %528, %cst_185 {dimension_numbers = #tpu.dot_dimension_numbers<[1], [0], [0], [1], [0, 0, 1, 1], [], []>} : vector<1x128xbf16>, vector<128x512xbf16>, vector<1x512xf32> -> vector<1x512xf32>
    %694 = arith.addf %691, %693 : vector<1x512xf32>
    %695 = vector.extract_strided_slice %694 {offsets = [0, 0], sizes = [1, 384], strides = [1, 1]} : vector<1x512xf32> to vector<1x384xf32>
    %696 = arith.negf %695 : vector<1x384xf32>
    %697 = math.exp %696 : vector<1x384xf32>
    %cst_186 = arith.constant 1.000000e+00 : f32
    %698 = vector.broadcast %cst_186 : f32 to vector<1x384xf32>
    %699 = arith.addf %698, %697 : vector<1x384xf32>
    %700 = arith.divf %698, %699 : vector<1x384xf32>
    %701 = vector.extract_strided_slice %700 {offsets = [0, 0], sizes = [1, 128], strides = [1, 1]} : vector<1x384xf32> to vector<1x128xf32>
    %702 = vector.extract_strided_slice %700 {offsets = [0, 128], sizes = [1, 128], strides = [1, 1]} : vector<1x384xf32> to vector<1x128xf32>
    %703 = vector.extract_strided_slice %700 {offsets = [0, 256], sizes = [1, 128], strides = [1, 1]} : vector<1x384xf32> to vector<1x128xf32>
    %704 = vector.extract_strided_slice %694 {offsets = [0, 384], sizes = [1, 128], strides = [1, 1]} : vector<1x512xf32> to vector<1x128xf32>
    %705 = math.tanh %704 : vector<1x128xf32>
    %706 = arith.mulf %702, %688 : vector<1x128xf32>
    %707 = arith.mulf %701, %705 : vector<1x128xf32>
    %708 = arith.addf %706, %707 : vector<1x128xf32>
    %709 = math.tanh %708 : vector<1x128xf32>
    %710 = arith.mulf %703, %709 : vector<1x128xf32>
    %c9_187 = arith.constant 9 : index
    %c0_188 = arith.constant 0 : index
    %711 = vector.load %arg7[%c9_187, %c0_188] : memref<24x512xf32, #tpu.memory_space<vmem>>, vector<1x512xf32>
    %712 = arith.truncf %710 : vector<1x128xf32> to vector<1x128xbf16>
    %cst_189 = arith.constant dense<0.000000e+00> : vector<1x512xf32>
    %713 = tpu.matmul %712, %528, %cst_189 {dimension_numbers = #tpu.dot_dimension_numbers<[1], [0], [0], [1], [0, 0, 1, 1], [], []>} : vector<1x128xbf16>, vector<128x512xbf16>, vector<1x512xf32> -> vector<1x512xf32>
    %714 = arith.addf %711, %713 : vector<1x512xf32>
    %715 = vector.extract_strided_slice %714 {offsets = [0, 0], sizes = [1, 384], strides = [1, 1]} : vector<1x512xf32> to vector<1x384xf32>
    %716 = arith.negf %715 : vector<1x384xf32>
    %717 = math.exp %716 : vector<1x384xf32>
    %cst_190 = arith.constant 1.000000e+00 : f32
    %718 = vector.broadcast %cst_190 : f32 to vector<1x384xf32>
    %719 = arith.addf %718, %717 : vector<1x384xf32>
    %720 = arith.divf %718, %719 : vector<1x384xf32>
    %721 = vector.extract_strided_slice %720 {offsets = [0, 0], sizes = [1, 128], strides = [1, 1]} : vector<1x384xf32> to vector<1x128xf32>
    %722 = vector.extract_strided_slice %720 {offsets = [0, 128], sizes = [1, 128], strides = [1, 1]} : vector<1x384xf32> to vector<1x128xf32>
    %723 = vector.extract_strided_slice %720 {offsets = [0, 256], sizes = [1, 128], strides = [1, 1]} : vector<1x384xf32> to vector<1x128xf32>
    %724 = vector.extract_strided_slice %714 {offsets = [0, 384], sizes = [1, 128], strides = [1, 1]} : vector<1x512xf32> to vector<1x128xf32>
    %725 = math.tanh %724 : vector<1x128xf32>
    %726 = arith.mulf %722, %708 : vector<1x128xf32>
    %727 = arith.mulf %721, %725 : vector<1x128xf32>
    %728 = arith.addf %726, %727 : vector<1x128xf32>
    %729 = math.tanh %728 : vector<1x128xf32>
    %730 = arith.mulf %723, %729 : vector<1x128xf32>
    %c10_191 = arith.constant 10 : index
    %c0_192 = arith.constant 0 : index
    %731 = vector.load %arg7[%c10_191, %c0_192] : memref<24x512xf32, #tpu.memory_space<vmem>>, vector<1x512xf32>
    %732 = arith.truncf %730 : vector<1x128xf32> to vector<1x128xbf16>
    %cst_193 = arith.constant dense<0.000000e+00> : vector<1x512xf32>
    %733 = tpu.matmul %732, %528, %cst_193 {dimension_numbers = #tpu.dot_dimension_numbers<[1], [0], [0], [1], [0, 0, 1, 1], [], []>} : vector<1x128xbf16>, vector<128x512xbf16>, vector<1x512xf32> -> vector<1x512xf32>
    %734 = arith.addf %731, %733 : vector<1x512xf32>
    %735 = vector.extract_strided_slice %734 {offsets = [0, 0], sizes = [1, 384], strides = [1, 1]} : vector<1x512xf32> to vector<1x384xf32>
    %736 = arith.negf %735 : vector<1x384xf32>
    %737 = math.exp %736 : vector<1x384xf32>
    %cst_194 = arith.constant 1.000000e+00 : f32
    %738 = vector.broadcast %cst_194 : f32 to vector<1x384xf32>
    %739 = arith.addf %738, %737 : vector<1x384xf32>
    %740 = arith.divf %738, %739 : vector<1x384xf32>
    %741 = vector.extract_strided_slice %740 {offsets = [0, 0], sizes = [1, 128], strides = [1, 1]} : vector<1x384xf32> to vector<1x128xf32>
    %742 = vector.extract_strided_slice %740 {offsets = [0, 128], sizes = [1, 128], strides = [1, 1]} : vector<1x384xf32> to vector<1x128xf32>
    %743 = vector.extract_strided_slice %740 {offsets = [0, 256], sizes = [1, 128], strides = [1, 1]} : vector<1x384xf32> to vector<1x128xf32>
    %744 = vector.extract_strided_slice %734 {offsets = [0, 384], sizes = [1, 128], strides = [1, 1]} : vector<1x512xf32> to vector<1x128xf32>
    %745 = math.tanh %744 : vector<1x128xf32>
    %746 = arith.mulf %742, %728 : vector<1x128xf32>
    %747 = arith.mulf %741, %745 : vector<1x128xf32>
    %748 = arith.addf %746, %747 : vector<1x128xf32>
    %749 = math.tanh %748 : vector<1x128xf32>
    %750 = arith.mulf %743, %749 : vector<1x128xf32>
    %c11_195 = arith.constant 11 : index
    %c0_196 = arith.constant 0 : index
    %751 = vector.load %arg7[%c11_195, %c0_196] : memref<24x512xf32, #tpu.memory_space<vmem>>, vector<1x512xf32>
    %752 = arith.truncf %750 : vector<1x128xf32> to vector<1x128xbf16>
    %cst_197 = arith.constant dense<0.000000e+00> : vector<1x512xf32>
    %753 = tpu.matmul %752, %528, %cst_197 {dimension_numbers = #tpu.dot_dimension_numbers<[1], [0], [0], [1], [0, 0, 1, 1], [], []>} : vector<1x128xbf16>, vector<128x512xbf16>, vector<1x512xf32> -> vector<1x512xf32>
    %754 = arith.addf %751, %753 : vector<1x512xf32>
    %755 = vector.extract_strided_slice %754 {offsets = [0, 0], sizes = [1, 384], strides = [1, 1]} : vector<1x512xf32> to vector<1x384xf32>
    %756 = arith.negf %755 : vector<1x384xf32>
    %757 = math.exp %756 : vector<1x384xf32>
    %cst_198 = arith.constant 1.000000e+00 : f32
    %758 = vector.broadcast %cst_198 : f32 to vector<1x384xf32>
    %759 = arith.addf %758, %757 : vector<1x384xf32>
    %760 = arith.divf %758, %759 : vector<1x384xf32>
    %761 = vector.extract_strided_slice %760 {offsets = [0, 0], sizes = [1, 128], strides = [1, 1]} : vector<1x384xf32> to vector<1x128xf32>
    %762 = vector.extract_strided_slice %760 {offsets = [0, 128], sizes = [1, 128], strides = [1, 1]} : vector<1x384xf32> to vector<1x128xf32>
    %763 = vector.extract_strided_slice %760 {offsets = [0, 256], sizes = [1, 128], strides = [1, 1]} : vector<1x384xf32> to vector<1x128xf32>
    %764 = vector.extract_strided_slice %754 {offsets = [0, 384], sizes = [1, 128], strides = [1, 1]} : vector<1x512xf32> to vector<1x128xf32>
    %765 = math.tanh %764 : vector<1x128xf32>
    %766 = arith.mulf %762, %748 : vector<1x128xf32>
    %767 = arith.mulf %761, %765 : vector<1x128xf32>
    %768 = arith.addf %766, %767 : vector<1x128xf32>
    %769 = math.tanh %768 : vector<1x128xf32>
    %770 = arith.mulf %763, %769 : vector<1x128xf32>
    %c0_199 = arith.constant 0 : index
    %c0_200 = arith.constant 0 : index
    %771 = vector.load %arg5[%c0_199, %c0_200] : memref<2x128xf32, #tpu.memory_space<vmem>>, vector<1x128xf32>
    tpu.vector_store %arg5[%c0_199, %c0_200], %770 {strides = array<i32>} : memref<2x128xf32, #tpu.memory_space<vmem>>, vector<1x128xf32>,
    %c12_201 = arith.constant 12 : index
    %c0_202 = arith.constant 0 : index
    %772 = vector.load %arg7[%c12_201, %c0_202] : memref<24x512xf32, #tpu.memory_space<vmem>>, vector<1x512xf32>
    %773 = arith.truncf %770 : vector<1x128xf32> to vector<1x128xbf16>
    %cst_203 = arith.constant dense<0.000000e+00> : vector<1x512xf32>
    %774 = tpu.matmul %773, %528, %cst_203 {dimension_numbers = #tpu.dot_dimension_numbers<[1], [0], [0], [1], [0, 0, 1, 1], [], []>} : vector<1x128xbf16>, vector<128x512xbf16>, vector<1x512xf32> -> vector<1x512xf32>
    %775 = arith.addf %772, %774 : vector<1x512xf32>
    %776 = vector.extract_strided_slice %775 {offsets = [0, 0], sizes = [1, 384], strides = [1, 1]} : vector<1x512xf32> to vector<1x384xf32>
    %777 = arith.negf %776 : vector<1x384xf32>
    %778 = math.exp %777 : vector<1x384xf32>
    %cst_204 = arith.constant 1.000000e+00 : f32
    %779 = vector.broadcast %cst_204 : f32 to vector<1x384xf32>
    %780 = arith.addf %779, %778 : vector<1x384xf32>
    %781 = arith.divf %779, %780 : vector<1x384xf32>
    %782 = vector.extract_strided_slice %781 {offsets = [0, 0], sizes = [1, 128], strides = [1, 1]} : vector<1x384xf32> to vector<1x128xf32>
    %783 = vector.extract_strided_slice %781 {offsets = [0, 128], sizes = [1, 128], strides = [1, 1]} : vector<1x384xf32> to vector<1x128xf32>
    %784 = vector.extract_strided_slice %781 {offsets = [0, 256], sizes = [1, 128], strides = [1, 1]} : vector<1x384xf32> to vector<1x128xf32>
    %785 = vector.extract_strided_slice %775 {offsets = [0, 384], sizes = [1, 128], strides = [1, 1]} : vector<1x512xf32> to vector<1x128xf32>
    %786 = math.tanh %785 : vector<1x128xf32>
    %787 = arith.mulf %783, %768 : vector<1x128xf32>
    %788 = arith.mulf %782, %786 : vector<1x128xf32>
    %789 = arith.addf %787, %788 : vector<1x128xf32>
    %790 = math.tanh %789 : vector<1x128xf32>
    %791 = arith.mulf %784, %790 : vector<1x128xf32>
    %c13_205 = arith.constant 13 : index
    %c0_206 = arith.constant 0 : index
    %792 = vector.load %arg7[%c13_205, %c0_206] : memref<24x512xf32, #tpu.memory_space<vmem>>, vector<1x512xf32>
    %793 = arith.truncf %791 : vector<1x128xf32> to vector<1x128xbf16>
    %cst_207 = arith.constant dense<0.000000e+00> : vector<1x512xf32>
    %794 = tpu.matmul %793, %528, %cst_207 {dimension_numbers = #tpu.dot_dimension_numbers<[1], [0], [0], [1], [0, 0, 1, 1], [], []>} : vector<1x128xbf16>, vector<128x512xbf16>, vector<1x512xf32> -> vector<1x512xf32>
    %795 = arith.addf %792, %794 : vector<1x512xf32>
    %796 = vector.extract_strided_slice %795 {offsets = [0, 0], sizes = [1, 384], strides = [1, 1]} : vector<1x512xf32> to vector<1x384xf32>
    %797 = arith.negf %796 : vector<1x384xf32>
    %798 = math.exp %797 : vector<1x384xf32>
    %cst_208 = arith.constant 1.000000e+00 : f32
    %799 = vector.broadcast %cst_208 : f32 to vector<1x384xf32>
    %800 = arith.addf %799, %798 : vector<1x384xf32>
    %801 = arith.divf %799, %800 : vector<1x384xf32>
    %802 = vector.extract_strided_slice %801 {offsets = [0, 0], sizes = [1, 128], strides = [1, 1]} : vector<1x384xf32> to vector<1x128xf32>
    %803 = vector.extract_strided_slice %801 {offsets = [0, 128], sizes = [1, 128], strides = [1, 1]} : vector<1x384xf32> to vector<1x128xf32>
    %804 = vector.extract_strided_slice %801 {offsets = [0, 256], sizes = [1, 128], strides = [1, 1]} : vector<1x384xf32> to vector<1x128xf32>
    %805 = vector.extract_strided_slice %795 {offsets = [0, 384], sizes = [1, 128], strides = [1, 1]} : vector<1x512xf32> to vector<1x128xf32>
    %806 = math.tanh %805 : vector<1x128xf32>
    %807 = arith.mulf %803, %789 : vector<1x128xf32>
    %808 = arith.mulf %802, %806 : vector<1x128xf32>
    %809 = arith.addf %807, %808 : vector<1x128xf32>
    %810 = math.tanh %809 : vector<1x128xf32>
    %811 = arith.mulf %804, %810 : vector<1x128xf32>
    %c14_209 = arith.constant 14 : index
    %c0_210 = arith.constant 0 : index
    %812 = vector.load %arg7[%c14_209, %c0_210] : memref<24x512xf32, #tpu.memory_space<vmem>>, vector<1x512xf32>
    %813 = arith.truncf %811 : vector<1x128xf32> to vector<1x128xbf16>
    %cst_211 = arith.constant dense<0.000000e+00> : vector<1x512xf32>
    %814 = tpu.matmul %813, %528, %cst_211 {dimension_numbers = #tpu.dot_dimension_numbers<[1], [0], [0], [1], [0, 0, 1, 1], [], []>} : vector<1x128xbf16>, vector<128x512xbf16>, vector<1x512xf32> -> vector<1x512xf32>
    %815 = arith.addf %812, %814 : vector<1x512xf32>
    %816 = vector.extract_strided_slice %815 {offsets = [0, 0], sizes = [1, 384], strides = [1, 1]} : vector<1x512xf32> to vector<1x384xf32>
    %817 = arith.negf %816 : vector<1x384xf32>
    %818 = math.exp %817 : vector<1x384xf32>
    %cst_212 = arith.constant 1.000000e+00 : f32
    %819 = vector.broadcast %cst_212 : f32 to vector<1x384xf32>
    %820 = arith.addf %819, %818 : vector<1x384xf32>
    %821 = arith.divf %819, %820 : vector<1x384xf32>
    %822 = vector.extract_strided_slice %821 {offsets = [0, 0], sizes = [1, 128], strides = [1, 1]} : vector<1x384xf32> to vector<1x128xf32>
    %823 = vector.extract_strided_slice %821 {offsets = [0, 128], sizes = [1, 128], strides = [1, 1]} : vector<1x384xf32> to vector<1x128xf32>
    %824 = vector.extract_strided_slice %821 {offsets = [0, 256], sizes = [1, 128], strides = [1, 1]} : vector<1x384xf32> to vector<1x128xf32>
    %825 = vector.extract_strided_slice %815 {offsets = [0, 384], sizes = [1, 128], strides = [1, 1]} : vector<1x512xf32> to vector<1x128xf32>
    %826 = math.tanh %825 : vector<1x128xf32>
    %827 = arith.mulf %823, %809 : vector<1x128xf32>
    %828 = arith.mulf %822, %826 : vector<1x128xf32>
    %829 = arith.addf %827, %828 : vector<1x128xf32>
    %830 = math.tanh %829 : vector<1x128xf32>
    %831 = arith.mulf %824, %830 : vector<1x128xf32>
    %c15_213 = arith.constant 15 : index
    %c0_214 = arith.constant 0 : index
    %832 = vector.load %arg7[%c15_213, %c0_214] : memref<24x512xf32, #tpu.memory_space<vmem>>, vector<1x512xf32>
    %833 = arith.truncf %831 : vector<1x128xf32> to vector<1x128xbf16>
    %cst_215 = arith.constant dense<0.000000e+00> : vector<1x512xf32>
    %834 = tpu.matmul %833, %528, %cst_215 {dimension_numbers = #tpu.dot_dimension_numbers<[1], [0], [0], [1], [0, 0, 1, 1], [], []>} : vector<1x128xbf16>, vector<128x512xbf16>, vector<1x512xf32> -> vector<1x512xf32>
    %835 = arith.addf %832, %834 : vector<1x512xf32>
    %836 = vector.extract_strided_slice %835 {offsets = [0, 0], sizes = [1, 384], strides = [1, 1]} : vector<1x512xf32> to vector<1x384xf32>
    %837 = arith.negf %836 : vector<1x384xf32>
    %838 = math.exp %837 : vector<1x384xf32>
    %cst_216 = arith.constant 1.000000e+00 : f32
    %839 = vector.broadcast %cst_216 : f32 to vector<1x384xf32>
    %840 = arith.addf %839, %838 : vector<1x384xf32>
    %841 = arith.divf %839, %840 : vector<1x384xf32>
    %842 = vector.extract_strided_slice %841 {offsets = [0, 0], sizes = [1, 128], strides = [1, 1]} : vector<1x384xf32> to vector<1x128xf32>
    %843 = vector.extract_strided_slice %841 {offsets = [0, 128], sizes = [1, 128], strides = [1, 1]} : vector<1x384xf32> to vector<1x128xf32>
    %844 = vector.extract_strided_slice %841 {offsets = [0, 256], sizes = [1, 128], strides = [1, 1]} : vector<1x384xf32> to vector<1x128xf32>
    %845 = vector.extract_strided_slice %835 {offsets = [0, 384], sizes = [1, 128], strides = [1, 1]} : vector<1x512xf32> to vector<1x128xf32>
    %846 = math.tanh %845 : vector<1x128xf32>
    %847 = arith.mulf %843, %829 : vector<1x128xf32>
    %848 = arith.mulf %842, %846 : vector<1x128xf32>
    %849 = arith.addf %847, %848 : vector<1x128xf32>
    %850 = math.tanh %849 : vector<1x128xf32>
    %851 = arith.mulf %844, %850 : vector<1x128xf32>
    %c16_217 = arith.constant 16 : index
    %c0_218 = arith.constant 0 : index
    %852 = vector.load %arg7[%c16_217, %c0_218] : memref<24x512xf32, #tpu.memory_space<vmem>>, vector<1x512xf32>
    %853 = arith.truncf %851 : vector<1x128xf32> to vector<1x128xbf16>
    %cst_219 = arith.constant dense<0.000000e+00> : vector<1x512xf32>
    %854 = tpu.matmul %853, %528, %cst_219 {dimension_numbers = #tpu.dot_dimension_numbers<[1], [0], [0], [1], [0, 0, 1, 1], [], []>} : vector<1x128xbf16>, vector<128x512xbf16>, vector<1x512xf32> -> vector<1x512xf32>
    %855 = arith.addf %852, %854 : vector<1x512xf32>
    %856 = vector.extract_strided_slice %855 {offsets = [0, 0], sizes = [1, 384], strides = [1, 1]} : vector<1x512xf32> to vector<1x384xf32>
    %857 = arith.negf %856 : vector<1x384xf32>
    %858 = math.exp %857 : vector<1x384xf32>
    %cst_220 = arith.constant 1.000000e+00 : f32
    %859 = vector.broadcast %cst_220 : f32 to vector<1x384xf32>
    %860 = arith.addf %859, %858 : vector<1x384xf32>
    %861 = arith.divf %859, %860 : vector<1x384xf32>
    %862 = vector.extract_strided_slice %861 {offsets = [0, 0], sizes = [1, 128], strides = [1, 1]} : vector<1x384xf32> to vector<1x128xf32>
    %863 = vector.extract_strided_slice %861 {offsets = [0, 128], sizes = [1, 128], strides = [1, 1]} : vector<1x384xf32> to vector<1x128xf32>
    %864 = vector.extract_strided_slice %861 {offsets = [0, 256], sizes = [1, 128], strides = [1, 1]} : vector<1x384xf32> to vector<1x128xf32>
    %865 = vector.extract_strided_slice %855 {offsets = [0, 384], sizes = [1, 128], strides = [1, 1]} : vector<1x512xf32> to vector<1x128xf32>
    %866 = math.tanh %865 : vector<1x128xf32>
    %867 = arith.mulf %863, %849 : vector<1x128xf32>
    %868 = arith.mulf %862, %866 : vector<1x128xf32>
    %869 = arith.addf %867, %868 : vector<1x128xf32>
    %870 = math.tanh %869 : vector<1x128xf32>
    %871 = arith.mulf %864, %870 : vector<1x128xf32>
    %c17_221 = arith.constant 17 : index
    %c0_222 = arith.constant 0 : index
    %872 = vector.load %arg7[%c17_221, %c0_222] : memref<24x512xf32, #tpu.memory_space<vmem>>, vector<1x512xf32>
    %873 = arith.truncf %871 : vector<1x128xf32> to vector<1x128xbf16>
    %cst_223 = arith.constant dense<0.000000e+00> : vector<1x512xf32>
    %874 = tpu.matmul %873, %528, %cst_223 {dimension_numbers = #tpu.dot_dimension_numbers<[1], [0], [0], [1], [0, 0, 1, 1], [], []>} : vector<1x128xbf16>, vector<128x512xbf16>, vector<1x512xf32> -> vector<1x512xf32>
    %875 = arith.addf %872, %874 : vector<1x512xf32>
    %876 = vector.extract_strided_slice %875 {offsets = [0, 0], sizes = [1, 384], strides = [1, 1]} : vector<1x512xf32> to vector<1x384xf32>
    %877 = arith.negf %876 : vector<1x384xf32>
    %878 = math.exp %877 : vector<1x384xf32>
    %cst_224 = arith.constant 1.000000e+00 : f32
    %879 = vector.broadcast %cst_224 : f32 to vector<1x384xf32>
    %880 = arith.addf %879, %878 : vector<1x384xf32>
    %881 = arith.divf %879, %880 : vector<1x384xf32>
    %882 = vector.extract_strided_slice %881 {offsets = [0, 0], sizes = [1, 128], strides = [1, 1]} : vector<1x384xf32> to vector<1x128xf32>
    %883 = vector.extract_strided_slice %881 {offsets = [0, 128], sizes = [1, 128], strides = [1, 1]} : vector<1x384xf32> to vector<1x128xf32>
    %884 = vector.extract_strided_slice %881 {offsets = [0, 256], sizes = [1, 128], strides = [1, 1]} : vector<1x384xf32> to vector<1x128xf32>
    %885 = vector.extract_strided_slice %875 {offsets = [0, 384], sizes = [1, 128], strides = [1, 1]} : vector<1x512xf32> to vector<1x128xf32>
    %886 = math.tanh %885 : vector<1x128xf32>
    %887 = arith.mulf %883, %869 : vector<1x128xf32>
    %888 = arith.mulf %882, %886 : vector<1x128xf32>
    %889 = arith.addf %887, %888 : vector<1x128xf32>
    %890 = math.tanh %889 : vector<1x128xf32>
    %891 = arith.mulf %884, %890 : vector<1x128xf32>
    %c18_225 = arith.constant 18 : index
    %c0_226 = arith.constant 0 : index
    %892 = vector.load %arg7[%c18_225, %c0_226] : memref<24x512xf32, #tpu.memory_space<vmem>>, vector<1x512xf32>
    %893 = arith.truncf %891 : vector<1x128xf32> to vector<1x128xbf16>
    %cst_227 = arith.constant dense<0.000000e+00> : vector<1x512xf32>
    %894 = tpu.matmul %893, %528, %cst_227 {dimension_numbers = #tpu.dot_dimension_numbers<[1], [0], [0], [1], [0, 0, 1, 1], [], []>} : vector<1x128xbf16>, vector<128x512xbf16>, vector<1x512xf32> -> vector<1x512xf32>
    %895 = arith.addf %892, %894 : vector<1x512xf32>
    %896 = vector.extract_strided_slice %895 {offsets = [0, 0], sizes = [1, 384], strides = [1, 1]} : vector<1x512xf32> to vector<1x384xf32>
    %897 = arith.negf %896 : vector<1x384xf32>
    %898 = math.exp %897 : vector<1x384xf32>
    %cst_228 = arith.constant 1.000000e+00 : f32
    %899 = vector.broadcast %cst_228 : f32 to vector<1x384xf32>
    %900 = arith.addf %899, %898 : vector<1x384xf32>
    %901 = arith.divf %899, %900 : vector<1x384xf32>
    %902 = vector.extract_strided_slice %901 {offsets = [0, 0], sizes = [1, 128], strides = [1, 1]} : vector<1x384xf32> to vector<1x128xf32>
    %903 = vector.extract_strided_slice %901 {offsets = [0, 128], sizes = [1, 128], strides = [1, 1]} : vector<1x384xf32> to vector<1x128xf32>
    %904 = vector.extract_strided_slice %901 {offsets = [0, 256], sizes = [1, 128], strides = [1, 1]} : vector<1x384xf32> to vector<1x128xf32>
    %905 = vector.extract_strided_slice %895 {offsets = [0, 384], sizes = [1, 128], strides = [1, 1]} : vector<1x512xf32> to vector<1x128xf32>
    %906 = math.tanh %905 : vector<1x128xf32>
    %907 = arith.mulf %903, %889 : vector<1x128xf32>
    %908 = arith.mulf %902, %906 : vector<1x128xf32>
    %909 = arith.addf %907, %908 : vector<1x128xf32>
    %910 = math.tanh %909 : vector<1x128xf32>
    %911 = arith.mulf %904, %910 : vector<1x128xf32>
    %c19_229 = arith.constant 19 : index
    %c0_230 = arith.constant 0 : index
    %912 = vector.load %arg7[%c19_229, %c0_230] : memref<24x512xf32, #tpu.memory_space<vmem>>, vector<1x512xf32>
    %913 = arith.truncf %911 : vector<1x128xf32> to vector<1x128xbf16>
    %cst_231 = arith.constant dense<0.000000e+00> : vector<1x512xf32>
    %914 = tpu.matmul %913, %528, %cst_231 {dimension_numbers = #tpu.dot_dimension_numbers<[1], [0], [0], [1], [0, 0, 1, 1], [], []>} : vector<1x128xbf16>, vector<128x512xbf16>, vector<1x512xf32> -> vector<1x512xf32>
    %915 = arith.addf %912, %914 : vector<1x512xf32>
    %916 = vector.extract_strided_slice %915 {offsets = [0, 0], sizes = [1, 384], strides = [1, 1]} : vector<1x512xf32> to vector<1x384xf32>
    %917 = arith.negf %916 : vector<1x384xf32>
    %918 = math.exp %917 : vector<1x384xf32>
    %cst_232 = arith.constant 1.000000e+00 : f32
    %919 = vector.broadcast %cst_232 : f32 to vector<1x384xf32>
    %920 = arith.addf %919, %918 : vector<1x384xf32>
    %921 = arith.divf %919, %920 : vector<1x384xf32>
    %922 = vector.extract_strided_slice %921 {offsets = [0, 0], sizes = [1, 128], strides = [1, 1]} : vector<1x384xf32> to vector<1x128xf32>
    %923 = vector.extract_strided_slice %921 {offsets = [0, 128], sizes = [1, 128], strides = [1, 1]} : vector<1x384xf32> to vector<1x128xf32>
    %924 = vector.extract_strided_slice %921 {offsets = [0, 256], sizes = [1, 128], strides = [1, 1]} : vector<1x384xf32> to vector<1x128xf32>
    %925 = vector.extract_strided_slice %915 {offsets = [0, 384], sizes = [1, 128], strides = [1, 1]} : vector<1x512xf32> to vector<1x128xf32>
    %926 = math.tanh %925 : vector<1x128xf32>
    %927 = arith.mulf %923, %909 : vector<1x128xf32>
    %928 = arith.mulf %922, %926 : vector<1x128xf32>
    %929 = arith.addf %927, %928 : vector<1x128xf32>
    %930 = math.tanh %929 : vector<1x128xf32>
    %931 = arith.mulf %924, %930 : vector<1x128xf32>
    %c20_233 = arith.constant 20 : index
    %c0_234 = arith.constant 0 : index
    %932 = vector.load %arg7[%c20_233, %c0_234] : memref<24x512xf32, #tpu.memory_space<vmem>>, vector<1x512xf32>
    %933 = arith.truncf %931 : vector<1x128xf32> to vector<1x128xbf16>
    %cst_235 = arith.constant dense<0.000000e+00> : vector<1x512xf32>
    %934 = tpu.matmul %933, %528, %cst_235 {dimension_numbers = #tpu.dot_dimension_numbers<[1], [0], [0], [1], [0, 0, 1, 1], [], []>} : vector<1x128xbf16>, vector<128x512xbf16>, vector<1x512xf32> -> vector<1x512xf32>
    %935 = arith.addf %932, %934 : vector<1x512xf32>
    %936 = vector.extract_strided_slice %935 {offsets = [0, 0], sizes = [1, 384], strides = [1, 1]} : vector<1x512xf32> to vector<1x384xf32>
    %937 = arith.negf %936 : vector<1x384xf32>
    %938 = math.exp %937 : vector<1x384xf32>
    %cst_236 = arith.constant 1.000000e+00 : f32
    %939 = vector.broadcast %cst_236 : f32 to vector<1x384xf32>
    %940 = arith.addf %939, %938 : vector<1x384xf32>
    %941 = arith.divf %939, %940 : vector<1x384xf32>
    %942 = vector.extract_strided_slice %941 {offsets = [0, 0], sizes = [1, 128], strides = [1, 1]} : vector<1x384xf32> to vector<1x128xf32>
    %943 = vector.extract_strided_slice %941 {offsets = [0, 128], sizes = [1, 128], strides = [1, 1]} : vector<1x384xf32> to vector<1x128xf32>
    %944 = vector.extract_strided_slice %941 {offsets = [0, 256], sizes = [1, 128], strides = [1, 1]} : vector<1x384xf32> to vector<1x128xf32>
    %945 = vector.extract_strided_slice %935 {offsets = [0, 384], sizes = [1, 128], strides = [1, 1]} : vector<1x512xf32> to vector<1x128xf32>
    %946 = math.tanh %945 : vector<1x128xf32>
    %947 = arith.mulf %943, %929 : vector<1x128xf32>
    %948 = arith.mulf %942, %946 : vector<1x128xf32>
    %949 = arith.addf %947, %948 : vector<1x128xf32>
    %950 = math.tanh %949 : vector<1x128xf32>
    %951 = arith.mulf %944, %950 : vector<1x128xf32>
    %c21_237 = arith.constant 21 : index
    %c0_238 = arith.constant 0 : index
    %952 = vector.load %arg7[%c21_237, %c0_238] : memref<24x512xf32, #tpu.memory_space<vmem>>, vector<1x512xf32>
    %953 = arith.truncf %951 : vector<1x128xf32> to vector<1x128xbf16>
    %cst_239 = arith.constant dense<0.000000e+00> : vector<1x512xf32>
    %954 = tpu.matmul %953, %528, %cst_239 {dimension_numbers = #tpu.dot_dimension_numbers<[1], [0], [0], [1], [0, 0, 1, 1], [], []>} : vector<1x128xbf16>, vector<128x512xbf16>, vector<1x512xf32> -> vector<1x512xf32>
    %955 = arith.addf %952, %954 : vector<1x512xf32>
    %956 = vector.extract_strided_slice %955 {offsets = [0, 0], sizes = [1, 384], strides = [1, 1]} : vector<1x512xf32> to vector<1x384xf32>
    %957 = arith.negf %956 : vector<1x384xf32>
    %958 = math.exp %957 : vector<1x384xf32>
    %cst_240 = arith.constant 1.000000e+00 : f32
    %959 = vector.broadcast %cst_240 : f32 to vector<1x384xf32>
    %960 = arith.addf %959, %958 : vector<1x384xf32>
    %961 = arith.divf %959, %960 : vector<1x384xf32>
    %962 = vector.extract_strided_slice %961 {offsets = [0, 0], sizes = [1, 128], strides = [1, 1]} : vector<1x384xf32> to vector<1x128xf32>
    %963 = vector.extract_strided_slice %961 {offsets = [0, 128], sizes = [1, 128], strides = [1, 1]} : vector<1x384xf32> to vector<1x128xf32>
    %964 = vector.extract_strided_slice %961 {offsets = [0, 256], sizes = [1, 128], strides = [1, 1]} : vector<1x384xf32> to vector<1x128xf32>
    %965 = vector.extract_strided_slice %955 {offsets = [0, 384], sizes = [1, 128], strides = [1, 1]} : vector<1x512xf32> to vector<1x128xf32>
    %966 = math.tanh %965 : vector<1x128xf32>
    %967 = arith.mulf %963, %949 : vector<1x128xf32>
    %968 = arith.mulf %962, %966 : vector<1x128xf32>
    %969 = arith.addf %967, %968 : vector<1x128xf32>
    %970 = math.tanh %969 : vector<1x128xf32>
    %971 = arith.mulf %964, %970 : vector<1x128xf32>
    %c22_241 = arith.constant 22 : index
    %c0_242 = arith.constant 0 : index
    %972 = vector.load %arg7[%c22_241, %c0_242] : memref<24x512xf32, #tpu.memory_space<vmem>>, vector<1x512xf32>
    %973 = arith.truncf %971 : vector<1x128xf32> to vector<1x128xbf16>
    %cst_243 = arith.constant dense<0.000000e+00> : vector<1x512xf32>
    %974 = tpu.matmul %973, %528, %cst_243 {dimension_numbers = #tpu.dot_dimension_numbers<[1], [0], [0], [1], [0, 0, 1, 1], [], []>} : vector<1x128xbf16>, vector<128x512xbf16>, vector<1x512xf32> -> vector<1x512xf32>
    %975 = arith.addf %972, %974 : vector<1x512xf32>
    %976 = vector.extract_strided_slice %975 {offsets = [0, 0], sizes = [1, 384], strides = [1, 1]} : vector<1x512xf32> to vector<1x384xf32>
    %977 = arith.negf %976 : vector<1x384xf32>
    %978 = math.exp %977 : vector<1x384xf32>
    %cst_244 = arith.constant 1.000000e+00 : f32
    %979 = vector.broadcast %cst_244 : f32 to vector<1x384xf32>
    %980 = arith.addf %979, %978 : vector<1x384xf32>
    %981 = arith.divf %979, %980 : vector<1x384xf32>
    %982 = vector.extract_strided_slice %981 {offsets = [0, 0], sizes = [1, 128], strides = [1, 1]} : vector<1x384xf32> to vector<1x128xf32>
    %983 = vector.extract_strided_slice %981 {offsets = [0, 128], sizes = [1, 128], strides = [1, 1]} : vector<1x384xf32> to vector<1x128xf32>
    %984 = vector.extract_strided_slice %981 {offsets = [0, 256], sizes = [1, 128], strides = [1, 1]} : vector<1x384xf32> to vector<1x128xf32>
    %985 = vector.extract_strided_slice %975 {offsets = [0, 384], sizes = [1, 128], strides = [1, 1]} : vector<1x512xf32> to vector<1x128xf32>
    %986 = math.tanh %985 : vector<1x128xf32>
    %987 = arith.mulf %983, %969 : vector<1x128xf32>
    %988 = arith.mulf %982, %986 : vector<1x128xf32>
    %989 = arith.addf %987, %988 : vector<1x128xf32>
    %990 = math.tanh %989 : vector<1x128xf32>
    %991 = arith.mulf %984, %990 : vector<1x128xf32>
    %c23_245 = arith.constant 23 : index
    %c0_246 = arith.constant 0 : index
    %992 = vector.load %arg7[%c23_245, %c0_246] : memref<24x512xf32, #tpu.memory_space<vmem>>, vector<1x512xf32>
    %993 = arith.truncf %991 : vector<1x128xf32> to vector<1x128xbf16>
    %cst_247 = arith.constant dense<0.000000e+00> : vector<1x512xf32>
    %994 = tpu.matmul %993, %528, %cst_247 {dimension_numbers = #tpu.dot_dimension_numbers<[1], [0], [0], [1], [0, 0, 1, 1], [], []>} : vector<1x128xbf16>, vector<128x512xbf16>, vector<1x512xf32> -> vector<1x512xf32>
    %995 = arith.addf %992, %994 : vector<1x512xf32>
    %996 = vector.extract_strided_slice %995 {offsets = [0, 0], sizes = [1, 384], strides = [1, 1]} : vector<1x512xf32> to vector<1x384xf32>
    %997 = arith.negf %996 : vector<1x384xf32>
    %998 = math.exp %997 : vector<1x384xf32>
    %cst_248 = arith.constant 1.000000e+00 : f32
    %999 = vector.broadcast %cst_248 : f32 to vector<1x384xf32>
    %1000 = arith.addf %999, %998 : vector<1x384xf32>
    %1001 = arith.divf %999, %1000 : vector<1x384xf32>
    %1002 = vector.extract_strided_slice %1001 {offsets = [0, 0], sizes = [1, 128], strides = [1, 1]} : vector<1x384xf32> to vector<1x128xf32>
    %1003 = vector.extract_strided_slice %1001 {offsets = [0, 128], sizes = [1, 128], strides = [1, 1]} : vector<1x384xf32> to vector<1x128xf32>
    %1004 = vector.extract_strided_slice %1001 {offsets = [0, 256], sizes = [1, 128], strides = [1, 1]} : vector<1x384xf32> to vector<1x128xf32>
    %1005 = vector.extract_strided_slice %995 {offsets = [0, 384], sizes = [1, 128], strides = [1, 1]} : vector<1x512xf32> to vector<1x128xf32>
    %1006 = math.tanh %1005 : vector<1x128xf32>
    %1007 = arith.mulf %1003, %989 : vector<1x128xf32>
    %1008 = arith.mulf %1002, %1006 : vector<1x128xf32>
    %1009 = arith.addf %1007, %1008 : vector<1x128xf32>
    %1010 = math.tanh %1009 : vector<1x128xf32>
    %1011 = arith.mulf %1004, %1010 : vector<1x128xf32>
    %c1_249 = arith.constant 1 : index
    %c0_250 = arith.constant 0 : index
    %1012 = vector.load %arg5[%c1_249, %c0_250] : memref<2x128xf32, #tpu.memory_space<vmem>>, vector<1x128xf32>
    tpu.vector_store %arg5[%c1_249, %c0_250], %1011 {strides = array<i32>} : memref<2x128xf32, #tpu.memory_space<vmem>>, vector<1x128xf32>,
    return
  }
  func.func @transform_0(%arg0: i32) -> (i32, i32) {
    %c0_i32 = arith.constant 0 : i32
    %c0_i32_0 = arith.constant 0 : i32
    %c0_i32_1 = arith.constant 0 : i32
    return %c0_i32, %c0_i32_0 : i32, i32
  }
  func.func @transform_1(%arg0: i32) -> (i32, i32, i32) {
    %c0_i32 = arith.constant 0 : i32
    %c0_i32_0 = arith.constant 0 : i32
    %c0_i32_1 = arith.constant 0 : i32
    %c0_i32_2 = arith.constant 0 : i32
    return %c0_i32, %c0_i32_0, %c0_i32_1 : i32, i32, i32
  }
  func.func @transform_2(%arg0: i32) -> (i32, i32, i32) {
    %c0_i32 = arith.constant 0 : i32
    %c0_i32_0 = arith.constant 0 : i32
    %c0_i32_1 = arith.constant 0 : i32
    %c0_i32_2 = arith.constant 0 : i32
    return %c0_i32, %c0_i32_0, %c0_i32_1 : i32, i32, i32
  }
  func.func @transform_3(%arg0: i32) -> (i32, i32, i32) {
    %c0_i32 = arith.constant 0 : i32
    %c0_i32_0 = arith.constant 0 : i32
    %c0_i32_1 = arith.constant 0 : i32
    %c0_i32_2 = arith.constant 0 : i32
    return %c0_i32, %c0_i32_0, %c0_i32_1 : i32, i32, i32
  }
  func.func @transform_4(%arg0: i32) -> (i32, i32) {
    %c0_i32 = arith.constant 0 : i32
    %c0_i32_0 = arith.constant 0 : i32
    %c0_i32_1 = arith.constant 0 : i32
    return %c0_i32, %c0_i32_0 : i32, i32
  }
}

</mosaic_0001>

<bundles_post_ra>
// kernel: tpu_custom_call.1
= control target key start
LH: loop header
LB: loop body
LE: loop exit
PB: predicated region body
PF: predicated region fallthrough
CT: control target
= control target key end

     0   :  { %9 = vsyncpa [#allocation5], 0  ;;  %s9201_s0 = inlined_call_operand.hbm [shape: bf16[24,128], index: 0, kind: input, shape index: {}]   ;;  %s9202_s1 = inlined_call_operand.hbm [shape: bf16[2,128,512], index: 1, kind: input, shape index: {}]   ;;  %s9203_s2 = inlined_call_operand.hbm [shape: bf16[2,128,512], index: 2, kind: input, shape index: {}]   ;;  %s9204_s3 = inlined_call_operand.hbm [shape: f32[2,1,512], index: 3, kind: input, shape index: {}]   ;;  %s9205_s4 = inlined_call_operand.hbm [shape: f32[2,128], index: 4, kind: output, shape index: {}]  }
   0x1   :  { %10 = vsyncpa [#allocation8], 0 }
   0x2   :  { %11 = vsyncpa [#allocation11], 0  ;;  %s30_s17 = sshll.u32 %s9202_s1, 4  ;;  %s31_s17 = int_to_ptr.hbm [resolvable:$true] %s30_s17 }
   0x3   :  { %12 = vsyncpa [#allocation6], 0  ;;  %s7095_s18 = smov [#allocation7]   ;;  %s17_s22 = sshll.u32 %s9201_s0, 4  ;;  %s18_s22 = int_to_ptr.hbm [resolvable:$true] %s17_s22 }
   0x4   :  { %s32_s19 = sshll.u32 %s7095_s18, 4  ;;  %s7096_s23 = smov 256   ;;  %s33_s19 = int_to_ptr.vmem [resolvable:$true] %s32_s19 }
   0x5   :  { %s7097_s24 = smov 16   ;;  %s7098_s25 = smov [#allocation4]  }
   0x6   :  { %38 = dma.hbm_to_vmem [thread:$0]  %s31_s17, 8192, %s33_s19, [#allocation8], %s7096_s23, %s7096_s23, %s7097_s24  }
   0x7   :  { %s19_s26 = sshll.u32 %s7098_s25, 4  ;;  %s7099_s27 = smov 64   ;;  %s20_s26 = int_to_ptr.vmem [resolvable:$true] %s19_s26 }
   0x8   :  { %s7100_s28 = smov 4   ;;  %s43_s30 = sshll.u32 %s9203_s2, 4  ;;  %s44_s30 = int_to_ptr.hbm [resolvable:$true] %s43_s30 }
   0x9   :  { %25 = dma.hbm_to_vmem [thread:$0]  %s18_s22, 192, %s20_s26, [#allocation5], %s7099_s27, %s7099_s27, %s7100_s28  }
   0xa   :  { %s7101_s5 = smov [#allocation9]   ;;  %s56_s8 = sshll.u32 %s9204_s3, 4  ;;  %s57_s8 = int_to_ptr.hbm [resolvable:$true] %s56_s8 }
   0xb   :  { %s45_s6 = sshll.u32 %s7101_s5, 4  ;;  %s7102_s9 = smov [#allocation10]   ;;  %s46_s6 = int_to_ptr.vmem [resolvable:$true] %s45_s6 }
   0xc   :  { %51 = dma.hbm_to_vmem [thread:$0]  %s44_s30, 8192, %s46_s6, [#allocation8], %s7096_s23, %s7096_s23, %s7097_s24  }
   0xd   :  { %s58_s10 = sshll.u32 %s7102_s9, 4  ;;  %s59_s10 = int_to_ptr.vmem [resolvable:$true] %s58_s10 }
   0xe   :  { %64 = dma.hbm_to_vmem [thread:$0]  %s57_s8, 128, %s59_s10, [#allocation11], %s7099_s27, %s7099_s27, %s7100_s28  }
   0xf   :  { %7087 = dma.done.wait [#allocation5], 192  }
  0x10   :  { %7088 = vsyncadd [#allocation5], 4294967104 }
  0x11   :  { %7089 = dma.done.wait [#allocation8], 16384  }
  0x12   :  { %7090 = vsyncadd [#allocation8], 4294950912 }
  0x13   :  { %7091 = dma.done.wait [#allocation11], 128  }
  0x14   :  { %7092 = vsyncadd [#allocation11], 4294967168  ;;  %v5998_v0 = vld [vmem:[#allocation7 + $0xe0] sm:$0xf]  ;;  %v6475_v1 = vld [vmem:[#allocation7 + $0xec] sm:$0xf0] }
  0x15   :  { %v6473_v2 = vld [vmem:[#allocation7 + $0xe4] sm:$0xf]  ;;  %v5999_v3 = vor.u32 %v6475_v1, %v5998_v0  ;;  %v6000_v4 = vld [vmem:[#allocation7 + $0xf0] sm:$0xf0]  ;;  %v6006_v5 = vld [vmem:[#allocation7 + $0xe8] sm:$0xf] }
  0x16   :  { %v6476_v6 = vld [vmem:[#allocation7 + $0xf4] sm:$0xf0]  ;;  %v6003_v7 = vor.u32 %v6473_v2, %v6000_v4  ;;  %v6474_v9 = vld [vmem:[#allocation7 + $0xec] sm:$0xf]  ;;  %v6008_v10 = vld [vmem:[#allocation7 + $0xf8] sm:$0xf0] }
  0x17   :  { %v6007_v8 = vor.u32 %v6476_v6, %v6006_v5  ;;  %v5982_v11 = vld [vmem:[#allocation7 + $0xc0] sm:$0xf]  ;;  %297 = vmatpush.bf16.msra.mxu0 %v5999_v3  ;;  %v6011_v12 = vor.u32 %v6474_v9, %v6008_v10  ;;  %v6471_v13 = vld [vmem:[#allocation7 + $0xcc] sm:$0xf0]  ;;  %v6469_v14 = vld [vmem:[#allocation7 + $0xc4] sm:$0xf] }
  0x18   :  { %v5984_v15 = vld [vmem:[#allocation7 + $0xd0] sm:$0xf0]  ;;  %315 = vmatpush.bf16.msra.mxu1 %v6003_v7  ;;  %v5983_v16 = vor.u32 %v6471_v13, %v5982_v11  ;;  %v5990_v18 = vld [vmem:[#allocation7 + $0xc8] sm:$0xf]  ;;  %v6472_v19 = vld [vmem:[#allocation7 + $0xd4] sm:$0xf0] }
  0x19   :  { %333 = vmatpush.bf16.msra.mxu2 %v6007_v8  ;;  %v5987_v17 = vor.u32 %v6469_v14, %v5984_v15  ;;  %v6470_v20 = vld [vmem:[#allocation7 + $0xcc] sm:$0xf]  ;;  %351 = vmatpush.bf16.msra.mxu3 %v6011_v12  ;;  %v5991_v21 = vor.u32 %v6472_v19, %v5990_v18  ;;  %v5992_v22 = vld [vmem:[#allocation7 + $0xd8] sm:$0xf0]  ;;  %v5966_v23 = vld [vmem:[#allocation7 + $0xa0] sm:$0xf] }
  0x1a   :  { %v6467_v24 = vld [vmem:[#allocation7 + $0xac] sm:$0xf0]  ;;  %v5995_v25 = vor.u32 %v6470_v20, %v5992_v22  ;;  %v6465_v26 = vld [vmem:[#allocation7 + $0xa4] sm:$0xf]  ;;  %v5968_v27 = vld [vmem:[#allocation7 + $0xb0] sm:$0xf0] }
  0x1b   :  { %v5974_v28 = vld [vmem:[#allocation7 + $0xa8] sm:$0xf]  ;;  %298 = vmatpush.bf16.msra.mxu0 %v5983_v16  ;;  %v5967_v29 = vor.u32 %v6467_v24, %v5966_v23  ;;  %v6468_v30 = vld [vmem:[#allocation7 + $0xb4] sm:$0xf0]  ;;  %v6466_v31 = vld [vmem:[#allocation7 + $0xac] sm:$0xf]  ;;  %v5971_v33 = vor.u32 %v6465_v26, %v5968_v27 }
  0x1c   :  { %v5976_v32 = vld [vmem:[#allocation7 + $0xb8] sm:$0xf0]  ;;  %316 = vmatpush.bf16.msra.mxu1 %v5987_v17  ;;  %v5975_v34 = vor.u32 %v6468_v30, %v5974_v28  ;;  %v5950_v35 = vld [vmem:[#allocation7 + $0x80] sm:$0xf]  ;;  %v6463_v36 = vld [vmem:[#allocation7 + $0x8c] sm:$0xf0] }
  0x1d   :  { %334 = vmatpush.bf16.msra.mxu2 %v5991_v21  ;;  %v6461_v37 = vld [vmem:[#allocation7 + $0x84] sm:$0xf]  ;;  %352 = vmatpush.bf16.msra.mxu3 %v5995_v25  ;;  %v5979_v38 = vor.u32 %v6466_v31, %v5976_v32  ;;  %v5952_v39 = vld [vmem:[#allocation7 + $0x90] sm:$0xf0]  ;;  %v5958_v40 = vld [vmem:[#allocation7 + $0x88] sm:$0xf]  ;;  %v5951_v44 = vor.u32 %v6463_v36, %v5950_v35 }
  0x1e   :  { %v6464_v41 = vld [vmem:[#allocation7 + $0x94] sm:$0xf0]  ;;  %v6462_v42 = vld [vmem:[#allocation7 + $0x8c] sm:$0xf]  ;;  %v5960_v43 = vld [vmem:[#allocation7 + $0x98] sm:$0xf0]  ;;  %v5955_v45 = vor.u32 %v6461_v37, %v5952_v39 }
  0x1f   :  { %299 = vmatpush.bf16.msra.mxu0 %v5967_v29  ;;  %v5959_v46 = vor.u32 %v6464_v41, %v5958_v40  ;;  %v5934_v47 = vld [vmem:[#allocation7 + $0x60] sm:$0xf]  ;;  %v6459_v48 = vld [vmem:[#allocation7 + $0x6c] sm:$0xf0]  ;;  %v6457_v49 = vld [vmem:[#allocation7 + $0x64] sm:$0xf]  ;;  %v5963_v50 = vor.u32 %v6462_v42, %v5960_v43 }
  0x20   :  { %317 = vmatpush.bf16.msra.mxu1 %v5971_v33  ;;  %v5936_v51 = vld [vmem:[#allocation7 + $0x70] sm:$0xf0]  ;;  %v5942_v52 = vld [vmem:[#allocation7 + $0x68] sm:$0xf]  ;;  %v6460_v53 = vld [vmem:[#allocation7 + $0x74] sm:$0xf0]  ;;  %v5935_v56 = vor.u32 %v6459_v48, %v5934_v47 }
  0x21   :  { %335 = vmatpush.bf16.msra.mxu2 %v5975_v34  ;;  %353 = vmatpush.bf16.msra.mxu3 %v5979_v38  ;;  %v6458_v54 = vld [vmem:[#allocation7 + $0x6c] sm:$0xf]  ;;  %v5944_v55 = vld [vmem:[#allocation7 + $0x78] sm:$0xf0]  ;;  %v5939_v57 = vor.u32 %v6457_v49, %v5936_v51  ;;  %v5943_v58 = vor.u32 %v6460_v53, %v5942_v52  ;;  %v5918_v59 = vld [vmem:[#allocation7 + $0x40] sm:$0xf] }
  0x22   :  { %v6455_v60 = vld [vmem:[#allocation7 + $0x4c] sm:$0xf0]  ;;  %v6453_v61 = vld [vmem:[#allocation7 + $0x44] sm:$0xf]  ;;  %v5947_v62 = vor.u32 %v6458_v54, %v5944_v55  ;;  %v5920_v63 = vld [vmem:[#allocation7 + $0x50] sm:$0xf0] }
  0x23   :  { %300 = vmatpush.bf16.msra.mxu0 %v5951_v44  ;;  %v5926_v0 = vld [vmem:[#allocation7 + $0x48] sm:$0xf]  ;;  %v6456_v1 = vld [vmem:[#allocation7 + $0x54] sm:$0xf0]  ;;  %v6454_v2 = vld [vmem:[#allocation7 + $0x4c] sm:$0xf]  ;;  %v5919_v4 = vor.u32 %v6455_v60, %v5918_v59  ;;  %v5923_v5 = vor.u32 %v6453_v61, %v5920_v63 }
  0x24   :  { %318 = vmatpush.bf16.msra.mxu1 %v5955_v45  ;;  %v5928_v3 = vld [vmem:[#allocation7 + $0x58] sm:$0xf0]  ;;  %v5927_v6 = vor.u32 %v6456_v1, %v5926_v0  ;;  %v5902_v7 = vld [vmem:[#allocation7 + $0x20] sm:$0xf]  ;;  %v6451_v8 = vld [vmem:[#allocation7 + $0x2c] sm:$0xf0] }
  0x25   :  { %336 = vmatpush.bf16.msra.mxu2 %v5959_v46  ;;  %354 = vmatpush.bf16.msra.mxu3 %v5963_v50  ;;  %v6449_v9 = vld [vmem:[#allocation7 + $0x24] sm:$0xf]  ;;  %v5931_v10 = vor.u32 %v6454_v2, %v5928_v3  ;;  %v5904_v11 = vld [vmem:[#allocation7 + $0x30] sm:$0xf0]  ;;  %v5910_v12 = vld [vmem:[#allocation7 + $0x28] sm:$0xf]  ;;  %v5903_v16 = vor.u32 %v6451_v8, %v5902_v7 }
  0x26   :  { %v6452_v13 = vld [vmem:[#allocation7 + $0x34] sm:$0xf0]  ;;  %v6450_v14 = vld [vmem:[#allocation7 + $0x2c] sm:$0xf]  ;;  %v5912_v15 = vld [vmem:[#allocation7 + $0x38] sm:$0xf0]  ;;  %v5907_v18 = vor.u32 %v6449_v9, %v5904_v11 }
  0x27   :  { %301 = vmatpush.bf16.msra.mxu0 %v5935_v56  ;;  %v5886_v17 = vld [vmem:[#allocation7] sm:$0xf]  ;;  %v5911_v19 = vor.u32 %v6452_v13, %v5910_v12  ;;  %v6447_v20 = vld [vmem:[#allocation7 + $0xc] sm:$0xf0]  ;;  %v6445_v21 = vld [vmem:[#allocation7 + $0x4] sm:$0xf]  ;;  %v5915_v23 = vor.u32 %v6450_v14, %v5912_v15 }
  0x28   :  { %319 = vmatpush.bf16.msra.mxu1 %v5939_v57  ;;  %v5888_v22 = vld [vmem:[#allocation7 + $0x10] sm:$0xf0]  ;;  %v5894_v24 = vld [vmem:[#allocation7 + $0x8] sm:$0xf]  ;;  %v6448_v25 = vld [vmem:[#allocation7 + $0x14] sm:$0xf0]  ;;  %v5887_v30 = vor.u32 %v6447_v20, %v5886_v17 }
  0x29   :  { %337 = vmatpush.bf16.msra.mxu2 %v5943_v58  ;;  %355 = vmatpush.bf16.msra.mxu3 %v5947_v62  ;;  %v6446_v26 = vld [vmem:[#allocation7 + $0xc] sm:$0xf]  ;;  %v5896_v27 = vld [vmem:[#allocation7 + $0x18] sm:$0xf0]  ;;  %v6134_v28 = vld [vmem:[#allocation9 + $0xe8] sm:$0xf]  ;;  %v5891_v33 = vor.u32 %v6445_v21, %v5888_v22  ;;  %v5895_v34 = vor.u32 %v6448_v25, %v5894_v24 }
  0x2a   :  { %v6508_v29 = vld [vmem:[#allocation9 + $0xf4] sm:$0xf0]  ;;  %v6506_v31 = vld [vmem:[#allocation9 + $0xec] sm:$0xf]  ;;  %v6136_v32 = vld [vmem:[#allocation9 + $0xf8] sm:$0xf0]  ;;  %v5899_v36 = vor.u32 %v6446_v26, %v5896_v27 }
  0x2b   :  { %302 = vmatpush.bf16.msra.mxu0 %v5919_v4  ;;  %v6444_v35 = vld [vmem:[#allocation4] sm:$0xff]  ;;  %v7142_v37 = vor.u32 %v6508_v29, %v6134_v28  ;;  %v6126_v38 = vld [vmem:[#allocation9 + $0xe0] sm:$0xf]  ;;  %v6507_v39 = vld [vmem:[#allocation9 + $0xec] sm:$0xf0]  ;;  %v7144_v41 = vor.u32 %v6506_v31, %v6136_v32  ;;  %vm633_vm0 = vcmask 1040384  }
  0x2c   :  { %320 = vmatpush.bf16.msra.mxu1 %v5923_v5  ;;  %v6505_v40 = vld [vmem:[#allocation9 + $0xe4] sm:$0xf]  ;;  %v6128_v42 = vld [vmem:[#allocation9 + $0xf0] sm:$0xf0]  ;;  %v6118_v43 = vld [vmem:[#allocation9 + $0xc8] sm:$0xf]  ;;  %v7146_v47 = vor.u32 %v6507_v39, %v6126_v38 }
  0x2d   :  { %338 = vmatpush.bf16.msra.mxu2 %v5927_v6  ;;  %356 = vmatpush.bf16.msra.mxu3 %v5931_v10  ;;  %v6504_v44 = vld [vmem:[#allocation9 + $0xd4] sm:$0xf0]  ;;  %v6502_v45 = vld [vmem:[#allocation9 + $0xcc] sm:$0xf]  ;;  %v6120_v46 = vld [vmem:[#allocation9 + $0xd8] sm:$0xf0]  ;;  %v7149_v48 = vor.u32 %v6505_v40, %v6128_v42 }
  0x2e   :  { %v7151_v49 = vor.u32 %v6504_v44, %v6118_v43  ;;  %v6110_v50 = vld [vmem:[#allocation9 + $0xc0] sm:$0xf]  ;;  %v6503_v51 = vld [vmem:[#allocation9 + $0xcc] sm:$0xf0]  ;;  %v6501_v52 = vld [vmem:[#allocation9 + $0xc4] sm:$0xf]  ;;  %v7154_v53 = vor.u32 %v6502_v45, %v6120_v46 }
  0x2f   :  { %303 = vmatpush.bf16.msra.mxu0 %v5903_v16  ;;  %v6112_v54 = vld [vmem:[#allocation9 + $0xd0] sm:$0xf0]  ;;  %v6102_v55 = vld [vmem:[#allocation9 + $0xa8] sm:$0xf]  ;;  %v6500_v56 = vld [vmem:[#allocation9 + $0xb4] sm:$0xf0]  ;;  %v7157_v59 = vor.u32 %v6503_v51, %v6110_v50 }
  0x30   :  { %321 = vmatpush.bf16.msra.mxu1 %v5907_v18  ;;  %v6498_v57 = vld [vmem:[#allocation9 + $0xac] sm:$0xf]  ;;  %v6104_v58 = vld [vmem:[#allocation9 + $0xb8] sm:$0xf0]  ;;  %v7161_v60 = vor.u32 %v6501_v52, %v6112_v54  ;;  %v7163_v61 = vor.u32 %v6500_v56, %v6102_v55  ;;  %v6094_v62 = vld [vmem:[#allocation9 + $0xa0] sm:$0xf] }
  0x31   :  { %339 = vmatpush.bf16.msra.mxu2 %v5911_v19  ;;  %357 = vmatpush.bf16.msra.mxu3 %v5915_v23  ;;  %v6499_v63 = vld [vmem:[#allocation9 + $0xac] sm:$0xf0]  ;;  %v6497_v0 = vld [vmem:[#allocation9 + $0xa4] sm:$0xf]  ;;  %v7166_v1 = vor.u32 %v6498_v57, %v6104_v58  ;;  %v6096_v2 = vld [vmem:[#allocation9 + $0xb0] sm:$0xf0] }
  0x32   :  { %v6086_v3 = vld [vmem:[#allocation9 + $0x88] sm:$0xf]  ;;  %v6496_v4 = vld [vmem:[#allocation9 + $0x94] sm:$0xf0]  ;;  %v6494_v5 = vld [vmem:[#allocation9 + $0x8c] sm:$0xf]  ;;  %v7169_v8 = vor.u32 %v6499_v63, %v6094_v62  ;;  %v7173_v9 = vor.u32 %v6497_v0, %v6096_v2 }
  0x33   :  { %304 = vmatpush.bf16.msra.mxu0 %v5887_v30  ;;  %v6088_v6 = vld [vmem:[#allocation9 + $0x98] sm:$0xf0]  ;;  %v7175_v10 = vor.u32 %v6496_v4, %v6086_v3  ;;  %v6078_v11 = vld [vmem:[#allocation9 + $0x80] sm:$0xf]  ;;  %v6495_v12 = vld [vmem:[#allocation9 + $0x8c] sm:$0xf0] }
  0x34   :  { %322 = vmatpush.bf16.msra.mxu1 %v5891_v33  ;;  %v84_v7 = vld [vmem:[#allocation4 + $0x8] sm:$0xf]  ;;  %v6493_v13 = vld [vmem:[#allocation9 + $0x84] sm:$0xf]  ;;  %v7178_v14 = vor.u32 %v6494_v5, %v6088_v6  ;;  %v6080_v15 = vld [vmem:[#allocation9 + $0x90] sm:$0xf0]  ;;  %v7181_v21 = vor.u32 %v6495_v12, %v6078_v11 }
  0x35   :  { %340 = vmatpush.bf16.msra.mxu2 %v5895_v34  ;;  %358 = vmatpush.bf16.msra.mxu3 %v5899_v36  ;;  %v132_v16 = vunpack.c.l.b16 %v84_v7  ;;  %v6070_v17 = vld [vmem:[#allocation9 + $0x68] sm:$0xf]  ;;  %v6492_v18 = vld [vmem:[#allocation9 + $0x74] sm:$0xf0]  ;;  %v6490_v19 = vld [vmem:[#allocation9 + $0x6c] sm:$0xf]  ;;  %v7185_v22 = vor.u32 %v6493_v13, %v6080_v15 }
  0x36   :  { %305 = vmatmul.bf16.vlgmr.msra.gmra.mxu0 %v6444_v35  ;;  %v6072_v20 = vld [vmem:[#allocation9 + $0x78] sm:$0xf0]  ;;  %v7187_v23 = vor.u32 %v6492_v18, %v6070_v17  ;;  %v6062_v24 = vld [vmem:[#allocation9 + $0x60] sm:$0xf]  ;;  %v6491_v25 = vld [vmem:[#allocation9 + $0x6c] sm:$0xf0] }
  0x37   :  { %323 = vmatmul.bf16.vlgmr.msra.gmra.mxu1 %v6444_v35  ;;  %574 = vmatpush.bf16.msrb.mxu0 %v7146_v47  ;;  %v6489_v26 = vld [vmem:[#allocation9 + $0x64] sm:$0xf]  ;;  %v134_v27 = vpack.c.b16 %v132_v16, %v132_v16  ;;  %v7190_v28 = vor.u32 %v6490_v19, %v6072_v20  ;;  %v6064_v29 = vld [vmem:[#allocation9 + $0x70] sm:$0xf0]  ;;  %v6054_v30 = vld [vmem:[#allocation9 + $0x48] sm:$0xf]  ;;  %v7193_v34 = vor.u32 %v6491_v25, %v6062_v24 }
  0x38   :  { %341 = vmatmul.bf16.vlgmr.msra.gmra.mxu2 %v6444_v35  ;;  %359 = vmatmul.bf16.vlgmr.msra.gmra.mxu3 %v6444_v35  ;;  %v6488_v31 = vld [vmem:[#allocation9 + $0x54] sm:$0xf0]  ;;  %v6486_v32 = vld [vmem:[#allocation9 + $0x4c] sm:$0xf]  ;;  %v6056_v33 = vld [vmem:[#allocation9 + $0x58] sm:$0xf0]  ;;  %v7197_v35 = vor.u32 %v6489_v26, %v6064_v29 }
  0x39   :  { %600 = vmatpush.bf16.msrb.mxu2 %v7142_v37  ;;  %613 = vmatpush.bf16.msrb.mxu3 %v7144_v41  ;;  %v7199_v36 = vor.u32 %v6488_v31, %v6054_v30  ;;  %v6046_v38 = vld [vmem:[#allocation9 + $0x40] sm:$0xf]  ;;  %v6487_v39 = vld [vmem:[#allocation9 + $0x4c] sm:$0xf0]  ;;  %v6485_v40 = vld [vmem:[#allocation9 + $0x44] sm:$0xf]  ;;  %v7202_v42 = vor.u32 %v6486_v32, %v6056_v33 }
  0x3a   :  { %587 = vmatpush.bf16.msrb.mxu1 %v7149_v48  ;;  %v6048_v43 = vld [vmem:[#allocation9 + $0x50] sm:$0xf0]  ;;  %v6038_v44 = vld [vmem:[#allocation9 + $0x28] sm:$0xf]  ;;  %v6484_v45 = vld [vmem:[#allocation9 + $0x34] sm:$0xf0]  ;;  %v7205_v51 = vor.u32 %v6487_v39, %v6046_v38 }
  0x3b   :  { %575 = vmatpush.bf16.msrb.mxu0 %v7157_v59  ;;  %v6482_v46 = vld [vmem:[#allocation9 + $0x2c] sm:$0xf]  ;;  %v6040_v50 = vld [vmem:[#allocation9 + $0x38] sm:$0xf0]  ;;  %v7209_v52 = vor.u32 %v6485_v40, %v6048_v43  ;;  %v7211_v54 = vor.u32 %v6484_v45, %v6038_v44  ;;  %v6030_v55 = vld [vmem:[#allocation9 + $0x20] sm:$0xf] }
  0x3c   :  { %v6483_v56 = vld [vmem:[#allocation9 + $0x2c] sm:$0xf0]  ;;  %v6481_v57 = vld [vmem:[#allocation9 + $0x24] sm:$0xf]  ;;  %v7214_v58 = vor.u32 %v6482_v46, %v6040_v50  ;;  %v6032_v62 = vld [vmem:[#allocation9 + $0x30] sm:$0xf0] }
  0x3d   :  { %601 = vmatpush.bf16.msrb.mxu2 %v7151_v49  ;;  %614 = vmatpush.bf16.msrb.mxu3 %v7154_v53  ;;  %v6022_v63 = vld [vmem:[#allocation9 + $0x8] sm:$0xf]  ;;  %v6480_v0 = vld [vmem:[#allocation9 + $0x14] sm:$0xf0]  ;;  %v6478_v2 = vld [vmem:[#allocation9 + $0xc] sm:$0xf]  ;;  %v7217_v4 = vor.u32 %v6483_v56, %v6030_v55  ;;  %v7221_v5 = vor.u32 %v6481_v57, %v6032_v62 }
  0x3e   :  { %588 = vmatpush.bf16.msrb.mxu1 %v7161_v60  ;;  %v6024_v3 = vld [vmem:[#allocation9 + $0x18] sm:$0xf0]  ;;  %v7223_v6 = vor.u32 %v6480_v0, %v6022_v63  ;;  %v6014_v7 = vld [vmem:[#allocation9] sm:$0xf]  ;;  %v6479_v11 = vld [vmem:[#allocation9 + $0xc] sm:$0xf0] }
  0x3f   :  { %576 = vmatpush.bf16.msrb.mxu0 %v7169_v8  ;;  %v7226_v12 = vor.u32 %v6478_v2, %v6024_v3  ;;  %v6477_v13 = vld [vmem:[#allocation9 + $0x4] sm:$0xf]  ;;  %v6016_v15 = vld [vmem:[#allocation9 + $0x10] sm:$0xf0]  ;;  %v7229_v16 = vor.u32 %v6479_v11, %v6014_v7  ;;  %v7103_v18 = vmov 0   ;;  %vm635_vm1 = vcmask 1042434  }
  0x40   :  { %v7233_v17 = vor.u32 %v6477_v13, %v6016_v15  ;;  %v117_v19 = vld [vmem:[#allocation10] sm:$0xf]  ;;  %vm637_vm2 = vcmask 1041408   ;;  %s7104_s2 = smov [#allocation12]   ;;  %s5868_s13 = sshll.u32 %s9205_s4, 4  ;;  %s5869_s13 = int_to_ptr.hbm [resolvable:$true] %s5868_s13 }
  0x41   :  { %602 = vmatpush.bf16.msrb.mxu2 %v7163_v61  ;;  %615 = vmatpush.bf16.msrb.mxu3 %v7166_v1  ;;  %v119_v20 = vperm.slane %v117_v19, 0  ;;  %v120_v24 = vperm.slane %v117_v19, 1  ;;  %v121_v30 = vperm.slane %v117_v19, 2  ;;  %v122_v31 = vperm.slane %v117_v19, 3  ;;  %s5866_s3 = sshll.u32 %s7104_s2, 4  ;;  %s5867_s3 = int_to_ptr.vmem [resolvable:$true] %s5866_s3 }
  0x42   :  { %589 = vmatpush.bf16.msrb.mxu1 %v7173_v9 }
  0x43   :  { %577 = vmatpush.bf16.msrb.mxu0 %v7181_v21 }
  0x45   :  { %603 = vmatpush.bf16.msrb.mxu2 %v7175_v10  ;;  %616 = vmatpush.bf16.msrb.mxu3 %v7178_v14 }
  0x46   :  { %590 = vmatpush.bf16.msrb.mxu1 %v7185_v22  ;;  %310 = vmatmul.bf16.gmra.mxu0 %v134_v27 }
  0x47   :  { %328 = vmatmul.bf16.gmra.mxu1 %v134_v27  ;;  %578 = vmatpush.bf16.msrb.mxu0 %v7193_v34 }
  0x48   :  { %346 = vmatmul.bf16.gmra.mxu2 %v134_v27  ;;  %364 = vmatmul.bf16.gmra.mxu3 %v134_v27 }
  0x49   :  { %604 = vmatpush.bf16.msrb.mxu2 %v7187_v23  ;;  %617 = vmatpush.bf16.msrb.mxu3 %v7190_v28 }
  0x4a   :  { %591 = vmatpush.bf16.msrb.mxu1 %v7197_v35 }
  0x4b   :  { %579 = vmatpush.bf16.msrb.mxu0 %v7205_v51 }
  0x4d   :  { %605 = vmatpush.bf16.msrb.mxu2 %v7199_v36  ;;  %618 = vmatpush.bf16.msrb.mxu3 %v7202_v42 }
  0x4e   :  { %592 = vmatpush.bf16.msrb.mxu1 %v7209_v52 }
  0x4f   :  { %580 = vmatpush.bf16.msrb.mxu0 %v7217_v4 }
  0x51   :  { %606 = vmatpush.bf16.msrb.mxu2 %v7211_v54  ;;  %619 = vmatpush.bf16.msrb.mxu3 %v7214_v58 }
  0x52   :  { %593 = vmatpush.bf16.msrb.mxu1 %v7221_v5 }
  0x53   :  { %581 = vmatpush.bf16.msrb.mxu0 %v7229_v16 }
  0x55   :  { %607 = vmatpush.bf16.msrb.mxu2 %v7223_v6  ;;  %620 = vmatpush.bf16.msrb.mxu3 %v7226_v12 }
  0x56   :  { %594 = vmatpush.bf16.msrb.mxu1 %v7233_v17  ;;  %582 = vmatmul.bf16.vlgmr.msrb.gmra.mxu0 %v7103_v18 }
  0x57   :  { %678 = vmatpush.bf16.msra.mxu0 %v7146_v47 }
  0x58   :  { %608 = vmatmul.bf16.vlgmr.msrb.gmra.mxu2 %v7103_v18  ;;  %621 = vmatmul.bf16.vlgmr.msrb.gmra.mxu3 %v7103_v18 }
  0x59   :  { %704 = vmatpush.bf16.msra.mxu2 %v7142_v37  ;;  %717 = vmatpush.bf16.msra.mxu3 %v7144_v41 }
  0x5a   :  { %691 = vmatpush.bf16.msra.mxu1 %v7149_v48 }
  0x5b   :  { %595 = vmatmul.bf16.vlgmr.msrb.gmra.mxu1 %v7103_v18  ;;  %679 = vmatpush.bf16.msra.mxu0 %v7157_v59 }
  0x5d   :  { %705 = vmatpush.bf16.msra.mxu2 %v7151_v49  ;;  %718 = vmatpush.bf16.msra.mxu3 %v7154_v53 }
  0x5e   :  { %692 = vmatpush.bf16.msra.mxu1 %v7161_v60 }
  0x5f   :  { %680 = vmatpush.bf16.msra.mxu0 %v7169_v8 }
  0x61   :  { %706 = vmatpush.bf16.msra.mxu2 %v7163_v61  ;;  %719 = vmatpush.bf16.msra.mxu3 %v7166_v1 }
  0x62   :  { %693 = vmatpush.bf16.msra.mxu1 %v7173_v9 }
  0x63   :  { %681 = vmatpush.bf16.msra.mxu0 %v7181_v21 }
  0x65   :  { %707 = vmatpush.bf16.msra.mxu2 %v7175_v10  ;;  %720 = vmatpush.bf16.msra.mxu3 %v7178_v14 }
  0x66   :  { %694 = vmatpush.bf16.msra.mxu1 %v7185_v22 }
  0x67   :  { %682 = vmatpush.bf16.msra.mxu0 %v7193_v34 }
  0x69   :  { %708 = vmatpush.bf16.msra.mxu2 %v7187_v23  ;;  %721 = vmatpush.bf16.msra.mxu3 %v7190_v28 }
  0x6a   :  { %695 = vmatpush.bf16.msra.mxu1 %v7197_v35 }
  0x6b   :  { %683 = vmatpush.bf16.msra.mxu0 %v7205_v51 }
  0x6d   :  { %709 = vmatpush.bf16.msra.mxu2 %v7199_v36  ;;  %722 = vmatpush.bf16.msra.mxu3 %v7202_v42 }
  0x6e   :  { %696 = vmatpush.bf16.msra.mxu1 %v7209_v52 }
  0x6f   :  { %684 = vmatpush.bf16.msra.mxu0 %v7217_v4 }
  0x71   :  { %710 = vmatpush.bf16.msra.mxu2 %v7211_v54  ;;  %723 = vmatpush.bf16.msra.mxu3 %v7214_v58 }
  0x72   :  { %697 = vmatpush.bf16.msra.mxu1 %v7221_v5 }
  0x73   :  { %685 = vmatpush.bf16.msra.mxu0 %v7229_v16 }
  0x75   :  { %711 = vmatpush.bf16.msra.mxu2 %v7223_v6  ;;  %724 = vmatpush.bf16.msra.mxu3 %v7226_v12 }
  0x76   :  { %698 = vmatpush.bf16.msra.mxu1 %v7233_v17 }
  0x77   :  { %779 = vmatpush.bf16.msrb.mxu0 %v7146_v47 }
  0x79   :  { %805 = vmatpush.bf16.msrb.mxu2 %v7142_v37  ;;  %818 = vmatpush.bf16.msrb.mxu3 %v7144_v41 }
  0x7a   :  { %792 = vmatpush.bf16.msrb.mxu1 %v7149_v48 }
  0x7b   :  { %780 = vmatpush.bf16.msrb.mxu0 %v7157_v59 }
  0x7d   :  { %806 = vmatpush.bf16.msrb.mxu2 %v7151_v49  ;;  %819 = vmatpush.bf16.msrb.mxu3 %v7154_v53 }
  0x7e   :  { %793 = vmatpush.bf16.msrb.mxu1 %v7161_v60 }
  0x7f   :  { %781 = vmatpush.bf16.msrb.mxu0 %v7169_v8 }
  0x81   :  { %807 = vmatpush.bf16.msrb.mxu2 %v7163_v61  ;;  %820 = vmatpush.bf16.msrb.mxu3 %v7166_v1 }
  0x82   :  { %794 = vmatpush.bf16.msrb.mxu1 %v7173_v9 }
  0x83   :  { %782 = vmatpush.bf16.msrb.mxu0 %v7181_v21 }
  0x85   :  { %808 = vmatpush.bf16.msrb.mxu2 %v7175_v10  ;;  %821 = vmatpush.bf16.msrb.mxu3 %v7178_v14 }
  0x86   :  { %795 = vmatpush.bf16.msrb.mxu1 %v7185_v22 }
  0x87   :  { %783 = vmatpush.bf16.msrb.mxu0 %v7193_v34 }
  0x89   :  { %809 = vmatpush.bf16.msrb.mxu2 %v7187_v23  ;;  %822 = vmatpush.bf16.msrb.mxu3 %v7190_v28 }
  0x8a   :  { %796 = vmatpush.bf16.msrb.mxu1 %v7197_v35 }
  0x8b   :  { %784 = vmatpush.bf16.msrb.mxu0 %v7205_v51 }
  0x8d   :  { %810 = vmatpush.bf16.msrb.mxu2 %v7199_v36  ;;  %823 = vmatpush.bf16.msrb.mxu3 %v7202_v42 }
  0x8e   :  { %797 = vmatpush.bf16.msrb.mxu1 %v7209_v52 }
  0x8f   :  { %785 = vmatpush.bf16.msrb.mxu0 %v7217_v4 }
  0x91   :  { %811 = vmatpush.bf16.msrb.mxu2 %v7211_v54  ;;  %824 = vmatpush.bf16.msrb.mxu3 %v7214_v58 }
  0x92   :  { %798 = vmatpush.bf16.msrb.mxu1 %v7221_v5 }
  0x93   :  { %786 = vmatpush.bf16.msrb.mxu0 %v7229_v16 }
  0x95   :  { %812 = vmatpush.bf16.msrb.mxu2 %v7223_v6  ;;  %825 = vmatpush.bf16.msrb.mxu3 %v7226_v12 }
  0x96   :  { %799 = vmatpush.bf16.msrb.mxu1 %v7233_v17 }
  0xb3   :  { %v306_v25 = vpop.f32.mrf.mxu0 }
  0xb4   :  { %v307_v26 = vadd.f32 %v306_v25, %v119_v20  ;;  %v324_v27 = vpop.f32.mrf.mxu1 }
  0xb5   :  { %v325_v29 = vadd.f32 %v324_v27, %v120_v24 }
  0xb6   :  { %369 = vst [vmem:[#allocation3] sm:$0xff] %v307_v26 }
  0xb7   :  { %370 = vst [vmem:[#allocation3 + $0x8] sm:$0xff] %v325_v29 }
  0xbb   :  { %v342_v32 = vpop.f32.mrf.mxu2  ;;  %v360_v38 = vpop.f32.mrf.mxu3 }
  0xbc   :  { %v343_v33 = vadd.f32 %v342_v32, %v121_v30  ;;  %v308_v39 = vpop.f32.mrf.mxu0  ;;  %v361_v40 = vadd.f32 %v360_v38, %v122_v31  ;;  %v326_v44 = vpop.f32.mrf.mxu1 }
  0xbd   :  { %v309_v43 = vadd.f32 %v308_v39, %v119_v20  ;;  %v327_v45 = vadd.f32 %v326_v44, %v120_v24 }
  0xbe   :  { %371 = vst [vmem:[#allocation3 + $0x10] sm:$0xff] %v343_v33 }
  0xbf   :  { %372 = vst [vmem:[#allocation3 + $0x18] sm:$0xff] %v361_v40 }
  0xc0   :  { %373 = vst [vmem:[#allocation3 + $0x20] sm:$0xff] %v309_v43 }
  0xc1   :  { %374 = vst [vmem:[#allocation3 + $0x28] sm:$0xff] %v327_v45 }
  0xc3   :  { %v344_v46 = vpop.f32.mrf.mxu2  ;;  %v362_v55 = vpop.f32.mrf.mxu3 }
  0xc4   :  { %v345_v50 = vadd.f32 %v344_v46, %v121_v30  ;;  %v311_v56 = vpop.f32.mrf.mxu0  ;;  %v363_v57 = vadd.f32 %v362_v55, %v122_v31  ;;  %v329_v63 = vpop.f32.mrf.mxu1 }
  0xc5   :  { %v312_v62 = vadd.f32 %v311_v56, %v119_v20  ;;  %v330_v0 = vadd.f32 %v329_v63, %v120_v24 }
  0xc6   :  { %375 = vst [vmem:[#allocation3 + $0x30] sm:$0xff] %v345_v50  ;;  %v413_v40 = vld [vmem:[#allocation3] ss:$8 sm:$0xf] }
  0xc7   :  { %376 = vst [vmem:[#allocation3 + $0x38] sm:$0xff] %v363_v57 }
  0xc8   :  { %377 = vst [vmem:[#allocation3 + $0x40] sm:$0xff] %v312_v62 }
  0xc9   :  { %378 = vst [vmem:[#allocation3 + $0x48] sm:$0xff] %v330_v0 }
  0xcb   :  { %v347_v2 = vpop.f32.mrf.mxu2  ;;  %v365_v7 = vpop.f32.mrf.mxu3 }
  0xcc   :  { %v348_v3 = vadd.f32 %v347_v2, %v121_v30  ;;  %v313_v11 = vpop.f32.mrf.mxu0  ;;  %v366_v13 = vadd.f32 %v365_v7, %v122_v31  ;;  %v331_v15 = vpop.f32.mrf.mxu1 }
  0xce   :  { %379 = vst [vmem:[#allocation3 + $0x50] sm:$0xff] %v348_v3 }
  0xcf   :  { %380 = vst [vmem:[#allocation3 + $0x58] sm:$0xff] %v366_v13 }
  0xd3   :  { %v349_v19 = vpop.f32.mrf.mxu2  ;;  %v367_v25 = vpop.f32.mrf.mxu3 }
  0xd4   :  { %v583_v26 = vpop.f32.mrf.mxu0 }
  0xd8   :  { %v596_v27 = vpop.f32.mrf.mxu1 }
  0xd9   :  { %v630_v29 = vrot.slane %v596_v27, 7 }
  0xdb   :  { %v609_v20 = vpop.f32.mrf.mxu2  ;;  %v622_v24 = vpop.f32.mrf.mxu3  ;;  %v634_v33 = vsel %vm633_vm0, %v583_v26, %v630_v29 }
  0xdc   :  { %v631_v32 = vrot.slane %v609_v20, 6  ;;  %v632_v38 = vrot.slane %v622_v24, 5  ;;  %v585_v30 = vpop.f32.mrf.mxu0 }
  0xde   :  { %v636_v31 = vsel %vm635_vm1, %v631_v32, %v632_v38 }
  0xdf   :  { %v638_v43 = vsel %vm637_vm2, %v634_v33, %v636_v31 }
  0xe0   :  { %v598_v39 = vpop.f32.mrf.mxu1  ;;  %v640_v44 = vadd.f32 %v638_v43, %v413_v40 }
  0xe2   :  { %v6140_v45 = vmul.f32 -1.442695, %v640_v44  ;;  %v661_v63 = vrot.slane %v640_v44, 3 }
  0xe3   :  { %v611_v46 = vpop.f32.mrf.mxu2  ;;  %v624_v50 = vpop.f32.mrf.mxu3 }
  0xe4   :  { %6583 = vpow2.f32 %v6140_v45 }
  0xea   :  { %v6584_v55 = vpop.eup %6583 }
  0xeb   :  { %v644_v56 = vadd.f32 1.0, %v6584_v55 }
  0xed   :  { %6585 = vrcp.f32 %v644_v56  ;;  %v656_v2 = vand.u32 2147483648, %v644_v56  ;;  %v654_v7 = vand.u32 2147483647, %v644_v56  ;;  %vm650_vm4 = vweird.f32 %v644_v56 }
  0xee   :  { %6587 = vtanh.f32 %v661_v63 }
  0xef   :  { %v657_v13 = vor.u32 1.1754944e-38, %v656_v2  ;;  %vm655_vm6 = vcmp.eq.f32.partialorder %v654_v7, 8.507059e+37 }
  0xf3   :  { %v6586_v57 = vpop.eup %6585 }
  0xf4   :  { %v646_v62 = vmul.f32 %v6586_v57, %v644_v56  ;;  %vm651_vm3 = vweird.f32 %v6586_v57  ;;  %v6588_v26 = vpop.eup %6587 }
  0xf5   :  { %vm652_vm5 = vmor %vm650_vm4, %vm651_vm3 }
  0xf6   :  { %v647_v0 = vsub.f32 1.0, %v646_v62 }
  0xf8   :  { %v648_v3 = vmul.f32 %v6586_v57, %v647_v0 }
  0xfa   :  { %v649_v11 = vadd.f32 %v6586_v57, %v648_v3 }
  0xfc   :  { %v653_v15 = vsel %vm652_vm5, %v6586_v57, %v649_v11  ;;  %v676_v57 = vld [vmem:[#allocation3 + $0x1] ss:$8 sm:$0xf] }
  0xfd   :  { %v658_v19 = vsel %vm655_vm6, %v657_v13, %v653_v15 }
  0xfe   :  { %v665_v25 = vrot.slane %v658_v19, 1  ;;  %v668_v29 = vmul.f32 %v6588_v26, %v658_v19  ;;  %v671_v32 = vrot.slane %v658_v19, 2 }
 0x100   :  { %v667_v27 = vmul.f32 0.0, %v665_v25 }
 0x102   :  { %v7309_v20 = vadd.f32 %v668_v29, %v667_v27 }
 0x104   :  { %6589 = vtanh.f32 %v7309_v20 }
 0x10a   :  { %v6590_v24 = vpop.eup %6589 }
 0x10b   :  { %v673_v33 = vmul.f32 %v6590_v24, %v671_v32 }
 0x10d   :  { %674 = vst [vmem:[#allocation2] sm:$0x1] %v673_v33  ;;  %v677_v38 = vpack.c.bf16 %v673_v33, %v673_v33 }
 0x10f   :  { %686 = vmatmul.bf16.vlgmr.msra.gmra.mxu0 %v677_v38  ;;  %699 = vmatmul.bf16.vlgmr.msra.gmra.mxu1 %v677_v38 }
 0x110   :  { %712 = vmatmul.bf16.vlgmr.msra.gmra.mxu2 %v677_v38  ;;  %725 = vmatmul.bf16.vlgmr.msra.gmra.mxu3 %v677_v38 }
 0x111   :  { %880 = vmatpush.bf16.msra.mxu0 %v7146_v47  ;;  %893 = vmatpush.bf16.msra.mxu1 %v7149_v48 }
 0x112   :  { %906 = vmatpush.bf16.msra.mxu2 %v7142_v37  ;;  %919 = vmatpush.bf16.msra.mxu3 %v7144_v41 }
 0x115   :  { %881 = vmatpush.bf16.msra.mxu0 %v7157_v59  ;;  %894 = vmatpush.bf16.msra.mxu1 %v7161_v60 }
 0x116   :  { %907 = vmatpush.bf16.msra.mxu2 %v7151_v49  ;;  %920 = vmatpush.bf16.msra.mxu3 %v7154_v53 }
 0x119   :  { %882 = vmatpush.bf16.msra.mxu0 %v7169_v8  ;;  %895 = vmatpush.bf16.msra.mxu1 %v7173_v9 }
 0x11a   :  { %908 = vmatpush.bf16.msra.mxu2 %v7163_v61  ;;  %921 = vmatpush.bf16.msra.mxu3 %v7166_v1 }
 0x11d   :  { %883 = vmatpush.bf16.msra.mxu0 %v7181_v21  ;;  %896 = vmatpush.bf16.msra.mxu1 %v7185_v22 }
 0x11e   :  { %909 = vmatpush.bf16.msra.mxu2 %v7175_v10  ;;  %922 = vmatpush.bf16.msra.mxu3 %v7178_v14 }
 0x121   :  { %884 = vmatpush.bf16.msra.mxu0 %v7193_v34  ;;  %897 = vmatpush.bf16.msra.mxu1 %v7197_v35 }
 0x122   :  { %910 = vmatpush.bf16.msra.mxu2 %v7187_v23  ;;  %923 = vmatpush.bf16.msra.mxu3 %v7190_v28 }
 0x125   :  { %885 = vmatpush.bf16.msra.mxu0 %v7205_v51  ;;  %898 = vmatpush.bf16.msra.mxu1 %v7209_v52 }
 0x126   :  { %911 = vmatpush.bf16.msra.mxu2 %v7199_v36  ;;  %924 = vmatpush.bf16.msra.mxu3 %v7202_v42 }
 0x129   :  { %886 = vmatpush.bf16.msra.mxu0 %v7217_v4  ;;  %899 = vmatpush.bf16.msra.mxu1 %v7221_v5 }
 0x12a   :  { %912 = vmatpush.bf16.msra.mxu2 %v7211_v54  ;;  %925 = vmatpush.bf16.msra.mxu3 %v7214_v58 }
 0x12d   :  { %887 = vmatpush.bf16.msra.mxu0 %v7229_v16  ;;  %900 = vmatpush.bf16.msra.mxu1 %v7233_v17 }
 0x12e   :  { %913 = vmatpush.bf16.msra.mxu2 %v7223_v6  ;;  %926 = vmatpush.bf16.msra.mxu3 %v7226_v12 }
 0x18c   :  { %v687_v30 = vpop.f32.mrf.mxu0  ;;  %v700_v39 = vpop.f32.mrf.mxu1 }
 0x18d   :  { %v734_v31 = vrot.slane %v700_v39, 7 }
 0x18f   :  { %v737_v55 = vsel %vm633_vm0, %v687_v30, %v734_v31 }
 0x193   :  { %v713_v40 = vpop.f32.mrf.mxu2  ;;  %v726_v43 = vpop.f32.mrf.mxu3 }
 0x194   :  { %v735_v44 = vrot.slane %v713_v40, 6  ;;  %v736_v45 = vrot.slane %v726_v43, 5  ;;  %v689_v46 = vpop.f32.mrf.mxu0  ;;  %v702_v50 = vpop.f32.mrf.mxu1 }
 0x196   :  { %v738_v56 = vsel %vm635_vm1, %v735_v44, %v736_v45 }
 0x197   :  { %v739_v62 = vsel %vm637_vm2, %v737_v55, %v738_v56 }
 0x198   :  { %v741_v63 = vadd.f32 %v739_v62, %v676_v57 }
 0x19a   :  { %v6141_v0 = vmul.f32 -1.442695, %v741_v63  ;;  %v762_v19 = vrot.slane %v741_v63, 3 }
 0x19b   :  { %v715_v2 = vpop.f32.mrf.mxu2  ;;  %v728_v3 = vpop.f32.mrf.mxu3 }
 0x19c   :  { %6591 = vpow2.f32 %v6141_v0 }
 0x1a2   :  { %v6592_v7 = vpop.eup %6591 }
 0x1a3   :  { %v745_v11 = vadd.f32 1.0, %v6592_v7 }
 0x1a5   :  { %6593 = vrcp.f32 %v745_v11  ;;  %v757_v26 = vand.u32 2147483648, %v745_v11  ;;  %v755_v29 = vand.u32 2147483647, %v745_v11  ;;  %vm751_vm8 = vweird.f32 %v745_v11 }
 0x1a6   :  { %6595 = vtanh.f32 %v762_v19 }
 0x1a7   :  { %v758_v24 = vor.u32 1.1754944e-38, %v757_v26  ;;  %vm756_vm10 = vcmp.eq.f32.partialorder %v755_v29, 8.507059e+37 }
 0x1ab   :  { %v6594_v13 = vpop.eup %6593 }
 0x1ac   :  { %v747_v15 = vmul.f32 %v6594_v13, %v745_v11  ;;  %vm752_vm7 = vweird.f32 %v6594_v13  ;;  %v6596_v39 = vpop.eup %6595 }
 0x1ad   :  { %vm753_vm9 = vmor %vm751_vm8, %vm752_vm7 }
 0x1ae   :  { %v748_v25 = vsub.f32 1.0, %v747_v15 }
 0x1b0   :  { %v749_v27 = vmul.f32 %v6594_v13, %v748_v25 }
 0x1b2   :  { %v750_v32 = vadd.f32 %v6594_v13, %v749_v27 }
 0x1b4   :  { %v754_v33 = vsel %vm753_vm9, %v6594_v13, %v750_v32  ;;  %v777_v13 = vld [vmem:[#allocation3 + $0x2] ss:$8 sm:$0xf] }
 0x1b5   :  { %v759_v38 = vsel %vm756_vm10, %v758_v24, %v754_v33 }
 0x1b6   :  { %v766_v30 = vrot.slane %v759_v38, 1  ;;  %v769_v40 = vmul.f32 %v6596_v39, %v759_v38  ;;  %v772_v44 = vrot.slane %v759_v38, 2 }
 0x1b8   :  { %v768_v31 = vmul.f32 %v766_v30, %v7309_v20 }
 0x1ba   :  { %v7348_v43 = vadd.f32 %v769_v40, %v768_v31 }
 0x1bc   :  { %6597 = vtanh.f32 %v7348_v43 }
 0x1c2   :  { %v6598_v45 = vpop.eup %6597 }
 0x1c3   :  { %v774_v46 = vmul.f32 %v6598_v45, %v772_v44 }
 0x1c5   :  { %775 = vst [vmem:[#allocation2 + $0x1] sm:$0x1] %v774_v46  ;;  %v778_v50 = vpack.c.bf16 %v774_v46, %v774_v46 }
 0x1c7   :  { %787 = vmatmul.bf16.vlgmr.msrb.gmra.mxu0 %v778_v50  ;;  %800 = vmatmul.bf16.vlgmr.msrb.gmra.mxu1 %v778_v50 }
 0x1c8   :  { %813 = vmatmul.bf16.vlgmr.msrb.gmra.mxu2 %v778_v50  ;;  %826 = vmatmul.bf16.vlgmr.msrb.gmra.mxu3 %v778_v50 }
 0x1c9   :  { %981 = vmatpush.bf16.msrb.mxu0 %v7146_v47  ;;  %994 = vmatpush.bf16.msrb.mxu1 %v7149_v48 }
 0x1ca   :  { %1007 = vmatpush.bf16.msrb.mxu2 %v7142_v37  ;;  %1020 = vmatpush.bf16.msrb.mxu3 %v7144_v41 }
 0x1cd   :  { %982 = vmatpush.bf16.msrb.mxu0 %v7157_v59  ;;  %995 = vmatpush.bf16.msrb.mxu1 %v7161_v60 }
 0x1ce   :  { %1008 = vmatpush.bf16.msrb.mxu2 %v7151_v49  ;;  %1021 = vmatpush.bf16.msrb.mxu3 %v7154_v53 }
 0x1d1   :  { %983 = vmatpush.bf16.msrb.mxu0 %v7169_v8  ;;  %996 = vmatpush.bf16.msrb.mxu1 %v7173_v9 }
 0x1d2   :  { %1009 = vmatpush.bf16.msrb.mxu2 %v7163_v61  ;;  %1022 = vmatpush.bf16.msrb.mxu3 %v7166_v1 }
 0x1d5   :  { %984 = vmatpush.bf16.msrb.mxu0 %v7181_v21  ;;  %997 = vmatpush.bf16.msrb.mxu1 %v7185_v22 }
 0x1d6   :  { %1010 = vmatpush.bf16.msrb.mxu2 %v7175_v10  ;;  %1023 = vmatpush.bf16.msrb.mxu3 %v7178_v14 }
 0x1d9   :  { %985 = vmatpush.bf16.msrb.mxu0 %v7193_v34  ;;  %998 = vmatpush.bf16.msrb.mxu1 %v7197_v35 }
 0x1da   :  { %1011 = vmatpush.bf16.msrb.mxu2 %v7187_v23  ;;  %1024 = vmatpush.bf16.msrb.mxu3 %v7190_v28 }
 0x1dd   :  { %986 = vmatpush.bf16.msrb.mxu0 %v7205_v51  ;;  %999 = vmatpush.bf16.msrb.mxu1 %v7209_v52 }
 0x1de   :  { %1012 = vmatpush.bf16.msrb.mxu2 %v7199_v36  ;;  %1025 = vmatpush.bf16.msrb.mxu3 %v7202_v42 }
 0x1e1   :  { %987 = vmatpush.bf16.msrb.mxu0 %v7217_v4  ;;  %1000 = vmatpush.bf16.msrb.mxu1 %v7221_v5 }
 0x1e2   :  { %1013 = vmatpush.bf16.msrb.mxu2 %v7211_v54  ;;  %1026 = vmatpush.bf16.msrb.mxu3 %v7214_v58 }
 0x1e5   :  { %988 = vmatpush.bf16.msrb.mxu0 %v7229_v16  ;;  %1001 = vmatpush.bf16.msrb.mxu1 %v7233_v17 }
 0x1e6   :  { %1014 = vmatpush.bf16.msrb.mxu2 %v7223_v6  ;;  %1027 = vmatpush.bf16.msrb.mxu3 %v7226_v12 }
 0x244   :  { %v788_v20 = vpop.f32.mrf.mxu0  ;;  %v801_v55 = vpop.f32.mrf.mxu1 }
 0x245   :  { %v835_v56 = vrot.slane %v801_v55, 7 }
 0x247   :  { %v838_v7 = vsel %vm633_vm0, %v788_v20, %v835_v56 }
 0x24b   :  { %v814_v57 = vpop.f32.mrf.mxu2  ;;  %v827_v62 = vpop.f32.mrf.mxu3 }
 0x24c   :  { %v836_v63 = vrot.slane %v814_v57, 6  ;;  %v837_v0 = vrot.slane %v827_v62, 5  ;;  %v790_v2 = vpop.f32.mrf.mxu0  ;;  %v803_v3 = vpop.f32.mrf.mxu1 }
 0x24e   :  { %v839_v11 = vsel %vm635_vm1, %v836_v63, %v837_v0 }
 0x24f   :  { %v840_v15 = vsel %vm637_vm2, %v838_v7, %v839_v11 }
 0x250   :  { %v842_v19 = vadd.f32 %v840_v15, %v777_v13 }
 0x252   :  { %v6142_v25 = vmul.f32 -1.442695, %v842_v19  ;;  %v863_v38 = vrot.slane %v842_v19, 3 }
 0x253   :  { %v816_v26 = vpop.f32.mrf.mxu2  ;;  %v829_v27 = vpop.f32.mrf.mxu3 }
 0x254   :  { %6599 = vpow2.f32 %v6142_v25 }
 0x25a   :  { %v6600_v29 = vpop.eup %6599 }
 0x25b   :  { %v846_v32 = vadd.f32 1.0, %v6600_v29 }
 0x25d   :  { %6601 = vrcp.f32 %v846_v32  ;;  %v858_v39 = vand.u32 2147483648, %v846_v32  ;;  %v856_v40 = vand.u32 2147483647, %v846_v32  ;;  %vm852_vm12 = vweird.f32 %v846_v32 }
 0x25e   :  { %6603 = vtanh.f32 %v863_v38 }
 0x25f   :  { %v859_v45 = vor.u32 1.1754944e-38, %v858_v39  ;;  %vm857_vm14 = vcmp.eq.f32.partialorder %v856_v40, 8.507059e+37 }
 0x263   :  { %v6602_v24 = vpop.eup %6601 }
 0x264   :  { %v848_v33 = vmul.f32 %v6602_v24, %v846_v32  ;;  %vm853_vm11 = vweird.f32 %v6602_v24  ;;  %v6604_v55 = vpop.eup %6603 }
 0x265   :  { %vm854_vm13 = vmor %vm852_vm12, %vm853_vm11 }
 0x266   :  { %v849_v30 = vsub.f32 1.0, %v848_v33 }
 0x268   :  { %v850_v31 = vmul.f32 %v6602_v24, %v849_v30 }
 0x26a   :  { %v851_v44 = vadd.f32 %v6602_v24, %v850_v31 }
 0x26c   :  { %v855_v46 = vsel %vm854_vm13, %v6602_v24, %v851_v44  ;;  %v878_v24 = vld [vmem:[#allocation3 + $0x3] ss:$8 sm:$0xf] }
 0x26d   :  { %v860_v50 = vsel %vm857_vm14, %v859_v45, %v855_v46 }
 0x26e   :  { %v867_v20 = vrot.slane %v860_v50, 1  ;;  %v870_v57 = vmul.f32 %v6604_v55, %v860_v50  ;;  %v873_v63 = vrot.slane %v860_v50, 2 }
 0x270   :  { %v869_v56 = vmul.f32 %v867_v20, %v7348_v43 }
 0x272   :  { %v7387_v62 = vadd.f32 %v870_v57, %v869_v56 }
 0x274   :  { %6605 = vtanh.f32 %v7387_v62 }
 0x27a   :  { %v6606_v0 = vpop.eup %6605 }
 0x27b   :  { %v875_v2 = vmul.f32 %v6606_v0, %v873_v63 }
 0x27d   :  { %876 = vst [vmem:[#allocation2 + $0x2] sm:$0x1] %v875_v2  ;;  %v879_v3 = vpack.c.bf16 %v875_v2, %v875_v2 }
 0x27f   :  { %888 = vmatmul.bf16.vlgmr.msra.gmra.mxu0 %v879_v3  ;;  %901 = vmatmul.bf16.vlgmr.msra.gmra.mxu1 %v879_v3 }
 0x280   :  { %914 = vmatmul.bf16.vlgmr.msra.gmra.mxu2 %v879_v3  ;;  %927 = vmatmul.bf16.vlgmr.msra.gmra.mxu3 %v879_v3 }
 0x281   :  { %1082 = vmatpush.bf16.msra.mxu0 %v7146_v47  ;;  %1095 = vmatpush.bf16.msra.mxu1 %v7149_v48 }
 0x282   :  { %1108 = vmatpush.bf16.msra.mxu2 %v7142_v37  ;;  %1121 = vmatpush.bf16.msra.mxu3 %v7144_v41 }
 0x285   :  { %1083 = vmatpush.bf16.msra.mxu0 %v7157_v59  ;;  %1096 = vmatpush.bf16.msra.mxu1 %v7161_v60 }
 0x286   :  { %1109 = vmatpush.bf16.msra.mxu2 %v7151_v49  ;;  %1122 = vmatpush.bf16.msra.mxu3 %v7154_v53 }
 0x289   :  { %1084 = vmatpush.bf16.msra.mxu0 %v7169_v8  ;;  %1097 = vmatpush.bf16.msra.mxu1 %v7173_v9 }
 0x28a   :  { %1110 = vmatpush.bf16.msra.mxu2 %v7163_v61  ;;  %1123 = vmatpush.bf16.msra.mxu3 %v7166_v1 }
 0x28d   :  { %1085 = vmatpush.bf16.msra.mxu0 %v7181_v21  ;;  %1098 = vmatpush.bf16.msra.mxu1 %v7185_v22 }
 0x28e   :  { %1111 = vmatpush.bf16.msra.mxu2 %v7175_v10  ;;  %1124 = vmatpush.bf16.msra.mxu3 %v7178_v14 }
 0x291   :  { %1086 = vmatpush.bf16.msra.mxu0 %v7193_v34  ;;  %1099 = vmatpush.bf16.msra.mxu1 %v7197_v35 }
 0x292   :  { %1112 = vmatpush.bf16.msra.mxu2 %v7187_v23  ;;  %1125 = vmatpush.bf16.msra.mxu3 %v7190_v28 }
 0x295   :  { %1087 = vmatpush.bf16.msra.mxu0 %v7205_v51  ;;  %1100 = vmatpush.bf16.msra.mxu1 %v7209_v52 }
 0x296   :  { %1113 = vmatpush.bf16.msra.mxu2 %v7199_v36  ;;  %1126 = vmatpush.bf16.msra.mxu3 %v7202_v42 }
 0x299   :  { %1088 = vmatpush.bf16.msra.mxu0 %v7217_v4  ;;  %1101 = vmatpush.bf16.msra.mxu1 %v7221_v5 }
 0x29a   :  { %1114 = vmatpush.bf16.msra.mxu2 %v7211_v54  ;;  %1127 = vmatpush.bf16.msra.mxu3 %v7214_v58 }
 0x29d   :  { %1089 = vmatpush.bf16.msra.mxu0 %v7229_v16  ;;  %1102 = vmatpush.bf16.msra.mxu1 %v7233_v17 }
 0x29e   :  { %1115 = vmatpush.bf16.msra.mxu2 %v7223_v6  ;;  %1128 = vmatpush.bf16.msra.mxu3 %v7226_v12 }
 0x2fc   :  { %v889_v43 = vpop.f32.mrf.mxu0  ;;  %v902_v7 = vpop.f32.mrf.mxu1 }
 0x2fd   :  { %v936_v11 = vrot.slane %v902_v7, 7 }
 0x2ff   :  { %v939_v29 = vsel %vm633_vm0, %v889_v43, %v936_v11 }
 0x303   :  { %v915_v13 = vpop.f32.mrf.mxu2  ;;  %v928_v15 = vpop.f32.mrf.mxu3 }
 0x304   :  { %v937_v19 = vrot.slane %v915_v13, 6  ;;  %v938_v25 = vrot.slane %v928_v15, 5  ;;  %v891_v26 = vpop.f32.mrf.mxu0  ;;  %v904_v27 = vpop.f32.mrf.mxu1 }
 0x306   :  { %v940_v32 = vsel %vm635_vm1, %v937_v19, %v938_v25 }
 0x307   :  { %v941_v33 = vsel %vm637_vm2, %v939_v29, %v940_v32 }
 0x308   :  { %v943_v38 = vadd.f32 %v941_v33, %v878_v24 }
 0x30a   :  { %v6143_v30 = vmul.f32 -1.442695, %v943_v38  ;;  %v964_v50 = vrot.slane %v943_v38, 3 }
 0x30b   :  { %v917_v39 = vpop.f32.mrf.mxu2  ;;  %v930_v31 = vpop.f32.mrf.mxu3 }
 0x30c   :  { %6607 = vpow2.f32 %v6143_v30 }
 0x312   :  { %v6608_v40 = vpop.eup %6607 }
 0x313   :  { %v947_v44 = vadd.f32 1.0, %v6608_v40 }
 0x315   :  { %6609 = vrcp.f32 %v947_v44  ;;  %v959_v55 = vand.u32 2147483648, %v947_v44  ;;  %v957_v57 = vand.u32 2147483647, %v947_v44  ;;  %vm953_vm3 = vweird.f32 %v947_v44 }
 0x316   :  { %6611 = vtanh.f32 %v964_v50 }
 0x317   :  { %v960_v0 = vor.u32 1.1754944e-38, %v959_v55  ;;  %vm958_vm5 = vcmp.eq.f32.partialorder %v957_v57, 8.507059e+37 }
 0x31b   :  { %v6610_v45 = vpop.eup %6609 }
 0x31c   :  { %v949_v46 = vmul.f32 %v6610_v45, %v947_v44  ;;  %vm954_vm15 = vweird.f32 %v6610_v45  ;;  %v6612_v7 = vpop.eup %6611 }
 0x31d   :  { %vm955_vm4 = vmor %vm953_vm3, %vm954_vm15 }
 0x31e   :  { %v950_v20 = vsub.f32 1.0, %v949_v46 }
 0x320   :  { %v951_v56 = vmul.f32 %v6610_v45, %v950_v20 }
 0x322   :  { %v952_v63 = vadd.f32 %v6610_v45, %v951_v56 }
 0x324   :  { %v956_v2 = vsel %vm955_vm4, %v6610_v45, %v952_v63  ;;  %v979_v45 = vld [vmem:[#allocation3 + $0x4] ss:$8 sm:$0xf] }
 0x325   :  { %v961_v3 = vsel %vm958_vm5, %v960_v0, %v956_v2 }
 0x326   :  { %v968_v43 = vrot.slane %v961_v3, 1  ;;  %v971_v13 = vmul.f32 %v6612_v7, %v961_v3  ;;  %v974_v19 = vrot.slane %v961_v3, 2 }
 0x328   :  { %v970_v11 = vmul.f32 %v968_v43, %v7387_v62 }
 0x32a   :  { %v7426_v15 = vadd.f32 %v971_v13, %v970_v11 }
 0x32c   :  { %6613 = vtanh.f32 %v7426_v15 }
 0x332   :  { %v6614_v25 = vpop.eup %6613 }
 0x333   :  { %v976_v26 = vmul.f32 %v6614_v25, %v974_v19 }
 0x335   :  { %977 = vst [vmem:[#allocation2 + $0x3] sm:$0x1] %v976_v26  ;;  %v980_v27 = vpack.c.bf16 %v976_v26, %v976_v26 }
 0x337   :  { %989 = vmatmul.bf16.vlgmr.msrb.gmra.mxu0 %v980_v27  ;;  %1002 = vmatmul.bf16.vlgmr.msrb.gmra.mxu1 %v980_v27 }
 0x338   :  { %1015 = vmatmul.bf16.vlgmr.msrb.gmra.mxu2 %v980_v27  ;;  %1028 = vmatmul.bf16.vlgmr.msrb.gmra.mxu3 %v980_v27 }
 0x339   :  { %1183 = vmatpush.bf16.msrb.mxu0 %v7146_v47  ;;  %1196 = vmatpush.bf16.msrb.mxu1 %v7149_v48 }
 0x33a   :  { %1209 = vmatpush.bf16.msrb.mxu2 %v7142_v37  ;;  %1222 = vmatpush.bf16.msrb.mxu3 %v7144_v41 }
 0x33d   :  { %1184 = vmatpush.bf16.msrb.mxu0 %v7157_v59  ;;  %1197 = vmatpush.bf16.msrb.mxu1 %v7161_v60 }
 0x33e   :  { %1210 = vmatpush.bf16.msrb.mxu2 %v7151_v49  ;;  %1223 = vmatpush.bf16.msrb.mxu3 %v7154_v53 }
 0x341   :  { %1185 = vmatpush.bf16.msrb.mxu0 %v7169_v8  ;;  %1198 = vmatpush.bf16.msrb.mxu1 %v7173_v9 }
 0x342   :  { %1211 = vmatpush.bf16.msrb.mxu2 %v7163_v61  ;;  %1224 = vmatpush.bf16.msrb.mxu3 %v7166_v1 }
 0x345   :  { %1186 = vmatpush.bf16.msrb.mxu0 %v7181_v21  ;;  %1199 = vmatpush.bf16.msrb.mxu1 %v7185_v22 }
 0x346   :  { %1212 = vmatpush.bf16.msrb.mxu2 %v7175_v10  ;;  %1225 = vmatpush.bf16.msrb.mxu3 %v7178_v14 }
 0x349   :  { %1187 = vmatpush.bf16.msrb.mxu0 %v7193_v34  ;;  %1200 = vmatpush.bf16.msrb.mxu1 %v7197_v35 }
 0x34a   :  { %1213 = vmatpush.bf16.msrb.mxu2 %v7187_v23  ;;  %1226 = vmatpush.bf16.msrb.mxu3 %v7190_v28 }
 0x34d   :  { %1188 = vmatpush.bf16.msrb.mxu0 %v7205_v51  ;;  %1201 = vmatpush.bf16.msrb.mxu1 %v7209_v52 }
 0x34e   :  { %1214 = vmatpush.bf16.msrb.mxu2 %v7199_v36  ;;  %1227 = vmatpush.bf16.msrb.mxu3 %v7202_v42 }
 0x351   :  { %1189 = vmatpush.bf16.msrb.mxu0 %v7217_v4  ;;  %1202 = vmatpush.bf16.msrb.mxu1 %v7221_v5 }
 0x352   :  { %1215 = vmatpush.bf16.msrb.mxu2 %v7211_v54  ;;  %1228 = vmatpush.bf16.msrb.mxu3 %v7214_v58 }
 0x355   :  { %1190 = vmatpush.bf16.msrb.mxu0 %v7229_v16  ;;  %1203 = vmatpush.bf16.msrb.mxu1 %v7233_v17 }
 0x356   :  { %1216 = vmatpush.bf16.msrb.mxu2 %v7223_v6  ;;  %1229 = vmatpush.bf16.msrb.mxu3 %v7226_v12 }
 0x3b4   :  { %v990_v62 = vpop.f32.mrf.mxu0  ;;  %v1003_v29 = vpop.f32.mrf.mxu1 }
 0x3b5   :  { %v1037_v32 = vrot.slane %v1003_v29, 7 }
 0x3b7   :  { %v1040_v40 = vsel %vm633_vm0, %v990_v62, %v1037_v32 }
 0x3bb   :  { %v1016_v24 = vpop.f32.mrf.mxu2  ;;  %v1029_v33 = vpop.f32.mrf.mxu3 }
 0x3bc   :  { %v1038_v38 = vrot.slane %v1016_v24, 6  ;;  %v1039_v30 = vrot.slane %v1029_v33, 5  ;;  %v992_v39 = vpop.f32.mrf.mxu0  ;;  %v1005_v31 = vpop.f32.mrf.mxu1 }
 0x3be   :  { %v1041_v44 = vsel %vm635_vm1, %v1038_v38, %v1039_v30 }
 0x3bf   :  { %v1042_v46 = vsel %vm637_vm2, %v1040_v40, %v1041_v44 }
 0x3c0   :  { %v1044_v50 = vadd.f32 %v1042_v46, %v979_v45 }
 0x3c2   :  { %v6144_v20 = vmul.f32 -1.442695, %v1044_v50  ;;  %v1065_v3 = vrot.slane %v1044_v50, 3 }
 0x3c3   :  { %v1018_v55 = vpop.f32.mrf.mxu2  ;;  %v1031_v56 = vpop.f32.mrf.mxu3 }
 0x3c4   :  { %6615 = vpow2.f32 %v6144_v20 }
 0x3ca   :  { %v6616_v57 = vpop.eup %6615 }
 0x3cb   :  { %v1048_v63 = vadd.f32 1.0, %v6616_v57 }
 0x3cd   :  { %6617 = vrcp.f32 %v1048_v63  ;;  %v1060_v7 = vand.u32 2147483648, %v1048_v63  ;;  %v1058_v13 = vand.u32 2147483647, %v1048_v63  ;;  %vm1054_vm7 = vweird.f32 %v1048_v63 }
 0x3ce   :  { %6619 = vtanh.f32 %v1065_v3 }
 0x3cf   :  { %v1061_v25 = vor.u32 1.1754944e-38, %v1060_v7  ;;  %vm1059_vm9 = vcmp.eq.f32.partialorder %v1058_v13, 8.507059e+37 }
 0x3d3   :  { %v6618_v0 = vpop.eup %6617 }
 0x3d4   :  { %v1050_v2 = vmul.f32 %v6618_v0, %v1048_v63  ;;  %vm1055_vm6 = vweird.f32 %v6618_v0  ;;  %v6620_v29 = vpop.eup %6619 }
 0x3d5   :  { %vm1056_vm8 = vmor %vm1054_vm7, %vm1055_vm6 }
 0x3d6   :  { %v1051_v43 = vsub.f32 1.0, %v1050_v2 }
 0x3d8   :  { %v1052_v11 = vmul.f32 %v6618_v0, %v1051_v43 }
 0x3da   :  { %v1053_v19 = vadd.f32 %v6618_v0, %v1052_v11 }
 0x3dc   :  { %v1057_v26 = vsel %vm1056_vm8, %v6618_v0, %v1053_v19  ;;  %v1080_v0 = vld [vmem:[#allocation3 + $0x5] ss:$8 sm:$0xf] }
 0x3dd   :  { %v1062_v27 = vsel %vm1059_vm9, %v1061_v25, %v1057_v26 }
 0x3de   :  { %v1069_v62 = vrot.slane %v1062_v27, 1  ;;  %v1072_v24 = vmul.f32 %v6620_v29, %v1062_v27  ;;  %v1075_v38 = vrot.slane %v1062_v27, 2 }
 0x3e0   :  { %v1071_v32 = vmul.f32 %v1069_v62, %v7426_v15 }
 0x3e2   :  { %v7465_v33 = vadd.f32 %v1072_v24, %v1071_v32 }
 0x3e4   :  { %6621 = vtanh.f32 %v7465_v33 }
 0x3ea   :  { %v6622_v30 = vpop.eup %6621 }
 0x3eb   :  { %v1077_v39 = vmul.f32 %v6622_v30, %v1075_v38 }
 0x3ed   :  { %1078 = vst [vmem:[#allocation2 + $0x4] sm:$0x1] %v1077_v39  ;;  %v1081_v31 = vpack.c.bf16 %v1077_v39, %v1077_v39 }
 0x3ef   :  { %1090 = vmatmul.bf16.vlgmr.msra.gmra.mxu0 %v1081_v31  ;;  %1103 = vmatmul.bf16.vlgmr.msra.gmra.mxu1 %v1081_v31 }
 0x3f0   :  { %1116 = vmatmul.bf16.vlgmr.msra.gmra.mxu2 %v1081_v31  ;;  %1129 = vmatmul.bf16.vlgmr.msra.gmra.mxu3 %v1081_v31 }
 0x3f1   :  { %1284 = vmatpush.bf16.msra.mxu0 %v7146_v47  ;;  %1297 = vmatpush.bf16.msra.mxu1 %v7149_v48 }
 0x3f2   :  { %1310 = vmatpush.bf16.msra.mxu2 %v7142_v37  ;;  %1323 = vmatpush.bf16.msra.mxu3 %v7144_v41 }
 0x3f5   :  { %1285 = vmatpush.bf16.msra.mxu0 %v7157_v59  ;;  %1298 = vmatpush.bf16.msra.mxu1 %v7161_v60 }
 0x3f6   :  { %1311 = vmatpush.bf16.msra.mxu2 %v7151_v49  ;;  %1324 = vmatpush.bf16.msra.mxu3 %v7154_v53 }
 0x3f9   :  { %1286 = vmatpush.bf16.msra.mxu0 %v7169_v8  ;;  %1299 = vmatpush.bf16.msra.mxu1 %v7173_v9 }
 0x3fa   :  { %1312 = vmatpush.bf16.msra.mxu2 %v7163_v61  ;;  %1325 = vmatpush.bf16.msra.mxu3 %v7166_v1 }
 0x3fd   :  { %1287 = vmatpush.bf16.msra.mxu0 %v7181_v21  ;;  %1300 = vmatpush.bf16.msra.mxu1 %v7185_v22 }
 0x3fe   :  { %1313 = vmatpush.bf16.msra.mxu2 %v7175_v10  ;;  %1326 = vmatpush.bf16.msra.mxu3 %v7178_v14 }
 0x401   :  { %1288 = vmatpush.bf16.msra.mxu0 %v7193_v34  ;;  %1301 = vmatpush.bf16.msra.mxu1 %v7197_v35 }
 0x402   :  { %1314 = vmatpush.bf16.msra.mxu2 %v7187_v23  ;;  %1327 = vmatpush.bf16.msra.mxu3 %v7190_v28 }
 0x405   :  { %1289 = vmatpush.bf16.msra.mxu0 %v7205_v51  ;;  %1302 = vmatpush.bf16.msra.mxu1 %v7209_v52 }
 0x406   :  { %1315 = vmatpush.bf16.msra.mxu2 %v7199_v36  ;;  %1328 = vmatpush.bf16.msra.mxu3 %v7202_v42 }
 0x409   :  { %1290 = vmatpush.bf16.msra.mxu0 %v7217_v4  ;;  %1303 = vmatpush.bf16.msra.mxu1 %v7221_v5 }
 0x40a   :  { %1316 = vmatpush.bf16.msra.mxu2 %v7211_v54  ;;  %1329 = vmatpush.bf16.msra.mxu3 %v7214_v58 }
 0x40d   :  { %1291 = vmatpush.bf16.msra.mxu0 %v7229_v16  ;;  %1304 = vmatpush.bf16.msra.mxu1 %v7233_v17 }
 0x40e   :  { %1317 = vmatpush.bf16.msra.mxu2 %v7223_v6  ;;  %1330 = vmatpush.bf16.msra.mxu3 %v7226_v12 }
 0x46c   :  { %v1091_v15 = vpop.f32.mrf.mxu0  ;;  %v1104_v40 = vpop.f32.mrf.mxu1 }
 0x46d   :  { %v1138_v44 = vrot.slane %v1104_v40, 7 }
 0x46f   :  { %v1141_v57 = vsel %vm633_vm0, %v1091_v15, %v1138_v44 }
 0x473   :  { %v1117_v45 = vpop.f32.mrf.mxu2  ;;  %v1130_v46 = vpop.f32.mrf.mxu3 }
 0x474   :  { %v1139_v50 = vrot.slane %v1117_v45, 6  ;;  %v1140_v20 = vrot.slane %v1130_v46, 5  ;;  %v1093_v55 = vpop.f32.mrf.mxu0  ;;  %v1106_v56 = vpop.f32.mrf.mxu1 }
 0x476   :  { %v1142_v63 = vsel %vm635_vm1, %v1139_v50, %v1140_v20 }
 0x477   :  { %v1143_v2 = vsel %vm637_vm2, %v1141_v57, %v1142_v63 }
 0x478   :  { %v1145_v3 = vadd.f32 %v1143_v2, %v1080_v0 }
 0x47a   :  { %v6145_v43 = vmul.f32 -1.442695, %v1145_v3  ;;  %v1166_v27 = vrot.slane %v1145_v3, 3 }
 0x47b   :  { %v1119_v7 = vpop.f32.mrf.mxu2  ;;  %v1132_v11 = vpop.f32.mrf.mxu3 }
 0x47c   :  { %6623 = vpow2.f32 %v6145_v43 }
 0x482   :  { %v6624_v13 = vpop.eup %6623 }
 0x483   :  { %v1149_v19 = vadd.f32 1.0, %v6624_v13 }
 0x485   :  { %6625 = vrcp.f32 %v1149_v19  ;;  %v1161_v29 = vand.u32 2147483648, %v1149_v19  ;;  %v1159_v24 = vand.u32 2147483647, %v1149_v19  ;;  %vm1155_vm11 = vweird.f32 %v1149_v19 }
 0x486   :  { %6627 = vtanh.f32 %v1166_v27 }
 0x487   :  { %v1162_v30 = vor.u32 1.1754944e-38, %v1161_v29  ;;  %vm1160_vm13 = vcmp.eq.f32.partialorder %v1159_v24, 8.507059e+37 }
 0x48b   :  { %v6626_v25 = vpop.eup %6625 }
 0x48c   :  { %v1151_v26 = vmul.f32 %v6626_v25, %v1149_v19  ;;  %vm1156_vm10 = vweird.f32 %v6626_v25  ;;  %v6628_v40 = vpop.eup %6627 }
 0x48d   :  { %vm1157_vm12 = vmor %vm1155_vm11, %vm1156_vm10 }
 0x48e   :  { %v1152_v62 = vsub.f32 1.0, %v1151_v26 }
 0x490   :  { %v1153_v32 = vmul.f32 %v6626_v25, %v1152_v62 }
 0x492   :  { %v1154_v38 = vadd.f32 %v6626_v25, %v1153_v32 }
 0x494   :  { %v1158_v39 = vsel %vm1157_vm12, %v6626_v25, %v1154_v38  ;;  %v1181_v25 = vld [vmem:[#allocation3 + $0x6] ss:$8 sm:$0xf] }
 0x495   :  { %v1163_v31 = vsel %vm1160_vm13, %v1162_v30, %v1158_v39 }
 0x496   :  { %v1170_v15 = vrot.slane %v1163_v31, 1  ;;  %v1173_v45 = vmul.f32 %v6628_v40, %v1163_v31  ;;  %v1176_v50 = vrot.slane %v1163_v31, 2 }
 0x498   :  { %v1172_v44 = vmul.f32 %v1170_v15, %v7465_v33 }
 0x49a   :  { %v7504_v46 = vadd.f32 %v1173_v45, %v1172_v44 }
 0x49c   :  { %6629 = vtanh.f32 %v7504_v46 }
 0x4a2   :  { %v6630_v20 = vpop.eup %6629 }
 0x4a3   :  { %v1178_v55 = vmul.f32 %v6630_v20, %v1176_v50 }
 0x4a5   :  { %1179 = vst [vmem:[#allocation2 + $0x5] sm:$0x1] %v1178_v55  ;;  %v1182_v56 = vpack.c.bf16 %v1178_v55, %v1178_v55 }
 0x4a7   :  { %1191 = vmatmul.bf16.vlgmr.msrb.gmra.mxu0 %v1182_v56  ;;  %1204 = vmatmul.bf16.vlgmr.msrb.gmra.mxu1 %v1182_v56 }
 0x4a8   :  { %1217 = vmatmul.bf16.vlgmr.msrb.gmra.mxu2 %v1182_v56  ;;  %1230 = vmatmul.bf16.vlgmr.msrb.gmra.mxu3 %v1182_v56 }
 0x4a9   :  { %1385 = vmatpush.bf16.msrb.mxu0 %v7146_v47  ;;  %1398 = vmatpush.bf16.msrb.mxu1 %v7149_v48 }
 0x4aa   :  { %1411 = vmatpush.bf16.msrb.mxu2 %v7142_v37  ;;  %1424 = vmatpush.bf16.msrb.mxu3 %v7144_v41 }
 0x4ad   :  { %1386 = vmatpush.bf16.msrb.mxu0 %v7157_v59  ;;  %1399 = vmatpush.bf16.msrb.mxu1 %v7161_v60 }
 0x4ae   :  { %1412 = vmatpush.bf16.msrb.mxu2 %v7151_v49  ;;  %1425 = vmatpush.bf16.msrb.mxu3 %v7154_v53 }
 0x4b1   :  { %1387 = vmatpush.bf16.msrb.mxu0 %v7169_v8  ;;  %1400 = vmatpush.bf16.msrb.mxu1 %v7173_v9 }
 0x4b2   :  { %1413 = vmatpush.bf16.msrb.mxu2 %v7163_v61  ;;  %1426 = vmatpush.bf16.msrb.mxu3 %v7166_v1 }
 0x4b5   :  { %1388 = vmatpush.bf16.msrb.mxu0 %v7181_v21  ;;  %1401 = vmatpush.bf16.msrb.mxu1 %v7185_v22 }
 0x4b6   :  { %1414 = vmatpush.bf16.msrb.mxu2 %v7175_v10  ;;  %1427 = vmatpush.bf16.msrb.mxu3 %v7178_v14 }
 0x4b9   :  { %1389 = vmatpush.bf16.msrb.mxu0 %v7193_v34  ;;  %1402 = vmatpush.bf16.msrb.mxu1 %v7197_v35 }
 0x4ba   :  { %1415 = vmatpush.bf16.msrb.mxu2 %v7187_v23  ;;  %1428 = vmatpush.bf16.msrb.mxu3 %v7190_v28 }
 0x4bd   :  { %1390 = vmatpush.bf16.msrb.mxu0 %v7205_v51  ;;  %1403 = vmatpush.bf16.msrb.mxu1 %v7209_v52 }
 0x4be   :  { %1416 = vmatpush.bf16.msrb.mxu2 %v7199_v36  ;;  %1429 = vmatpush.bf16.msrb.mxu3 %v7202_v42 }
 0x4c1   :  { %1391 = vmatpush.bf16.msrb.mxu0 %v7217_v4  ;;  %1404 = vmatpush.bf16.msrb.mxu1 %v7221_v5 }
 0x4c2   :  { %1417 = vmatpush.bf16.msrb.mxu2 %v7211_v54  ;;  %1430 = vmatpush.bf16.msrb.mxu3 %v7214_v58 }
 0x4c5   :  { %1392 = vmatpush.bf16.msrb.mxu0 %v7229_v16  ;;  %1405 = vmatpush.bf16.msrb.mxu1 %v7233_v17 }
 0x4c6   :  { %1418 = vmatpush.bf16.msrb.mxu2 %v7223_v6  ;;  %1431 = vmatpush.bf16.msrb.mxu3 %v7226_v12 }
 0x524   :  { %v1192_v33 = vpop.f32.mrf.mxu0  ;;  %v1205_v57 = vpop.f32.mrf.mxu1 }
 0x525   :  { %v1239_v63 = vrot.slane %v1205_v57, 7 }
 0x527   :  { %v1242_v13 = vsel %vm633_vm0, %v1192_v33, %v1239_v63 }
 0x52b   :  { %v1218_v0 = vpop.f32.mrf.mxu2  ;;  %v1231_v2 = vpop.f32.mrf.mxu3 }
 0x52c   :  { %v1240_v3 = vrot.slane %v1218_v0, 6  ;;  %v1241_v43 = vrot.slane %v1231_v2, 5  ;;  %v1194_v7 = vpop.f32.mrf.mxu0  ;;  %v1207_v11 = vpop.f32.mrf.mxu1 }
 0x52e   :  { %v1243_v19 = vsel %vm635_vm1, %v1240_v3, %v1241_v43 }
 0x52f   :  { %v1244_v26 = vsel %vm637_vm2, %v1242_v13, %v1243_v19 }
 0x530   :  { %v1246_v27 = vadd.f32 %v1244_v26, %v1181_v25 }
 0x532   :  { %v6146_v62 = vmul.f32 -1.442695, %v1246_v27  ;;  %v1267_v31 = vrot.slane %v1246_v27, 3 }
 0x533   :  { %v1220_v29 = vpop.f32.mrf.mxu2  ;;  %v1233_v32 = vpop.f32.mrf.mxu3 }
 0x534   :  { %6631 = vpow2.f32 %v6146_v62 }
 0x53a   :  { %v6632_v24 = vpop.eup %6631 }
 0x53b   :  { %v1250_v38 = vadd.f32 1.0, %v6632_v24 }
 0x53d   :  { %6633 = vrcp.f32 %v1250_v38  ;;  %v1262_v40 = vand.u32 2147483648, %v1250_v38  ;;  %v1260_v45 = vand.u32 2147483647, %v1250_v38  ;;  %vm1256_vm15 = vweird.f32 %v1250_v38 }
 0x53e   :  { %6635 = vtanh.f32 %v1267_v31 }
 0x53f   :  { %v1263_v20 = vor.u32 1.1754944e-38, %v1262_v40  ;;  %vm1261_vm4 = vcmp.eq.f32.partialorder %v1260_v45, 8.507059e+37 }
 0x543   :  { %v6634_v30 = vpop.eup %6633 }
 0x544   :  { %v1252_v39 = vmul.f32 %v6634_v30, %v1250_v38  ;;  %vm1257_vm14 = vweird.f32 %v6634_v30  ;;  %v6636_v57 = vpop.eup %6635 }
 0x545   :  { %vm1258_vm3 = vmor %vm1256_vm15, %vm1257_vm14 }
 0x546   :  { %v1253_v15 = vsub.f32 1.0, %v1252_v39 }
 0x548   :  { %v1254_v44 = vmul.f32 %v6634_v30, %v1253_v15 }
 0x54a   :  { %v1255_v50 = vadd.f32 %v6634_v30, %v1254_v44 }
 0x54c   :  { %v1259_v55 = vsel %vm1258_vm3, %v6634_v30, %v1255_v50  ;;  %v1282_v30 = vld [vmem:[#allocation3 + $0x7] ss:$8 sm:$0xf] }
 0x54d   :  { %v1264_v56 = vsel %vm1261_vm4, %v1263_v20, %v1259_v55 }
 0x54e   :  { %v1271_v33 = vrot.slane %v1264_v56, 1  ;;  %v1274_v0 = vmul.f32 %v6636_v57, %v1264_v56  ;;  %v1277_v3 = vrot.slane %v1264_v56, 2 }
 0x550   :  { %v1273_v63 = vmul.f32 %v1271_v33, %v7504_v46 }
 0x552   :  { %v7543_v2 = vadd.f32 %v1274_v0, %v1273_v63 }
 0x554   :  { %6637 = vtanh.f32 %v7543_v2 }
 0x55a   :  { %v6638_v43 = vpop.eup %6637 }
 0x55b   :  { %v1279_v7 = vmul.f32 %v6638_v43, %v1277_v3 }
 0x55d   :  { %1280 = vst [vmem:[#allocation2 + $0x6] sm:$0x1] %v1279_v7  ;;  %v1283_v11 = vpack.c.bf16 %v1279_v7, %v1279_v7 }
 0x55f   :  { %1292 = vmatmul.bf16.vlgmr.msra.gmra.mxu0 %v1283_v11  ;;  %1305 = vmatmul.bf16.vlgmr.msra.gmra.mxu1 %v1283_v11 }
 0x560   :  { %1318 = vmatmul.bf16.vlgmr.msra.gmra.mxu2 %v1283_v11  ;;  %1331 = vmatmul.bf16.vlgmr.msra.gmra.mxu3 %v1283_v11 }
 0x561   :  { %1486 = vmatpush.bf16.msra.mxu0 %v7146_v47  ;;  %1499 = vmatpush.bf16.msra.mxu1 %v7149_v48 }
 0x562   :  { %1512 = vmatpush.bf16.msra.mxu2 %v7142_v37  ;;  %1525 = vmatpush.bf16.msra.mxu3 %v7144_v41 }
 0x565   :  { %1487 = vmatpush.bf16.msra.mxu0 %v7157_v59  ;;  %1500 = vmatpush.bf16.msra.mxu1 %v7161_v60 }
 0x566   :  { %1513 = vmatpush.bf16.msra.mxu2 %v7151_v49  ;;  %1526 = vmatpush.bf16.msra.mxu3 %v7154_v53 }
 0x569   :  { %1488 = vmatpush.bf16.msra.mxu0 %v7169_v8  ;;  %1501 = vmatpush.bf16.msra.mxu1 %v7173_v9 }
 0x56a   :  { %1514 = vmatpush.bf16.msra.mxu2 %v7163_v61  ;;  %1527 = vmatpush.bf16.msra.mxu3 %v7166_v1 }
 0x56d   :  { %1489 = vmatpush.bf16.msra.mxu0 %v7181_v21  ;;  %1502 = vmatpush.bf16.msra.mxu1 %v7185_v22 }
 0x56e   :  { %1515 = vmatpush.bf16.msra.mxu2 %v7175_v10  ;;  %1528 = vmatpush.bf16.msra.mxu3 %v7178_v14 }
 0x571   :  { %1490 = vmatpush.bf16.msra.mxu0 %v7193_v34  ;;  %1503 = vmatpush.bf16.msra.mxu1 %v7197_v35 }
 0x572   :  { %1516 = vmatpush.bf16.msra.mxu2 %v7187_v23  ;;  %1529 = vmatpush.bf16.msra.mxu3 %v7190_v28 }
 0x575   :  { %1491 = vmatpush.bf16.msra.mxu0 %v7205_v51  ;;  %1504 = vmatpush.bf16.msra.mxu1 %v7209_v52 }
 0x576   :  { %1517 = vmatpush.bf16.msra.mxu2 %v7199_v36  ;;  %1530 = vmatpush.bf16.msra.mxu3 %v7202_v42 }
 0x579   :  { %1492 = vmatpush.bf16.msra.mxu0 %v7217_v4  ;;  %1505 = vmatpush.bf16.msra.mxu1 %v7221_v5 }
 0x57a   :  { %1518 = vmatpush.bf16.msra.mxu2 %v7211_v54  ;;  %1531 = vmatpush.bf16.msra.mxu3 %v7214_v58 }
 0x57d   :  { %1493 = vmatpush.bf16.msra.mxu0 %v7229_v16  ;;  %1506 = vmatpush.bf16.msra.mxu1 %v7233_v17 }
 0x57e   :  { %1519 = vmatpush.bf16.msra.mxu2 %v7223_v6  ;;  %1532 = vmatpush.bf16.msra.mxu3 %v7226_v12 }
 0x5dc   :  { %v1293_v46 = vpop.f32.mrf.mxu0  ;;  %v1306_v13 = vpop.f32.mrf.mxu1 }
 0x5dd   :  { %v1340_v19 = vrot.slane %v1306_v13, 7 }
 0x5df   :  { %v1343_v24 = vsel %vm633_vm0, %v1293_v46, %v1340_v19 }
 0x5e3   :  { %v1319_v25 = vpop.f32.mrf.mxu2  ;;  %v1332_v26 = vpop.f32.mrf.mxu3 }
 0x5e4   :  { %v1341_v27 = vrot.slane %v1319_v25, 6  ;;  %v1342_v62 = vrot.slane %v1332_v26, 5  ;;  %v1295_v29 = vpop.f32.mrf.mxu0  ;;  %v1308_v32 = vpop.f32.mrf.mxu1 }
 0x5e6   :  { %v1344_v38 = vsel %vm635_vm1, %v1341_v27, %v1342_v62 }
 0x5e7   :  { %v1345_v39 = vsel %vm637_vm2, %v1343_v24, %v1344_v38 }
 0x5e8   :  { %v1347_v31 = vadd.f32 %v1345_v39, %v1282_v30 }
 0x5ea   :  { %v6147_v15 = vmul.f32 -1.442695, %v1347_v31  ;;  %v1368_v56 = vrot.slane %v1347_v31, 3 }
 0x5eb   :  { %v1321_v40 = vpop.f32.mrf.mxu2  ;;  %v1334_v44 = vpop.f32.mrf.mxu3 }
 0x5ec   :  { %6639 = vpow2.f32 %v6147_v15 }
 0x5f2   :  { %v6640_v45 = vpop.eup %6639 }
 0x5f3   :  { %v1351_v50 = vadd.f32 1.0, %v6640_v45 }
 0x5f5   :  { %6641 = vrcp.f32 %v1351_v50  ;;  %v1363_v57 = vand.u32 2147483648, %v1351_v50  ;;  %v1361_v0 = vand.u32 2147483647, %v1351_v50  ;;  %vm1357_vm6 = vweird.f32 %v1351_v50 }
 0x5f6   :  { %6643 = vtanh.f32 %v1368_v56 }
 0x5f7   :  { %v1364_v43 = vor.u32 1.1754944e-38, %v1363_v57  ;;  %vm1362_vm8 = vcmp.eq.f32.partialorder %v1361_v0, 8.507059e+37 }
 0x5fb   :  { %v6642_v20 = vpop.eup %6641 }
 0x5fc   :  { %v1353_v55 = vmul.f32 %v6642_v20, %v1351_v50  ;;  %vm1358_vm5 = vweird.f32 %v6642_v20  ;;  %v6644_v13 = vpop.eup %6643 }
 0x5fd   :  { %vm1359_vm7 = vmor %vm1357_vm6, %vm1358_vm5 }
 0x5fe   :  { %v1354_v33 = vsub.f32 1.0, %v1353_v55 }
 0x600   :  { %v1355_v63 = vmul.f32 %v6642_v20, %v1354_v33 }
 0x602   :  { %v1356_v3 = vadd.f32 %v6642_v20, %v1355_v63 }
 0x604   :  { %v1360_v7 = vsel %vm1359_vm7, %v6642_v20, %v1356_v3  ;;  %v1383_v20 = vld [vmem:[#allocation3 + $0x20] ss:$8 sm:$0xf] }
 0x605   :  { %v1365_v11 = vsel %vm1362_vm8, %v1364_v43, %v1360_v7 }
 0x606   :  { %v1372_v46 = vrot.slane %v1365_v11, 1  ;;  %v1375_v25 = vmul.f32 %v6644_v13, %v1365_v11  ;;  %v1378_v27 = vrot.slane %v1365_v11, 2 }
 0x608   :  { %v1374_v19 = vmul.f32 %v1372_v46, %v7543_v2 }
 0x60a   :  { %v7582_v26 = vadd.f32 %v1375_v25, %v1374_v19 }
 0x60c   :  { %6645 = vtanh.f32 %v7582_v26 }
 0x612   :  { %v6646_v62 = vpop.eup %6645 }
 0x613   :  { %v1380_v29 = vmul.f32 %v6646_v62, %v1378_v27 }
 0x615   :  { %1381 = vst [vmem:[#allocation2 + $0x7] sm:$0x1] %v1380_v29  ;;  %v1384_v32 = vpack.c.bf16 %v1380_v29, %v1380_v29 }
 0x617   :  { %1393 = vmatmul.bf16.vlgmr.msrb.gmra.mxu0 %v1384_v32  ;;  %1406 = vmatmul.bf16.vlgmr.msrb.gmra.mxu1 %v1384_v32 }
 0x618   :  { %1419 = vmatmul.bf16.vlgmr.msrb.gmra.mxu2 %v1384_v32  ;;  %1432 = vmatmul.bf16.vlgmr.msrb.gmra.mxu3 %v1384_v32 }
 0x619   :  { %1587 = vmatpush.bf16.msrb.mxu0 %v7146_v47  ;;  %1600 = vmatpush.bf16.msrb.mxu1 %v7149_v48 }
 0x61a   :  { %1613 = vmatpush.bf16.msrb.mxu2 %v7142_v37  ;;  %1626 = vmatpush.bf16.msrb.mxu3 %v7144_v41 }
 0x61d   :  { %1588 = vmatpush.bf16.msrb.mxu0 %v7157_v59  ;;  %1601 = vmatpush.bf16.msrb.mxu1 %v7161_v60 }
 0x61e   :  { %1614 = vmatpush.bf16.msrb.mxu2 %v7151_v49  ;;  %1627 = vmatpush.bf16.msrb.mxu3 %v7154_v53 }
 0x621   :  { %1589 = vmatpush.bf16.msrb.mxu0 %v7169_v8  ;;  %1602 = vmatpush.bf16.msrb.mxu1 %v7173_v9 }
 0x622   :  { %1615 = vmatpush.bf16.msrb.mxu2 %v7163_v61  ;;  %1628 = vmatpush.bf16.msrb.mxu3 %v7166_v1 }
 0x625   :  { %1590 = vmatpush.bf16.msrb.mxu0 %v7181_v21  ;;  %1603 = vmatpush.bf16.msrb.mxu1 %v7185_v22 }
 0x626   :  { %1616 = vmatpush.bf16.msrb.mxu2 %v7175_v10  ;;  %1629 = vmatpush.bf16.msrb.mxu3 %v7178_v14 }
 0x629   :  { %1591 = vmatpush.bf16.msrb.mxu0 %v7193_v34  ;;  %1604 = vmatpush.bf16.msrb.mxu1 %v7197_v35 }
 0x62a   :  { %1617 = vmatpush.bf16.msrb.mxu2 %v7187_v23  ;;  %1630 = vmatpush.bf16.msrb.mxu3 %v7190_v28 }
 0x62d   :  { %1592 = vmatpush.bf16.msrb.mxu0 %v7205_v51  ;;  %1605 = vmatpush.bf16.msrb.mxu1 %v7209_v52 }
 0x62e   :  { %1618 = vmatpush.bf16.msrb.mxu2 %v7199_v36  ;;  %1631 = vmatpush.bf16.msrb.mxu3 %v7202_v42 }
 0x631   :  { %1593 = vmatpush.bf16.msrb.mxu0 %v7217_v4  ;;  %1606 = vmatpush.bf16.msrb.mxu1 %v7221_v5 }
 0x632   :  { %1619 = vmatpush.bf16.msrb.mxu2 %v7211_v54  ;;  %1632 = vmatpush.bf16.msrb.mxu3 %v7214_v58 }
 0x635   :  { %1594 = vmatpush.bf16.msrb.mxu0 %v7229_v16  ;;  %1607 = vmatpush.bf16.msrb.mxu1 %v7233_v17 }
 0x636   :  { %1620 = vmatpush.bf16.msrb.mxu2 %v7223_v6  ;;  %1633 = vmatpush.bf16.msrb.mxu3 %v7226_v12 }
 0x694   :  { %v1394_v2 = vpop.f32.mrf.mxu0  ;;  %v1407_v24 = vpop.f32.mrf.mxu1 }
 0x695   :  { %v1441_v38 = vrot.slane %v1407_v24, 7 }
 0x697   :  { %v1444_v45 = vsel %vm633_vm0, %v1394_v2, %v1441_v38 }
 0x69b   :  { %v1420_v30 = vpop.f32.mrf.mxu2  ;;  %v1433_v39 = vpop.f32.mrf.mxu3 }
 0x69c   :  { %v1442_v31 = vrot.slane %v1420_v30, 6  ;;  %v1443_v15 = vrot.slane %v1433_v39, 5  ;;  %v1396_v40 = vpop.f32.mrf.mxu0  ;;  %v1409_v44 = vpop.f32.mrf.mxu1 }
 0x69e   :  { %v1445_v50 = vsel %vm635_vm1, %v1442_v31, %v1443_v15 }
 0x69f   :  { %v1446_v55 = vsel %vm637_vm2, %v1444_v45, %v1445_v50 }
 0x6a0   :  { %v1448_v56 = vadd.f32 %v1446_v55, %v1383_v20 }
 0x6a2   :  { %v6148_v33 = vmul.f32 -1.442695, %v1448_v56  ;;  %v1469_v11 = vrot.slane %v1448_v56, 3 }
 0x6a3   :  { %v1422_v57 = vpop.f32.mrf.mxu2  ;;  %v1435_v63 = vpop.f32.mrf.mxu3 }
 0x6a4   :  { %6647 = vpow2.f32 %v6148_v33 }
 0x6aa   :  { %v6648_v0 = vpop.eup %6647 }
 0x6ab   :  { %v1452_v3 = vadd.f32 1.0, %v6648_v0 }
 0x6ad   :  { %6649 = vrcp.f32 %v1452_v3  ;;  %v1464_v13 = vand.u32 2147483648, %v1452_v3  ;;  %v1462_v25 = vand.u32 2147483647, %v1452_v3  ;;  %vm1458_vm10 = vweird.f32 %v1452_v3 }
 0x6ae   :  { %6651 = vtanh.f32 %v1469_v11 }
 0x6af   :  { %v1465_v62 = vor.u32 1.1754944e-38, %v1464_v13  ;;  %vm1463_vm12 = vcmp.eq.f32.partialorder %v1462_v25, 8.507059e+37 }
 0x6b3   :  { %v6650_v43 = vpop.eup %6649 }
 0x6b4   :  { %v1454_v7 = vmul.f32 %v6650_v43, %v1452_v3  ;;  %vm1459_vm9 = vweird.f32 %v6650_v43  ;;  %v6652_v24 = vpop.eup %6651 }
 0x6b5   :  { %vm1460_vm11 = vmor %vm1458_vm10, %vm1459_vm9 }
 0x6b6   :  { %v1455_v46 = vsub.f32 1.0, %v1454_v7 }
 0x6b8   :  { %v1456_v19 = vmul.f32 %v6650_v43, %v1455_v46 }
 0x6ba   :  { %v1457_v27 = vadd.f32 %v6650_v43, %v1456_v19 }
 0x6bc   :  { %v1461_v29 = vsel %vm1460_vm11, %v6650_v43, %v1457_v27  ;;  %v1484_v43 = vld [vmem:[#allocation3 + $0x21] ss:$8 sm:$0xf] }
 0x6bd   :  { %v1466_v32 = vsel %vm1463_vm12, %v1465_v62, %v1461_v29 }
 0x6be   :  { %v1473_v2 = vrot.slane %v1466_v32, 1  ;;  %v1476_v30 = vmul.f32 %v6652_v24, %v1466_v32  ;;  %v1479_v31 = vrot.slane %v1466_v32, 2 }
 0x6c0   :  { %v1475_v38 = vmul.f32 %v1473_v2, %v7582_v26 }
 0x6c2   :  { %v7621_v39 = vadd.f32 %v1476_v30, %v1475_v38 }
 0x6c4   :  { %6653 = vtanh.f32 %v7621_v39 }
 0x6ca   :  { %v6654_v15 = vpop.eup %6653 }
 0x6cb   :  { %v1481_v40 = vmul.f32 %v6654_v15, %v1479_v31 }
 0x6cd   :  { %1482 = vst [vmem:[#allocation2 + $0x8] sm:$0x1] %v1481_v40  ;;  %v1485_v44 = vpack.c.bf16 %v1481_v40, %v1481_v40 }
 0x6cf   :  { %1494 = vmatmul.bf16.vlgmr.msra.gmra.mxu0 %v1485_v44  ;;  %1507 = vmatmul.bf16.vlgmr.msra.gmra.mxu1 %v1485_v44 }
 0x6d0   :  { %1520 = vmatmul.bf16.vlgmr.msra.gmra.mxu2 %v1485_v44  ;;  %1533 = vmatmul.bf16.vlgmr.msra.gmra.mxu3 %v1485_v44 }
 0x6d1   :  { %1688 = vmatpush.bf16.msra.mxu0 %v7146_v47  ;;  %1701 = vmatpush.bf16.msra.mxu1 %v7149_v48 }
 0x6d2   :  { %1714 = vmatpush.bf16.msra.mxu2 %v7142_v37  ;;  %1727 = vmatpush.bf16.msra.mxu3 %v7144_v41 }
 0x6d5   :  { %1689 = vmatpush.bf16.msra.mxu0 %v7157_v59  ;;  %1702 = vmatpush.bf16.msra.mxu1 %v7161_v60 }
 0x6d6   :  { %1715 = vmatpush.bf16.msra.mxu2 %v7151_v49  ;;  %1728 = vmatpush.bf16.msra.mxu3 %v7154_v53 }
 0x6d9   :  { %1690 = vmatpush.bf16.msra.mxu0 %v7169_v8  ;;  %1703 = vmatpush.bf16.msra.mxu1 %v7173_v9 }
 0x6da   :  { %1716 = vmatpush.bf16.msra.mxu2 %v7163_v61  ;;  %1729 = vmatpush.bf16.msra.mxu3 %v7166_v1 }
 0x6dd   :  { %1691 = vmatpush.bf16.msra.mxu0 %v7181_v21  ;;  %1704 = vmatpush.bf16.msra.mxu1 %v7185_v22 }
 0x6de   :  { %1717 = vmatpush.bf16.msra.mxu2 %v7175_v10  ;;  %1730 = vmatpush.bf16.msra.mxu3 %v7178_v14 }
 0x6e1   :  { %1692 = vmatpush.bf16.msra.mxu0 %v7193_v34  ;;  %1705 = vmatpush.bf16.msra.mxu1 %v7197_v35 }
 0x6e2   :  { %1718 = vmatpush.bf16.msra.mxu2 %v7187_v23  ;;  %1731 = vmatpush.bf16.msra.mxu3 %v7190_v28 }
 0x6e5   :  { %1693 = vmatpush.bf16.msra.mxu0 %v7205_v51  ;;  %1706 = vmatpush.bf16.msra.mxu1 %v7209_v52 }
 0x6e6   :  { %1719 = vmatpush.bf16.msra.mxu2 %v7199_v36  ;;  %1732 = vmatpush.bf16.msra.mxu3 %v7202_v42 }
 0x6e9   :  { %1694 = vmatpush.bf16.msra.mxu0 %v7217_v4  ;;  %1707 = vmatpush.bf16.msra.mxu1 %v7221_v5 }
 0x6ea   :  { %1720 = vmatpush.bf16.msra.mxu2 %v7211_v54  ;;  %1733 = vmatpush.bf16.msra.mxu3 %v7214_v58 }
 0x6ed   :  { %1695 = vmatpush.bf16.msra.mxu0 %v7229_v16  ;;  %1708 = vmatpush.bf16.msra.mxu1 %v7233_v17 }
 0x6ee   :  { %1721 = vmatpush.bf16.msra.mxu2 %v7223_v6  ;;  %1734 = vmatpush.bf16.msra.mxu3 %v7226_v12 }
 0x74c   :  { %v1495_v26 = vpop.f32.mrf.mxu0  ;;  %v1508_v45 = vpop.f32.mrf.mxu1 }
 0x74d   :  { %v1542_v50 = vrot.slane %v1508_v45, 7 }
 0x74f   :  { %v1545_v0 = vsel %vm633_vm0, %v1495_v26, %v1542_v50 }
 0x753   :  { %v1521_v20 = vpop.f32.mrf.mxu2  ;;  %v1534_v55 = vpop.f32.mrf.mxu3 }
 0x754   :  { %v1543_v56 = vrot.slane %v1521_v20, 6  ;;  %v1544_v33 = vrot.slane %v1534_v55, 5  ;;  %v1497_v57 = vpop.f32.mrf.mxu0  ;;  %v1510_v63 = vpop.f32.mrf.mxu1 }
 0x756   :  { %v1546_v3 = vsel %vm635_vm1, %v1543_v56, %v1544_v33 }
 0x757   :  { %v1547_v7 = vsel %vm637_vm2, %v1545_v0, %v1546_v3 }
 0x758   :  { %v1549_v11 = vadd.f32 %v1547_v7, %v1484_v43 }
 0x75a   :  { %v6149_v46 = vmul.f32 -1.442695, %v1549_v11  ;;  %v1570_v32 = vrot.slane %v1549_v11, 3 }
 0x75b   :  { %v1523_v13 = vpop.f32.mrf.mxu2  ;;  %v1536_v19 = vpop.f32.mrf.mxu3 }
 0x75c   :  { %6655 = vpow2.f32 %v6149_v46 }
 0x762   :  { %v6656_v25 = vpop.eup %6655 }
 0x763   :  { %v1553_v27 = vadd.f32 1.0, %v6656_v25 }
 0x765   :  { %6657 = vrcp.f32 %v1553_v27  ;;  %v1565_v24 = vand.u32 2147483648, %v1553_v27  ;;  %v1563_v30 = vand.u32 2147483647, %v1553_v27  ;;  %vm1559_vm14 = vweird.f32 %v1553_v27 }
 0x766   :  { %6659 = vtanh.f32 %v1570_v32 }
 0x767   :  { %v1566_v15 = vor.u32 1.1754944e-38, %v1565_v24  ;;  %vm1564_vm3 = vcmp.eq.f32.partialorder %v1563_v30, 8.507059e+37 }
 0x76b   :  { %v6658_v62 = vpop.eup %6657 }
 0x76c   :  { %v1555_v29 = vmul.f32 %v6658_v62, %v1553_v27  ;;  %vm1560_vm13 = vweird.f32 %v6658_v62  ;;  %v6660_v45 = vpop.eup %6659 }
 0x76d   :  { %vm1561_vm15 = vmor %vm1559_vm14, %vm1560_vm13 }
 0x76e   :  { %v1556_v2 = vsub.f32 1.0, %v1555_v29 }
 0x770   :  { %v1557_v38 = vmul.f32 %v6658_v62, %v1556_v2 }
 0x772   :  { %v1558_v31 = vadd.f32 %v6658_v62, %v1557_v38 }
 0x774   :  { %v1562_v40 = vsel %vm1561_vm15, %v6658_v62, %v1558_v31  ;;  %v1585_v62 = vld [vmem:[#allocation3 + $0x22] ss:$8 sm:$0xf] }
 0x775   :  { %v1567_v44 = vsel %vm1564_vm3, %v1566_v15, %v1562_v40 }
 0x776   :  { %v1574_v26 = vrot.slane %v1567_v44, 1  ;;  %v1577_v20 = vmul.f32 %v6660_v45, %v1567_v44  ;;  %v1580_v56 = vrot.slane %v1567_v44, 2 }
 0x778   :  { %v1576_v50 = vmul.f32 %v1574_v26, %v7621_v39 }
 0x77a   :  { %v7660_v55 = vadd.f32 %v1577_v20, %v1576_v50 }
 0x77c   :  { %6661 = vtanh.f32 %v7660_v55 }
 0x782   :  { %v6662_v33 = vpop.eup %6661 }
 0x783   :  { %v1582_v57 = vmul.f32 %v6662_v33, %v1580_v56 }
 0x785   :  { %1583 = vst [vmem:[#allocation2 + $0x9] sm:$0x1] %v1582_v57  ;;  %v1586_v63 = vpack.c.bf16 %v1582_v57, %v1582_v57 }
 0x787   :  { %1595 = vmatmul.bf16.vlgmr.msrb.gmra.mxu0 %v1586_v63  ;;  %1608 = vmatmul.bf16.vlgmr.msrb.gmra.mxu1 %v1586_v63 }
 0x788   :  { %1621 = vmatmul.bf16.vlgmr.msrb.gmra.mxu2 %v1586_v63  ;;  %1634 = vmatmul.bf16.vlgmr.msrb.gmra.mxu3 %v1586_v63 }
 0x789   :  { %1789 = vmatpush.bf16.msrb.mxu0 %v7146_v47  ;;  %1802 = vmatpush.bf16.msrb.mxu1 %v7149_v48 }
 0x78a   :  { %1815 = vmatpush.bf16.msrb.mxu2 %v7142_v37  ;;  %1828 = vmatpush.bf16.msrb.mxu3 %v7144_v41 }
 0x78d   :  { %1790 = vmatpush.bf16.msrb.mxu0 %v7157_v59  ;;  %1803 = vmatpush.bf16.msrb.mxu1 %v7161_v60 }
 0x78e   :  { %1816 = vmatpush.bf16.msrb.mxu2 %v7151_v49  ;;  %1829 = vmatpush.bf16.msrb.mxu3 %v7154_v53 }
 0x791   :  { %1791 = vmatpush.bf16.msrb.mxu0 %v7169_v8  ;;  %1804 = vmatpush.bf16.msrb.mxu1 %v7173_v9 }
 0x792   :  { %1817 = vmatpush.bf16.msrb.mxu2 %v7163_v61  ;;  %1830 = vmatpush.bf16.msrb.mxu3 %v7166_v1 }
 0x795   :  { %1792 = vmatpush.bf16.msrb.mxu0 %v7181_v21  ;;  %1805 = vmatpush.bf16.msrb.mxu1 %v7185_v22 }
 0x796   :  { %1818 = vmatpush.bf16.msrb.mxu2 %v7175_v10  ;;  %1831 = vmatpush.bf16.msrb.mxu3 %v7178_v14 }
 0x799   :  { %1793 = vmatpush.bf16.msrb.mxu0 %v7193_v34  ;;  %1806 = vmatpush.bf16.msrb.mxu1 %v7197_v35 }
 0x79a   :  { %1819 = vmatpush.bf16.msrb.mxu2 %v7187_v23  ;;  %1832 = vmatpush.bf16.msrb.mxu3 %v7190_v28 }
 0x79d   :  { %1794 = vmatpush.bf16.msrb.mxu0 %v7205_v51  ;;  %1807 = vmatpush.bf16.msrb.mxu1 %v7209_v52 }
 0x79e   :  { %1820 = vmatpush.bf16.msrb.mxu2 %v7199_v36  ;;  %1833 = vmatpush.bf16.msrb.mxu3 %v7202_v42 }
 0x7a1   :  { %1795 = vmatpush.bf16.msrb.mxu0 %v7217_v4  ;;  %1808 = vmatpush.bf16.msrb.mxu1 %v7221_v5 }
 0x7a2   :  { %1821 = vmatpush.bf16.msrb.mxu2 %v7211_v54  ;;  %1834 = vmatpush.bf16.msrb.mxu3 %v7214_v58 }
 0x7a5   :  { %1796 = vmatpush.bf16.msrb.mxu0 %v7229_v16  ;;  %1809 = vmatpush.bf16.msrb.mxu1 %v7233_v17 }
 0x7a6   :  { %1822 = vmatpush.bf16.msrb.mxu2 %v7223_v6  ;;  %1835 = vmatpush.bf16.msrb.mxu3 %v7226_v12 }
 0x804   :  { %v1596_v39 = vpop.f32.mrf.mxu0  ;;  %v1609_v0 = vpop.f32.mrf.mxu1 }
 0x805   :  { %v1643_v3 = vrot.slane %v1609_v0, 7 }
 0x807   :  { %v1646_v25 = vsel %vm633_vm0, %v1596_v39, %v1643_v3 }
 0x80b   :  { %v1622_v43 = vpop.f32.mrf.mxu2  ;;  %v1635_v7 = vpop.f32.mrf.mxu3 }
 0x80c   :  { %v1644_v11 = vrot.slane %v1622_v43, 6  ;;  %v1645_v46 = vrot.slane %v1635_v7, 5  ;;  %v1598_v13 = vpop.f32.mrf.mxu0  ;;  %v1611_v19 = vpop.f32.mrf.mxu1 }
 0x80e   :  { %v1647_v27 = vsel %vm635_vm1, %v1644_v11, %v1645_v46 }
 0x80f   :  { %v1648_v29 = vsel %vm637_vm2, %v1646_v25, %v1647_v27 }
 0x810   :  { %v1650_v32 = vadd.f32 %v1648_v29, %v1585_v62 }
 0x812   :  { %v6150_v2 = vmul.f32 -1.442695, %v1650_v32  ;;  %v1671_v44 = vrot.slane %v1650_v32, 3 }
 0x813   :  { %v1624_v24 = vpop.f32.mrf.mxu2  ;;  %v1637_v38 = vpop.f32.mrf.mxu3 }
 0x814   :  { %6663 = vpow2.f32 %v6150_v2 }
 0x81a   :  { %v6664_v30 = vpop.eup %6663 }
 0x81b   :  { %v1654_v31 = vadd.f32 1.0, %v6664_v30 }
 0x81d   :  { %6665 = vrcp.f32 %v1654_v31  ;;  %v1666_v45 = vand.u32 2147483648, %v1654_v31  ;;  %v1664_v20 = vand.u32 2147483647, %v1654_v31  ;;  %vm1660_vm5 = vweird.f32 %v1654_v31 }
 0x81e   :  { %6667 = vtanh.f32 %v1671_v44 }
 0x81f   :  { %v1667_v33 = vor.u32 1.1754944e-38, %v1666_v45  ;;  %vm1665_vm7 = vcmp.eq.f32.partialorder %v1664_v20, 8.507059e+37 }
 0x823   :  { %v6666_v15 = vpop.eup %6665 }
 0x824   :  { %v1656_v40 = vmul.f32 %v6666_v15, %v1654_v31  ;;  %vm1661_vm4 = vweird.f32 %v6666_v15  ;;  %v6668_v0 = vpop.eup %6667 }
 0x825   :  { %vm1662_vm6 = vmor %vm1660_vm5, %vm1661_vm4 }
 0x826   :  { %v1657_v26 = vsub.f32 1.0, %v1656_v40 }
 0x828   :  { %v1658_v50 = vmul.f32 %v6666_v15, %v1657_v26 }
 0x82a   :  { %v1659_v56 = vadd.f32 %v6666_v15, %v1658_v50 }
 0x82c   :  { %v1663_v57 = vsel %vm1662_vm6, %v6666_v15, %v1659_v56  ;;  %v1686_v15 = vld [vmem:[#allocation3 + $0x23] ss:$8 sm:$0xf] }
 0x82d   :  { %v1668_v63 = vsel %vm1665_vm7, %v1667_v33, %v1663_v57 }
 0x82e   :  { %v1675_v39 = vrot.slane %v1668_v63, 1  ;;  %v1678_v43 = vmul.f32 %v6668_v0, %v1668_v63  ;;  %v1681_v11 = vrot.slane %v1668_v63, 2 }
 0x830   :  { %v1677_v3 = vmul.f32 %v1675_v39, %v7660_v55 }
 0x832   :  { %v7699_v7 = vadd.f32 %v1678_v43, %v1677_v3 }
 0x834   :  { %6669 = vtanh.f32 %v7699_v7 }
 0x83a   :  { %v6670_v46 = vpop.eup %6669 }
 0x83b   :  { %v1683_v13 = vmul.f32 %v6670_v46, %v1681_v11 }
 0x83d   :  { %1684 = vst [vmem:[#allocation2 + $0xa] sm:$0x1] %v1683_v13  ;;  %v1687_v19 = vpack.c.bf16 %v1683_v13, %v1683_v13 }
 0x83f   :  { %1696 = vmatmul.bf16.vlgmr.msra.gmra.mxu0 %v1687_v19  ;;  %1709 = vmatmul.bf16.vlgmr.msra.gmra.mxu1 %v1687_v19 }
 0x840   :  { %1722 = vmatmul.bf16.vlgmr.msra.gmra.mxu2 %v1687_v19  ;;  %1735 = vmatmul.bf16.vlgmr.msra.gmra.mxu3 %v1687_v19 }
 0x841   :  { %1890 = vmatpush.bf16.msra.mxu0 %v7146_v47  ;;  %1903 = vmatpush.bf16.msra.mxu1 %v7149_v48 }
 0x842   :  { %1916 = vmatpush.bf16.msra.mxu2 %v7142_v37  ;;  %1929 = vmatpush.bf16.msra.mxu3 %v7144_v41 }
 0x845   :  { %1891 = vmatpush.bf16.msra.mxu0 %v7157_v59  ;;  %1904 = vmatpush.bf16.msra.mxu1 %v7161_v60 }
 0x846   :  { %1917 = vmatpush.bf16.msra.mxu2 %v7151_v49  ;;  %1930 = vmatpush.bf16.msra.mxu3 %v7154_v53 }
 0x849   :  { %1892 = vmatpush.bf16.msra.mxu0 %v7169_v8  ;;  %1905 = vmatpush.bf16.msra.mxu1 %v7173_v9 }
 0x84a   :  { %1918 = vmatpush.bf16.msra.mxu2 %v7163_v61  ;;  %1931 = vmatpush.bf16.msra.mxu3 %v7166_v1 }
 0x84d   :  { %1893 = vmatpush.bf16.msra.mxu0 %v7181_v21  ;;  %1906 = vmatpush.bf16.msra.mxu1 %v7185_v22 }
 0x84e   :  { %1919 = vmatpush.bf16.msra.mxu2 %v7175_v10  ;;  %1932 = vmatpush.bf16.msra.mxu3 %v7178_v14 }
 0x851   :  { %1894 = vmatpush.bf16.msra.mxu0 %v7193_v34  ;;  %1907 = vmatpush.bf16.msra.mxu1 %v7197_v35 }
 0x852   :  { %1920 = vmatpush.bf16.msra.mxu2 %v7187_v23  ;;  %1933 = vmatpush.bf16.msra.mxu3 %v7190_v28 }
 0x855   :  { %1895 = vmatpush.bf16.msra.mxu0 %v7205_v51  ;;  %1908 = vmatpush.bf16.msra.mxu1 %v7209_v52 }
 0x856   :  { %1921 = vmatpush.bf16.msra.mxu2 %v7199_v36  ;;  %1934 = vmatpush.bf16.msra.mxu3 %v7202_v42 }
 0x859   :  { %1896 = vmatpush.bf16.msra.mxu0 %v7217_v4  ;;  %1909 = vmatpush.bf16.msra.mxu1 %v7221_v5 }
 0x85a   :  { %1922 = vmatpush.bf16.msra.mxu2 %v7211_v54  ;;  %1935 = vmatpush.bf16.msra.mxu3 %v7214_v58 }
 0x85d   :  { %1897 = vmatpush.bf16.msra.mxu0 %v7229_v16  ;;  %1910 = vmatpush.bf16.msra.mxu1 %v7233_v17 }
 0x85e   :  { %1923 = vmatpush.bf16.msra.mxu2 %v7223_v6  ;;  %1936 = vmatpush.bf16.msra.mxu3 %v7226_v12 }
 0x8bc   :  { %v1697_v55 = vpop.f32.mrf.mxu0  ;;  %v1710_v25 = vpop.f32.mrf.mxu1 }
 0x8bd   :  { %v1744_v27 = vrot.slane %v1710_v25, 7 }
 0x8bf   :  { %v1747_v30 = vsel %vm633_vm0, %v1697_v55, %v1744_v27 }
 0x8c3   :  { %v1723_v62 = vpop.f32.mrf.mxu2  ;;  %v1736_v29 = vpop.f32.mrf.mxu3 }
 0x8c4   :  { %v1745_v32 = vrot.slane %v1723_v62, 6  ;;  %v1746_v2 = vrot.slane %v1736_v29, 5  ;;  %v1699_v24 = vpop.f32.mrf.mxu0  ;;  %v1712_v38 = vpop.f32.mrf.mxu1 }
 0x8c6   :  { %v1748_v31 = vsel %vm635_vm1, %v1745_v32, %v1746_v2 }
 0x8c7   :  { %v1749_v40 = vsel %vm637_vm2, %v1747_v30, %v1748_v31 }
 0x8c8   :  { %v1751_v44 = vadd.f32 %v1749_v40, %v1686_v15 }
 0x8ca   :  { %v6151_v26 = vmul.f32 -1.442695, %v1751_v44  ;;  %v1772_v63 = vrot.slane %v1751_v44, 3 }
 0x8cb   :  { %v1725_v45 = vpop.f32.mrf.mxu2  ;;  %v1738_v50 = vpop.f32.mrf.mxu3 }
 0x8cc   :  { %6671 = vpow2.f32 %v6151_v26 }
 0x8d2   :  { %v6672_v20 = vpop.eup %6671 }
 0x8d3   :  { %v1755_v56 = vadd.f32 1.0, %v6672_v20 }
 0x8d5   :  { %6673 = vrcp.f32 %v1755_v56  ;;  %v1767_v0 = vand.u32 2147483648, %v1755_v56  ;;  %v1765_v43 = vand.u32 2147483647, %v1755_v56  ;;  %vm1761_vm9 = vweird.f32 %v1755_v56 }
 0x8d6   :  { %6675 = vtanh.f32 %v1772_v63 }
 0x8d7   :  { %v1768_v46 = vor.u32 1.1754944e-38, %v1767_v0  ;;  %vm1766_vm11 = vcmp.eq.f32.partialorder %v1765_v43, 8.507059e+37 }
 0x8db   :  { %v6674_v33 = vpop.eup %6673 }
 0x8dc   :  { %v1757_v57 = vmul.f32 %v6674_v33, %v1755_v56  ;;  %vm1762_vm8 = vweird.f32 %v6674_v33  ;;  %v6676_v25 = vpop.eup %6675 }
 0x8dd   :  { %vm1763_vm10 = vmor %vm1761_vm9, %vm1762_vm8 }
 0x8de   :  { %v1758_v39 = vsub.f32 1.0, %v1757_v57 }
 0x8e0   :  { %v1759_v3 = vmul.f32 %v6674_v33, %v1758_v39 }
 0x8e2   :  { %v1760_v11 = vadd.f32 %v6674_v33, %v1759_v3 }
 0x8e4   :  { %v1764_v13 = vsel %vm1763_vm10, %v6674_v33, %v1760_v11  ;;  %v1787_v33 = vld [vmem:[#allocation3 + $0x24] ss:$8 sm:$0xf] }
 0x8e5   :  { %v1769_v19 = vsel %vm1766_vm11, %v1768_v46, %v1764_v13 }
 0x8e6   :  { %v1776_v55 = vrot.slane %v1769_v19, 1  ;;  %v1779_v62 = vmul.f32 %v6676_v25, %v1769_v19  ;;  %v1782_v32 = vrot.slane %v1769_v19, 2 }
 0x8e8   :  { %v1778_v27 = vmul.f32 %v1776_v55, %v7699_v7 }
 0x8ea   :  { %v7738_v29 = vadd.f32 %v1779_v62, %v1778_v27 }
 0x8ec   :  { %6677 = vtanh.f32 %v7738_v29 }
 0x8f2   :  { %v6678_v2 = vpop.eup %6677 }
 0x8f3   :  { %v1784_v24 = vmul.f32 %v6678_v2, %v1782_v32 }
 0x8f5   :  { %1785 = vst [vmem:[#allocation2 + $0xb] sm:$0x1] %v1784_v24  ;;  %v1788_v38 = vpack.c.bf16 %v1784_v24, %v1784_v24 }
 0x8f7   :  { %1797 = vmatmul.bf16.vlgmr.msrb.gmra.mxu0 %v1788_v38  ;;  %1810 = vmatmul.bf16.vlgmr.msrb.gmra.mxu1 %v1788_v38 }
 0x8f8   :  { %1823 = vmatmul.bf16.vlgmr.msrb.gmra.mxu2 %v1788_v38  ;;  %1836 = vmatmul.bf16.vlgmr.msrb.gmra.mxu3 %v1788_v38 }
 0x8f9   :  { %1991 = vmatpush.bf16.msrb.mxu0 %v7146_v47  ;;  %2004 = vmatpush.bf16.msrb.mxu1 %v7149_v48 }
 0x8fa   :  { %2017 = vmatpush.bf16.msrb.mxu2 %v7142_v37  ;;  %2030 = vmatpush.bf16.msrb.mxu3 %v7144_v41 }
 0x8fd   :  { %1992 = vmatpush.bf16.msrb.mxu0 %v7157_v59  ;;  %2005 = vmatpush.bf16.msrb.mxu1 %v7161_v60 }
 0x8fe   :  { %2018 = vmatpush.bf16.msrb.mxu2 %v7151_v49  ;;  %2031 = vmatpush.bf16.msrb.mxu3 %v7154_v53 }
 0x901   :  { %1993 = vmatpush.bf16.msrb.mxu0 %v7169_v8  ;;  %2006 = vmatpush.bf16.msrb.mxu1 %v7173_v9 }
 0x902   :  { %2019 = vmatpush.bf16.msrb.mxu2 %v7163_v61  ;;  %2032 = vmatpush.bf16.msrb.mxu3 %v7166_v1 }
 0x905   :  { %1994 = vmatpush.bf16.msrb.mxu0 %v7181_v21  ;;  %2007 = vmatpush.bf16.msrb.mxu1 %v7185_v22 }
 0x906   :  { %2020 = vmatpush.bf16.msrb.mxu2 %v7175_v10  ;;  %2033 = vmatpush.bf16.msrb.mxu3 %v7178_v14 }
 0x909   :  { %1995 = vmatpush.bf16.msrb.mxu0 %v7193_v34  ;;  %2008 = vmatpush.bf16.msrb.mxu1 %v7197_v35 }
 0x90a   :  { %2021 = vmatpush.bf16.msrb.mxu2 %v7187_v23  ;;  %2034 = vmatpush.bf16.msrb.mxu3 %v7190_v28 }
 0x90d   :  { %1996 = vmatpush.bf16.msrb.mxu0 %v7205_v51  ;;  %2009 = vmatpush.bf16.msrb.mxu1 %v7209_v52 }
 0x90e   :  { %2022 = vmatpush.bf16.msrb.mxu2 %v7199_v36  ;;  %2035 = vmatpush.bf16.msrb.mxu3 %v7202_v42 }
 0x911   :  { %1997 = vmatpush.bf16.msrb.mxu0 %v7217_v4  ;;  %2010 = vmatpush.bf16.msrb.mxu1 %v7221_v5 }
 0x912   :  { %2023 = vmatpush.bf16.msrb.mxu2 %v7211_v54  ;;  %2036 = vmatpush.bf16.msrb.mxu3 %v7214_v58 }
 0x915   :  { %1998 = vmatpush.bf16.msrb.mxu0 %v7229_v16  ;;  %2011 = vmatpush.bf16.msrb.mxu1 %v7233_v17 }
 0x916   :  { %2024 = vmatpush.bf16.msrb.mxu2 %v7223_v6  ;;  %2037 = vmatpush.bf16.msrb.mxu3 %v7226_v12 }
 0x974   :  { %v1798_v7 = vpop.f32.mrf.mxu0  ;;  %v1811_v30 = vpop.f32.mrf.mxu1 }
 0x975   :  { %v1845_v31 = vrot.slane %v1811_v30, 7 }
 0x977   :  { %v1848_v20 = vsel %vm633_vm0, %v1798_v7, %v1845_v31 }
 0x97b   :  { %v1824_v15 = vpop.f32.mrf.mxu2  ;;  %v1837_v40 = vpop.f32.mrf.mxu3 }
 0x97c   :  { %v1846_v44 = vrot.slane %v1824_v15, 6  ;;  %v1847_v26 = vrot.slane %v1837_v40, 5  ;;  %v1800_v45 = vpop.f32.mrf.mxu0  ;;  %v1813_v50 = vpop.f32.mrf.mxu1 }
 0x97e   :  { %v1849_v56 = vsel %vm635_vm1, %v1846_v44, %v1847_v26 }
 0x97f   :  { %v1850_v57 = vsel %vm637_vm2, %v1848_v20, %v1849_v56 }
 0x980   :  { %v1852_v63 = vadd.f32 %v1850_v57, %v1787_v33 }
 0x982   :  { %v6152_v39 = vmul.f32 -1.442695, %v1852_v63  ;;  %v1873_v19 = vrot.slane %v1852_v63, 3 }
 0x983   :  { %v1826_v0 = vpop.f32.mrf.mxu2  ;;  %v1839_v3 = vpop.f32.mrf.mxu3 }
 0x984   :  { %6679 = vpow2.f32 %v6152_v39 }
 0x98a   :  { %v6680_v43 = vpop.eup %6679 }
 0x98b   :  { %v1856_v11 = vadd.f32 1.0, %v6680_v43 }
 0x98d   :  { %6681 = vrcp.f32 %v1856_v11  ;;  %v1868_v25 = vand.u32 2147483648, %v1856_v11  ;;  %v1866_v62 = vand.u32 2147483647, %v1856_v11  ;;  %vm1862_vm13 = vweird.f32 %v1856_v11 }
 0x98e   :  { %6683 = vtanh.f32 %v1873_v19 }
 0x98f   :  { %v1869_v2 = vor.u32 1.1754944e-38, %v1868_v25  ;;  %vm1867_vm15 = vcmp.eq.f32.partialorder %v1866_v62, 8.507059e+37 }
 0x993   :  { %v6682_v46 = vpop.eup %6681 }
 0x994   :  { %v1858_v13 = vmul.f32 %v6682_v46, %v1856_v11  ;;  %vm1863_vm12 = vweird.f32 %v6682_v46  ;;  %v6684_v30 = vpop.eup %6683 }
 0x995   :  { %vm1864_vm14 = vmor %vm1862_vm13, %vm1863_vm12 }
 0x996   :  { %v1859_v55 = vsub.f32 1.0, %v1858_v13 }
 0x998   :  { %v1860_v27 = vmul.f32 %v6682_v46, %v1859_v55 }
 0x99a   :  { %v1861_v32 = vadd.f32 %v6682_v46, %v1860_v27 }
 0x99c   :  { %v1865_v24 = vsel %vm1864_vm14, %v6682_v46, %v1861_v32  ;;  %v1888_v46 = vld [vmem:[#allocation3 + $0x25] ss:$8 sm:$0xf] }
 0x99d   :  { %v1870_v38 = vsel %vm1867_vm15, %v1869_v2, %v1865_v24 }
 0x99e   :  { %v1877_v7 = vrot.slane %v1870_v38, 1  ;;  %v1880_v15 = vmul.f32 %v6684_v30, %v1870_v38  ;;  %v1883_v44 = vrot.slane %v1870_v38, 2 }
 0x9a0   :  { %v1879_v31 = vmul.f32 %v1877_v7, %v7738_v29 }
 0x9a2   :  { %v7777_v40 = vadd.f32 %v1880_v15, %v1879_v31 }
 0x9a4   :  { %6685 = vtanh.f32 %v7777_v40 }
 0x9aa   :  { %v6686_v26 = vpop.eup %6685 }
 0x9ab   :  { %v1885_v45 = vmul.f32 %v6686_v26, %v1883_v44 }
 0x9ad   :  { %1886 = vst [vmem:[#allocation2 + $0xc] sm:$0x1] %v1885_v45  ;;  %v1889_v50 = vpack.c.bf16 %v1885_v45, %v1885_v45 }
 0x9af   :  { %1898 = vmatmul.bf16.vlgmr.msra.gmra.mxu0 %v1889_v50  ;;  %1911 = vmatmul.bf16.vlgmr.msra.gmra.mxu1 %v1889_v50 }
 0x9b0   :  { %1924 = vmatmul.bf16.vlgmr.msra.gmra.mxu2 %v1889_v50  ;;  %1937 = vmatmul.bf16.vlgmr.msra.gmra.mxu3 %v1889_v50 }
 0x9b1   :  { %2092 = vmatpush.bf16.msra.mxu0 %v7146_v47  ;;  %2105 = vmatpush.bf16.msra.mxu1 %v7149_v48 }
 0x9b2   :  { %2118 = vmatpush.bf16.msra.mxu2 %v7142_v37  ;;  %2131 = vmatpush.bf16.msra.mxu3 %v7144_v41 }
 0x9b5   :  { %2093 = vmatpush.bf16.msra.mxu0 %v7157_v59  ;;  %2106 = vmatpush.bf16.msra.mxu1 %v7161_v60 }
 0x9b6   :  { %2119 = vmatpush.bf16.msra.mxu2 %v7151_v49  ;;  %2132 = vmatpush.bf16.msra.mxu3 %v7154_v53 }
 0x9b9   :  { %2094 = vmatpush.bf16.msra.mxu0 %v7169_v8  ;;  %2107 = vmatpush.bf16.msra.mxu1 %v7173_v9 }
 0x9ba   :  { %2120 = vmatpush.bf16.msra.mxu2 %v7163_v61  ;;  %2133 = vmatpush.bf16.msra.mxu3 %v7166_v1 }
 0x9bd   :  { %2095 = vmatpush.bf16.msra.mxu0 %v7181_v21  ;;  %2108 = vmatpush.bf16.msra.mxu1 %v7185_v22 }
 0x9be   :  { %2121 = vmatpush.bf16.msra.mxu2 %v7175_v10  ;;  %2134 = vmatpush.bf16.msra.mxu3 %v7178_v14 }
 0x9c1   :  { %2096 = vmatpush.bf16.msra.mxu0 %v7193_v34  ;;  %2109 = vmatpush.bf16.msra.mxu1 %v7197_v35 }
 0x9c2   :  { %2122 = vmatpush.bf16.msra.mxu2 %v7187_v23  ;;  %2135 = vmatpush.bf16.msra.mxu3 %v7190_v28 }
 0x9c5   :  { %2097 = vmatpush.bf16.msra.mxu0 %v7205_v51  ;;  %2110 = vmatpush.bf16.msra.mxu1 %v7209_v52 }
 0x9c6   :  { %2123 = vmatpush.bf16.msra.mxu2 %v7199_v36  ;;  %2136 = vmatpush.bf16.msra.mxu3 %v7202_v42 }
 0x9c9   :  { %2098 = vmatpush.bf16.msra.mxu0 %v7217_v4  ;;  %2111 = vmatpush.bf16.msra.mxu1 %v7221_v5 }
 0x9ca   :  { %2124 = vmatpush.bf16.msra.mxu2 %v7211_v54  ;;  %2137 = vmatpush.bf16.msra.mxu3 %v7214_v58 }
 0x9cd   :  { %2099 = vmatpush.bf16.msra.mxu0 %v7229_v16  ;;  %2112 = vmatpush.bf16.msra.mxu1 %v7233_v17 }
 0x9ce   :  { %2125 = vmatpush.bf16.msra.mxu2 %v7223_v6  ;;  %2138 = vmatpush.bf16.msra.mxu3 %v7226_v12 }
 0xa2c   :  { %v1899_v29 = vpop.f32.mrf.mxu0  ;;  %v1912_v20 = vpop.f32.mrf.mxu1 }
 0xa2d   :  { %v1946_v56 = vrot.slane %v1912_v20, 7 }
 0xa2f   :  { %v1949_v43 = vsel %vm633_vm0, %v1899_v29, %v1946_v56 }
 0xa33   :  { %v1925_v33 = vpop.f32.mrf.mxu2  ;;  %v1938_v57 = vpop.f32.mrf.mxu3 }
 0xa34   :  { %v1947_v63 = vrot.slane %v1925_v33, 6  ;;  %v1948_v39 = vrot.slane %v1938_v57, 5  ;;  %v1901_v0 = vpop.f32.mrf.mxu0  ;;  %v1914_v3 = vpop.f32.mrf.mxu1 }
 0xa36   :  { %v1950_v11 = vsel %vm635_vm1, %v1947_v63, %v1948_v39 }
 0xa37   :  { %v1951_v13 = vsel %vm637_vm2, %v1949_v43, %v1950_v11 }
 0xa38   :  { %v1953_v19 = vadd.f32 %v1951_v13, %v1888_v46 }
 0xa3a   :  { %v6153_v55 = vmul.f32 -1.442695, %v1953_v19  ;;  %v1974_v38 = vrot.slane %v1953_v19, 3 }
 0xa3b   :  { %v1927_v25 = vpop.f32.mrf.mxu2  ;;  %v1940_v27 = vpop.f32.mrf.mxu3 }
 0xa3c   :  { %6687 = vpow2.f32 %v6153_v55 }
 0xa42   :  { %v6688_v62 = vpop.eup %6687 }
 0xa43   :  { %v1957_v32 = vadd.f32 1.0, %v6688_v62 }
 0xa45   :  { %6689 = vrcp.f32 %v1957_v32  ;;  %v1969_v30 = vand.u32 2147483648, %v1957_v32  ;;  %v1967_v15 = vand.u32 2147483647, %v1957_v32  ;;  %vm1963_vm4 = vweird.f32 %v1957_v32 }
 0xa46   :  { %6691 = vtanh.f32 %v1974_v38 }
 0xa47   :  { %v1970_v26 = vor.u32 1.1754944e-38, %v1969_v30  ;;  %vm1968_vm6 = vcmp.eq.f32.partialorder %v1967_v15, 8.507059e+37 }
 0xa4b   :  { %v6690_v2 = vpop.eup %6689 }
 0xa4c   :  { %v1959_v24 = vmul.f32 %v6690_v2, %v1957_v32  ;;  %vm1964_vm3 = vweird.f32 %v6690_v2  ;;  %v6692_v20 = vpop.eup %6691 }
 0xa4d   :  { %vm1965_vm5 = vmor %vm1963_vm4, %vm1964_vm3 }
 0xa4e   :  { %v1960_v7 = vsub.f32 1.0, %v1959_v24 }
 0xa50   :  { %v1961_v31 = vmul.f32 %v6690_v2, %v1960_v7 }
 0xa52   :  { %v1962_v44 = vadd.f32 %v6690_v2, %v1961_v31 }
 0xa54   :  { %v1966_v45 = vsel %vm1965_vm5, %v6690_v2, %v1962_v44  ;;  %v1989_v2 = vld [vmem:[#allocation3 + $0x26] ss:$8 sm:$0xf] }
 0xa55   :  { %v1971_v50 = vsel %vm1968_vm6, %v1970_v26, %v1966_v45 }
 0xa56   :  { %v1978_v29 = vrot.slane %v1971_v50, 1  ;;  %v1981_v33 = vmul.f32 %v6692_v20, %v1971_v50  ;;  %v1984_v63 = vrot.slane %v1971_v50, 2 }
 0xa58   :  { %v1980_v56 = vmul.f32 %v1978_v29, %v7777_v40 }
 0xa5a   :  { %v7816_v57 = vadd.f32 %v1981_v33, %v1980_v56 }
 0xa5c   :  { %6693 = vtanh.f32 %v7816_v57 }
 0xa62   :  { %v6694_v39 = vpop.eup %6693 }
 0xa63   :  { %v1986_v0 = vmul.f32 %v6694_v39, %v1984_v63 }
 0xa65   :  { %1987 = vst [vmem:[#allocation2 + $0xd] sm:$0x1] %v1986_v0  ;;  %v1990_v3 = vpack.c.bf16 %v1986_v0, %v1986_v0 }
 0xa67   :  { %1999 = vmatmul.bf16.vlgmr.msrb.gmra.mxu0 %v1990_v3  ;;  %2012 = vmatmul.bf16.vlgmr.msrb.gmra.mxu1 %v1990_v3 }
 0xa68   :  { %2025 = vmatmul.bf16.vlgmr.msrb.gmra.mxu2 %v1990_v3  ;;  %2038 = vmatmul.bf16.vlgmr.msrb.gmra.mxu3 %v1990_v3 }
 0xa69   :  { %2193 = vmatpush.bf16.msrb.mxu0 %v7146_v47  ;;  %2206 = vmatpush.bf16.msrb.mxu1 %v7149_v48 }
 0xa6a   :  { %2219 = vmatpush.bf16.msrb.mxu2 %v7142_v37  ;;  %2232 = vmatpush.bf16.msrb.mxu3 %v7144_v41 }
 0xa6d   :  { %2194 = vmatpush.bf16.msrb.mxu0 %v7157_v59  ;;  %2207 = vmatpush.bf16.msrb.mxu1 %v7161_v60 }
 0xa6e   :  { %2220 = vmatpush.bf16.msrb.mxu2 %v7151_v49  ;;  %2233 = vmatpush.bf16.msrb.mxu3 %v7154_v53 }
 0xa71   :  { %2195 = vmatpush.bf16.msrb.mxu0 %v7169_v8  ;;  %2208 = vmatpush.bf16.msrb.mxu1 %v7173_v9 }
 0xa72   :  { %2221 = vmatpush.bf16.msrb.mxu2 %v7163_v61  ;;  %2234 = vmatpush.bf16.msrb.mxu3 %v7166_v1 }
 0xa75   :  { %2196 = vmatpush.bf16.msrb.mxu0 %v7181_v21  ;;  %2209 = vmatpush.bf16.msrb.mxu1 %v7185_v22 }
 0xa76   :  { %2222 = vmatpush.bf16.msrb.mxu2 %v7175_v10  ;;  %2235 = vmatpush.bf16.msrb.mxu3 %v7178_v14 }
 0xa79   :  { %2197 = vmatpush.bf16.msrb.mxu0 %v7193_v34  ;;  %2210 = vmatpush.bf16.msrb.mxu1 %v7197_v35 }
 0xa7a   :  { %2223 = vmatpush.bf16.msrb.mxu2 %v7187_v23  ;;  %2236 = vmatpush.bf16.msrb.mxu3 %v7190_v28 }
 0xa7d   :  { %2198 = vmatpush.bf16.msrb.mxu0 %v7205_v51  ;;  %2211 = vmatpush.bf16.msrb.mxu1 %v7209_v52 }
 0xa7e   :  { %2224 = vmatpush.bf16.msrb.mxu2 %v7199_v36  ;;  %2237 = vmatpush.bf16.msrb.mxu3 %v7202_v42 }
 0xa81   :  { %2199 = vmatpush.bf16.msrb.mxu0 %v7217_v4  ;;  %2212 = vmatpush.bf16.msrb.mxu1 %v7221_v5 }
 0xa82   :  { %2225 = vmatpush.bf16.msrb.mxu2 %v7211_v54  ;;  %2238 = vmatpush.bf16.msrb.mxu3 %v7214_v58 }
 0xa85   :  { %2200 = vmatpush.bf16.msrb.mxu0 %v7229_v16  ;;  %2213 = vmatpush.bf16.msrb.mxu1 %v7233_v17 }
 0xa86   :  { %2226 = vmatpush.bf16.msrb.mxu2 %v7223_v6  ;;  %2239 = vmatpush.bf16.msrb.mxu3 %v7226_v12 }
 0xae4   :  { %v2000_v40 = vpop.f32.mrf.mxu0  ;;  %v2013_v43 = vpop.f32.mrf.mxu1 }
 0xae5   :  { %v2047_v11 = vrot.slane %v2013_v43, 7 }
 0xae7   :  { %v2050_v62 = vsel %vm633_vm0, %v2000_v40, %v2047_v11 }
 0xaeb   :  { %v2026_v46 = vpop.f32.mrf.mxu2  ;;  %v2039_v13 = vpop.f32.mrf.mxu3 }
 0xaec   :  { %v2048_v19 = vrot.slane %v2026_v46, 6  ;;  %v2049_v55 = vrot.slane %v2039_v13, 5  ;;  %v2002_v25 = vpop.f32.mrf.mxu0  ;;  %v2015_v27 = vpop.f32.mrf.mxu1 }
 0xaee   :  { %v2051_v32 = vsel %vm635_vm1, %v2048_v19, %v2049_v55 }
 0xaef   :  { %v2052_v24 = vsel %vm637_vm2, %v2050_v62, %v2051_v32 }
 0xaf0   :  { %v2054_v38 = vadd.f32 %v2052_v24, %v1989_v2 }
 0xaf2   :  { %v6154_v7 = vmul.f32 -1.442695, %v2054_v38  ;;  %v2075_v50 = vrot.slane %v2054_v38, 3 }
 0xaf3   :  { %v2028_v30 = vpop.f32.mrf.mxu2  ;;  %v2041_v31 = vpop.f32.mrf.mxu3 }
 0xaf4   :  { %6695 = vpow2.f32 %v6154_v7 }
 0xafa   :  { %v6696_v15 = vpop.eup %6695 }
 0xafb   :  { %v2058_v44 = vadd.f32 1.0, %v6696_v15 }
 0xafd   :  { %6697 = vrcp.f32 %v2058_v44  ;;  %v2070_v20 = vand.u32 2147483648, %v2058_v44  ;;  %v2068_v33 = vand.u32 2147483647, %v2058_v44  ;;  %vm2064_vm8 = vweird.f32 %v2058_v44 }
 0xafe   :  { %6699 = vtanh.f32 %v2075_v50 }
 0xaff   :  { %v2071_v39 = vor.u32 1.1754944e-38, %v2070_v20  ;;  %vm2069_vm10 = vcmp.eq.f32.partialorder %v2068_v33, 8.507059e+37 }
 0xb03   :  { %v6698_v26 = vpop.eup %6697 }
 0xb04   :  { %v2060_v45 = vmul.f32 %v6698_v26, %v2058_v44  ;;  %vm2065_vm7 = vweird.f32 %v6698_v26  ;;  %v6700_v43 = vpop.eup %6699 }
 0xb05   :  { %vm2066_vm9 = vmor %vm2064_vm8, %vm2065_vm7 }
 0xb06   :  { %v2061_v29 = vsub.f32 1.0, %v2060_v45 }
 0xb08   :  { %v2062_v56 = vmul.f32 %v6698_v26, %v2061_v29 }
 0xb0a   :  { %v2063_v63 = vadd.f32 %v6698_v26, %v2062_v56 }
 0xb0c   :  { %v2067_v0 = vsel %vm2066_vm9, %v6698_v26, %v2063_v63  ;;  %v2090_v26 = vld [vmem:[#allocation3 + $0x27] ss:$8 sm:$0xf] }
 0xb0d   :  { %v2072_v3 = vsel %vm2069_vm10, %v2071_v39, %v2067_v0 }
 0xb0e   :  { %v2079_v40 = vrot.slane %v2072_v3, 1  ;;  %v2082_v46 = vmul.f32 %v6700_v43, %v2072_v3  ;;  %v2085_v19 = vrot.slane %v2072_v3, 2 }
 0xb10   :  { %v2081_v11 = vmul.f32 %v2079_v40, %v7816_v57 }
 0xb12   :  { %v7855_v13 = vadd.f32 %v2082_v46, %v2081_v11 }
 0xb14   :  { %6701 = vtanh.f32 %v7855_v13 }
 0xb1a   :  { %v6702_v55 = vpop.eup %6701 }
 0xb1b   :  { %v2087_v25 = vmul.f32 %v6702_v55, %v2085_v19 }
 0xb1d   :  { %2088 = vst [vmem:[#allocation2 + $0xe] sm:$0x1] %v2087_v25  ;;  %v2091_v27 = vpack.c.bf16 %v2087_v25, %v2087_v25 }
 0xb1f   :  { %2100 = vmatmul.bf16.vlgmr.msra.gmra.mxu0 %v2091_v27  ;;  %2113 = vmatmul.bf16.vlgmr.msra.gmra.mxu1 %v2091_v27 }
 0xb20   :  { %2126 = vmatmul.bf16.vlgmr.msra.gmra.mxu2 %v2091_v27  ;;  %2139 = vmatmul.bf16.vlgmr.msra.gmra.mxu3 %v2091_v27 }
 0xb21   :  { %2294 = vmatpush.bf16.msra.mxu0 %v7146_v47  ;;  %2307 = vmatpush.bf16.msra.mxu1 %v7149_v48 }
 0xb22   :  { %2320 = vmatpush.bf16.msra.mxu2 %v7142_v37  ;;  %2333 = vmatpush.bf16.msra.mxu3 %v7144_v41 }
 0xb25   :  { %2295 = vmatpush.bf16.msra.mxu0 %v7157_v59  ;;  %2308 = vmatpush.bf16.msra.mxu1 %v7161_v60 }
 0xb26   :  { %2321 = vmatpush.bf16.msra.mxu2 %v7151_v49  ;;  %2334 = vmatpush.bf16.msra.mxu3 %v7154_v53 }
 0xb29   :  { %2296 = vmatpush.bf16.msra.mxu0 %v7169_v8  ;;  %2309 = vmatpush.bf16.msra.mxu1 %v7173_v9 }
 0xb2a   :  { %2322 = vmatpush.bf16.msra.mxu2 %v7163_v61  ;;  %2335 = vmatpush.bf16.msra.mxu3 %v7166_v1 }
 0xb2d   :  { %2297 = vmatpush.bf16.msra.mxu0 %v7181_v21  ;;  %2310 = vmatpush.bf16.msra.mxu1 %v7185_v22 }
 0xb2e   :  { %2323 = vmatpush.bf16.msra.mxu2 %v7175_v10  ;;  %2336 = vmatpush.bf16.msra.mxu3 %v7178_v14 }
 0xb31   :  { %2298 = vmatpush.bf16.msra.mxu0 %v7193_v34  ;;  %2311 = vmatpush.bf16.msra.mxu1 %v7197_v35 }
 0xb32   :  { %2324 = vmatpush.bf16.msra.mxu2 %v7187_v23  ;;  %2337 = vmatpush.bf16.msra.mxu3 %v7190_v28 }
 0xb35   :  { %2299 = vmatpush.bf16.msra.mxu0 %v7205_v51  ;;  %2312 = vmatpush.bf16.msra.mxu1 %v7209_v52 }
 0xb36   :  { %2325 = vmatpush.bf16.msra.mxu2 %v7199_v36  ;;  %2338 = vmatpush.bf16.msra.mxu3 %v7202_v42 }
 0xb39   :  { %2300 = vmatpush.bf16.msra.mxu0 %v7217_v4  ;;  %2313 = vmatpush.bf16.msra.mxu1 %v7221_v5 }
 0xb3a   :  { %2326 = vmatpush.bf16.msra.mxu2 %v7211_v54  ;;  %2339 = vmatpush.bf16.msra.mxu3 %v7214_v58 }
 0xb3d   :  { %2301 = vmatpush.bf16.msra.mxu0 %v7229_v16  ;;  %2314 = vmatpush.bf16.msra.mxu1 %v7233_v17 }
 0xb3e   :  { %2327 = vmatpush.bf16.msra.mxu2 %v7223_v6  ;;  %2340 = vmatpush.bf16.msra.mxu3 %v7226_v12 }
 0xb9c   :  { %v2101_v57 = vpop.f32.mrf.mxu0  ;;  %v2114_v62 = vpop.f32.mrf.mxu1 }
 0xb9d   :  { %v2148_v32 = vrot.slane %v2114_v62, 7 }
 0xb9f   :  { %v2151_v15 = vsel %vm633_vm0, %v2101_v57, %v2148_v32 }
 0xba3   :  { %v2127_v2 = vpop.f32.mrf.mxu2  ;;  %v2140_v24 = vpop.f32.mrf.mxu3 }
 0xba4   :  { %v2149_v38 = vrot.slane %v2127_v2, 6  ;;  %v2150_v7 = vrot.slane %v2140_v24, 5  ;;  %v2103_v30 = vpop.f32.mrf.mxu0  ;;  %v2116_v31 = vpop.f32.mrf.mxu1 }
 0xba6   :  { %v2152_v44 = vsel %vm635_vm1, %v2149_v38, %v2150_v7 }
 0xba7   :  { %v2153_v45 = vsel %vm637_vm2, %v2151_v15, %v2152_v44 }
 0xba8   :  { %v2155_v50 = vadd.f32 %v2153_v45, %v2090_v26 }
 0xbaa   :  { %v6155_v29 = vmul.f32 -1.442695, %v2155_v50  ;;  %v2176_v3 = vrot.slane %v2155_v50, 3 }
 0xbab   :  { %v2129_v20 = vpop.f32.mrf.mxu2  ;;  %v2142_v56 = vpop.f32.mrf.mxu3 }
 0xbac   :  { %6703 = vpow2.f32 %v6155_v29 }
 0xbb2   :  { %v6704_v33 = vpop.eup %6703 }
 0xbb3   :  { %v2159_v63 = vadd.f32 1.0, %v6704_v33 }
 0xbb5   :  { %6705 = vrcp.f32 %v2159_v63  ;;  %v2171_v43 = vand.u32 2147483648, %v2159_v63  ;;  %v2169_v46 = vand.u32 2147483647, %v2159_v63  ;;  %vm2165_vm12 = vweird.f32 %v2159_v63 }
 0xbb6   :  { %6707 = vtanh.f32 %v2176_v3 }
 0xbb7   :  { %v2172_v55 = vor.u32 1.1754944e-38, %v2171_v43  ;;  %vm2170_vm14 = vcmp.eq.f32.partialorder %v2169_v46, 8.507059e+37 }
 0xbbb   :  { %v6706_v39 = vpop.eup %6705 }
 0xbbc   :  { %v2161_v0 = vmul.f32 %v6706_v39, %v2159_v63  ;;  %vm2166_vm11 = vweird.f32 %v6706_v39  ;;  %v6708_v62 = vpop.eup %6707 }
 0xbbd   :  { %vm2167_vm13 = vmor %vm2165_vm12, %vm2166_vm11 }
 0xbbe   :  { %v2162_v40 = vsub.f32 1.0, %v2161_v0 }
 0xbc0   :  { %v2163_v11 = vmul.f32 %v6706_v39, %v2162_v40 }
 0xbc2   :  { %v2164_v19 = vadd.f32 %v6706_v39, %v2163_v11 }
 0xbc4   :  { %v2168_v25 = vsel %vm2167_vm13, %v6706_v39, %v2164_v19  ;;  %v2191_v39 = vld [vmem:[#allocation3 + $0x40] ss:$8 sm:$0xf] }
 0xbc5   :  { %v2173_v27 = vsel %vm2170_vm14, %v2172_v55, %v2168_v25 }
 0xbc6   :  { %v2180_v57 = vrot.slane %v2173_v27, 1  ;;  %v2183_v2 = vmul.f32 %v6708_v62, %v2173_v27  ;;  %v2186_v38 = vrot.slane %v2173_v27, 2 }
 0xbc8   :  { %v2182_v32 = vmul.f32 %v2180_v57, %v7855_v13 }
 0xbca   :  { %v7894_v24 = vadd.f32 %v2183_v2, %v2182_v32 }
 0xbcc   :  { %6709 = vtanh.f32 %v7894_v24 }
 0xbd2   :  { %v6710_v7 = vpop.eup %6709 }
 0xbd3   :  { %v2188_v30 = vmul.f32 %v6710_v7, %v2186_v38 }
 0xbd5   :  { %2189 = vst [vmem:[#allocation2 + $0xf] sm:$0x1] %v2188_v30  ;;  %v2192_v31 = vpack.c.bf16 %v2188_v30, %v2188_v30 }
 0xbd7   :  { %2201 = vmatmul.bf16.vlgmr.msrb.gmra.mxu0 %v2192_v31  ;;  %2214 = vmatmul.bf16.vlgmr.msrb.gmra.mxu1 %v2192_v31 }
 0xbd8   :  { %2227 = vmatmul.bf16.vlgmr.msrb.gmra.mxu2 %v2192_v31  ;;  %2240 = vmatmul.bf16.vlgmr.msrb.gmra.mxu3 %v2192_v31 }
 0xbd9   :  { %2395 = vmatpush.bf16.msrb.mxu0 %v7146_v47  ;;  %2408 = vmatpush.bf16.msrb.mxu1 %v7149_v48 }
 0xbda   :  { %2421 = vmatpush.bf16.msrb.mxu2 %v7142_v37  ;;  %2434 = vmatpush.bf16.msrb.mxu3 %v7144_v41 }
 0xbdd   :  { %2396 = vmatpush.bf16.msrb.mxu0 %v7157_v59  ;;  %2409 = vmatpush.bf16.msrb.mxu1 %v7161_v60 }
 0xbde   :  { %2422 = vmatpush.bf16.msrb.mxu2 %v7151_v49  ;;  %2435 = vmatpush.bf16.msrb.mxu3 %v7154_v53 }
 0xbe1   :  { %2397 = vmatpush.bf16.msrb.mxu0 %v7169_v8  ;;  %2410 = vmatpush.bf16.msrb.mxu1 %v7173_v9 }
 0xbe2   :  { %2423 = vmatpush.bf16.msrb.mxu2 %v7163_v61  ;;  %2436 = vmatpush.bf16.msrb.mxu3 %v7166_v1 }
 0xbe5   :  { %2398 = vmatpush.bf16.msrb.mxu0 %v7181_v21  ;;  %2411 = vmatpush.bf16.msrb.mxu1 %v7185_v22 }
 0xbe6   :  { %2424 = vmatpush.bf16.msrb.mxu2 %v7175_v10  ;;  %2437 = vmatpush.bf16.msrb.mxu3 %v7178_v14 }
 0xbe9   :  { %2399 = vmatpush.bf16.msrb.mxu0 %v7193_v34  ;;  %2412 = vmatpush.bf16.msrb.mxu1 %v7197_v35 }
 0xbea   :  { %2425 = vmatpush.bf16.msrb.mxu2 %v7187_v23  ;;  %2438 = vmatpush.bf16.msrb.mxu3 %v7190_v28 }
 0xbed   :  { %2400 = vmatpush.bf16.msrb.mxu0 %v7205_v51  ;;  %2413 = vmatpush.bf16.msrb.mxu1 %v7209_v52 }
 0xbee   :  { %2426 = vmatpush.bf16.msrb.mxu2 %v7199_v36  ;;  %2439 = vmatpush.bf16.msrb.mxu3 %v7202_v42 }
 0xbf1   :  { %2401 = vmatpush.bf16.msrb.mxu0 %v7217_v4  ;;  %2414 = vmatpush.bf16.msrb.mxu1 %v7221_v5 }
 0xbf2   :  { %2427 = vmatpush.bf16.msrb.mxu2 %v7211_v54  ;;  %2440 = vmatpush.bf16.msrb.mxu3 %v7214_v58 }
 0xbf5   :  { %2402 = vmatpush.bf16.msrb.mxu0 %v7229_v16  ;;  %2415 = vmatpush.bf16.msrb.mxu1 %v7233_v17 }
 0xbf6   :  { %2428 = vmatpush.bf16.msrb.mxu2 %v7223_v6  ;;  %2441 = vmatpush.bf16.msrb.mxu3 %v7226_v12 }
 0xc54   :  { %v2202_v13 = vpop.f32.mrf.mxu0  ;;  %v2215_v15 = vpop.f32.mrf.mxu1 }
 0xc55   :  { %v2249_v44 = vrot.slane %v2215_v15, 7 }
 0xc57   :  { %v2252_v33 = vsel %vm633_vm0, %v2202_v13, %v2249_v44 }
 0xc5b   :  { %v2228_v26 = vpop.f32.mrf.mxu2  ;;  %v2241_v45 = vpop.f32.mrf.mxu3 }
 0xc5c   :  { %v2250_v50 = vrot.slane %v2228_v26, 6  ;;  %v2251_v29 = vrot.slane %v2241_v45, 5  ;;  %v2204_v20 = vpop.f32.mrf.mxu0  ;;  %v2217_v56 = vpop.f32.mrf.mxu1 }
 0xc5e   :  { %v2253_v63 = vsel %vm635_vm1, %v2250_v50, %v2251_v29 }
 0xc5f   :  { %v2254_v0 = vsel %vm637_vm2, %v2252_v33, %v2253_v63 }
 0xc60   :  { %v2256_v3 = vadd.f32 %v2254_v0, %v2191_v39 }
 0xc62   :  { %v6156_v40 = vmul.f32 -1.442695, %v2256_v3  ;;  %v2277_v27 = vrot.slane %v2256_v3, 3 }
 0xc63   :  { %v2230_v43 = vpop.f32.mrf.mxu2  ;;  %v2243_v11 = vpop.f32.mrf.mxu3 }
 0xc64   :  { %6711 = vpow2.f32 %v6156_v40 }
 0xc6a   :  { %v6712_v46 = vpop.eup %6711 }
 0xc6b   :  { %v2260_v19 = vadd.f32 1.0, %v6712_v46 }
 0xc6d   :  { %6713 = vrcp.f32 %v2260_v19  ;;  %v2272_v62 = vand.u32 2147483648, %v2260_v19  ;;  %v2270_v2 = vand.u32 2147483647, %v2260_v19  ;;  %vm2266_vm3 = vweird.f32 %v2260_v19 }
 0xc6e   :  { %6715 = vtanh.f32 %v2277_v27 }
 0xc6f   :  { %v2273_v7 = vor.u32 1.1754944e-38, %v2272_v62  ;;  %vm2271_vm5 = vcmp.eq.f32.partialorder %v2270_v2, 8.507059e+37 }
 0xc73   :  { %v6714_v55 = vpop.eup %6713 }
 0xc74   :  { %v2262_v25 = vmul.f32 %v6714_v55, %v2260_v19  ;;  %vm2267_vm15 = vweird.f32 %v6714_v55  ;;  %v6716_v15 = vpop.eup %6715 }
 0xc75   :  { %vm2268_vm4 = vmor %vm2266_vm3, %vm2267_vm15 }
 0xc76   :  { %v2263_v57 = vsub.f32 1.0, %v2262_v25 }
 0xc78   :  { %v2264_v32 = vmul.f32 %v6714_v55, %v2263_v57 }
 0xc7a   :  { %v2265_v38 = vadd.f32 %v6714_v55, %v2264_v32 }
 0xc7c   :  { %v2269_v30 = vsel %vm2268_vm4, %v6714_v55, %v2265_v38  ;;  %v2292_v55 = vld [vmem:[#allocation3 + $0x41] ss:$8 sm:$0xf] }
 0xc7d   :  { %v2274_v31 = vsel %vm2271_vm5, %v2273_v7, %v2269_v30 }
 0xc7e   :  { %v2281_v13 = vrot.slane %v2274_v31, 1  ;;  %v2284_v26 = vmul.f32 %v6716_v15, %v2274_v31  ;;  %v2287_v50 = vrot.slane %v2274_v31, 2 }
 0xc80   :  { %v2283_v44 = vmul.f32 %v2281_v13, %v7894_v24 }
 0xc82   :  { %v7933_v45 = vadd.f32 %v2284_v26, %v2283_v44 }
 0xc84   :  { %6717 = vtanh.f32 %v7933_v45 }
 0xc8a   :  { %v6718_v29 = vpop.eup %6717 }
 0xc8b   :  { %v2289_v20 = vmul.f32 %v6718_v29, %v2287_v50 }
 0xc8d   :  { %2290 = vst [vmem:[#allocation2 + $0x10] sm:$0x1] %v2289_v20  ;;  %v2293_v56 = vpack.c.bf16 %v2289_v20, %v2289_v20 }
 0xc8f   :  { %2302 = vmatmul.bf16.vlgmr.msra.gmra.mxu0 %v2293_v56  ;;  %2315 = vmatmul.bf16.vlgmr.msra.gmra.mxu1 %v2293_v56 }
 0xc90   :  { %2328 = vmatmul.bf16.vlgmr.msra.gmra.mxu2 %v2293_v56  ;;  %2341 = vmatmul.bf16.vlgmr.msra.gmra.mxu3 %v2293_v56 }
 0xc91   :  { %2496 = vmatpush.bf16.msra.mxu0 %v7146_v47  ;;  %2509 = vmatpush.bf16.msra.mxu1 %v7149_v48 }
 0xc92   :  { %2522 = vmatpush.bf16.msra.mxu2 %v7142_v37  ;;  %2535 = vmatpush.bf16.msra.mxu3 %v7144_v41 }
 0xc95   :  { %2497 = vmatpush.bf16.msra.mxu0 %v7157_v59  ;;  %2510 = vmatpush.bf16.msra.mxu1 %v7161_v60 }
 0xc96   :  { %2523 = vmatpush.bf16.msra.mxu2 %v7151_v49  ;;  %2536 = vmatpush.bf16.msra.mxu3 %v7154_v53 }
 0xc99   :  { %2498 = vmatpush.bf16.msra.mxu0 %v7169_v8  ;;  %2511 = vmatpush.bf16.msra.mxu1 %v7173_v9 }
 0xc9a   :  { %2524 = vmatpush.bf16.msra.mxu2 %v7163_v61  ;;  %2537 = vmatpush.bf16.msra.mxu3 %v7166_v1 }
 0xc9d   :  { %2499 = vmatpush.bf16.msra.mxu0 %v7181_v21  ;;  %2512 = vmatpush.bf16.msra.mxu1 %v7185_v22 }
 0xc9e   :  { %2525 = vmatpush.bf16.msra.mxu2 %v7175_v10  ;;  %2538 = vmatpush.bf16.msra.mxu3 %v7178_v14 }
 0xca1   :  { %2500 = vmatpush.bf16.msra.mxu0 %v7193_v34  ;;  %2513 = vmatpush.bf16.msra.mxu1 %v7197_v35 }
 0xca2   :  { %2526 = vmatpush.bf16.msra.mxu2 %v7187_v23  ;;  %2539 = vmatpush.bf16.msra.mxu3 %v7190_v28 }
 0xca5   :  { %2501 = vmatpush.bf16.msra.mxu0 %v7205_v51  ;;  %2514 = vmatpush.bf16.msra.mxu1 %v7209_v52 }
 0xca6   :  { %2527 = vmatpush.bf16.msra.mxu2 %v7199_v36  ;;  %2540 = vmatpush.bf16.msra.mxu3 %v7202_v42 }
 0xca9   :  { %2502 = vmatpush.bf16.msra.mxu0 %v7217_v4  ;;  %2515 = vmatpush.bf16.msra.mxu1 %v7221_v5 }
 0xcaa   :  { %2528 = vmatpush.bf16.msra.mxu2 %v7211_v54  ;;  %2541 = vmatpush.bf16.msra.mxu3 %v7214_v58 }
 0xcad   :  { %2503 = vmatpush.bf16.msra.mxu0 %v7229_v16  ;;  %2516 = vmatpush.bf16.msra.mxu1 %v7233_v17 }
 0xcae   :  { %2529 = vmatpush.bf16.msra.mxu2 %v7223_v6  ;;  %2542 = vmatpush.bf16.msra.mxu3 %v7226_v12 }
 0xd0c   :  { %v2303_v24 = vpop.f32.mrf.mxu0  ;;  %v2316_v33 = vpop.f32.mrf.mxu1 }
 0xd0d   :  { %v2350_v63 = vrot.slane %v2316_v33, 7 }
 0xd0f   :  { %v2353_v46 = vsel %vm633_vm0, %v2303_v24, %v2350_v63 }
 0xd13   :  { %v2329_v39 = vpop.f32.mrf.mxu2  ;;  %v2342_v0 = vpop.f32.mrf.mxu3 }
 0xd14   :  { %v2351_v3 = vrot.slane %v2329_v39, 6  ;;  %v2352_v40 = vrot.slane %v2342_v0, 5  ;;  %v2305_v43 = vpop.f32.mrf.mxu0  ;;  %v2318_v11 = vpop.f32.mrf.mxu1 }
 0xd16   :  { %v2354_v19 = vsel %vm635_vm1, %v2351_v3, %v2352_v40 }
 0xd17   :  { %v2355_v25 = vsel %vm637_vm2, %v2353_v46, %v2354_v19 }
 0xd18   :  { %v2357_v27 = vadd.f32 %v2355_v25, %v2292_v55 }
 0xd1a   :  { %v6157_v57 = vmul.f32 -1.442695, %v2357_v27  ;;  %v2378_v31 = vrot.slane %v2357_v27, 3 }
 0xd1b   :  { %v2331_v62 = vpop.f32.mrf.mxu2  ;;  %v2344_v32 = vpop.f32.mrf.mxu3 }
 0xd1c   :  { %6719 = vpow2.f32 %v6157_v57 }
 0xd22   :  { %v6720_v2 = vpop.eup %6719 }
 0xd23   :  { %v2361_v38 = vadd.f32 1.0, %v6720_v2 }
 0xd25   :  { %6721 = vrcp.f32 %v2361_v38  ;;  %v2373_v15 = vand.u32 2147483648, %v2361_v38  ;;  %v2371_v26 = vand.u32 2147483647, %v2361_v38  ;;  %vm2367_vm7 = vweird.f32 %v2361_v38 }
 0xd26   :  { %6723 = vtanh.f32 %v2378_v31 }
 0xd27   :  { %v2374_v29 = vor.u32 1.1754944e-38, %v2373_v15  ;;  %vm2372_vm9 = vcmp.eq.f32.partialorder %v2371_v26, 8.507059e+37 }
 0xd2b   :  { %v6722_v7 = vpop.eup %6721 }
 0xd2c   :  { %v2363_v30 = vmul.f32 %v6722_v7, %v2361_v38  ;;  %vm2368_vm6 = vweird.f32 %v6722_v7  ;;  %v6724_v33 = vpop.eup %6723 }
 0xd2d   :  { %vm2369_vm8 = vmor %vm2367_vm7, %vm2368_vm6 }
 0xd2e   :  { %v2364_v13 = vsub.f32 1.0, %v2363_v30 }
 0xd30   :  { %v2365_v44 = vmul.f32 %v6722_v7, %v2364_v13 }
 0xd32   :  { %v2366_v50 = vadd.f32 %v6722_v7, %v2365_v44 }
 0xd34   :  { %v2370_v20 = vsel %vm2369_vm8, %v6722_v7, %v2366_v50  ;;  %v2393_v7 = vld [vmem:[#allocation3 + $0x42] ss:$8 sm:$0xf] }
 0xd35   :  { %v2375_v56 = vsel %vm2372_vm9, %v2374_v29, %v2370_v20 }
 0xd36   :  { %v2382_v24 = vrot.slane %v2375_v56, 1  ;;  %v2385_v39 = vmul.f32 %v6724_v33, %v2375_v56  ;;  %v2388_v3 = vrot.slane %v2375_v56, 2 }
 0xd38   :  { %v2384_v63 = vmul.f32 %v2382_v24, %v7933_v45 }
 0xd3a   :  { %v7972_v0 = vadd.f32 %v2385_v39, %v2384_v63 }
 0xd3c   :  { %6725 = vtanh.f32 %v7972_v0 }
 0xd42   :  { %v6726_v40 = vpop.eup %6725 }
 0xd43   :  { %v2390_v43 = vmul.f32 %v6726_v40, %v2388_v3 }
 0xd45   :  { %2391 = vst [vmem:[#allocation2 + $0x11] sm:$0x1] %v2390_v43  ;;  %v2394_v11 = vpack.c.bf16 %v2390_v43, %v2390_v43 }
 0xd47   :  { %2403 = vmatmul.bf16.vlgmr.msrb.gmra.mxu0 %v2394_v11  ;;  %2416 = vmatmul.bf16.vlgmr.msrb.gmra.mxu1 %v2394_v11 }
 0xd48   :  { %2429 = vmatmul.bf16.vlgmr.msrb.gmra.mxu2 %v2394_v11  ;;  %2442 = vmatmul.bf16.vlgmr.msrb.gmra.mxu3 %v2394_v11 }
 0xd49   :  { %2597 = vmatpush.bf16.msrb.mxu0 %v7146_v47  ;;  %2610 = vmatpush.bf16.msrb.mxu1 %v7149_v48 }
 0xd4a   :  { %2623 = vmatpush.bf16.msrb.mxu2 %v7142_v37  ;;  %2636 = vmatpush.bf16.msrb.mxu3 %v7144_v41 }
 0xd4d   :  { %2598 = vmatpush.bf16.msrb.mxu0 %v7157_v59  ;;  %2611 = vmatpush.bf16.msrb.mxu1 %v7161_v60 }
 0xd4e   :  { %2624 = vmatpush.bf16.msrb.mxu2 %v7151_v49  ;;  %2637 = vmatpush.bf16.msrb.mxu3 %v7154_v53 }
 0xd51   :  { %2599 = vmatpush.bf16.msrb.mxu0 %v7169_v8  ;;  %2612 = vmatpush.bf16.msrb.mxu1 %v7173_v9 }
 0xd52   :  { %2625 = vmatpush.bf16.msrb.mxu2 %v7163_v61  ;;  %2638 = vmatpush.bf16.msrb.mxu3 %v7166_v1 }
 0xd55   :  { %2600 = vmatpush.bf16.msrb.mxu0 %v7181_v21  ;;  %2613 = vmatpush.bf16.msrb.mxu1 %v7185_v22 }
 0xd56   :  { %2626 = vmatpush.bf16.msrb.mxu2 %v7175_v10  ;;  %2639 = vmatpush.bf16.msrb.mxu3 %v7178_v14 }
 0xd59   :  { %2601 = vmatpush.bf16.msrb.mxu0 %v7193_v34  ;;  %2614 = vmatpush.bf16.msrb.mxu1 %v7197_v35 }
 0xd5a   :  { %2627 = vmatpush.bf16.msrb.mxu2 %v7187_v23  ;;  %2640 = vmatpush.bf16.msrb.mxu3 %v7190_v28 }
 0xd5d   :  { %2602 = vmatpush.bf16.msrb.mxu0 %v7205_v51  ;;  %2615 = vmatpush.bf16.msrb.mxu1 %v7209_v52 }
 0xd5e   :  { %2628 = vmatpush.bf16.msrb.mxu2 %v7199_v36  ;;  %2641 = vmatpush.bf16.msrb.mxu3 %v7202_v42 }
 0xd61   :  { %2603 = vmatpush.bf16.msrb.mxu0 %v7217_v4  ;;  %2616 = vmatpush.bf16.msrb.mxu1 %v7221_v5 }
 0xd62   :  { %2629 = vmatpush.bf16.msrb.mxu2 %v7211_v54  ;;  %2642 = vmatpush.bf16.msrb.mxu3 %v7214_v58 }
 0xd65   :  { %2604 = vmatpush.bf16.msrb.mxu0 %v7229_v16  ;;  %2617 = vmatpush.bf16.msrb.mxu1 %v7233_v17 }
 0xd66   :  { %2630 = vmatpush.bf16.msrb.mxu2 %v7223_v6  ;;  %2643 = vmatpush.bf16.msrb.mxu3 %v7226_v12 }
 0xdc4   :  { %v2404_v45 = vpop.f32.mrf.mxu0  ;;  %v2417_v46 = vpop.f32.mrf.mxu1 }
 0xdc5   :  { %v2451_v19 = vrot.slane %v2417_v46, 7 }
 0xdc7   :  { %v2454_v2 = vsel %vm633_vm0, %v2404_v45, %v2451_v19 }
 0xdcb   :  { %v2430_v55 = vpop.f32.mrf.mxu2  ;;  %v2443_v25 = vpop.f32.mrf.mxu3 }
 0xdcc   :  { %v2452_v27 = vrot.slane %v2430_v55, 6  ;;  %v2453_v57 = vrot.slane %v2443_v25, 5  ;;  %v2406_v62 = vpop.f32.mrf.mxu0  ;;  %v2419_v32 = vpop.f32.mrf.mxu1 }
 0xdce   :  { %v2455_v38 = vsel %vm635_vm1, %v2452_v27, %v2453_v57 }
 0xdcf   :  { %v2456_v30 = vsel %vm637_vm2, %v2454_v2, %v2455_v38 }
 0xdd0   :  { %v2458_v31 = vadd.f32 %v2456_v30, %v2393_v7 }
 0xdd2   :  { %v6158_v13 = vmul.f32 -1.442695, %v2458_v31  ;;  %v2479_v56 = vrot.slane %v2458_v31, 3 }
 0xdd3   :  { %v2432_v15 = vpop.f32.mrf.mxu2  ;;  %v2445_v44 = vpop.f32.mrf.mxu3 }
 0xdd4   :  { %6727 = vpow2.f32 %v6158_v13 }
 0xdda   :  { %v6728_v26 = vpop.eup %6727 }
 0xddb   :  { %v2462_v50 = vadd.f32 1.0, %v6728_v26 }
 0xddd   :  { %6729 = vrcp.f32 %v2462_v50  ;;  %v2474_v33 = vand.u32 2147483648, %v2462_v50  ;;  %v2472_v39 = vand.u32 2147483647, %v2462_v50  ;;  %vm2468_vm11 = vweird.f32 %v2462_v50 }
 0xdde   :  { %6731 = vtanh.f32 %v2479_v56 }
 0xddf   :  { %v2475_v40 = vor.u32 1.1754944e-38, %v2474_v33  ;;  %vm2473_vm13 = vcmp.eq.f32.partialorder %v2472_v39, 8.507059e+37 }
 0xde3   :  { %v6730_v29 = vpop.eup %6729 }
 0xde4   :  { %v2464_v20 = vmul.f32 %v6730_v29, %v2462_v50  ;;  %vm2469_vm10 = vweird.f32 %v6730_v29  ;;  %v6732_v46 = vpop.eup %6731 }
 0xde5   :  { %vm2470_vm12 = vmor %vm2468_vm11, %vm2469_vm10 }
 0xde6   :  { %v2465_v24 = vsub.f32 1.0, %v2464_v20 }
 0xde8   :  { %v2466_v63 = vmul.f32 %v6730_v29, %v2465_v24 }
 0xdea   :  { %v2467_v3 = vadd.f32 %v6730_v29, %v2466_v63 }
 0xdec   :  { %v2471_v43 = vsel %vm2470_vm12, %v6730_v29, %v2467_v3  ;;  %v2494_v29 = vld [vmem:[#allocation3 + $0x43] ss:$8 sm:$0xf] }
 0xded   :  { %v2476_v11 = vsel %vm2473_vm13, %v2475_v40, %v2471_v43 }
 0xdee   :  { %v2483_v45 = vrot.slane %v2476_v11, 1  ;;  %v2486_v55 = vmul.f32 %v6732_v46, %v2476_v11  ;;  %v2489_v27 = vrot.slane %v2476_v11, 2 }
 0xdf0   :  { %v2485_v19 = vmul.f32 %v2483_v45, %v7972_v0 }
 0xdf2   :  { %v8011_v25 = vadd.f32 %v2486_v55, %v2485_v19 }
 0xdf4   :  { %6733 = vtanh.f32 %v8011_v25 }
 0xdfa   :  { %v6734_v57 = vpop.eup %6733 }
 0xdfb   :  { %v2491_v62 = vmul.f32 %v6734_v57, %v2489_v27 }
 0xdfd   :  { %2492 = vst [vmem:[#allocation2 + $0x12] sm:$0x1] %v2491_v62  ;;  %v2495_v32 = vpack.c.bf16 %v2491_v62, %v2491_v62 }
 0xdff   :  { %2504 = vmatmul.bf16.vlgmr.msra.gmra.mxu0 %v2495_v32  ;;  %2517 = vmatmul.bf16.vlgmr.msra.gmra.mxu1 %v2495_v32 }
 0xe00   :  { %2530 = vmatmul.bf16.vlgmr.msra.gmra.mxu2 %v2495_v32  ;;  %2543 = vmatmul.bf16.vlgmr.msra.gmra.mxu3 %v2495_v32 }
 0xe01   :  { %2698 = vmatpush.bf16.msra.mxu0 %v7146_v47  ;;  %2711 = vmatpush.bf16.msra.mxu1 %v7149_v48 }
 0xe02   :  { %2724 = vmatpush.bf16.msra.mxu2 %v7142_v37  ;;  %2737 = vmatpush.bf16.msra.mxu3 %v7144_v41 }
 0xe05   :  { %2699 = vmatpush.bf16.msra.mxu0 %v7157_v59  ;;  %2712 = vmatpush.bf16.msra.mxu1 %v7161_v60 }
 0xe06   :  { %2725 = vmatpush.bf16.msra.mxu2 %v7151_v49  ;;  %2738 = vmatpush.bf16.msra.mxu3 %v7154_v53 }
 0xe09   :  { %2700 = vmatpush.bf16.msra.mxu0 %v7169_v8  ;;  %2713 = vmatpush.bf16.msra.mxu1 %v7173_v9 }
 0xe0a   :  { %2726 = vmatpush.bf16.msra.mxu2 %v7163_v61  ;;  %2739 = vmatpush.bf16.msra.mxu3 %v7166_v1 }
 0xe0d   :  { %2701 = vmatpush.bf16.msra.mxu0 %v7181_v21  ;;  %2714 = vmatpush.bf16.msra.mxu1 %v7185_v22 }
 0xe0e   :  { %2727 = vmatpush.bf16.msra.mxu2 %v7175_v10  ;;  %2740 = vmatpush.bf16.msra.mxu3 %v7178_v14 }
 0xe11   :  { %2702 = vmatpush.bf16.msra.mxu0 %v7193_v34  ;;  %2715 = vmatpush.bf16.msra.mxu1 %v7197_v35 }
 0xe12   :  { %2728 = vmatpush.bf16.msra.mxu2 %v7187_v23  ;;  %2741 = vmatpush.bf16.msra.mxu3 %v7190_v28 }
 0xe15   :  { %2703 = vmatpush.bf16.msra.mxu0 %v7205_v51  ;;  %2716 = vmatpush.bf16.msra.mxu1 %v7209_v52 }
 0xe16   :  { %2729 = vmatpush.bf16.msra.mxu2 %v7199_v36  ;;  %2742 = vmatpush.bf16.msra.mxu3 %v7202_v42 }
 0xe19   :  { %2704 = vmatpush.bf16.msra.mxu0 %v7217_v4  ;;  %2717 = vmatpush.bf16.msra.mxu1 %v7221_v5 }
 0xe1a   :  { %2730 = vmatpush.bf16.msra.mxu2 %v7211_v54  ;;  %2743 = vmatpush.bf16.msra.mxu3 %v7214_v58 }
 0xe1d   :  { %2705 = vmatpush.bf16.msra.mxu0 %v7229_v16  ;;  %2718 = vmatpush.bf16.msra.mxu1 %v7233_v17 }
 0xe1e   :  { %2731 = vmatpush.bf16.msra.mxu2 %v7223_v6  ;;  %2744 = vmatpush.bf16.msra.mxu3 %v7226_v12 }
 0xe7c   :  { %v2505_v0 = vpop.f32.mrf.mxu0  ;;  %v2518_v2 = vpop.f32.mrf.mxu1 }
 0xe7d   :  { %v2552_v38 = vrot.slane %v2518_v2, 7 }
 0xe7f   :  { %v2555_v26 = vsel %vm633_vm0, %v2505_v0, %v2552_v38 }
 0xe83   :  { %v2531_v7 = vpop.f32.mrf.mxu2  ;;  %v2544_v30 = vpop.f32.mrf.mxu3 }
 0xe84   :  { %v2553_v31 = vrot.slane %v2531_v7, 6  ;;  %v2554_v13 = vrot.slane %v2544_v30, 5  ;;  %v2507_v15 = vpop.f32.mrf.mxu0  ;;  %v2520_v44 = vpop.f32.mrf.mxu1 }
 0xe86   :  { %v2556_v50 = vsel %vm635_vm1, %v2553_v31, %v2554_v13 }
 0xe87   :  { %v2557_v20 = vsel %vm637_vm2, %v2555_v26, %v2556_v50 }
 0xe88   :  { %v2559_v56 = vadd.f32 %v2557_v20, %v2494_v29 }
 0xe8a   :  { %v6159_v24 = vmul.f32 -1.442695, %v2559_v56  ;;  %v2580_v11 = vrot.slane %v2559_v56, 3 }
 0xe8b   :  { %v2533_v33 = vpop.f32.mrf.mxu2  ;;  %v2546_v63 = vpop.f32.mrf.mxu3 }
 0xe8c   :  { %6735 = vpow2.f32 %v6159_v24 }
 0xe92   :  { %v6736_v39 = vpop.eup %6735 }
 0xe93   :  { %v2563_v3 = vadd.f32 1.0, %v6736_v39 }
 0xe95   :  { %6737 = vrcp.f32 %v2563_v3  ;;  %v2575_v46 = vand.u32 2147483648, %v2563_v3  ;;  %v2573_v55 = vand.u32 2147483647, %v2563_v3  ;;  %vm2569_vm15 = vweird.f32 %v2563_v3 }
 0xe96   :  { %6739 = vtanh.f32 %v2580_v11 }
 0xe97   :  { %v2576_v57 = vor.u32 1.1754944e-38, %v2575_v46  ;;  %vm2574_vm4 = vcmp.eq.f32.partialorder %v2573_v55, 8.507059e+37 }
 0xe9b   :  { %v6738_v40 = vpop.eup %6737 }
 0xe9c   :  { %v2565_v43 = vmul.f32 %v6738_v40, %v2563_v3  ;;  %vm2570_vm14 = vweird.f32 %v6738_v40  ;;  %v6740_v2 = vpop.eup %6739 }
 0xe9d   :  { %vm2571_vm3 = vmor %vm2569_vm15, %vm2570_vm14 }
 0xe9e   :  { %v2566_v45 = vsub.f32 1.0, %v2565_v43 }
 0xea0   :  { %v2567_v19 = vmul.f32 %v6738_v40, %v2566_v45 }
 0xea2   :  { %v2568_v27 = vadd.f32 %v6738_v40, %v2567_v19 }
 0xea4   :  { %v2572_v62 = vsel %vm2571_vm3, %v6738_v40, %v2568_v27  ;;  %v2595_v40 = vld [vmem:[#allocation3 + $0x44] ss:$8 sm:$0xf] }
 0xea5   :  { %v2577_v32 = vsel %vm2574_vm4, %v2576_v57, %v2572_v62 }
 0xea6   :  { %v2584_v0 = vrot.slane %v2577_v32, 1  ;;  %v2587_v7 = vmul.f32 %v6740_v2, %v2577_v32  ;;  %v2590_v31 = vrot.slane %v2577_v32, 2 }
 0xea8   :  { %v2586_v38 = vmul.f32 %v2584_v0, %v8011_v25 }
 0xeaa   :  { %v8050_v30 = vadd.f32 %v2587_v7, %v2586_v38 }
 0xeac   :  { %6741 = vtanh.f32 %v8050_v30 }
 0xeb2   :  { %v6742_v13 = vpop.eup %6741 }
 0xeb3   :  { %v2592_v15 = vmul.f32 %v6742_v13, %v2590_v31 }
 0xeb5   :  { %2593 = vst [vmem:[#allocation2 + $0x13] sm:$0x1] %v2592_v15  ;;  %v2596_v44 = vpack.c.bf16 %v2592_v15, %v2592_v15 }
 0xeb7   :  { %2605 = vmatmul.bf16.vlgmr.msrb.gmra.mxu0 %v2596_v44  ;;  %2618 = vmatmul.bf16.vlgmr.msrb.gmra.mxu1 %v2596_v44 }
 0xeb8   :  { %2631 = vmatmul.bf16.vlgmr.msrb.gmra.mxu2 %v2596_v44  ;;  %2644 = vmatmul.bf16.vlgmr.msrb.gmra.mxu3 %v2596_v44 }
 0xeb9   :  { %2799 = vmatpush.bf16.msrb.mxu0 %v7146_v47  ;;  %2812 = vmatpush.bf16.msrb.mxu1 %v7149_v48 }
 0xeba   :  { %2825 = vmatpush.bf16.msrb.mxu2 %v7142_v37  ;;  %2838 = vmatpush.bf16.msrb.mxu3 %v7144_v41 }
 0xebd   :  { %2800 = vmatpush.bf16.msrb.mxu0 %v7157_v59  ;;  %2813 = vmatpush.bf16.msrb.mxu1 %v7161_v60 }
 0xebe   :  { %2826 = vmatpush.bf16.msrb.mxu2 %v7151_v49  ;;  %2839 = vmatpush.bf16.msrb.mxu3 %v7154_v53 }
 0xec1   :  { %2801 = vmatpush.bf16.msrb.mxu0 %v7169_v8  ;;  %2814 = vmatpush.bf16.msrb.mxu1 %v7173_v9 }
 0xec2   :  { %2827 = vmatpush.bf16.msrb.mxu2 %v7163_v61  ;;  %2840 = vmatpush.bf16.msrb.mxu3 %v7166_v1 }
 0xec5   :  { %2802 = vmatpush.bf16.msrb.mxu0 %v7181_v21  ;;  %2815 = vmatpush.bf16.msrb.mxu1 %v7185_v22 }
 0xec6   :  { %2828 = vmatpush.bf16.msrb.mxu2 %v7175_v10  ;;  %2841 = vmatpush.bf16.msrb.mxu3 %v7178_v14 }
 0xec9   :  { %2803 = vmatpush.bf16.msrb.mxu0 %v7193_v34  ;;  %2816 = vmatpush.bf16.msrb.mxu1 %v7197_v35 }
 0xeca   :  { %2829 = vmatpush.bf16.msrb.mxu2 %v7187_v23  ;;  %2842 = vmatpush.bf16.msrb.mxu3 %v7190_v28 }
 0xecd   :  { %2804 = vmatpush.bf16.msrb.mxu0 %v7205_v51  ;;  %2817 = vmatpush.bf16.msrb.mxu1 %v7209_v52 }
 0xece   :  { %2830 = vmatpush.bf16.msrb.mxu2 %v7199_v36  ;;  %2843 = vmatpush.bf16.msrb.mxu3 %v7202_v42 }
 0xed1   :  { %2805 = vmatpush.bf16.msrb.mxu0 %v7217_v4  ;;  %2818 = vmatpush.bf16.msrb.mxu1 %v7221_v5 }
 0xed2   :  { %2831 = vmatpush.bf16.msrb.mxu2 %v7211_v54  ;;  %2844 = vmatpush.bf16.msrb.mxu3 %v7214_v58 }
 0xed5   :  { %2806 = vmatpush.bf16.msrb.mxu0 %v7229_v16  ;;  %2819 = vmatpush.bf16.msrb.mxu1 %v7233_v17 }
 0xed6   :  { %2832 = vmatpush.bf16.msrb.mxu2 %v7223_v6  ;;  %2845 = vmatpush.bf16.msrb.mxu3 %v7226_v12 }
 0xf34   :  { %v2606_v25 = vpop.f32.mrf.mxu0  ;;  %v2619_v26 = vpop.f32.mrf.mxu1 }
 0xf35   :  { %v2653_v50 = vrot.slane %v2619_v26, 7 }
 0xf37   :  { %v2656_v39 = vsel %vm633_vm0, %v2606_v25, %v2653_v50 }
 0xf3b   :  { %v2632_v29 = vpop.f32.mrf.mxu2  ;;  %v2645_v20 = vpop.f32.mrf.mxu3 }
 0xf3c   :  { %v2654_v56 = vrot.slane %v2632_v29, 6  ;;  %v2655_v24 = vrot.slane %v2645_v20, 5  ;;  %v2608_v33 = vpop.f32.mrf.mxu0  ;;  %v2621_v63 = vpop.f32.mrf.mxu1 }
 0xf3e   :  { %v2657_v3 = vsel %vm635_vm1, %v2654_v56, %v2655_v24 }
 0xf3f   :  { %v2658_v43 = vsel %vm637_vm2, %v2656_v39, %v2657_v3 }
 0xf40   :  { %v2660_v11 = vadd.f32 %v2658_v43, %v2595_v40 }
 0xf42   :  { %v6160_v45 = vmul.f32 -1.442695, %v2660_v11  ;;  %v2681_v32 = vrot.slane %v2660_v11, 3 }
 0xf43   :  { %v2634_v46 = vpop.f32.mrf.mxu2  ;;  %v2647_v19 = vpop.f32.mrf.mxu3 }
 0xf44   :  { %6743 = vpow2.f32 %v6160_v45 }
 0xf4a   :  { %v6744_v55 = vpop.eup %6743 }
 0xf4b   :  { %v2664_v27 = vadd.f32 1.0, %v6744_v55 }
 0xf4d   :  { %6745 = vrcp.f32 %v2664_v27  ;;  %v2676_v2 = vand.u32 2147483648, %v2664_v27  ;;  %v2674_v7 = vand.u32 2147483647, %v2664_v27  ;;  %vm2670_vm6 = vweird.f32 %v2664_v27 }
 0xf4e   :  { %6747 = vtanh.f32 %v2681_v32 }
 0xf4f   :  { %v2677_v13 = vor.u32 1.1754944e-38, %v2676_v2  ;;  %vm2675_vm8 = vcmp.eq.f32.partialorder %v2674_v7, 8.507059e+37 }
 0xf53   :  { %v6746_v57 = vpop.eup %6745 }
 0xf54   :  { %v2666_v62 = vmul.f32 %v6746_v57, %v2664_v27  ;;  %vm2671_vm5 = vweird.f32 %v6746_v57  ;;  %v6748_v26 = vpop.eup %6747 }
 0xf55   :  { %vm2672_vm7 = vmor %vm2670_vm6, %vm2671_vm5 }
 0xf56   :  { %v2667_v0 = vsub.f32 1.0, %v2666_v62 }
 0xf58   :  { %v2668_v38 = vmul.f32 %v6746_v57, %v2667_v0 }
 0xf5a   :  { %v2669_v31 = vadd.f32 %v6746_v57, %v2668_v38  ;;  %v2797_v38 = vld [vmem:[#allocation3 + $0x46] ss:$8 sm:$0xf] }
 0xf5c   :  { %v2673_v15 = vsel %vm2672_vm7, %v6746_v57, %v2669_v31 }
 0xf5d   :  { %v2678_v44 = vsel %vm2675_vm8, %v2677_v13, %v2673_v15  ;;  %v6278_v13 = vld [vmem:[#allocation7 + $0x1e0] sm:$0xf]  ;;  %v6539_v15 = vld [vmem:[#allocation7 + $0x1ec] sm:$0xf0] }
 0xf5e   :  { %v2685_v25 = vrot.slane %v2678_v44, 1  ;;  %v2688_v29 = vmul.f32 %v6748_v26, %v2678_v44  ;;  %v2691_v56 = vrot.slane %v2678_v44, 2  ;;  %v6537_v44 = vld [vmem:[#allocation7 + $0x1e4] sm:$0xf]  ;;  %v6279_v26 = vor.u32 %v6539_v15, %v6278_v13  ;;  %v6524_v15 = vld [vmem:[#allocation7 + $0x174] sm:$0xf0] }
 0xf60   :  { %v2687_v50 = vmul.f32 %v2685_v25, %v8050_v30 }
 0xf62   :  { %v8089_v20 = vadd.f32 %v2688_v29, %v2687_v50  ;;  %v6280_v50 = vld [vmem:[#allocation7 + $0x1f0] sm:$0xf0]  ;;  %v6286_v29 = vld [vmem:[#allocation7 + $0x1e8] sm:$0xf] }
 0xf64   :  { %6749 = vtanh.f32 %v8089_v20 }
 0xf6a   :  { %v6750_v24 = vpop.eup %6749 }
 0xf6b   :  { %v2693_v33 = vmul.f32 %v6750_v24, %v2691_v56  ;;  %v6283_v24 = vor.u32 %v6537_v44, %v6280_v50  ;;  %v6522_v44 = vld [vmem:[#allocation7 + $0x16c] sm:$0xf] }
 0xf6d   :  { %2694 = vst [vmem:[#allocation2 + $0x14] sm:$0x1] %v2693_v33  ;;  %v2697_v63 = vpack.c.bf16 %v2693_v33, %v2693_v33 }
 0xf6f   :  { %2706 = vmatmul.bf16.vlgmr.msra.gmra.mxu0 %v2697_v63  ;;  %2719 = vmatmul.bf16.vlgmr.msra.gmra.mxu1 %v2697_v63 }
 0xf70   :  { %2732 = vmatmul.bf16.vlgmr.msra.gmra.mxu2 %v2697_v63  ;;  %2745 = vmatmul.bf16.vlgmr.msra.gmra.mxu3 %v2697_v63  ;;  %v6538_v63 = vld [vmem:[#allocation7 + $0x1ec] sm:$0xf] }
 0xf71   :  { %2900 = vmatpush.bf16.msra.mxu0 %v7146_v47  ;;  %2913 = vmatpush.bf16.msra.mxu1 %v7149_v48 }
 0xf72   :  { %2926 = vmatpush.bf16.msra.mxu2 %v7142_v37  ;;  %2939 = vmatpush.bf16.msra.mxu3 %v7144_v41 }
 0xf75   :  { %2901 = vmatpush.bf16.msra.mxu0 %v7157_v59  ;;  %2914 = vmatpush.bf16.msra.mxu1 %v7161_v60 }
 0xf76   :  { %2927 = vmatpush.bf16.msra.mxu2 %v7151_v49  ;;  %2940 = vmatpush.bf16.msra.mxu3 %v7154_v53 }
 0xf79   :  { %2902 = vmatpush.bf16.msra.mxu0 %v7169_v8  ;;  %2915 = vmatpush.bf16.msra.mxu1 %v7173_v9  ;;  %v2696_v9 = vld [vmem:[#allocation3 + $0x45] ss:$8 sm:$0xf] }
 0xf7a   :  { %2928 = vmatpush.bf16.msra.mxu2 %v7163_v61  ;;  %2941 = vmatpush.bf16.msra.mxu3 %v7166_v1 }
 0xf7d   :  { %2903 = vmatpush.bf16.msra.mxu0 %v7181_v21  ;;  %2916 = vmatpush.bf16.msra.mxu1 %v7185_v22 }
 0xf7e   :  { %2929 = vmatpush.bf16.msra.mxu2 %v7175_v10  ;;  %2942 = vmatpush.bf16.msra.mxu3 %v7178_v14 }
 0xf81   :  { %2904 = vmatpush.bf16.msra.mxu0 %v7193_v34  ;;  %2917 = vmatpush.bf16.msra.mxu1 %v7197_v35 }
 0xf82   :  { %2930 = vmatpush.bf16.msra.mxu2 %v7187_v23  ;;  %2943 = vmatpush.bf16.msra.mxu3 %v7190_v28 }
 0xf85   :  { %2905 = vmatpush.bf16.msra.mxu0 %v7205_v51  ;;  %2918 = vmatpush.bf16.msra.mxu1 %v7209_v52 }
 0xf86   :  { %2931 = vmatpush.bf16.msra.mxu2 %v7199_v36  ;;  %2944 = vmatpush.bf16.msra.mxu3 %v7202_v42 }
 0xf89   :  { %2906 = vmatpush.bf16.msra.mxu0 %v7217_v4  ;;  %2919 = vmatpush.bf16.msra.mxu1 %v7221_v5 }
 0xf8a   :  { %2932 = vmatpush.bf16.msra.mxu2 %v7211_v54  ;;  %2945 = vmatpush.bf16.msra.mxu3 %v7214_v58 }
 0xf8d   :  { %2907 = vmatpush.bf16.msra.mxu0 %v7229_v16  ;;  %2920 = vmatpush.bf16.msra.mxu1 %v7233_v17 }
 0xf8e   :  { %2933 = vmatpush.bf16.msra.mxu2 %v7223_v6  ;;  %2946 = vmatpush.bf16.msra.mxu3 %v7226_v12 }
 0xfec   :  { %v2707_v37 = vpop.f32.mrf.mxu0  ;;  %v2720_v41 = vpop.f32.mrf.mxu1 }
 0xfed   :  { %v2754_v47 = vrot.slane %v2720_v41, 7 }
 0xfef   :  { %v2757_v1 = vsel %vm633_vm0, %v2707_v37, %v2754_v47  ;;  %v6288_v37 = vld [vmem:[#allocation7 + $0x1f8] sm:$0xf0] }
 0xff0   :  { %v6291_v41 = vor.u32 %v6538_v63, %v6288_v37  ;;  %v6200_v63 = vld [vmem:[#allocation7 + $0x150] sm:$0xf0]  ;;  %v6206_v37 = vld [vmem:[#allocation7 + $0x148] sm:$0xf] }
 0xff3   :  { %v2733_v48 = vpop.f32.mrf.mxu2  ;;  %v2746_v49 = vpop.f32.mrf.mxu3 }
 0xff4   :  { %v2755_v53 = vrot.slane %v2733_v48, 6  ;;  %v2756_v59 = vrot.slane %v2746_v49, 5  ;;  %v2709_v60 = vpop.f32.mrf.mxu0  ;;  %v2722_v61 = vpop.f32.mrf.mxu1  ;;  %v6262_v48 = vld [vmem:[#allocation7 + $0x1c0] sm:$0xf] }
 0xff5   :  { %v6533_v60 = vld [vmem:[#allocation7 + $0x1c4] sm:$0xf]  ;;  %v6264_v61 = vld [vmem:[#allocation7 + $0x1d0] sm:$0xf0] }
 0xff6   :  { %v2758_v8 = vsel %vm635_vm1, %v2755_v53, %v2756_v59  ;;  %v6535_v59 = vld [vmem:[#allocation7 + $0x1cc] sm:$0xf0] }
 0xff7   :  { %v2759_v10 = vsel %vm637_vm2, %v2757_v1, %v2758_v8  ;;  %v6263_v1 = vor.u32 %v6535_v59, %v6262_v48  ;;  %v6267_v8 = vor.u32 %v6533_v60, %v6264_v61  ;;  %v6182_v59 = vld [vmem:[#allocation7 + $0x120] sm:$0xf] }
 0xff8   :  { %v2761_v14 = vadd.f32 %v2759_v10, %v2696_v9  ;;  %v6270_v9 = vld [vmem:[#allocation7 + $0x1c8] sm:$0xf]  ;;  %v6536_v10 = vld [vmem:[#allocation7 + $0x1d4] sm:$0xf0] }
 0xffa   :  { %v6161_v21 = vmul.f32 -1.442695, %v2761_v14  ;;  %v2782_v42 = vrot.slane %v2761_v14, 3  ;;  %v6534_v14 = vld [vmem:[#allocation7 + $0x1cc] sm:$0xf] }
 0xffb   :  { %v2735_v22 = vpop.f32.mrf.mxu2  ;;  %v2748_v23 = vpop.f32.mrf.mxu3 }
 0xffc   :  { %6751 = vpow2.f32 %v6161_v21  ;;  %v6271_v21 = vor.u32 %v6536_v10, %v6270_v9  ;;  %v6272_v22 = vld [vmem:[#allocation7 + $0x1d8] sm:$0xf0]  ;;  %v6246_v23 = vld [vmem:[#allocation7 + $0x1a0] sm:$0xf]  ;;  %v6184_v9 = vld [vmem:[#allocation7 + $0x130] sm:$0xf0] }
0x1002   :  { %v6752_v28 = vpop.eup %6751 }
0x1003   :  { %v2765_v34 = vadd.f32 1.0, %v6752_v28  ;;  %v6531_v28 = vld [vmem:[#allocation7 + $0x1ac] sm:$0xf0] }
0x1005   :  { %6753 = vrcp.f32 %v2765_v34  ;;  %v2777_v52 = vand.u32 2147483648, %v2765_v34  ;;  %v2775_v58 = vand.u32 2147483647, %v2765_v34  ;;  %vm2771_vm10 = vweird.f32 %v2765_v34 }
0x1006   :  { %6755 = vtanh.f32 %v2782_v42  ;;  %v6248_v42 = vld [vmem:[#allocation7 + $0x1b0] sm:$0xf0] }
0x1007   :  { %v2778_v5 = vor.u32 1.1754944e-38, %v2777_v52  ;;  %vm2776_vm12 = vcmp.eq.f32.partialorder %v2775_v58, 8.507059e+37  ;;  %v6530_v58 = vld [vmem:[#allocation7 + $0x1ac] sm:$0xf] }
0x100b   :  { %v6754_v35 = vpop.eup %6753 }
0x100c   :  { %v2767_v36 = vmul.f32 %v6754_v35, %v2765_v34  ;;  %vm2772_vm9 = vweird.f32 %v6754_v35  ;;  %v6756_v17 = vpop.eup %6755  ;;  %v6275_v34 = vor.u32 %v6534_v14, %v6272_v22  ;;  %v6190_v14 = vld [vmem:[#allocation7 + $0x128] sm:$0xf] }
0x100d   :  { %vm2773_vm11 = vmor %vm2771_vm10, %vm2772_vm9 }
0x100e   :  { %v2768_v51 = vsub.f32 1.0, %v2767_v36  ;;  %v6529_v36 = vld [vmem:[#allocation7 + $0x1a4] sm:$0xf] }
0x100f   :  { %v6251_v52 = vor.u32 %v6529_v36, %v6248_v42  ;;  %v6192_v36 = vld [vmem:[#allocation7 + $0x138] sm:$0xf0] }
0x1010   :  { %v2769_v54 = vmul.f32 %v6754_v35, %v2768_v51  ;;  %v6254_v51 = vld [vmem:[#allocation7 + $0x1a8] sm:$0xf] }
0x1012   :  { %v2770_v4 = vadd.f32 %v6754_v35, %v2769_v54  ;;  %v6532_v54 = vld [vmem:[#allocation7 + $0x1b4] sm:$0xf0] }
0x1014   :  { %v2774_v6 = vsel %vm2773_vm11, %v6754_v35, %v2770_v4  ;;  %v6247_v35 = vor.u32 %v6531_v28, %v6246_v23  ;;  %v6256_v4 = vld [vmem:[#allocation7 + $0x1b8] sm:$0xf0] }
0x1015   :  { %v2779_v12 = vsel %vm2776_vm12, %v2778_v5, %v2774_v6  ;;  %v6255_v5 = vor.u32 %v6532_v54, %v6254_v51  ;;  %v6259_v6 = vor.u32 %v6530_v58, %v6256_v4  ;;  %v6166_v51 = vld [vmem:[#allocation7 + $0x100] sm:$0xf]  ;;  %v6509_v54 = vld [vmem:[#allocation7 + $0x104] sm:$0xf] }
0x1016   :  { %v2786_v16 = vrot.slane %v2779_v12, 1  ;;  %v2789_v39 = vmul.f32 %v6756_v17, %v2779_v12  ;;  %v2792_v40 = vrot.slane %v2779_v12, 2  ;;  %v6230_v12 = vld [vmem:[#allocation7 + $0x180] sm:$0xf]  ;;  %v6525_v17 = vld [vmem:[#allocation7 + $0x184] sm:$0xf] }
0x1018   :  { %v2788_v30 = vmul.f32 %v2786_v16, %v8089_v20  ;;  %v6540_v20 = vld [vmem:[#allocation7 + $0x1f4] sm:$0xf0]  ;;  %v6527_v16 = vld [vmem:[#allocation7 + $0x18c] sm:$0xf0] }
0x1019   :  { %v6287_v33 = vor.u32 %v6540_v20, %v6286_v29  ;;  %v6198_v29 = vld [vmem:[#allocation7 + $0x140] sm:$0xf]  ;;  %v6519_v20 = vld [vmem:[#allocation7 + $0x14c] sm:$0xf0] }
0x101a   :  { %v8128_v3 = vadd.f32 %v2789_v39, %v2788_v30  ;;  %v6232_v30 = vld [vmem:[#allocation7 + $0x190] sm:$0xf0]  ;;  %v6238_v39 = vld [vmem:[#allocation7 + $0x188] sm:$0xf] }
0x101c   :  { %6757 = vtanh.f32 %v8128_v3 }
0x1022   :  { %v6758_v43 = vpop.eup %6757 }
0x1023   :  { %v2794_v11 = vmul.f32 %v6758_v43, %v2792_v40  ;;  %v6528_v40 = vld [vmem:[#allocation7 + $0x194] sm:$0xf0] }
0x1025   :  { %2795 = vst [vmem:[#allocation2 + $0x15] sm:$0x1] %v2794_v11  ;;  %v2798_v45 = vpack.c.bf16 %v2794_v11, %v2794_v11  ;;  %v6231_v11 = vor.u32 %v6527_v16, %v6230_v12  ;;  %v6512_v12 = vld [vmem:[#allocation7 + $0x114] sm:$0xf0]  ;;  %v6510_v16 = vld [vmem:[#allocation7 + $0x10c] sm:$0xf] }
0x1027   :  { %2807 = vmatmul.bf16.vlgmr.msrb.gmra.mxu0 %v2798_v45  ;;  %2820 = vmatmul.bf16.vlgmr.msrb.gmra.mxu1 %v2798_v45 }
0x1028   :  { %2833 = vmatmul.bf16.vlgmr.msrb.gmra.mxu2 %v2798_v45  ;;  %2846 = vmatmul.bf16.vlgmr.msrb.gmra.mxu3 %v2798_v45  ;;  %v6235_v45 = vor.u32 %v6525_v17, %v6232_v30  ;;  %v6176_v17 = vld [vmem:[#allocation7 + $0x118] sm:$0xf0] }
0x1029   :  { %3207 = vmatpush.bf16.msrb.mxu0 %v6279_v26  ;;  %3225 = vmatpush.bf16.msrb.mxu1 %v6283_v24  ;;  %v6517_v24 = vld [vmem:[#allocation7 + $0x144] sm:$0xf] }
0x102a   :  { %3243 = vmatpush.bf16.msrb.mxu2 %v6287_v33  ;;  %3261 = vmatpush.bf16.msrb.mxu3 %v6291_v41  ;;  %v6199_v33 = vor.u32 %v6519_v20, %v6198_v29 }
0x102d   :  { %3208 = vmatpush.bf16.msrb.mxu0 %v6263_v1  ;;  %3226 = vmatpush.bf16.msrb.mxu1 %v6267_v8  ;;  %v6515_v1 = vld [vmem:[#allocation7 + $0x12c] sm:$0xf0]  ;;  %v6513_v8 = vld [vmem:[#allocation7 + $0x124] sm:$0xf] }
0x102e   :  { %3244 = vmatpush.bf16.msrb.mxu2 %v6271_v21  ;;  %3262 = vmatpush.bf16.msrb.mxu3 %v6275_v34  ;;  %v6516_v21 = vld [vmem:[#allocation7 + $0x134] sm:$0xf0]  ;;  %v6183_v28 = vor.u32 %v6515_v1, %v6182_v59  ;;  %v6187_v34 = vor.u32 %v6513_v8, %v6184_v9 }
0x102f   :  { %v6191_v42 = vor.u32 %v6516_v21, %v6190_v14  ;;  %v6414_v14 = vld [vmem:[#allocation9 + $0x1e8] sm:$0xf]  ;;  %v6572_v21 = vld [vmem:[#allocation9 + $0x1f4] sm:$0xf0] }
0x1031   :  { %3209 = vmatpush.bf16.msrb.mxu0 %v6247_v35  ;;  %3227 = vmatpush.bf16.msrb.mxu1 %v6251_v52  ;;  %v6514_v35 = vld [vmem:[#allocation7 + $0x12c] sm:$0xf]  ;;  %v6511_v52 = vld [vmem:[#allocation7 + $0x10c] sm:$0xf0] }
0x1032   :  { %3245 = vmatpush.bf16.msrb.mxu2 %v6255_v5  ;;  %3263 = vmatpush.bf16.msrb.mxu3 %v6259_v6  ;;  %v6195_v4 = vor.u32 %v6514_v35, %v6192_v36  ;;  %v6168_v5 = vld [vmem:[#allocation7 + $0x110] sm:$0xf0]  ;;  %v6174_v6 = vld [vmem:[#allocation7 + $0x108] sm:$0xf]  ;;  %v6406_v35 = vld [vmem:[#allocation9 + $0x1e0] sm:$0xf] }
0x1035   :  { %3210 = vmatpush.bf16.msrb.mxu0 %v6231_v11  ;;  %3228 = vmatpush.bf16.msrb.mxu1 %v6235_v45  ;;  %v6175_v11 = vor.u32 %v6512_v12, %v6174_v6  ;;  %v6398_v6 = vld [vmem:[#allocation9 + $0x1c8] sm:$0xf]  ;;  %v6568_v12 = vld [vmem:[#allocation9 + $0x1d4] sm:$0xf0] }
0x10a4   :  { %v2808_v46 = vpop.f32.mrf.mxu0  ;;  %v2821_v19 = vpop.f32.mrf.mxu1 }
0x10a5   :  { %v2855_v55 = vrot.slane %v2821_v19, 7  ;;  %v6240_v19 = vld [vmem:[#allocation7 + $0x198] sm:$0xf0] }
0x10a7   :  { %v2858_v7 = vsel %vm633_vm0, %v2808_v46, %v2855_v55  ;;  %v6526_v46 = vld [vmem:[#allocation7 + $0x18c] sm:$0xf] }
0x10ab   :  { %v2834_v27 = vpop.f32.mrf.mxu2  ;;  %v2847_v57 = vpop.f32.mrf.mxu3 }
0x10ac   :  { %v2856_v62 = vrot.slane %v2834_v27, 6  ;;  %v2857_v32 = vrot.slane %v2847_v57, 5  ;;  %v2810_v0 = vpop.f32.mrf.mxu0  ;;  %v2823_v2 = vpop.f32.mrf.mxu1  ;;  %v6239_v27 = vor.u32 %v6528_v40, %v6238_v39  ;;  %v6243_v57 = vor.u32 %v6526_v46, %v6240_v19 }
0x10ad   :  { %v6521_v0 = vld [vmem:[#allocation7 + $0x164] sm:$0xf]  ;;  %v6167_v39 = vor.u32 %v6511_v52, %v6166_v51  ;;  %v6171_v40 = vor.u32 %v6509_v54, %v6168_v5  ;;  %v6179_v46 = vor.u32 %v6510_v16, %v6176_v17  ;;  %v6571_v51 = vld [vmem:[#allocation9 + $0x1ec] sm:$0xf0]  ;;  %v6566_v16 = vld [vmem:[#allocation9 + $0x1cc] sm:$0xf] }
0x10ae   :  { %v2859_v31 = vsel %vm635_vm1, %v2856_v62, %v2857_v32  ;;  %v6214_v62 = vld [vmem:[#allocation7 + $0x160] sm:$0xf]  ;;  %v6523_v32 = vld [vmem:[#allocation7 + $0x16c] sm:$0xf0]  ;;  %3246 = vmatpush.bf16.msrb.mxu2 %v6239_v27  ;;  %3264 = vmatpush.bf16.msrb.mxu3 %v6243_v57  ;;  %v6569_v52 = vld [vmem:[#allocation9 + $0x1e4] sm:$0xf]  ;;  %v8171_v54 = vor.u32 %v6571_v51, %v6406_v35 }
0x10af   :  { %v2860_v25 = vsel %vm637_vm2, %v2858_v7, %v2859_v31  ;;  %v6216_v7 = vld [vmem:[#allocation7 + $0x170] sm:$0xf0]  ;;  %v6222_v31 = vld [vmem:[#allocation7 + $0x168] sm:$0xf]  ;;  %v6557_v35 = vld [vmem:[#allocation9 + $0x184] sm:$0xf] }
0x10b0   :  { %v8134_v56 = vadd.f32 %v2860_v25, %v2797_v38  ;;  %v6215_v38 = vor.u32 %v6523_v32, %v6214_v62  ;;  %v6219_v13 = vor.u32 %v6521_v0, %v6216_v7  ;;  %v6224_v25 = vld [vmem:[#allocation7 + $0x178] sm:$0xf0]  ;;  %v6223_v26 = vor.u32 %v6524_v15, %v6222_v31  ;;  %v2999_v31 = vld [vmem:[#allocation2 + $0x8] sm:$0xff]  ;;  %v6360_v51 = vld [vmem:[#allocation9 + $0x190] sm:$0xf0] }
0x10b1   :  { %v6227_v50 = vor.u32 %v6522_v44, %v6224_v25 }
0x10b2   :  { %v6162_v47 = vmul.f32 -1.442695, %v8134_v56  ;;  %v2883_v2 = vrot.slane %v8134_v56, 3  ;;  %3211 = vmatpush.bf16.msrb.mxu0 %v6215_v38  ;;  %3229 = vmatpush.bf16.msrb.mxu1 %v6219_v13  ;;  %v6520_v56 = vld [vmem:[#allocation7 + $0x154] sm:$0xf0]  ;;  %v2998_v13 = vld [vmem:[#allocation2] sm:$0xff] }
0x10b3   :  { %v2836_v49 = vpop.f32.mrf.mxu2  ;;  %v2849_v53 = vpop.f32.mrf.mxu3  ;;  %3247 = vmatpush.bf16.msrb.mxu2 %v6223_v26  ;;  %v6207_v48 = vor.u32 %v6520_v56, %v6206_v37  ;;  %3265 = vmatpush.bf16.msrb.mxu3 %v6227_v50  ;;  %v3001_v15 = vpack.c.bf16 %v2999_v31, %v2998_v13  ;;  %v3037_v56 = vld [vmem:[#allocation10 + $0x4] sm:$0xf]  ;;  %v6564_v13 = vld [vmem:[#allocation9 + $0x1b4] sm:$0xf0] }
0x10b4   :  { %6759 = vpow2.f32 %v6162_v47  ;;  %v6203_v47 = vor.u32 %v6517_v24, %v6200_v63  ;;  %v6518_v49 = vld [vmem:[#allocation7 + $0x14c] sm:$0xf]  ;;  %v6208_v53 = vld [vmem:[#allocation7 + $0x158] sm:$0xf0]  ;;  %v8166_v36 = vperm.slane %v3037_v56, 3 }
0x10b5   :  { %v6211_v61 = vor.u32 %v6518_v49, %v6208_v53  ;;  %v8155_v49 = vperm.slane %v3037_v56, 0  ;;  %v8157_v53 = vperm.slane %v3037_v56, 1 }
0x10b6   :  { %3212 = vmatpush.bf16.msrb.mxu0 %v6199_v33  ;;  %3230 = vmatpush.bf16.msrb.mxu1 %v6203_v47 }
0x10b7   :  { %3248 = vmatpush.bf16.msrb.mxu2 %v6207_v48  ;;  %3266 = vmatpush.bf16.msrb.mxu3 %v6211_v61 }
0x10ba   :  { %v6760_v43 = vpop.eup %6759  ;;  %3213 = vmatpush.bf16.msrb.mxu0 %v6183_v28  ;;  %3231 = vmatpush.bf16.msrb.mxu1 %v6187_v34  ;;  %v8164_v28 = vor.u32 %v6572_v21, %v6414_v14  ;;  %v6416_v34 = vld [vmem:[#allocation9 + $0x1f8] sm:$0xf0]  ;;  %v6559_v14 = vld [vmem:[#allocation9 + $0x18c] sm:$0xf0] }
0x10bb   :  { %v8137_v55 = vadd.f32 1.0, %v6760_v43  ;;  %3249 = vmatpush.bf16.msrb.mxu2 %v6191_v42  ;;  %3267 = vmatpush.bf16.msrb.mxu3 %v6195_v4 }
0x10bd   :  { %6761 = vrcp.f32 %v8137_v55  ;;  %v2876_v10 = vand.u32 2147483647, %v8137_v55  ;;  %v2878_v23 = vand.u32 2147483648, %v8137_v55  ;;  %vm2872_vm14 = vweird.f32 %v8137_v55 }
0x10be   :  { %6763 = vtanh.f32 %v2883_v2  ;;  %3214 = vmatpush.bf16.msrb.mxu0 %v6167_v39  ;;  %3232 = vmatpush.bf16.msrb.mxu1 %v6171_v40  ;;  %v8179_v40 = vor.u32 %v6568_v12, %v6398_v6  ;;  %v8230_v6 = vor.u32 %v6557_v35, %v6360_v51  ;;  %v6545_v35 = vld [vmem:[#allocation9 + $0x124] sm:$0xf]  ;;  %v6312_v51 = vld [vmem:[#allocation9 + $0x130] sm:$0xf0] }
0x10bf   :  { %v2879_v43 = vor.u32 1.1754944e-38, %v2878_v23  ;;  %vm2877_vm3 = vcmp.eq.f32.partialorder %v2876_v10, 8.507059e+37  ;;  %3250 = vmatpush.bf16.msrb.mxu2 %v6175_v11  ;;  %3268 = vmatpush.bf16.msrb.mxu3 %v6179_v46  ;;  %v8162_v23 = vperm.slane %v3037_v56, 2  ;;  %v6390_v11 = vld [vmem:[#allocation9 + $0x1c0] sm:$0xf] }
0x10c0   :  { %v6376_v56 = vld [vmem:[#allocation9 + $0x1b0] sm:$0xf0] }
0x10c3   :  { %v6762_v41 = vpop.eup %6761 }
0x10c4   :  { %v2868_v60 = vmul.f32 %v6762_v41, %v8137_v55  ;;  %vm2873_vm13 = vweird.f32 %v6762_v41  ;;  %v6764_v57 = vpop.eup %6763 }
0x10c5   :  { %vm2874_vm15 = vmor %vm2872_vm14, %vm2873_vm13 }
0x10c6   :  { %v2869_v22 = vsub.f32 1.0, %v2868_v60 }
0x10c8   :  { %v2870_v58 = vmul.f32 %v6762_v41, %v2869_v22  ;;  %v6570_v22 = vld [vmem:[#allocation9 + $0x1ec] sm:$0xf] }
0x10c9   :  { %v8168_v42 = vor.u32 %v6570_v22, %v6416_v34 }
0x10ca   :  { %v2871_v30 = vadd.f32 %v6762_v41, %v2870_v58  ;;  %v6408_v58 = vld [vmem:[#allocation9 + $0x1f0] sm:$0xf0] }
0x10cb   :  { %v8174_v5 = vor.u32 %v6569_v52, %v6408_v58  ;;  %v6302_v52 = vld [vmem:[#allocation9 + $0x108] sm:$0xf] }
0x10cc   :  { %v2875_v45 = vsel %vm2874_vm15, %v6762_v41, %v2871_v30  ;;  %v2898_v41 = vld [vmem:[#allocation3 + $0x47] ss:$8 sm:$0xf] }
0x10cd   :  { %v2880_v19 = vsel %vm2877_vm3, %v2879_v43, %v2875_v45  ;;  %v6400_v43 = vld [vmem:[#allocation9 + $0x1d8] sm:$0xf0] }
0x10ce   :  { %v2887_v27 = vrot.slane %v2880_v19, 1  ;;  %v2890_v62 = vmul.f32 %v6764_v57, %v2880_v19  ;;  %v2893_v0 = vrot.slane %v2880_v19, 2  ;;  %v8184_v57 = vor.u32 %v6566_v16, %v6400_v43  ;;  %v6350_v16 = vld [vmem:[#allocation9 + $0x168] sm:$0xf] }
0x10d0   :  { %v2889_v55 = vmul.f32 %v2887_v27, %v8128_v3 }
0x10d2   :  { %v8147_v32 = vadd.f32 %v2890_v62, %v2889_v55  ;;  %v6567_v55 = vld [vmem:[#allocation9 + $0x1cc] sm:$0xf0]  ;;  %v6565_v62 = vld [vmem:[#allocation9 + $0x1c4] sm:$0xf] }
0x10d3   :  { %v8191_v31 = vor.u32 %v6567_v55, %v6390_v11  ;;  %v6555_v55 = vld [vmem:[#allocation9 + $0x16c] sm:$0xf0] }
0x10d4   :  { %6765 = vtanh.f32 %v8147_v32 }
0x10da   :  { %v6766_v2 = vpop.eup %6765 }
0x10db   :  { %v2895_v38 = vmul.f32 %v6766_v2, %v2893_v0  ;;  %v6392_v0 = vld [vmem:[#allocation9 + $0x1d0] sm:$0xf0]  ;;  %v6382_v2 = vld [vmem:[#allocation9 + $0x1a8] sm:$0xf] }
0x10dd   :  { %2896 = vst [vmem:[#allocation2 + $0x16] sm:$0x1] %v2895_v38  ;;  %v2899_v7 = vpack.c.bf16 %v2895_v38, %v2895_v38 }
0x10df   :  { %2908 = vmatmul.bf16.vlgmr.msra.gmra.mxu0 %v2899_v7  ;;  %2921 = vmatmul.bf16.vlgmr.msra.gmra.mxu1 %v2899_v7 }
0x10e0   :  { %2934 = vmatmul.bf16.vlgmr.msra.gmra.mxu2 %v2899_v7  ;;  %2947 = vmatmul.bf16.vlgmr.msra.gmra.mxu3 %v2899_v7 }
0x10e1   :  { %3511 = vmatpush.bf16.msra.mxu2 %v8164_v28  ;;  %3524 = vmatpush.bf16.msra.mxu3 %v8168_v42 }
0x10e2   :  { %3485 = vmatpush.bf16.msra.mxu0 %v8171_v54  ;;  %3498 = vmatpush.bf16.msra.mxu1 %v8174_v5 }
0x10e5   :  { %3512 = vmatpush.bf16.msra.mxu2 %v8179_v40  ;;  %3525 = vmatpush.bf16.msra.mxu3 %v8184_v57 }
0x10e6   :  { %3486 = vmatpush.bf16.msra.mxu0 %v8191_v31 }
0x10ef   :  { %3215 = vmatmul.bf16.vlgmr.msrb.gmra.mxu0 %v3001_v15  ;;  %3233 = vmatmul.bf16.vlgmr.msrb.gmra.mxu1 %v3001_v15 }
0x10f0   :  { %3251 = vmatmul.bf16.vlgmr.msrb.gmra.mxu2 %v3001_v15  ;;  %3269 = vmatmul.bf16.vlgmr.msrb.gmra.mxu3 %v3001_v15  ;;  %v6562_v15 = vld [vmem:[#allocation9 + $0x1ac] sm:$0xf] }
0x115c   :  { %v2909_v3 = vpop.f32.mrf.mxu0  ;;  %v2922_v44 = vpop.f32.mrf.mxu1 }
0x115d   :  { %v2956_v25 = vrot.slane %v2922_v44, 7  ;;  %v8194_v44 = vor.u32 %v6565_v62, %v6392_v0  ;;  %v6553_v62 = vld [vmem:[#allocation9 + $0x164] sm:$0xf] }
0x115f   :  { %v2959_v63 = vsel %vm633_vm0, %v2909_v3, %v2956_v25  ;;  %v8196_v25 = vor.u32 %v6564_v13, %v6382_v2  ;;  %3499 = vmatpush.bf16.msra.mxu1 %v8194_v44  ;;  %v6344_v2 = vld [vmem:[#allocation9 + $0x170] sm:$0xf0] }
0x1161   :  { %3513 = vmatpush.bf16.msra.mxu2 %v8196_v25 }
0x1163   :  { %v2935_v26 = vpop.f32.mrf.mxu2  ;;  %v2948_v50 = vpop.f32.mrf.mxu3 }
0x1164   :  { %v2957_v29 = vrot.slane %v2935_v26, 6  ;;  %v2958_v20 = vrot.slane %v2948_v50, 5  ;;  %v2911_v24 = vpop.f32.mrf.mxu0  ;;  %v2924_v33 = vpop.f32.mrf.mxu1  ;;  %v6384_v26 = vld [vmem:[#allocation9 + $0x1b8] sm:$0xf0] }
0x1165   :  { %v6563_v24 = vld [vmem:[#allocation9 + $0x1ac] sm:$0xf0] }
0x1166   :  { %v2960_v37 = vsel %vm635_vm1, %v2957_v29, %v2958_v20  ;;  %v8200_v29 = vor.u32 %v6562_v15, %v6384_v26  ;;  %v6374_v20 = vld [vmem:[#allocation9 + $0x1a0] sm:$0xf]  ;;  %v8251_v15 = vor.u32 %v6553_v62, %v6344_v2  ;;  %v6550_v26 = vld [vmem:[#allocation9 + $0x14c] sm:$0xf]  ;;  %v6543_v2 = vld [vmem:[#allocation9 + $0x10c] sm:$0xf0] }
0x1167   :  { %v2961_v47 = vsel %vm637_vm2, %v2959_v63, %v2960_v37  ;;  %v8205_v63 = vor.u32 %v6563_v24, %v6374_v20  ;;  %v6561_v37 = vld [vmem:[#allocation9 + $0x1a4] sm:$0xf]  ;;  %v6336_v20 = vld [vmem:[#allocation9 + $0x158] sm:$0xf0]  ;;  %v6326_v24 = vld [vmem:[#allocation9 + $0x140] sm:$0xf] }
0x1168   :  { %v8153_v48 = vadd.f32 %v2961_v47, %v2898_v41  ;;  %3526 = vmatpush.bf16.msra.mxu3 %v8200_v29  ;;  %v8208_v41 = vor.u32 %v6561_v37, %v6376_v56  ;;  %v6366_v47 = vld [vmem:[#allocation9 + $0x188] sm:$0xf]  ;;  %v6549_v37 = vld [vmem:[#allocation9 + $0x144] sm:$0xf]  ;;  %v6328_v56 = vld [vmem:[#allocation9 + $0x150] sm:$0xf0] }
0x1169   :  { %3487 = vmatpush.bf16.msra.mxu0 %v8205_v63  ;;  %v6294_v62 = vld [vmem:[#allocation9 + $0x100] sm:$0xf] }
0x116a   :  { %v6163_v59 = vmul.f32 -1.442695, %v8153_v48  ;;  %v2984_v50 = vrot.slane %v8153_v48, 3  ;;  %v6560_v48 = vld [vmem:[#allocation9 + $0x194] sm:$0xf0]  ;;  %3500 = vmatpush.bf16.msra.mxu1 %v8208_v41 }
0x116b   :  { %v2937_v60 = vpop.f32.mrf.mxu2  ;;  %v2950_v61 = vpop.f32.mrf.mxu3 }
0x116c   :  { %6767 = vpow2.f32 %v6163_v59  ;;  %v3216_v1 = vpop.f32.mrf.mxu0  ;;  %v3234_v8 = vpop.f32.mrf.mxu1  ;;  %v6558_v59 = vld [vmem:[#allocation9 + $0x18c] sm:$0xf] }
0x116d   :  { %v3217_v9 = vadd.f32 %v3216_v1, %v8155_v49  ;;  %v3235_v10 = vadd.f32 %v3234_v8, %v8157_v53  ;;  %v8212_v8 = vor.u32 %v6560_v48, %v6366_v47 }
0x116e   :  { %3501 = vmatpush.bf16.msra.mxu1 %v8230_v6 }
0x116f   :  { %3279 = vst [vmem:[#allocation3] sm:$0xff] %v3217_v9  ;;  %v6368_v9 = vld [vmem:[#allocation9 + $0x198] sm:$0xf0]  ;;  %3514 = vmatpush.bf16.msra.mxu2 %v8212_v8 }
0x1170   :  { %3280 = vst [vmem:[#allocation3 + $0x8] sm:$0xff] %v3235_v10  ;;  %v6358_v10 = vld [vmem:[#allocation9 + $0x180] sm:$0xf]  ;;  %v8226_v58 = vor.u32 %v6558_v59, %v6368_v9  ;;  %v6318_v59 = vld [vmem:[#allocation9 + $0x128] sm:$0xf] }
0x1172   :  { %v6768_v4 = vpop.eup %6767  ;;  %3527 = vmatpush.bf16.msra.mxu3 %v8226_v58  ;;  %3502 = vmatpush.bf16.msra.mxu1 %v8251_v15 }
0x1173   :  { %v8176_v17 = vadd.f32 1.0, %v6768_v4  ;;  %v3252_v30 = vpop.f32.mrf.mxu2  ;;  %v3270_v39 = vpop.f32.mrf.mxu3  ;;  %v8228_v4 = vor.u32 %v6559_v14, %v6358_v10  ;;  %v8268_v10 = vor.u32 %v6549_v37, %v6328_v56 }
0x1174   :  { %v3253_v45 = vadd.f32 %v3252_v30, %v8162_v23  ;;  %v3271_v46 = vadd.f32 %v3270_v39, %v8166_v36  ;;  %v3218_v19 = vpop.f32.mrf.mxu0  ;;  %v3236_v27 = vpop.f32.mrf.mxu1  ;;  %v6556_v30 = vld [vmem:[#allocation9 + $0x174] sm:$0xf0] }
0x1175   :  { %6769 = vrcp.f32 %v8176_v17  ;;  %v3219_v38 = vadd.f32 %v3218_v19, %v8155_v49  ;;  %v3237_v7 = vadd.f32 %v3236_v27, %v8157_v53  ;;  %v2977_v3 = vand.u32 2147483647, %v8176_v17  ;;  %3488 = vmatpush.bf16.msra.mxu0 %v8228_v4  ;;  %v6342_v27 = vld [vmem:[#allocation9 + $0x160] sm:$0xf] }
0x1176   :  { %3281 = vst [vmem:[#allocation3 + $0x10] sm:$0xff] %v3253_v45  ;;  %v2979_v33 = vand.u32 2147483648, %v8176_v17  ;;  %vm2973_vm6 = vweird.f32 %v8176_v17  ;;  %v8240_v11 = vor.u32 %v6556_v30, %v6350_v16  ;;  %v6554_v45 = vld [vmem:[#allocation9 + $0x16c] sm:$0xf]  ;;  %6771 = vtanh.f32 %v2984_v50  ;;  %v6544_v30 = vld [vmem:[#allocation9 + $0x114] sm:$0xf0]  ;;  %3503 = vmatpush.bf16.msra.mxu1 %v8268_v10 }
0x1177   :  { %3282 = vst [vmem:[#allocation3 + $0x18] sm:$0xff] %v3271_v46  ;;  %vm8220_vm5 = vcmp.eq.f32.partialorder %v2977_v3, 8.507059e+37  ;;  %v6352_v46 = vld [vmem:[#allocation9 + $0x178] sm:$0xf0]  ;;  %v8248_v0 = vor.u32 %v6555_v55, %v6342_v27  ;;  %v8256_v50 = vor.u32 %v6550_v26, %v6336_v20  ;;  %v8281_v27 = vor.u32 %v6545_v35, %v6312_v51 }
0x1178   :  { %3283 = vst [vmem:[#allocation3 + $0x20] sm:$0xff] %v3219_v38  ;;  %v2980_v43 = vor.u32 1.1754944e-38, %v2979_v33  ;;  %3515 = vmatpush.bf16.msra.mxu2 %v8240_v11  ;;  %v6334_v38 = vld [vmem:[#allocation9 + $0x148] sm:$0xf]  ;;  %v6551_v33 = vld [vmem:[#allocation9 + $0x14c] sm:$0xf0]  ;;  %v8283_v55 = vor.u32 %v6544_v30, %v6302_v52  ;;  %v8289_v26 = vor.u32 %v6543_v2, %v6294_v62 }
0x1179   :  { %3284 = vst [vmem:[#allocation3 + $0x28] sm:$0xff] %v3237_v7  ;;  %v6552_v7 = vld [vmem:[#allocation9 + $0x154] sm:$0xf0]  ;;  %3489 = vmatpush.bf16.msra.mxu0 %v8248_v0  ;;  %v8262_v48 = vor.u32 %v6551_v33, %v6326_v24 }
0x117a   :  { %v8253_v3 = vor.u32 %v6552_v7, %v6334_v38  ;;  %v6541_v7 = vld [vmem:[#allocation9 + $0x104] sm:$0xf]  ;;  %3504 = vmatpush.bf16.msra.mxu1 %v8281_v27 }
0x117b   :  { %v8210_v60 = vpop.eup %6769  ;;  %v3254_v61 = vpop.f32.mrf.mxu2 }
0x117c   :  { %v3272_v1 = vpop.f32.mrf.mxu3  ;;  %v2969_v21 = vmul.f32 %v8210_v60, %v8176_v17  ;;  %vm2974_vm4 = vweird.f32 %v8210_v60  ;;  %v3255_v22 = vadd.f32 %v3254_v61, %v8162_v23  ;;  %v8244_v17 = vor.u32 %v6554_v45, %v6352_v46  ;;  %v6548_v61 = vld [vmem:[#allocation9 + $0x134] sm:$0xf0]  ;;  %3516 = vmatpush.bf16.msra.mxu2 %v8253_v3  ;;  %v6542_v46 = vld [vmem:[#allocation9 + $0x10c] sm:$0xf] }
0x117d   :  { %v3273_v34 = vadd.f32 %v3272_v1, %v8166_v36  ;;  %vm8235_vm7 = vmor %vm2973_vm6, %vm2974_vm4  ;;  %v6546_v1 = vld [vmem:[#allocation9 + $0x12c] sm:$0xf]  ;;  %v8270_v14 = vor.u32 %v6548_v61, %v6318_v59  ;;  %3490 = vmatpush.bf16.msra.mxu0 %v8262_v48 }
0x117e   :  { %v2970_v12 = vsub.f32 1.0, %v2969_v21  ;;  %3285 = vst [vmem:[#allocation3 + $0x30] sm:$0xff] %v3255_v22  ;;  %3528 = vmatpush.bf16.msra.mxu3 %v8244_v17  ;;  %v6320_v21 = vld [vmem:[#allocation9 + $0x138] sm:$0xf0]  ;;  %v6547_v22 = vld [vmem:[#allocation9 + $0x12c] sm:$0xf0] }
0x117f   :  { %3286 = vst [vmem:[#allocation3 + $0x38] sm:$0xff] %v3273_v34  ;;  %v8273_v16 = vor.u32 %v6546_v1, %v6320_v21 }
0x1180   :  { %v2971_v19 = vmul.f32 %v8210_v60, %v2970_v12  ;;  %v6772_v12 = vpop.eup %6771  ;;  %3517 = vmatpush.bf16.msra.mxu2 %v8270_v14 }
0x1182   :  { %v2972_v13 = vadd.f32 %v8210_v60, %v2971_v19  ;;  %3529 = vmatpush.bf16.msra.mxu3 %v8256_v50  ;;  %v6304_v19 = vld [vmem:[#allocation9 + $0x118] sm:$0xf0] }
0x1184   :  { %v2976_v47 = vsel %vm8235_vm7, %v8210_v60, %v2972_v13  ;;  %v6310_v60 = vld [vmem:[#allocation9 + $0x120] sm:$0xf]  ;;  %v8286_v13 = vor.u32 %v6542_v46, %v6304_v19  ;;  %3518 = vmatpush.bf16.msra.mxu2 %v8283_v55 }
0x1185   :  { %v2981_v9 = vsel %vm8220_vm5, %v2980_v43, %v2976_v47  ;;  %v8277_v45 = vor.u32 %v6547_v22, %v6310_v60 }
0x1186   :  { %v2988_v34 = vrot.slane %v2981_v9, 1  ;;  %v2991_v43 = vmul.f32 %v6772_v12, %v2981_v9  ;;  %3530 = vmatpush.bf16.msra.mxu3 %v8273_v16  ;;  %v2994_v24 = vrot.slane %v2981_v9, 2 }
0x1187   :  { %3491 = vmatpush.bf16.msra.mxu0 %v8277_v45 }
0x1188   :  { %v2990_v39 = vmul.f32 %v2988_v34, %v8147_v32  ;;  %v6296_v32 = vld [vmem:[#allocation9 + $0x110] sm:$0xf0]  ;;  %3610 = vmatpush.bf16.msrb.mxu2 %v8164_v28 }
0x1189   :  { %v8293_v20 = vor.u32 %v6541_v7, %v6296_v32 }
0x118a   :  { %v2992_v38 = vadd.f32 %v2991_v43, %v2990_v39  ;;  %3531 = vmatpush.bf16.msra.mxu3 %v8286_v13 }
0x118b   :  { %3492 = vmatpush.bf16.msra.mxu0 %v8289_v26  ;;  %3505 = vmatpush.bf16.msra.mxu1 %v8293_v20 }
0x118c   :  { %6773 = vtanh.f32 %v2992_v38  ;;  %3611 = vmatpush.bf16.msrb.mxu2 %v8179_v40 }
0x118e   :  { %3623 = vmatpush.bf16.msrb.mxu3 %v8168_v42 }
0x118f   :  { %3584 = vmatpush.bf16.msrb.mxu0 %v8171_v54  ;;  %3597 = vmatpush.bf16.msrb.mxu1 %v8174_v5 }
0x1190   :  { %3612 = vmatpush.bf16.msrb.mxu2 %v8196_v25 }
0x1192   :  { %v6774_v33 = vpop.eup %6773  ;;  %3624 = vmatpush.bf16.msrb.mxu3 %v8184_v57 }
0x1193   :  { %v2996_v37 = vmul.f32 %v6774_v33, %v2994_v24  ;;  %3585 = vmatpush.bf16.msrb.mxu0 %v8191_v31  ;;  %3598 = vmatpush.bf16.msrb.mxu1 %v8194_v44 }
0x1194   :  { %3613 = vmatpush.bf16.msrb.mxu2 %v8212_v8 }
0x1195   :  { %2997 = vst [vmem:[#allocation2 + $0x17] sm:$0x1] %v2996_v37 }
0x1196   :  { %3625 = vmatpush.bf16.msrb.mxu3 %v8200_v29 }
0x1197   :  { %3586 = vmatpush.bf16.msrb.mxu0 %v8205_v63  ;;  %3599 = vmatpush.bf16.msrb.mxu1 %v8208_v41 }
0x1198   :  { %3614 = vmatpush.bf16.msrb.mxu2 %v8240_v11 }
0x119a   :  { %3626 = vmatpush.bf16.msrb.mxu3 %v8226_v58 }
0x119b   :  { %3587 = vmatpush.bf16.msrb.mxu0 %v8228_v4  ;;  %3600 = vmatpush.bf16.msrb.mxu1 %v8230_v6 }
0x119c   :  { %v3000_v56 = vld [vmem:[#allocation2 + $0x10] sm:$0xff]  ;;  %3615 = vmatpush.bf16.msrb.mxu2 %v8253_v3 }
0x119d   :  { %v3002_v47 = vpack.c.bf16 %v3000_v56, %v3000_v56 }
0x119e   :  { %3627 = vmatpush.bf16.msrb.mxu3 %v8244_v17 }
0x119f   :  { %3220 = vmatmul.bf16.gmra.mxu0 %v3002_v47  ;;  %3238 = vmatmul.bf16.gmra.mxu1 %v3002_v47 }
0x11a0   :  { %3256 = vmatmul.bf16.gmra.mxu2 %v3002_v47  ;;  %3274 = vmatmul.bf16.gmra.mxu3 %v3002_v47 }
0x11a1   :  { %3588 = vmatpush.bf16.msrb.mxu0 %v8248_v0  ;;  %3601 = vmatpush.bf16.msrb.mxu1 %v8251_v15 }
0x11a2   :  { %3628 = vmatpush.bf16.msrb.mxu3 %v8256_v50  ;;  %3616 = vmatpush.bf16.msrb.mxu2 %v8270_v14 }
0x11a5   :  { %3589 = vmatpush.bf16.msrb.mxu0 %v8262_v48  ;;  %3602 = vmatpush.bf16.msrb.mxu1 %v8268_v10 }
0x11a6   :  { %3629 = vmatpush.bf16.msrb.mxu3 %v8273_v16  ;;  %3617 = vmatpush.bf16.msrb.mxu2 %v8283_v55 }
0x11a9   :  { %3590 = vmatpush.bf16.msrb.mxu0 %v8277_v45  ;;  %3603 = vmatpush.bf16.msrb.mxu1 %v8281_v27 }
0x11aa   :  { %3630 = vmatpush.bf16.msrb.mxu3 %v8286_v13 }
0x11ad   :  { %3591 = vmatpush.bf16.msrb.mxu0 %v8289_v26  ;;  %3604 = vmatpush.bf16.msrb.mxu1 %v8293_v20 }
0x11af   :  { %3493 = vmatmul.bf16.vlgmr.msra.gmra.mxu0 %v7103_v18  ;;  %3506 = vmatmul.bf16.vlgmr.msra.gmra.mxu1 %v7103_v18 }
0x11b0   :  { %3519 = vmatmul.bf16.vlgmr.msra.gmra.mxu2 %v7103_v18  ;;  %3532 = vmatmul.bf16.vlgmr.msra.gmra.mxu3 %v7103_v18 }
0x11b1   :  { %3683 = vmatpush.bf16.msra.mxu0 %v8171_v54  ;;  %3696 = vmatpush.bf16.msra.mxu1 %v8174_v5 }
0x11b2   :  { %3709 = vmatpush.bf16.msra.mxu2 %v8164_v28  ;;  %3722 = vmatpush.bf16.msra.mxu3 %v8168_v42 }
0x11b5   :  { %3684 = vmatpush.bf16.msra.mxu0 %v8191_v31  ;;  %3697 = vmatpush.bf16.msra.mxu1 %v8194_v44 }
0x11b6   :  { %3710 = vmatpush.bf16.msra.mxu2 %v8179_v40  ;;  %3723 = vmatpush.bf16.msra.mxu3 %v8184_v57 }
0x11b9   :  { %3685 = vmatpush.bf16.msra.mxu0 %v8205_v63  ;;  %3698 = vmatpush.bf16.msra.mxu1 %v8208_v41 }
0x11ba   :  { %3711 = vmatpush.bf16.msra.mxu2 %v8196_v25  ;;  %3724 = vmatpush.bf16.msra.mxu3 %v8200_v29 }
0x11bd   :  { %3686 = vmatpush.bf16.msra.mxu0 %v8228_v4  ;;  %3699 = vmatpush.bf16.msra.mxu1 %v8230_v6 }
0x11be   :  { %3712 = vmatpush.bf16.msra.mxu2 %v8212_v8  ;;  %3725 = vmatpush.bf16.msra.mxu3 %v8226_v58 }
0x11c1   :  { %3687 = vmatpush.bf16.msra.mxu0 %v8248_v0  ;;  %3700 = vmatpush.bf16.msra.mxu1 %v8251_v15 }
0x11c2   :  { %3713 = vmatpush.bf16.msra.mxu2 %v8240_v11  ;;  %3726 = vmatpush.bf16.msra.mxu3 %v8244_v17 }
0x11c5   :  { %3688 = vmatpush.bf16.msra.mxu0 %v8262_v48  ;;  %3701 = vmatpush.bf16.msra.mxu1 %v8268_v10 }
0x11c6   :  { %3714 = vmatpush.bf16.msra.mxu2 %v8253_v3  ;;  %3727 = vmatpush.bf16.msra.mxu3 %v8256_v50 }
0x11c9   :  { %3689 = vmatpush.bf16.msra.mxu0 %v8277_v45  ;;  %3702 = vmatpush.bf16.msra.mxu1 %v8281_v27 }
0x11ca   :  { %3715 = vmatpush.bf16.msra.mxu2 %v8270_v14  ;;  %3728 = vmatpush.bf16.msra.mxu3 %v8273_v16 }
0x11cd   :  { %3690 = vmatpush.bf16.msra.mxu0 %v8289_v26  ;;  %3703 = vmatpush.bf16.msra.mxu1 %v8293_v20 }
0x11ce   :  { %3716 = vmatpush.bf16.msra.mxu2 %v8283_v55  ;;  %3729 = vmatpush.bf16.msra.mxu3 %v8286_v13 }
0x121c   :  { %v3221_v18 = vpop.f32.mrf.mxu0  ;;  %v3239_v59 = vpop.f32.mrf.mxu1 }
0x121d   :  { %v3222_v61 = vadd.f32 %v3221_v18, %v8155_v49  ;;  %v3240_v1 = vadd.f32 %v3239_v59, %v8157_v53 }
0x121f   :  { %3287 = vst [vmem:[#allocation3 + $0x40] sm:$0xff] %v3222_v61 }
0x1220   :  { %3288 = vst [vmem:[#allocation3 + $0x48] sm:$0xff] %v3240_v1 }
0x1223   :  { %v3257_v9 = vpop.f32.mrf.mxu2  ;;  %v3275_v21 = vpop.f32.mrf.mxu3 }
0x1224   :  { %v3258_v60 = vadd.f32 %v3257_v9, %v8162_v23  ;;  %v3276_v22 = vadd.f32 %v3275_v21, %v8166_v36  ;;  %v3223_v34 = vpop.f32.mrf.mxu0  ;;  %v3241_v35 = vpop.f32.mrf.mxu1  ;;  %v3324_v36 = vld [vmem:[#allocation3] ss:$8 sm:$0xf] }
0x1226   :  { %3289 = vst [vmem:[#allocation3 + $0x50] sm:$0xff] %v3258_v60 }
0x1227   :  { %3290 = vst [vmem:[#allocation3 + $0x58] sm:$0xff] %v3276_v22 }
0x122b   :  { %v3259_v51 = vpop.f32.mrf.mxu2  ;;  %v3277_v12 = vpop.f32.mrf.mxu3 }
0x122c   :  { %v3494_v52 = vpop.f32.mrf.mxu0  ;;  %v3507_v30 = vpop.f32.mrf.mxu1 }
0x122d   :  { %v3541_v39 = vrot.slane %v3507_v30, 7 }
0x122f   :  { %v3544_v53 = vsel %vm633_vm0, %v3494_v52, %v3541_v39 }
0x1233   :  { %v3520_v49 = vpop.f32.mrf.mxu2  ;;  %v3533_v43 = vpop.f32.mrf.mxu3 }
0x1234   :  { %v3542_v46 = vrot.slane %v3520_v49, 6  ;;  %v3543_v19 = vrot.slane %v3533_v43, 5  ;;  %v3496_v62 = vpop.f32.mrf.mxu0  ;;  %v3509_v2 = vpop.f32.mrf.mxu1 }
0x1236   :  { %v3545_v23 = vsel %vm635_vm1, %v3542_v46, %v3543_v19 }
0x1237   :  { %v3546_v38 = vsel %vm637_vm2, %v3544_v53, %v3545_v23 }
0x1238   :  { %v3548_v7 = vadd.f32 %v3546_v38, %v3324_v36 }
0x123a   :  { %v6420_v32 = vmul.f32 -1.442695, %v3548_v7  ;;  %v3569_v59 = vrot.slane %v3548_v7, 3 }
0x123b   :  { %v3522_v24 = vpop.f32.mrf.mxu2  ;;  %v3535_v33 = vpop.f32.mrf.mxu3 }
0x123c   :  { %6775 = vpow2.f32 %v6420_v32 }
0x1242   :  { %v6776_v37 = vpop.eup %6775 }
0x1243   :  { %v3552_v56 = vadd.f32 1.0, %v6776_v37 }
0x1245   :  { %6777 = vrcp.f32 %v3552_v56  ;;  %v3564_v1 = vand.u32 2147483648, %v3552_v56  ;;  %v3562_v21 = vand.u32 2147483647, %v3552_v56  ;;  %vm3558_vm9 = vweird.f32 %v3552_v56 }
0x1246   :  { %6779 = vtanh.f32 %v3569_v59 }
0x1247   :  { %v3565_v22 = vor.u32 1.1754944e-38, %v3564_v1  ;;  %vm3563_vm11 = vcmp.eq.f32.partialorder %v3562_v21, 8.507059e+37 }
0x124b   :  { %v6778_v47 = vpop.eup %6777 }
0x124c   :  { %v3554_v18 = vmul.f32 %v6778_v47, %v3552_v56  ;;  %vm3559_vm8 = vweird.f32 %v6778_v47  ;;  %v6780_v12 = vpop.eup %6779  ;;  %v3582_v56 = vld [vmem:[#allocation3 + $0x1] ss:$8 sm:$0xf] }
0x124d   :  { %vm3560_vm10 = vmor %vm3558_vm9, %vm3559_vm8 }
0x124e   :  { %v3555_v61 = vsub.f32 1.0, %v3554_v18 }
0x1250   :  { %v3556_v9 = vmul.f32 %v6778_v47, %v3555_v61 }
0x1252   :  { %v3557_v60 = vadd.f32 %v6778_v47, %v3556_v9 }
0x1254   :  { %v3561_v34 = vsel %vm3560_vm10, %v6778_v47, %v3557_v60 }
0x1255   :  { %v3566_v35 = vsel %vm3563_vm11, %v3565_v22, %v3561_v34 }
0x1256   :  { %v3573_v51 = vrot.slane %v3566_v35, 1  ;;  %v3576_v30 = vmul.f32 %v6780_v12, %v3566_v35  ;;  %v3579_v49 = vrot.slane %v3566_v35, 2 }
0x1258   :  { %v3575_v52 = vmul.f32 0.0, %v3573_v51 }
0x125a   :  { %v8373_v39 = vadd.f32 %v3576_v30, %v3575_v52 }
0x125c   :  { %6781 = vtanh.f32 %v8373_v39 }
0x1262   :  { %v6782_v43 = vpop.eup %6781 }
0x1263   :  { %v3581_v53 = vmul.f32 %v6782_v43, %v3579_v49 }
0x1265   :  { %v3583_v46 = vpack.c.bf16 %v3581_v53, %v3581_v53 }
0x1267   :  { %3592 = vmatmul.bf16.vlgmr.msrb.gmra.mxu0 %v3583_v46  ;;  %3605 = vmatmul.bf16.vlgmr.msrb.gmra.mxu1 %v3583_v46 }
0x1268   :  { %3618 = vmatmul.bf16.vlgmr.msrb.gmra.mxu2 %v3583_v46  ;;  %3631 = vmatmul.bf16.vlgmr.msrb.gmra.mxu3 %v3583_v46 }
0x1269   :  { %3782 = vmatpush.bf16.msrb.mxu0 %v8171_v54  ;;  %3795 = vmatpush.bf16.msrb.mxu1 %v8174_v5 }
0x126a   :  { %3808 = vmatpush.bf16.msrb.mxu2 %v8164_v28  ;;  %3821 = vmatpush.bf16.msrb.mxu3 %v8168_v42 }
0x126d   :  { %3783 = vmatpush.bf16.msrb.mxu0 %v8191_v31  ;;  %3796 = vmatpush.bf16.msrb.mxu1 %v8194_v44 }
0x126e   :  { %3809 = vmatpush.bf16.msrb.mxu2 %v8179_v40  ;;  %3822 = vmatpush.bf16.msrb.mxu3 %v8184_v57 }
0x1271   :  { %3784 = vmatpush.bf16.msrb.mxu0 %v8205_v63  ;;  %3797 = vmatpush.bf16.msrb.mxu1 %v8208_v41 }
0x1272   :  { %3810 = vmatpush.bf16.msrb.mxu2 %v8196_v25  ;;  %3823 = vmatpush.bf16.msrb.mxu3 %v8200_v29 }
0x1275   :  { %3785 = vmatpush.bf16.msrb.mxu0 %v8228_v4  ;;  %3798 = vmatpush.bf16.msrb.mxu1 %v8230_v6 }
0x1276   :  { %3811 = vmatpush.bf16.msrb.mxu2 %v8212_v8  ;;  %3824 = vmatpush.bf16.msrb.mxu3 %v8226_v58 }
0x1279   :  { %3786 = vmatpush.bf16.msrb.mxu0 %v8248_v0  ;;  %3799 = vmatpush.bf16.msrb.mxu1 %v8251_v15 }
0x127a   :  { %3812 = vmatpush.bf16.msrb.mxu2 %v8240_v11  ;;  %3825 = vmatpush.bf16.msrb.mxu3 %v8244_v17 }
0x127d   :  { %3787 = vmatpush.bf16.msrb.mxu0 %v8262_v48  ;;  %3800 = vmatpush.bf16.msrb.mxu1 %v8268_v10 }
0x127e   :  { %3813 = vmatpush.bf16.msrb.mxu2 %v8253_v3  ;;  %3826 = vmatpush.bf16.msrb.mxu3 %v8256_v50 }
0x1281   :  { %3788 = vmatpush.bf16.msrb.mxu0 %v8277_v45  ;;  %3801 = vmatpush.bf16.msrb.mxu1 %v8281_v27 }
0x1282   :  { %3814 = vmatpush.bf16.msrb.mxu2 %v8270_v14  ;;  %3827 = vmatpush.bf16.msrb.mxu3 %v8273_v16 }
0x1285   :  { %3789 = vmatpush.bf16.msrb.mxu0 %v8289_v26  ;;  %3802 = vmatpush.bf16.msrb.mxu1 %v8293_v20 }
0x1286   :  { %3815 = vmatpush.bf16.msrb.mxu2 %v8283_v55  ;;  %3828 = vmatpush.bf16.msrb.mxu3 %v8286_v13 }
0x12e4   :  { %v3593_v19 = vpop.f32.mrf.mxu0  ;;  %v3606_v62 = vpop.f32.mrf.mxu1 }
0x12e5   :  { %v3640_v2 = vrot.slane %v3606_v62, 7 }
0x12e7   :  { %v3643_v33 = vsel %vm633_vm0, %v3593_v19, %v3640_v2 }
0x12eb   :  { %v3619_v23 = vpop.f32.mrf.mxu2  ;;  %v3632_v36 = vpop.f32.mrf.mxu3 }
0x12ec   :  { %v3641_v38 = vrot.slane %v3619_v23, 6  ;;  %v3642_v7 = vrot.slane %v3632_v36, 5  ;;  %v3595_v32 = vpop.f32.mrf.mxu0  ;;  %v3608_v24 = vpop.f32.mrf.mxu1 }
0x12ee   :  { %v3644_v37 = vsel %vm635_vm1, %v3641_v38, %v3642_v7 }
0x12ef   :  { %v3645_v47 = vsel %vm637_vm2, %v3643_v33, %v3644_v37 }
0x12f0   :  { %v3647_v18 = vadd.f32 %v3645_v47, %v3582_v56 }
0x12f2   :  { %v6421_v59 = vmul.f32 -1.442695, %v3647_v18  ;;  %v3668_v34 = vrot.slane %v3647_v18, 3 }
0x12f3   :  { %v3621_v61 = vpop.f32.mrf.mxu2  ;;  %v3634_v1 = vpop.f32.mrf.mxu3 }
0x12f4   :  { %6783 = vpow2.f32 %v6421_v59 }
0x12fa   :  { %v6784_v9 = vpop.eup %6783 }
0x12fb   :  { %v3651_v21 = vadd.f32 1.0, %v6784_v9 }
0x12fd   :  { %6785 = vrcp.f32 %v3651_v21  ;;  %v3663_v51 = vand.u32 2147483648, %v3651_v21  ;;  %v3661_v52 = vand.u32 2147483647, %v3651_v21  ;;  %vm3657_vm13 = vweird.f32 %v3651_v21 }
0x12fe   :  { %6787 = vtanh.f32 %v3668_v34 }
0x12ff   :  { %v3664_v49 = vor.u32 1.1754944e-38, %v3663_v51  ;;  %vm3662_vm15 = vcmp.eq.f32.partialorder %v3661_v52, 8.507059e+37 }
0x1303   :  { %v6786_v60 = vpop.eup %6785 }
0x1304   :  { %v3653_v22 = vmul.f32 %v6786_v60, %v3651_v21  ;;  %vm3658_vm12 = vweird.f32 %v6786_v60  ;;  %v6788_v19 = vpop.eup %6787  ;;  %v3681_v21 = vld [vmem:[#allocation3 + $0x2] ss:$8 sm:$0xf] }
0x1305   :  { %vm3659_vm14 = vmor %vm3657_vm13, %vm3658_vm12 }
0x1306   :  { %v3654_v35 = vsub.f32 1.0, %v3653_v22 }
0x1308   :  { %v3655_v12 = vmul.f32 %v6786_v60, %v3654_v35 }
0x130a   :  { %v3656_v30 = vadd.f32 %v6786_v60, %v3655_v12 }
0x130c   :  { %v3660_v43 = vsel %vm3659_vm14, %v6786_v60, %v3656_v30 }
0x130d   :  { %v3665_v53 = vsel %vm3662_vm15, %v3664_v49, %v3660_v43 }
0x130e   :  { %v3672_v46 = vrot.slane %v3665_v53, 1  ;;  %v3675_v2 = vmul.f32 %v6788_v19, %v3665_v53  ;;  %v3678_v36 = vrot.slane %v3665_v53, 2 }
0x1310   :  { %v3674_v62 = vmul.f32 %v3672_v46, %v8373_v39 }
0x1312   :  { %v8412_v23 = vadd.f32 %v3675_v2, %v3674_v62 }
0x1314   :  { %6789 = vtanh.f32 %v8412_v23 }
0x131a   :  { %v6790_v38 = vpop.eup %6789 }
0x131b   :  { %v3680_v7 = vmul.f32 %v6790_v38, %v3678_v36 }
0x131d   :  { %v3682_v32 = vpack.c.bf16 %v3680_v7, %v3680_v7 }
0x131f   :  { %3691 = vmatmul.bf16.vlgmr.msra.gmra.mxu0 %v3682_v32  ;;  %3704 = vmatmul.bf16.vlgmr.msra.gmra.mxu1 %v3682_v32 }
0x1320   :  { %3717 = vmatmul.bf16.vlgmr.msra.gmra.mxu2 %v3682_v32  ;;  %3730 = vmatmul.bf16.vlgmr.msra.gmra.mxu3 %v3682_v32 }
0x1321   :  { %3881 = vmatpush.bf16.msra.mxu0 %v8171_v54  ;;  %3894 = vmatpush.bf16.msra.mxu1 %v8174_v5 }
0x1322   :  { %3907 = vmatpush.bf16.msra.mxu2 %v8164_v28  ;;  %3920 = vmatpush.bf16.msra.mxu3 %v8168_v42 }
0x1325   :  { %3882 = vmatpush.bf16.msra.mxu0 %v8191_v31  ;;  %3895 = vmatpush.bf16.msra.mxu1 %v8194_v44 }
0x1326   :  { %3908 = vmatpush.bf16.msra.mxu2 %v8179_v40  ;;  %3921 = vmatpush.bf16.msra.mxu3 %v8184_v57 }
0x1329   :  { %3883 = vmatpush.bf16.msra.mxu0 %v8205_v63  ;;  %3896 = vmatpush.bf16.msra.mxu1 %v8208_v41 }
0x132a   :  { %3909 = vmatpush.bf16.msra.mxu2 %v8196_v25  ;;  %3922 = vmatpush.bf16.msra.mxu3 %v8200_v29 }
0x132d   :  { %3884 = vmatpush.bf16.msra.mxu0 %v8228_v4  ;;  %3897 = vmatpush.bf16.msra.mxu1 %v8230_v6 }
0x132e   :  { %3910 = vmatpush.bf16.msra.mxu2 %v8212_v8  ;;  %3923 = vmatpush.bf16.msra.mxu3 %v8226_v58 }
0x1331   :  { %3885 = vmatpush.bf16.msra.mxu0 %v8248_v0  ;;  %3898 = vmatpush.bf16.msra.mxu1 %v8251_v15 }
0x1332   :  { %3911 = vmatpush.bf16.msra.mxu2 %v8240_v11  ;;  %3924 = vmatpush.bf16.msra.mxu3 %v8244_v17 }
0x1335   :  { %3886 = vmatpush.bf16.msra.mxu0 %v8262_v48  ;;  %3899 = vmatpush.bf16.msra.mxu1 %v8268_v10 }
0x1336   :  { %3912 = vmatpush.bf16.msra.mxu2 %v8253_v3  ;;  %3925 = vmatpush.bf16.msra.mxu3 %v8256_v50 }
0x1339   :  { %3887 = vmatpush.bf16.msra.mxu0 %v8277_v45  ;;  %3900 = vmatpush.bf16.msra.mxu1 %v8281_v27 }
0x133a   :  { %3913 = vmatpush.bf16.msra.mxu2 %v8270_v14  ;;  %3926 = vmatpush.bf16.msra.mxu3 %v8273_v16 }
0x133d   :  { %3888 = vmatpush.bf16.msra.mxu0 %v8289_v26  ;;  %3901 = vmatpush.bf16.msra.mxu1 %v8293_v20 }
0x133e   :  { %3914 = vmatpush.bf16.msra.mxu2 %v8283_v55  ;;  %3927 = vmatpush.bf16.msra.mxu3 %v8286_v13 }
0x139c   :  { %v3692_v39 = vpop.f32.mrf.mxu0  ;;  %v3705_v24 = vpop.f32.mrf.mxu1 }
0x139d   :  { %v3739_v33 = vrot.slane %v3705_v24, 7 }
0x139f   :  { %v3742_v1 = vsel %vm633_vm0, %v3692_v39, %v3739_v33 }
0x13a3   :  { %v3718_v37 = vpop.f32.mrf.mxu2  ;;  %v3731_v56 = vpop.f32.mrf.mxu3 }
0x13a4   :  { %v3740_v47 = vrot.slane %v3718_v37, 6  ;;  %v3741_v18 = vrot.slane %v3731_v56, 5  ;;  %v3694_v59 = vpop.f32.mrf.mxu0  ;;  %v3707_v61 = vpop.f32.mrf.mxu1 }
0x13a6   :  { %v3743_v9 = vsel %vm635_vm1, %v3740_v47, %v3741_v18 }
0x13a7   :  { %v3744_v60 = vsel %vm637_vm2, %v3742_v1, %v3743_v9 }
0x13a8   :  { %v3746_v22 = vadd.f32 %v3744_v60, %v3681_v21 }
0x13aa   :  { %v6422_v34 = vmul.f32 -1.442695, %v3746_v22  ;;  %v3767_v43 = vrot.slane %v3746_v22, 3 }
0x13ab   :  { %v3720_v35 = vpop.f32.mrf.mxu2  ;;  %v3733_v51 = vpop.f32.mrf.mxu3 }
0x13ac   :  { %6791 = vpow2.f32 %v6422_v34 }
0x13b2   :  { %v6792_v12 = vpop.eup %6791 }
0x13b3   :  { %v3750_v52 = vadd.f32 1.0, %v6792_v12 }
0x13b5   :  { %6793 = vrcp.f32 %v3750_v52  ;;  %v3762_v46 = vand.u32 2147483648, %v3750_v52  ;;  %v3760_v62 = vand.u32 2147483647, %v3750_v52  ;;  %vm3756_vm4 = vweird.f32 %v3750_v52 }
0x13b6   :  { %6795 = vtanh.f32 %v3767_v43 }
0x13b7   :  { %v3763_v36 = vor.u32 1.1754944e-38, %v3762_v46  ;;  %vm3761_vm6 = vcmp.eq.f32.partialorder %v3760_v62, 8.507059e+37 }
0x13bb   :  { %v6794_v30 = vpop.eup %6793 }
0x13bc   :  { %v3752_v49 = vmul.f32 %v6794_v30, %v3750_v52  ;;  %vm3757_vm3 = vweird.f32 %v6794_v30  ;;  %v6796_v39 = vpop.eup %6795  ;;  %v3780_v52 = vld [vmem:[#allocation3 + $0x3] ss:$8 sm:$0xf] }
0x13bd   :  { %vm3758_vm5 = vmor %vm3756_vm4, %vm3757_vm3 }
0x13be   :  { %v3753_v53 = vsub.f32 1.0, %v3752_v49 }
0x13c0   :  { %v3754_v19 = vmul.f32 %v6794_v30, %v3753_v53 }
0x13c2   :  { %v3755_v2 = vadd.f32 %v6794_v30, %v3754_v19 }
0x13c4   :  { %v3759_v38 = vsel %vm3758_vm5, %v6794_v30, %v3755_v2 }
0x13c5   :  { %v3764_v7 = vsel %vm3761_vm6, %v3763_v36, %v3759_v38 }
0x13c6   :  { %v3771_v32 = vrot.slane %v3764_v7, 1  ;;  %v3774_v33 = vmul.f32 %v6796_v39, %v3764_v7  ;;  %v3777_v56 = vrot.slane %v3764_v7, 2 }
0x13c8   :  { %v3773_v24 = vmul.f32 %v3771_v32, %v8412_v23 }
0x13ca   :  { %v8451_v37 = vadd.f32 %v3774_v33, %v3773_v24 }
0x13cc   :  { %6797 = vtanh.f32 %v8451_v37 }
0x13d2   :  { %v6798_v47 = vpop.eup %6797 }
0x13d3   :  { %v3779_v18 = vmul.f32 %v6798_v47, %v3777_v56 }
0x13d5   :  { %v3781_v59 = vpack.c.bf16 %v3779_v18, %v3779_v18 }
0x13d7   :  { %3790 = vmatmul.bf16.vlgmr.msrb.gmra.mxu0 %v3781_v59  ;;  %3803 = vmatmul.bf16.vlgmr.msrb.gmra.mxu1 %v3781_v59 }
0x13d8   :  { %3816 = vmatmul.bf16.vlgmr.msrb.gmra.mxu2 %v3781_v59  ;;  %3829 = vmatmul.bf16.vlgmr.msrb.gmra.mxu3 %v3781_v59 }
0x13d9   :  { %3980 = vmatpush.bf16.msrb.mxu0 %v8171_v54  ;;  %3993 = vmatpush.bf16.msrb.mxu1 %v8174_v5 }
0x13da   :  { %4006 = vmatpush.bf16.msrb.mxu2 %v8164_v28  ;;  %4019 = vmatpush.bf16.msrb.mxu3 %v8168_v42 }
0x13dd   :  { %3981 = vmatpush.bf16.msrb.mxu0 %v8191_v31  ;;  %3994 = vmatpush.bf16.msrb.mxu1 %v8194_v44 }
0x13de   :  { %4007 = vmatpush.bf16.msrb.mxu2 %v8179_v40  ;;  %4020 = vmatpush.bf16.msrb.mxu3 %v8184_v57 }
0x13e1   :  { %3982 = vmatpush.bf16.msrb.mxu0 %v8205_v63  ;;  %3995 = vmatpush.bf16.msrb.mxu1 %v8208_v41 }
0x13e2   :  { %4008 = vmatpush.bf16.msrb.mxu2 %v8196_v25  ;;  %4021 = vmatpush.bf16.msrb.mxu3 %v8200_v29 }
0x13e5   :  { %3983 = vmatpush.bf16.msrb.mxu0 %v8228_v4  ;;  %3996 = vmatpush.bf16.msrb.mxu1 %v8230_v6 }
0x13e6   :  { %4009 = vmatpush.bf16.msrb.mxu2 %v8212_v8  ;;  %4022 = vmatpush.bf16.msrb.mxu3 %v8226_v58 }
0x13e9   :  { %3984 = vmatpush.bf16.msrb.mxu0 %v8248_v0  ;;  %3997 = vmatpush.bf16.msrb.mxu1 %v8251_v15 }
0x13ea   :  { %4010 = vmatpush.bf16.msrb.mxu2 %v8240_v11  ;;  %4023 = vmatpush.bf16.msrb.mxu3 %v8244_v17 }
0x13ed   :  { %3985 = vmatpush.bf16.msrb.mxu0 %v8262_v48  ;;  %3998 = vmatpush.bf16.msrb.mxu1 %v8268_v10 }
0x13ee   :  { %4011 = vmatpush.bf16.msrb.mxu2 %v8253_v3  ;;  %4024 = vmatpush.bf16.msrb.mxu3 %v8256_v50 }
0x13f1   :  { %3986 = vmatpush.bf16.msrb.mxu0 %v8277_v45  ;;  %3999 = vmatpush.bf16.msrb.mxu1 %v8281_v27 }
0x13f2   :  { %4012 = vmatpush.bf16.msrb.mxu2 %v8270_v14  ;;  %4025 = vmatpush.bf16.msrb.mxu3 %v8273_v16 }
0x13f5   :  { %3987 = vmatpush.bf16.msrb.mxu0 %v8289_v26  ;;  %4000 = vmatpush.bf16.msrb.mxu1 %v8293_v20 }
0x13f6   :  { %4013 = vmatpush.bf16.msrb.mxu2 %v8283_v55  ;;  %4026 = vmatpush.bf16.msrb.mxu3 %v8286_v13 }
0x1454   :  { %v3791_v23 = vpop.f32.mrf.mxu0  ;;  %v3804_v61 = vpop.f32.mrf.mxu1 }
0x1455   :  { %v3838_v1 = vrot.slane %v3804_v61, 7 }
0x1457   :  { %v3841_v51 = vsel %vm633_vm0, %v3791_v23, %v3838_v1 }
0x145b   :  { %v3817_v9 = vpop.f32.mrf.mxu2  ;;  %v3830_v21 = vpop.f32.mrf.mxu3 }
0x145c   :  { %v3839_v60 = vrot.slane %v3817_v9, 6  ;;  %v3840_v22 = vrot.slane %v3830_v21, 5  ;;  %v3793_v34 = vpop.f32.mrf.mxu0  ;;  %v3806_v35 = vpop.f32.mrf.mxu1 }
0x145e   :  { %v3842_v12 = vsel %vm635_vm1, %v3839_v60, %v3840_v22 }
0x145f   :  { %v3843_v30 = vsel %vm637_vm2, %v3841_v51, %v3842_v12 }
0x1460   :  { %v3845_v49 = vadd.f32 %v3843_v30, %v3780_v52 }
0x1462   :  { %v6423_v43 = vmul.f32 -1.442695, %v3845_v49  ;;  %v3866_v38 = vrot.slane %v3845_v49, 3 }
0x1463   :  { %v3819_v53 = vpop.f32.mrf.mxu2  ;;  %v3832_v46 = vpop.f32.mrf.mxu3 }
0x1464   :  { %6799 = vpow2.f32 %v6423_v43 }
0x146a   :  { %v6800_v19 = vpop.eup %6799 }
0x146b   :  { %v3849_v62 = vadd.f32 1.0, %v6800_v19 }
0x146d   :  { %6801 = vrcp.f32 %v3849_v62  ;;  %v3861_v32 = vand.u32 2147483648, %v3849_v62  ;;  %v3859_v24 = vand.u32 2147483647, %v3849_v62  ;;  %vm3855_vm8 = vweird.f32 %v3849_v62 }
0x146e   :  { %6803 = vtanh.f32 %v3866_v38 }
0x146f   :  { %v3862_v56 = vor.u32 1.1754944e-38, %v3861_v32  ;;  %vm3860_vm10 = vcmp.eq.f32.partialorder %v3859_v24, 8.507059e+37 }
0x1473   :  { %v6802_v2 = vpop.eup %6801 }
0x1474   :  { %v3851_v36 = vmul.f32 %v6802_v2, %v3849_v62  ;;  %vm3856_vm7 = vweird.f32 %v6802_v2  ;;  %v6804_v23 = vpop.eup %6803  ;;  %v3879_v62 = vld [vmem:[#allocation3 + $0x4] ss:$8 sm:$0xf] }
0x1475   :  { %vm3857_vm9 = vmor %vm3855_vm8, %vm3856_vm7 }
0x1476   :  { %v3852_v7 = vsub.f32 1.0, %v3851_v36 }
0x1478   :  { %v3853_v39 = vmul.f32 %v6802_v2, %v3852_v7 }
0x147a   :  { %v3854_v33 = vadd.f32 %v6802_v2, %v3853_v39 }
0x147c   :  { %v3858_v47 = vsel %vm3857_vm9, %v6802_v2, %v3854_v33 }
0x147d   :  { %v3863_v18 = vsel %vm3860_vm10, %v3862_v56, %v3858_v47 }
0x147e   :  { %v3870_v59 = vrot.slane %v3863_v18, 1  ;;  %v3873_v1 = vmul.f32 %v6804_v23, %v3863_v18  ;;  %v3876_v21 = vrot.slane %v3863_v18, 2 }
0x1480   :  { %v3872_v61 = vmul.f32 %v3870_v59, %v8451_v37 }
0x1482   :  { %v8490_v9 = vadd.f32 %v3873_v1, %v3872_v61 }
0x1484   :  { %6805 = vtanh.f32 %v8490_v9 }
0x148a   :  { %v6806_v60 = vpop.eup %6805 }
0x148b   :  { %v3878_v22 = vmul.f32 %v6806_v60, %v3876_v21 }
0x148d   :  { %v3880_v34 = vpack.c.bf16 %v3878_v22, %v3878_v22 }
0x148f   :  { %3889 = vmatmul.bf16.vlgmr.msra.gmra.mxu0 %v3880_v34  ;;  %3902 = vmatmul.bf16.vlgmr.msra.gmra.mxu1 %v3880_v34 }
0x1490   :  { %3915 = vmatmul.bf16.vlgmr.msra.gmra.mxu2 %v3880_v34  ;;  %3928 = vmatmul.bf16.vlgmr.msra.gmra.mxu3 %v3880_v34 }
0x1491   :  { %4079 = vmatpush.bf16.msra.mxu0 %v8171_v54  ;;  %4092 = vmatpush.bf16.msra.mxu1 %v8174_v5 }
0x1492   :  { %4105 = vmatpush.bf16.msra.mxu2 %v8164_v28  ;;  %4118 = vmatpush.bf16.msra.mxu3 %v8168_v42 }
0x1495   :  { %4080 = vmatpush.bf16.msra.mxu0 %v8191_v31  ;;  %4093 = vmatpush.bf16.msra.mxu1 %v8194_v44 }
0x1496   :  { %4106 = vmatpush.bf16.msra.mxu2 %v8179_v40  ;;  %4119 = vmatpush.bf16.msra.mxu3 %v8184_v57 }
0x1499   :  { %4081 = vmatpush.bf16.msra.mxu0 %v8205_v63  ;;  %4094 = vmatpush.bf16.msra.mxu1 %v8208_v41 }
0x149a   :  { %4107 = vmatpush.bf16.msra.mxu2 %v8196_v25  ;;  %4120 = vmatpush.bf16.msra.mxu3 %v8200_v29 }
0x149d   :  { %4082 = vmatpush.bf16.msra.mxu0 %v8228_v4  ;;  %4095 = vmatpush.bf16.msra.mxu1 %v8230_v6 }
0x149e   :  { %4108 = vmatpush.bf16.msra.mxu2 %v8212_v8  ;;  %4121 = vmatpush.bf16.msra.mxu3 %v8226_v58 }
0x14a1   :  { %4083 = vmatpush.bf16.msra.mxu0 %v8248_v0  ;;  %4096 = vmatpush.bf16.msra.mxu1 %v8251_v15 }
0x14a2   :  { %4109 = vmatpush.bf16.msra.mxu2 %v8240_v11  ;;  %4122 = vmatpush.bf16.msra.mxu3 %v8244_v17 }
0x14a5   :  { %4084 = vmatpush.bf16.msra.mxu0 %v8262_v48  ;;  %4097 = vmatpush.bf16.msra.mxu1 %v8268_v10 }
0x14a6   :  { %4110 = vmatpush.bf16.msra.mxu2 %v8253_v3  ;;  %4123 = vmatpush.bf16.msra.mxu3 %v8256_v50 }
0x14a9   :  { %4085 = vmatpush.bf16.msra.mxu0 %v8277_v45  ;;  %4098 = vmatpush.bf16.msra.mxu1 %v8281_v27 }
0x14aa   :  { %4111 = vmatpush.bf16.msra.mxu2 %v8270_v14  ;;  %4124 = vmatpush.bf16.msra.mxu3 %v8273_v16 }
0x14ad   :  { %4086 = vmatpush.bf16.msra.mxu0 %v8289_v26  ;;  %4099 = vmatpush.bf16.msra.mxu1 %v8293_v20 }
0x14ae   :  { %4112 = vmatpush.bf16.msra.mxu2 %v8283_v55  ;;  %4125 = vmatpush.bf16.msra.mxu3 %v8286_v13 }
0x150c   :  { %v3890_v37 = vpop.f32.mrf.mxu0  ;;  %v3903_v35 = vpop.f32.mrf.mxu1 }
0x150d   :  { %v3937_v51 = vrot.slane %v3903_v35, 7 }
0x150f   :  { %v3940_v46 = vsel %vm633_vm0, %v3890_v37, %v3937_v51 }
0x1513   :  { %v3916_v12 = vpop.f32.mrf.mxu2  ;;  %v3929_v52 = vpop.f32.mrf.mxu3 }
0x1514   :  { %v3938_v30 = vrot.slane %v3916_v12, 6  ;;  %v3939_v49 = vrot.slane %v3929_v52, 5  ;;  %v3892_v43 = vpop.f32.mrf.mxu0  ;;  %v3905_v53 = vpop.f32.mrf.mxu1 }
0x1516   :  { %v3941_v19 = vsel %vm635_vm1, %v3938_v30, %v3939_v49 }
0x1517   :  { %v3942_v2 = vsel %vm637_vm2, %v3940_v46, %v3941_v19 }
0x1518   :  { %v3944_v36 = vadd.f32 %v3942_v2, %v3879_v62 }
0x151a   :  { %v6424_v38 = vmul.f32 -1.442695, %v3944_v36  ;;  %v3965_v47 = vrot.slane %v3944_v36, 3 }
0x151b   :  { %v3918_v7 = vpop.f32.mrf.mxu2  ;;  %v3931_v32 = vpop.f32.mrf.mxu3 }
0x151c   :  { %6807 = vpow2.f32 %v6424_v38 }
0x1522   :  { %v6808_v39 = vpop.eup %6807 }
0x1523   :  { %v3948_v24 = vadd.f32 1.0, %v6808_v39 }
0x1525   :  { %6809 = vrcp.f32 %v3948_v24  ;;  %v3960_v59 = vand.u32 2147483648, %v3948_v24  ;;  %v3958_v61 = vand.u32 2147483647, %v3948_v24  ;;  %vm3954_vm12 = vweird.f32 %v3948_v24 }
0x1526   :  { %6811 = vtanh.f32 %v3965_v47 }
0x1527   :  { %v3961_v21 = vor.u32 1.1754944e-38, %v3960_v59  ;;  %vm3959_vm14 = vcmp.eq.f32.partialorder %v3958_v61, 8.507059e+37 }
0x152b   :  { %v6810_v33 = vpop.eup %6809 }
0x152c   :  { %v3950_v56 = vmul.f32 %v6810_v33, %v3948_v24  ;;  %vm3955_vm11 = vweird.f32 %v6810_v33  ;;  %v6812_v37 = vpop.eup %6811  ;;  %v3978_v24 = vld [vmem:[#allocation3 + $0x5] ss:$8 sm:$0xf] }
0x152d   :  { %vm3956_vm13 = vmor %vm3954_vm12, %vm3955_vm11 }
0x152e   :  { %v3951_v18 = vsub.f32 1.0, %v3950_v56 }
0x1530   :  { %v3952_v23 = vmul.f32 %v6810_v33, %v3951_v18 }
0x1532   :  { %v3953_v1 = vadd.f32 %v6810_v33, %v3952_v23 }
0x1534   :  { %v3957_v60 = vsel %vm3956_vm13, %v6810_v33, %v3953_v1 }
0x1535   :  { %v3962_v22 = vsel %vm3959_vm14, %v3961_v21, %v3957_v60 }
0x1536   :  { %v3969_v34 = vrot.slane %v3962_v22, 1  ;;  %v3972_v51 = vmul.f32 %v6812_v37, %v3962_v22  ;;  %v3975_v52 = vrot.slane %v3962_v22, 2 }
0x1538   :  { %v3971_v35 = vmul.f32 %v3969_v34, %v8490_v9 }
0x153a   :  { %v8529_v12 = vadd.f32 %v3972_v51, %v3971_v35 }
0x153c   :  { %6813 = vtanh.f32 %v8529_v12 }
0x1542   :  { %v6814_v30 = vpop.eup %6813 }
0x1543   :  { %v3977_v49 = vmul.f32 %v6814_v30, %v3975_v52 }
0x1545   :  { %v3979_v43 = vpack.c.bf16 %v3977_v49, %v3977_v49 }
0x1547   :  { %3988 = vmatmul.bf16.vlgmr.msrb.gmra.mxu0 %v3979_v43  ;;  %4001 = vmatmul.bf16.vlgmr.msrb.gmra.mxu1 %v3979_v43 }
0x1548   :  { %4014 = vmatmul.bf16.vlgmr.msrb.gmra.mxu2 %v3979_v43  ;;  %4027 = vmatmul.bf16.vlgmr.msrb.gmra.mxu3 %v3979_v43 }
0x1549   :  { %4178 = vmatpush.bf16.msrb.mxu0 %v8171_v54  ;;  %4191 = vmatpush.bf16.msrb.mxu1 %v8174_v5 }
0x154a   :  { %4204 = vmatpush.bf16.msrb.mxu2 %v8164_v28  ;;  %4217 = vmatpush.bf16.msrb.mxu3 %v8168_v42 }
0x154d   :  { %4179 = vmatpush.bf16.msrb.mxu0 %v8191_v31  ;;  %4192 = vmatpush.bf16.msrb.mxu1 %v8194_v44 }
0x154e   :  { %4205 = vmatpush.bf16.msrb.mxu2 %v8179_v40  ;;  %4218 = vmatpush.bf16.msrb.mxu3 %v8184_v57 }
0x1551   :  { %4180 = vmatpush.bf16.msrb.mxu0 %v8205_v63  ;;  %4193 = vmatpush.bf16.msrb.mxu1 %v8208_v41 }
0x1552   :  { %4206 = vmatpush.bf16.msrb.mxu2 %v8196_v25  ;;  %4219 = vmatpush.bf16.msrb.mxu3 %v8200_v29 }
0x1555   :  { %4181 = vmatpush.bf16.msrb.mxu0 %v8228_v4  ;;  %4194 = vmatpush.bf16.msrb.mxu1 %v8230_v6 }
0x1556   :  { %4207 = vmatpush.bf16.msrb.mxu2 %v8212_v8  ;;  %4220 = vmatpush.bf16.msrb.mxu3 %v8226_v58 }
0x1559   :  { %4182 = vmatpush.bf16.msrb.mxu0 %v8248_v0  ;;  %4195 = vmatpush.bf16.msrb.mxu1 %v8251_v15 }
0x155a   :  { %4208 = vmatpush.bf16.msrb.mxu2 %v8240_v11  ;;  %4221 = vmatpush.bf16.msrb.mxu3 %v8244_v17 }
0x155d   :  { %4183 = vmatpush.bf16.msrb.mxu0 %v8262_v48  ;;  %4196 = vmatpush.bf16.msrb.mxu1 %v8268_v10 }
0x155e   :  { %4209 = vmatpush.bf16.msrb.mxu2 %v8253_v3  ;;  %4222 = vmatpush.bf16.msrb.mxu3 %v8256_v50 }
0x1561   :  { %4184 = vmatpush.bf16.msrb.mxu0 %v8277_v45  ;;  %4197 = vmatpush.bf16.msrb.mxu1 %v8281_v27 }
0x1562   :  { %4210 = vmatpush.bf16.msrb.mxu2 %v8270_v14  ;;  %4223 = vmatpush.bf16.msrb.mxu3 %v8273_v16 }
0x1565   :  { %4185 = vmatpush.bf16.msrb.mxu0 %v8289_v26  ;;  %4198 = vmatpush.bf16.msrb.mxu1 %v8293_v20 }
0x1566   :  { %4211 = vmatpush.bf16.msrb.mxu2 %v8283_v55  ;;  %4224 = vmatpush.bf16.msrb.mxu3 %v8286_v13 }
0x15c4   :  { %v3989_v9 = vpop.f32.mrf.mxu0  ;;  %v4002_v53 = vpop.f32.mrf.mxu1 }
0x15c5   :  { %v4036_v46 = vrot.slane %v4002_v53, 7 }
0x15c7   :  { %v4039_v32 = vsel %vm633_vm0, %v3989_v9, %v4036_v46 }
0x15cb   :  { %v4015_v19 = vpop.f32.mrf.mxu2  ;;  %v4028_v62 = vpop.f32.mrf.mxu3 }
0x15cc   :  { %v4037_v2 = vrot.slane %v4015_v19, 6  ;;  %v4038_v36 = vrot.slane %v4028_v62, 5  ;;  %v3991_v38 = vpop.f32.mrf.mxu0  ;;  %v4004_v7 = vpop.f32.mrf.mxu1 }
0x15ce   :  { %v4040_v39 = vsel %vm635_vm1, %v4037_v2, %v4038_v36 }
0x15cf   :  { %v4041_v33 = vsel %vm637_vm2, %v4039_v32, %v4040_v39 }
0x15d0   :  { %v4043_v56 = vadd.f32 %v4041_v33, %v3978_v24 }
0x15d2   :  { %v6425_v47 = vmul.f32 -1.442695, %v4043_v56  ;;  %v4064_v60 = vrot.slane %v4043_v56, 3 }
0x15d3   :  { %v4017_v18 = vpop.f32.mrf.mxu2  ;;  %v4030_v59 = vpop.f32.mrf.mxu3 }
0x15d4   :  { %6815 = vpow2.f32 %v6425_v47 }
0x15da   :  { %v6816_v23 = vpop.eup %6815 }
0x15db   :  { %v4047_v61 = vadd.f32 1.0, %v6816_v23 }
0x15dd   :  { %6817 = vrcp.f32 %v4047_v61  ;;  %v4059_v34 = vand.u32 2147483648, %v4047_v61  ;;  %v4057_v35 = vand.u32 2147483647, %v4047_v61  ;;  %vm4053_vm3 = vweird.f32 %v4047_v61 }
0x15de   :  { %6819 = vtanh.f32 %v4064_v60 }
0x15df   :  { %v4060_v52 = vor.u32 1.1754944e-38, %v4059_v34  ;;  %vm4058_vm5 = vcmp.eq.f32.partialorder %v4057_v35, 8.507059e+37 }
0x15e3   :  { %v6818_v1 = vpop.eup %6817 }
0x15e4   :  { %v4049_v21 = vmul.f32 %v6818_v1, %v4047_v61  ;;  %vm4054_vm15 = vweird.f32 %v6818_v1  ;;  %v6820_v9 = vpop.eup %6819  ;;  %v4077_v61 = vld [vmem:[#allocation3 + $0x6] ss:$8 sm:$0xf] }
0x15e5   :  { %vm4055_vm4 = vmor %vm4053_vm3, %vm4054_vm15 }
0x15e6   :  { %v4050_v22 = vsub.f32 1.0, %v4049_v21 }
0x15e8   :  { %v4051_v37 = vmul.f32 %v6818_v1, %v4050_v22 }
0x15ea   :  { %v4052_v51 = vadd.f32 %v6818_v1, %v4051_v37 }
0x15ec   :  { %v4056_v30 = vsel %vm4055_vm4, %v6818_v1, %v4052_v51 }
0x15ed   :  { %v4061_v49 = vsel %vm4058_vm5, %v4060_v52, %v4056_v30 }
0x15ee   :  { %v4068_v43 = vrot.slane %v4061_v49, 1  ;;  %v4071_v46 = vmul.f32 %v6820_v9, %v4061_v49  ;;  %v4074_v62 = vrot.slane %v4061_v49, 2 }
0x15f0   :  { %v4070_v53 = vmul.f32 %v4068_v43, %v8529_v12 }
0x15f2   :  { %v8568_v19 = vadd.f32 %v4071_v46, %v4070_v53 }
0x15f4   :  { %6821 = vtanh.f32 %v8568_v19 }
0x15fa   :  { %v6822_v2 = vpop.eup %6821 }
0x15fb   :  { %v4076_v36 = vmul.f32 %v6822_v2, %v4074_v62 }
0x15fd   :  { %v4078_v38 = vpack.c.bf16 %v4076_v36, %v4076_v36 }
0x15ff   :  { %4087 = vmatmul.bf16.vlgmr.msra.gmra.mxu0 %v4078_v38  ;;  %4100 = vmatmul.bf16.vlgmr.msra.gmra.mxu1 %v4078_v38 }
0x1600   :  { %4113 = vmatmul.bf16.vlgmr.msra.gmra.mxu2 %v4078_v38  ;;  %4126 = vmatmul.bf16.vlgmr.msra.gmra.mxu3 %v4078_v38 }
0x1601   :  { %4277 = vmatpush.bf16.msra.mxu0 %v8171_v54  ;;  %4290 = vmatpush.bf16.msra.mxu1 %v8174_v5 }
0x1602   :  { %4303 = vmatpush.bf16.msra.mxu2 %v8164_v28  ;;  %4316 = vmatpush.bf16.msra.mxu3 %v8168_v42 }
0x1605   :  { %4278 = vmatpush.bf16.msra.mxu0 %v8191_v31  ;;  %4291 = vmatpush.bf16.msra.mxu1 %v8194_v44 }
0x1606   :  { %4304 = vmatpush.bf16.msra.mxu2 %v8179_v40  ;;  %4317 = vmatpush.bf16.msra.mxu3 %v8184_v57 }
0x1609   :  { %4279 = vmatpush.bf16.msra.mxu0 %v8205_v63  ;;  %4292 = vmatpush.bf16.msra.mxu1 %v8208_v41 }
0x160a   :  { %4305 = vmatpush.bf16.msra.mxu2 %v8196_v25  ;;  %4318 = vmatpush.bf16.msra.mxu3 %v8200_v29 }
0x160d   :  { %4280 = vmatpush.bf16.msra.mxu0 %v8228_v4  ;;  %4293 = vmatpush.bf16.msra.mxu1 %v8230_v6 }
0x160e   :  { %4306 = vmatpush.bf16.msra.mxu2 %v8212_v8  ;;  %4319 = vmatpush.bf16.msra.mxu3 %v8226_v58 }
0x1611   :  { %4281 = vmatpush.bf16.msra.mxu0 %v8248_v0  ;;  %4294 = vmatpush.bf16.msra.mxu1 %v8251_v15 }
0x1612   :  { %4307 = vmatpush.bf16.msra.mxu2 %v8240_v11  ;;  %4320 = vmatpush.bf16.msra.mxu3 %v8244_v17 }
0x1615   :  { %4282 = vmatpush.bf16.msra.mxu0 %v8262_v48  ;;  %4295 = vmatpush.bf16.msra.mxu1 %v8268_v10 }
0x1616   :  { %4308 = vmatpush.bf16.msra.mxu2 %v8253_v3  ;;  %4321 = vmatpush.bf16.msra.mxu3 %v8256_v50 }
0x1619   :  { %4283 = vmatpush.bf16.msra.mxu0 %v8277_v45  ;;  %4296 = vmatpush.bf16.msra.mxu1 %v8281_v27 }
0x161a   :  { %4309 = vmatpush.bf16.msra.mxu2 %v8270_v14  ;;  %4322 = vmatpush.bf16.msra.mxu3 %v8273_v16 }
0x161d   :  { %4284 = vmatpush.bf16.msra.mxu0 %v8289_v26  ;;  %4297 = vmatpush.bf16.msra.mxu1 %v8293_v20 }
0x161e   :  { %4310 = vmatpush.bf16.msra.mxu2 %v8283_v55  ;;  %4323 = vmatpush.bf16.msra.mxu3 %v8286_v13 }
0x167c   :  { %v4088_v12 = vpop.f32.mrf.mxu0  ;;  %v4101_v7 = vpop.f32.mrf.mxu1 }
0x167d   :  { %v4135_v32 = vrot.slane %v4101_v7, 7 }
0x167f   :  { %v4138_v59 = vsel %vm633_vm0, %v4088_v12, %v4135_v32 }
0x1683   :  { %v4114_v39 = vpop.f32.mrf.mxu2  ;;  %v4127_v24 = vpop.f32.mrf.mxu3 }
0x1684   :  { %v4136_v33 = vrot.slane %v4114_v39, 6  ;;  %v4137_v56 = vrot.slane %v4127_v24, 5  ;;  %v4090_v47 = vpop.f32.mrf.mxu0  ;;  %v4103_v18 = vpop.f32.mrf.mxu1 }
0x1686   :  { %v4139_v23 = vsel %vm635_vm1, %v4136_v33, %v4137_v56 }
0x1687   :  { %v4140_v1 = vsel %vm637_vm2, %v4138_v59, %v4139_v23 }
0x1688   :  { %v4142_v21 = vadd.f32 %v4140_v1, %v4077_v61 }
0x168a   :  { %v6426_v60 = vmul.f32 -1.442695, %v4142_v21  ;;  %v4163_v30 = vrot.slane %v4142_v21, 3 }
0x168b   :  { %v4116_v22 = vpop.f32.mrf.mxu2  ;;  %v4129_v34 = vpop.f32.mrf.mxu3 }
0x168c   :  { %6823 = vpow2.f32 %v6426_v60 }
0x1692   :  { %v6824_v37 = vpop.eup %6823 }
0x1693   :  { %v4146_v35 = vadd.f32 1.0, %v6824_v37 }
0x1695   :  { %6825 = vrcp.f32 %v4146_v35  ;;  %v4158_v43 = vand.u32 2147483648, %v4146_v35  ;;  %v4156_v53 = vand.u32 2147483647, %v4146_v35  ;;  %vm4152_vm7 = vweird.f32 %v4146_v35 }
0x1696   :  { %6827 = vtanh.f32 %v4163_v30 }
0x1697   :  { %v4159_v62 = vor.u32 1.1754944e-38, %v4158_v43  ;;  %vm4157_vm9 = vcmp.eq.f32.partialorder %v4156_v53, 8.507059e+37 }
0x169b   :  { %v6826_v51 = vpop.eup %6825 }
0x169c   :  { %v4148_v52 = vmul.f32 %v6826_v51, %v4146_v35  ;;  %vm4153_vm6 = vweird.f32 %v6826_v51  ;;  %v6828_v12 = vpop.eup %6827  ;;  %v4176_v35 = vld [vmem:[#allocation3 + $0x7] ss:$8 sm:$0xf] }
0x169d   :  { %vm4154_vm8 = vmor %vm4152_vm7, %vm4153_vm6 }
0x169e   :  { %v4149_v49 = vsub.f32 1.0, %v4148_v52 }
0x16a0   :  { %v4150_v9 = vmul.f32 %v6826_v51, %v4149_v49 }
0x16a2   :  { %v4151_v46 = vadd.f32 %v6826_v51, %v4150_v9 }
0x16a4   :  { %v4155_v2 = vsel %vm4154_vm8, %v6826_v51, %v4151_v46 }
0x16a5   :  { %v4160_v36 = vsel %vm4157_vm9, %v4159_v62, %v4155_v2 }
0x16a6   :  { %v4167_v38 = vrot.slane %v4160_v36, 1  ;;  %v4170_v32 = vmul.f32 %v6828_v12, %v4160_v36  ;;  %v4173_v24 = vrot.slane %v4160_v36, 2 }
0x16a8   :  { %v4169_v7 = vmul.f32 %v4167_v38, %v8568_v19 }
0x16aa   :  { %v8607_v39 = vadd.f32 %v4170_v32, %v4169_v7 }
0x16ac   :  { %6829 = vtanh.f32 %v8607_v39 }
0x16b2   :  { %v6830_v33 = vpop.eup %6829 }
0x16b3   :  { %v4175_v56 = vmul.f32 %v6830_v33, %v4173_v24 }
0x16b5   :  { %v4177_v47 = vpack.c.bf16 %v4175_v56, %v4175_v56 }
0x16b7   :  { %4186 = vmatmul.bf16.vlgmr.msrb.gmra.mxu0 %v4177_v47  ;;  %4199 = vmatmul.bf16.vlgmr.msrb.gmra.mxu1 %v4177_v47 }
0x16b8   :  { %4212 = vmatmul.bf16.vlgmr.msrb.gmra.mxu2 %v4177_v47  ;;  %4225 = vmatmul.bf16.vlgmr.msrb.gmra.mxu3 %v4177_v47 }
0x16b9   :  { %4376 = vmatpush.bf16.msrb.mxu0 %v8171_v54  ;;  %4389 = vmatpush.bf16.msrb.mxu1 %v8174_v5 }
0x16ba   :  { %4402 = vmatpush.bf16.msrb.mxu2 %v8164_v28  ;;  %4415 = vmatpush.bf16.msrb.mxu3 %v8168_v42 }
0x16bd   :  { %4377 = vmatpush.bf16.msrb.mxu0 %v8191_v31  ;;  %4390 = vmatpush.bf16.msrb.mxu1 %v8194_v44 }
0x16be   :  { %4403 = vmatpush.bf16.msrb.mxu2 %v8179_v40  ;;  %4416 = vmatpush.bf16.msrb.mxu3 %v8184_v57 }
0x16c1   :  { %4378 = vmatpush.bf16.msrb.mxu0 %v8205_v63  ;;  %4391 = vmatpush.bf16.msrb.mxu1 %v8208_v41 }
0x16c2   :  { %4404 = vmatpush.bf16.msrb.mxu2 %v8196_v25  ;;  %4417 = vmatpush.bf16.msrb.mxu3 %v8200_v29 }
0x16c5   :  { %4379 = vmatpush.bf16.msrb.mxu0 %v8228_v4  ;;  %4392 = vmatpush.bf16.msrb.mxu1 %v8230_v6 }
0x16c6   :  { %4405 = vmatpush.bf16.msrb.mxu2 %v8212_v8  ;;  %4418 = vmatpush.bf16.msrb.mxu3 %v8226_v58 }
0x16c9   :  { %4380 = vmatpush.bf16.msrb.mxu0 %v8248_v0  ;;  %4393 = vmatpush.bf16.msrb.mxu1 %v8251_v15 }
0x16ca   :  { %4406 = vmatpush.bf16.msrb.mxu2 %v8240_v11  ;;  %4419 = vmatpush.bf16.msrb.mxu3 %v8244_v17 }
0x16cd   :  { %4381 = vmatpush.bf16.msrb.mxu0 %v8262_v48  ;;  %4394 = vmatpush.bf16.msrb.mxu1 %v8268_v10 }
0x16ce   :  { %4407 = vmatpush.bf16.msrb.mxu2 %v8253_v3  ;;  %4420 = vmatpush.bf16.msrb.mxu3 %v8256_v50 }
0x16d1   :  { %4382 = vmatpush.bf16.msrb.mxu0 %v8277_v45  ;;  %4395 = vmatpush.bf16.msrb.mxu1 %v8281_v27 }
0x16d2   :  { %4408 = vmatpush.bf16.msrb.mxu2 %v8270_v14  ;;  %4421 = vmatpush.bf16.msrb.mxu3 %v8273_v16 }
0x16d5   :  { %4383 = vmatpush.bf16.msrb.mxu0 %v8289_v26  ;;  %4396 = vmatpush.bf16.msrb.mxu1 %v8293_v20 }
0x16d6   :  { %4409 = vmatpush.bf16.msrb.mxu2 %v8283_v55  ;;  %4422 = vmatpush.bf16.msrb.mxu3 %v8286_v13 }
0x1734   :  { %v4187_v19 = vpop.f32.mrf.mxu0  ;;  %v4200_v18 = vpop.f32.mrf.mxu1 }
0x1735   :  { %v4234_v59 = vrot.slane %v4200_v18, 7 }
0x1737   :  { %v4237_v34 = vsel %vm633_vm0, %v4187_v19, %v4234_v59 }
0x173b   :  { %v4213_v23 = vpop.f32.mrf.mxu2  ;;  %v4226_v61 = vpop.f32.mrf.mxu3 }
0x173c   :  { %v4235_v1 = vrot.slane %v4213_v23, 6  ;;  %v4236_v21 = vrot.slane %v4226_v61, 5  ;;  %v4189_v60 = vpop.f32.mrf.mxu0  ;;  %v4202_v22 = vpop.f32.mrf.mxu1 }
0x173e   :  { %v4238_v37 = vsel %vm635_vm1, %v4235_v1, %v4236_v21 }
0x173f   :  { %v4239_v51 = vsel %vm637_vm2, %v4237_v34, %v4238_v37 }
0x1740   :  { %v4241_v52 = vadd.f32 %v4239_v51, %v4176_v35 }
0x1742   :  { %v6427_v30 = vmul.f32 -1.442695, %v4241_v52  ;;  %v4262_v2 = vrot.slane %v4241_v52, 3 }
0x1743   :  { %v4215_v49 = vpop.f32.mrf.mxu2  ;;  %v4228_v43 = vpop.f32.mrf.mxu3 }
0x1744   :  { %6831 = vpow2.f32 %v6427_v30 }
0x174a   :  { %v6832_v9 = vpop.eup %6831 }
0x174b   :  { %v4245_v53 = vadd.f32 1.0, %v6832_v9 }
0x174d   :  { %6833 = vrcp.f32 %v4245_v53  ;;  %v4257_v38 = vand.u32 2147483648, %v4245_v53  ;;  %v4255_v7 = vand.u32 2147483647, %v4245_v53  ;;  %vm4251_vm11 = vweird.f32 %v4245_v53 }
0x174e   :  { %6835 = vtanh.f32 %v4262_v2 }
0x174f   :  { %v4258_v24 = vor.u32 1.1754944e-38, %v4257_v38  ;;  %vm4256_vm13 = vcmp.eq.f32.partialorder %v4255_v7, 8.507059e+37 }
0x1753   :  { %v6834_v46 = vpop.eup %6833 }
0x1754   :  { %v4247_v62 = vmul.f32 %v6834_v46, %v4245_v53  ;;  %vm4252_vm10 = vweird.f32 %v6834_v46  ;;  %v6836_v19 = vpop.eup %6835  ;;  %v4275_v53 = vld [vmem:[#allocation3 + $0x20] ss:$8 sm:$0xf] }
0x1755   :  { %vm4253_vm12 = vmor %vm4251_vm11, %vm4252_vm10 }
0x1756   :  { %v4248_v36 = vsub.f32 1.0, %v4247_v62 }
0x1758   :  { %v4249_v12 = vmul.f32 %v6834_v46, %v4248_v36 }
0x175a   :  { %v4250_v32 = vadd.f32 %v6834_v46, %v4249_v12 }
0x175c   :  { %v4254_v33 = vsel %vm4253_vm12, %v6834_v46, %v4250_v32 }
0x175d   :  { %v4259_v56 = vsel %vm4256_vm13, %v4258_v24, %v4254_v33 }
0x175e   :  { %v4266_v47 = vrot.slane %v4259_v56, 1  ;;  %v4269_v59 = vmul.f32 %v6836_v19, %v4259_v56  ;;  %v4272_v61 = vrot.slane %v4259_v56, 2 }
0x1760   :  { %v4268_v18 = vmul.f32 %v4266_v47, %v8607_v39 }
0x1762   :  { %v8646_v23 = vadd.f32 %v4269_v59, %v4268_v18 }
0x1764   :  { %6837 = vtanh.f32 %v8646_v23 }
0x176a   :  { %v6838_v1 = vpop.eup %6837 }
0x176b   :  { %v4274_v21 = vmul.f32 %v6838_v1, %v4272_v61 }
0x176d   :  { %v4276_v60 = vpack.c.bf16 %v4274_v21, %v4274_v21 }
0x176f   :  { %4285 = vmatmul.bf16.vlgmr.msra.gmra.mxu0 %v4276_v60  ;;  %4298 = vmatmul.bf16.vlgmr.msra.gmra.mxu1 %v4276_v60 }
0x1770   :  { %4311 = vmatmul.bf16.vlgmr.msra.gmra.mxu2 %v4276_v60  ;;  %4324 = vmatmul.bf16.vlgmr.msra.gmra.mxu3 %v4276_v60 }
0x1771   :  { %4475 = vmatpush.bf16.msra.mxu0 %v8171_v54  ;;  %4488 = vmatpush.bf16.msra.mxu1 %v8174_v5 }
0x1772   :  { %4501 = vmatpush.bf16.msra.mxu2 %v8164_v28  ;;  %4514 = vmatpush.bf16.msra.mxu3 %v8168_v42 }
0x1775   :  { %4476 = vmatpush.bf16.msra.mxu0 %v8191_v31  ;;  %4489 = vmatpush.bf16.msra.mxu1 %v8194_v44 }
0x1776   :  { %4502 = vmatpush.bf16.msra.mxu2 %v8179_v40  ;;  %4515 = vmatpush.bf16.msra.mxu3 %v8184_v57 }
0x1779   :  { %4477 = vmatpush.bf16.msra.mxu0 %v8205_v63  ;;  %4490 = vmatpush.bf16.msra.mxu1 %v8208_v41 }
0x177a   :  { %4503 = vmatpush.bf16.msra.mxu2 %v8196_v25  ;;  %4516 = vmatpush.bf16.msra.mxu3 %v8200_v29 }
0x177d   :  { %4478 = vmatpush.bf16.msra.mxu0 %v8228_v4  ;;  %4491 = vmatpush.bf16.msra.mxu1 %v8230_v6 }
0x177e   :  { %4504 = vmatpush.bf16.msra.mxu2 %v8212_v8  ;;  %4517 = vmatpush.bf16.msra.mxu3 %v8226_v58 }
0x1781   :  { %4479 = vmatpush.bf16.msra.mxu0 %v8248_v0  ;;  %4492 = vmatpush.bf16.msra.mxu1 %v8251_v15 }
0x1782   :  { %4505 = vmatpush.bf16.msra.mxu2 %v8240_v11  ;;  %4518 = vmatpush.bf16.msra.mxu3 %v8244_v17 }
0x1785   :  { %4480 = vmatpush.bf16.msra.mxu0 %v8262_v48  ;;  %4493 = vmatpush.bf16.msra.mxu1 %v8268_v10 }
0x1786   :  { %4506 = vmatpush.bf16.msra.mxu2 %v8253_v3  ;;  %4519 = vmatpush.bf16.msra.mxu3 %v8256_v50 }
0x1789   :  { %4481 = vmatpush.bf16.msra.mxu0 %v8277_v45  ;;  %4494 = vmatpush.bf16.msra.mxu1 %v8281_v27 }
0x178a   :  { %4507 = vmatpush.bf16.msra.mxu2 %v8270_v14  ;;  %4520 = vmatpush.bf16.msra.mxu3 %v8273_v16 }
0x178d   :  { %4482 = vmatpush.bf16.msra.mxu0 %v8289_v26  ;;  %4495 = vmatpush.bf16.msra.mxu1 %v8293_v20 }
0x178e   :  { %4508 = vmatpush.bf16.msra.mxu2 %v8283_v55  ;;  %4521 = vmatpush.bf16.msra.mxu3 %v8286_v13 }
0x17ec   :  { %v4286_v39 = vpop.f32.mrf.mxu0  ;;  %v4299_v22 = vpop.f32.mrf.mxu1 }
0x17ed   :  { %v4333_v34 = vrot.slane %v4299_v22, 7 }
0x17ef   :  { %v4336_v43 = vsel %vm633_vm0, %v4286_v39, %v4333_v34 }
0x17f3   :  { %v4312_v37 = vpop.f32.mrf.mxu2  ;;  %v4325_v35 = vpop.f32.mrf.mxu3 }
0x17f4   :  { %v4334_v51 = vrot.slane %v4312_v37, 6  ;;  %v4335_v52 = vrot.slane %v4325_v35, 5  ;;  %v4288_v30 = vpop.f32.mrf.mxu0  ;;  %v4301_v49 = vpop.f32.mrf.mxu1 }
0x17f6   :  { %v4337_v9 = vsel %vm635_vm1, %v4334_v51, %v4335_v52 }
0x17f7   :  { %v4338_v46 = vsel %vm637_vm2, %v4336_v43, %v4337_v9 }
0x17f8   :  { %v4340_v62 = vadd.f32 %v4338_v46, %v4275_v53 }
0x17fa   :  { %v6428_v2 = vmul.f32 -1.442695, %v4340_v62  ;;  %v4361_v33 = vrot.slane %v4340_v62, 3 }
0x17fb   :  { %v4314_v36 = vpop.f32.mrf.mxu2  ;;  %v4327_v38 = vpop.f32.mrf.mxu3 }
0x17fc   :  { %6839 = vpow2.f32 %v6428_v2 }
0x1802   :  { %v6840_v12 = vpop.eup %6839 }
0x1803   :  { %v4344_v7 = vadd.f32 1.0, %v6840_v12 }
0x1805   :  { %6841 = vrcp.f32 %v4344_v7  ;;  %v4356_v47 = vand.u32 2147483648, %v4344_v7  ;;  %v4354_v18 = vand.u32 2147483647, %v4344_v7  ;;  %vm4350_vm15 = vweird.f32 %v4344_v7 }
0x1806   :  { %6843 = vtanh.f32 %v4361_v33 }
0x1807   :  { %v4357_v61 = vor.u32 1.1754944e-38, %v4356_v47  ;;  %vm4355_vm4 = vcmp.eq.f32.partialorder %v4354_v18, 8.507059e+37 }
0x180b   :  { %v6842_v32 = vpop.eup %6841 }
0x180c   :  { %v4346_v24 = vmul.f32 %v6842_v32, %v4344_v7  ;;  %vm4351_vm14 = vweird.f32 %v6842_v32  ;;  %v6844_v39 = vpop.eup %6843  ;;  %v4374_v7 = vld [vmem:[#allocation3 + $0x21] ss:$8 sm:$0xf] }
0x180d   :  { %vm4352_vm3 = vmor %vm4350_vm15, %vm4351_vm14 }
0x180e   :  { %v4347_v56 = vsub.f32 1.0, %v4346_v24 }
0x1810   :  { %v4348_v19 = vmul.f32 %v6842_v32, %v4347_v56 }
0x1812   :  { %v4349_v59 = vadd.f32 %v6842_v32, %v4348_v19 }
0x1814   :  { %v4353_v1 = vsel %vm4352_vm3, %v6842_v32, %v4349_v59 }
0x1815   :  { %v4358_v21 = vsel %vm4355_vm4, %v4357_v61, %v4353_v1 }
0x1816   :  { %v4365_v60 = vrot.slane %v4358_v21, 1  ;;  %v4368_v34 = vmul.f32 %v6844_v39, %v4358_v21  ;;  %v4371_v35 = vrot.slane %v4358_v21, 2 }
0x1818   :  { %v4367_v22 = vmul.f32 %v4365_v60, %v8646_v23 }
0x181a   :  { %v8685_v37 = vadd.f32 %v4368_v34, %v4367_v22 }
0x181c   :  { %6845 = vtanh.f32 %v8685_v37 }
0x1822   :  { %v6846_v51 = vpop.eup %6845 }
0x1823   :  { %v4373_v52 = vmul.f32 %v6846_v51, %v4371_v35 }
0x1825   :  { %v4375_v30 = vpack.c.bf16 %v4373_v52, %v4373_v52 }
0x1827   :  { %4384 = vmatmul.bf16.vlgmr.msrb.gmra.mxu0 %v4375_v30  ;;  %4397 = vmatmul.bf16.vlgmr.msrb.gmra.mxu1 %v4375_v30 }
0x1828   :  { %4410 = vmatmul.bf16.vlgmr.msrb.gmra.mxu2 %v4375_v30  ;;  %4423 = vmatmul.bf16.vlgmr.msrb.gmra.mxu3 %v4375_v30 }
0x1829   :  { %4574 = vmatpush.bf16.msrb.mxu0 %v8171_v54  ;;  %4587 = vmatpush.bf16.msrb.mxu1 %v8174_v5 }
0x182a   :  { %4600 = vmatpush.bf16.msrb.mxu2 %v8164_v28  ;;  %4613 = vmatpush.bf16.msrb.mxu3 %v8168_v42 }
0x182d   :  { %4575 = vmatpush.bf16.msrb.mxu0 %v8191_v31  ;;  %4588 = vmatpush.bf16.msrb.mxu1 %v8194_v44 }
0x182e   :  { %4601 = vmatpush.bf16.msrb.mxu2 %v8179_v40  ;;  %4614 = vmatpush.bf16.msrb.mxu3 %v8184_v57 }
0x1831   :  { %4576 = vmatpush.bf16.msrb.mxu0 %v8205_v63  ;;  %4589 = vmatpush.bf16.msrb.mxu1 %v8208_v41 }
0x1832   :  { %4602 = vmatpush.bf16.msrb.mxu2 %v8196_v25  ;;  %4615 = vmatpush.bf16.msrb.mxu3 %v8200_v29 }
0x1835   :  { %4577 = vmatpush.bf16.msrb.mxu0 %v8228_v4  ;;  %4590 = vmatpush.bf16.msrb.mxu1 %v8230_v6 }
0x1836   :  { %4603 = vmatpush.bf16.msrb.mxu2 %v8212_v8  ;;  %4616 = vmatpush.bf16.msrb.mxu3 %v8226_v58 }
0x1839   :  { %4578 = vmatpush.bf16.msrb.mxu0 %v8248_v0  ;;  %4591 = vmatpush.bf16.msrb.mxu1 %v8251_v15 }
0x183a   :  { %4604 = vmatpush.bf16.msrb.mxu2 %v8240_v11  ;;  %4617 = vmatpush.bf16.msrb.mxu3 %v8244_v17 }
0x183d   :  { %4579 = vmatpush.bf16.msrb.mxu0 %v8262_v48  ;;  %4592 = vmatpush.bf16.msrb.mxu1 %v8268_v10 }
0x183e   :  { %4605 = vmatpush.bf16.msrb.mxu2 %v8253_v3  ;;  %4618 = vmatpush.bf16.msrb.mxu3 %v8256_v50 }
0x1841   :  { %4580 = vmatpush.bf16.msrb.mxu0 %v8277_v45  ;;  %4593 = vmatpush.bf16.msrb.mxu1 %v8281_v27 }
0x1842   :  { %4606 = vmatpush.bf16.msrb.mxu2 %v8270_v14  ;;  %4619 = vmatpush.bf16.msrb.mxu3 %v8273_v16 }
0x1845   :  { %4581 = vmatpush.bf16.msrb.mxu0 %v8289_v26  ;;  %4594 = vmatpush.bf16.msrb.mxu1 %v8293_v20 }
0x1846   :  { %4607 = vmatpush.bf16.msrb.mxu2 %v8283_v55  ;;  %4620 = vmatpush.bf16.msrb.mxu3 %v8286_v13 }
0x18a4   :  { %v4385_v23 = vpop.f32.mrf.mxu0  ;;  %v4398_v49 = vpop.f32.mrf.mxu1 }
0x18a5   :  { %v4432_v43 = vrot.slane %v4398_v49, 7 }
0x18a7   :  { %v4435_v38 = vsel %vm633_vm0, %v4385_v23, %v4432_v43 }
0x18ab   :  { %v4411_v9 = vpop.f32.mrf.mxu2  ;;  %v4424_v53 = vpop.f32.mrf.mxu3 }
0x18ac   :  { %v4433_v46 = vrot.slane %v4411_v9, 6  ;;  %v4434_v62 = vrot.slane %v4424_v53, 5  ;;  %v4387_v2 = vpop.f32.mrf.mxu0  ;;  %v4400_v36 = vpop.f32.mrf.mxu1 }
0x18ae   :  { %v4436_v12 = vsel %vm635_vm1, %v4433_v46, %v4434_v62 }
0x18af   :  { %v4437_v32 = vsel %vm637_vm2, %v4435_v38, %v4436_v12 }
0x18b0   :  { %v4439_v24 = vadd.f32 %v4437_v32, %v4374_v7 }
0x18b2   :  { %v6429_v33 = vmul.f32 -1.442695, %v4439_v24  ;;  %v4460_v1 = vrot.slane %v4439_v24, 3 }
0x18b3   :  { %v4413_v56 = vpop.f32.mrf.mxu2  ;;  %v4426_v47 = vpop.f32.mrf.mxu3 }
0x18b4   :  { %6847 = vpow2.f32 %v6429_v33 }
0x18ba   :  { %v6848_v19 = vpop.eup %6847 }
0x18bb   :  { %v4443_v18 = vadd.f32 1.0, %v6848_v19 }
0x18bd   :  { %6849 = vrcp.f32 %v4443_v18  ;;  %v4455_v60 = vand.u32 2147483648, %v4443_v18  ;;  %v4453_v22 = vand.u32 2147483647, %v4443_v18  ;;  %vm4449_vm6 = vweird.f32 %v4443_v18 }
0x18be   :  { %6851 = vtanh.f32 %v4460_v1 }
0x18bf   :  { %v4456_v35 = vor.u32 1.1754944e-38, %v4455_v60  ;;  %vm4454_vm8 = vcmp.eq.f32.partialorder %v4453_v22, 8.507059e+37 }
0x18c3   :  { %v6850_v59 = vpop.eup %6849 }
0x18c4   :  { %v4445_v61 = vmul.f32 %v6850_v59, %v4443_v18  ;;  %vm4450_vm5 = vweird.f32 %v6850_v59  ;;  %v6852_v23 = vpop.eup %6851  ;;  %v4473_v18 = vld [vmem:[#allocation3 + $0x22] ss:$8 sm:$0xf] }
0x18c5   :  { %vm4451_vm7 = vmor %vm4449_vm6, %vm4450_vm5 }
0x18c6   :  { %v4446_v21 = vsub.f32 1.0, %v4445_v61 }
0x18c8   :  { %v4447_v39 = vmul.f32 %v6850_v59, %v4446_v21 }
0x18ca   :  { %v4448_v34 = vadd.f32 %v6850_v59, %v4447_v39 }
0x18cc   :  { %v4452_v51 = vsel %vm4451_vm7, %v6850_v59, %v4448_v34 }
0x18cd   :  { %v4457_v52 = vsel %vm4454_vm8, %v4456_v35, %v4452_v51 }
0x18ce   :  { %v4464_v30 = vrot.slane %v4457_v52, 1  ;;  %v4467_v43 = vmul.f32 %v6852_v23, %v4457_v52  ;;  %v4470_v53 = vrot.slane %v4457_v52, 2 }
0x18d0   :  { %v4466_v49 = vmul.f32 %v4464_v30, %v8685_v37 }
0x18d2   :  { %v8724_v9 = vadd.f32 %v4467_v43, %v4466_v49 }
0x18d4   :  { %6853 = vtanh.f32 %v8724_v9 }
0x18da   :  { %v6854_v46 = vpop.eup %6853 }
0x18db   :  { %v4472_v62 = vmul.f32 %v6854_v46, %v4470_v53 }
0x18dd   :  { %v4474_v2 = vpack.c.bf16 %v4472_v62, %v4472_v62 }
0x18df   :  { %4483 = vmatmul.bf16.vlgmr.msra.gmra.mxu0 %v4474_v2  ;;  %4496 = vmatmul.bf16.vlgmr.msra.gmra.mxu1 %v4474_v2 }
0x18e0   :  { %4509 = vmatmul.bf16.vlgmr.msra.gmra.mxu2 %v4474_v2  ;;  %4522 = vmatmul.bf16.vlgmr.msra.gmra.mxu3 %v4474_v2 }
0x18e1   :  { %4674 = vmatpush.bf16.msra.mxu0 %v8171_v54  ;;  %4687 = vmatpush.bf16.msra.mxu1 %v8174_v5 }
0x18e2   :  { %4700 = vmatpush.bf16.msra.mxu2 %v8164_v28  ;;  %4713 = vmatpush.bf16.msra.mxu3 %v8168_v42 }
0x18e5   :  { %4675 = vmatpush.bf16.msra.mxu0 %v8191_v31  ;;  %4688 = vmatpush.bf16.msra.mxu1 %v8194_v44 }
0x18e6   :  { %4701 = vmatpush.bf16.msra.mxu2 %v8179_v40  ;;  %4714 = vmatpush.bf16.msra.mxu3 %v8184_v57 }
0x18e9   :  { %4676 = vmatpush.bf16.msra.mxu0 %v8205_v63  ;;  %4689 = vmatpush.bf16.msra.mxu1 %v8208_v41 }
0x18ea   :  { %4702 = vmatpush.bf16.msra.mxu2 %v8196_v25  ;;  %4715 = vmatpush.bf16.msra.mxu3 %v8200_v29 }
0x18ed   :  { %4677 = vmatpush.bf16.msra.mxu0 %v8228_v4  ;;  %4690 = vmatpush.bf16.msra.mxu1 %v8230_v6 }
0x18ee   :  { %4703 = vmatpush.bf16.msra.mxu2 %v8212_v8  ;;  %4716 = vmatpush.bf16.msra.mxu3 %v8226_v58 }
0x18f1   :  { %4678 = vmatpush.bf16.msra.mxu0 %v8248_v0  ;;  %4691 = vmatpush.bf16.msra.mxu1 %v8251_v15 }
0x18f2   :  { %4704 = vmatpush.bf16.msra.mxu2 %v8240_v11  ;;  %4717 = vmatpush.bf16.msra.mxu3 %v8244_v17 }
0x18f5   :  { %4679 = vmatpush.bf16.msra.mxu0 %v8262_v48  ;;  %4692 = vmatpush.bf16.msra.mxu1 %v8268_v10 }
0x18f6   :  { %4705 = vmatpush.bf16.msra.mxu2 %v8253_v3  ;;  %4718 = vmatpush.bf16.msra.mxu3 %v8256_v50 }
0x18f9   :  { %4680 = vmatpush.bf16.msra.mxu0 %v8277_v45  ;;  %4693 = vmatpush.bf16.msra.mxu1 %v8281_v27 }
0x18fa   :  { %4706 = vmatpush.bf16.msra.mxu2 %v8270_v14  ;;  %4719 = vmatpush.bf16.msra.mxu3 %v8273_v16 }
0x18fd   :  { %4681 = vmatpush.bf16.msra.mxu0 %v8289_v26  ;;  %4694 = vmatpush.bf16.msra.mxu1 %v8293_v20 }
0x18fe   :  { %4707 = vmatpush.bf16.msra.mxu2 %v8283_v55  ;;  %4720 = vmatpush.bf16.msra.mxu3 %v8286_v13 }
0x195c   :  { %v4484_v37 = vpop.f32.mrf.mxu0  ;;  %v4497_v36 = vpop.f32.mrf.mxu1 }
0x195d   :  { %v4531_v38 = vrot.slane %v4497_v36, 7 }
0x195f   :  { %v4534_v47 = vsel %vm633_vm0, %v4484_v37, %v4531_v38 }
0x1963   :  { %v4510_v12 = vpop.f32.mrf.mxu2  ;;  %v4523_v7 = vpop.f32.mrf.mxu3 }
0x1964   :  { %v4532_v32 = vrot.slane %v4510_v12, 6  ;;  %v4533_v24 = vrot.slane %v4523_v7, 5  ;;  %v4486_v33 = vpop.f32.mrf.mxu0  ;;  %v4499_v56 = vpop.f32.mrf.mxu1 }
0x1966   :  { %v4535_v19 = vsel %vm635_vm1, %v4532_v32, %v4533_v24 }
0x1967   :  { %v4536_v59 = vsel %vm637_vm2, %v4534_v47, %v4535_v19 }
0x1968   :  { %v4538_v61 = vadd.f32 %v4536_v59, %v4473_v18 }
0x196a   :  { %v6430_v1 = vmul.f32 -1.442695, %v4538_v61  ;;  %v4559_v51 = vrot.slane %v4538_v61, 3 }
0x196b   :  { %v4512_v21 = vpop.f32.mrf.mxu2  ;;  %v4525_v60 = vpop.f32.mrf.mxu3 }
0x196c   :  { %6855 = vpow2.f32 %v6430_v1 }
0x1972   :  { %v6856_v39 = vpop.eup %6855 }
0x1973   :  { %v4542_v22 = vadd.f32 1.0, %v6856_v39 }
0x1975   :  { %6857 = vrcp.f32 %v4542_v22  ;;  %v4554_v30 = vand.u32 2147483648, %v4542_v22  ;;  %v4552_v49 = vand.u32 2147483647, %v4542_v22  ;;  %vm4548_vm10 = vweird.f32 %v4542_v22 }
0x1976   :  { %6859 = vtanh.f32 %v4559_v51 }
0x1977   :  { %v4555_v53 = vor.u32 1.1754944e-38, %v4554_v30  ;;  %vm4553_vm12 = vcmp.eq.f32.partialorder %v4552_v49, 8.507059e+37 }
0x197b   :  { %v6858_v34 = vpop.eup %6857 }
0x197c   :  { %v4544_v35 = vmul.f32 %v6858_v34, %v4542_v22  ;;  %vm4549_vm9 = vweird.f32 %v6858_v34  ;;  %v6860_v37 = vpop.eup %6859  ;;  %v4572_v22 = vld [vmem:[#allocation3 + $0x23] ss:$8 sm:$0xf] }
0x197d   :  { %vm4550_vm11 = vmor %vm4548_vm10, %vm4549_vm9 }
0x197e   :  { %v4545_v52 = vsub.f32 1.0, %v4544_v35 }
0x1980   :  { %v4546_v23 = vmul.f32 %v6858_v34, %v4545_v52 }
0x1982   :  { %v4547_v43 = vadd.f32 %v6858_v34, %v4546_v23 }
0x1984   :  { %v4551_v46 = vsel %vm4550_vm11, %v6858_v34, %v4547_v43 }
0x1985   :  { %v4556_v62 = vsel %vm4553_vm12, %v4555_v53, %v4551_v46 }
0x1986   :  { %v4563_v2 = vrot.slane %v4556_v62, 1  ;;  %v4566_v38 = vmul.f32 %v6860_v37, %v4556_v62  ;;  %v4569_v7 = vrot.slane %v4556_v62, 2 }
0x1988   :  { %v4565_v36 = vmul.f32 %v4563_v2, %v8724_v9 }
0x198a   :  { %v8763_v12 = vadd.f32 %v4566_v38, %v4565_v36 }
0x198c   :  { %6861 = vtanh.f32 %v8763_v12 }
0x1992   :  { %v6862_v32 = vpop.eup %6861 }
0x1993   :  { %v4571_v24 = vmul.f32 %v6862_v32, %v4569_v7 }
0x1995   :  { %v4573_v33 = vpack.c.bf16 %v4571_v24, %v4571_v24 }
0x1997   :  { %4582 = vmatmul.bf16.vlgmr.msrb.gmra.mxu0 %v4573_v33  ;;  %4595 = vmatmul.bf16.vlgmr.msrb.gmra.mxu1 %v4573_v33 }
0x1998   :  { %4608 = vmatmul.bf16.vlgmr.msrb.gmra.mxu2 %v4573_v33  ;;  %4621 = vmatmul.bf16.vlgmr.msrb.gmra.mxu3 %v4573_v33 }
0x1999   :  { %4773 = vmatpush.bf16.msrb.mxu0 %v8171_v54  ;;  %4786 = vmatpush.bf16.msrb.mxu1 %v8174_v5 }
0x199a   :  { %4799 = vmatpush.bf16.msrb.mxu2 %v8164_v28  ;;  %4812 = vmatpush.bf16.msrb.mxu3 %v8168_v42 }
0x199d   :  { %4774 = vmatpush.bf16.msrb.mxu0 %v8191_v31  ;;  %4787 = vmatpush.bf16.msrb.mxu1 %v8194_v44 }
0x199e   :  { %4800 = vmatpush.bf16.msrb.mxu2 %v8179_v40  ;;  %4813 = vmatpush.bf16.msrb.mxu3 %v8184_v57 }
0x19a1   :  { %4775 = vmatpush.bf16.msrb.mxu0 %v8205_v63  ;;  %4788 = vmatpush.bf16.msrb.mxu1 %v8208_v41 }
0x19a2   :  { %4801 = vmatpush.bf16.msrb.mxu2 %v8196_v25  ;;  %4814 = vmatpush.bf16.msrb.mxu3 %v8200_v29 }
0x19a5   :  { %4776 = vmatpush.bf16.msrb.mxu0 %v8228_v4  ;;  %4789 = vmatpush.bf16.msrb.mxu1 %v8230_v6 }
0x19a6   :  { %4802 = vmatpush.bf16.msrb.mxu2 %v8212_v8  ;;  %4815 = vmatpush.bf16.msrb.mxu3 %v8226_v58 }
0x19a9   :  { %4777 = vmatpush.bf16.msrb.mxu0 %v8248_v0  ;;  %4790 = vmatpush.bf16.msrb.mxu1 %v8251_v15 }
0x19aa   :  { %4803 = vmatpush.bf16.msrb.mxu2 %v8240_v11  ;;  %4816 = vmatpush.bf16.msrb.mxu3 %v8244_v17 }
0x19ad   :  { %4778 = vmatpush.bf16.msrb.mxu0 %v8262_v48  ;;  %4791 = vmatpush.bf16.msrb.mxu1 %v8268_v10 }
0x19ae   :  { %4804 = vmatpush.bf16.msrb.mxu2 %v8253_v3  ;;  %4817 = vmatpush.bf16.msrb.mxu3 %v8256_v50 }
0x19b1   :  { %4779 = vmatpush.bf16.msrb.mxu0 %v8277_v45  ;;  %4792 = vmatpush.bf16.msrb.mxu1 %v8281_v27 }
0x19b2   :  { %4805 = vmatpush.bf16.msrb.mxu2 %v8270_v14  ;;  %4818 = vmatpush.bf16.msrb.mxu3 %v8273_v16 }
0x19b5   :  { %4780 = vmatpush.bf16.msrb.mxu0 %v8289_v26  ;;  %4793 = vmatpush.bf16.msrb.mxu1 %v8293_v20 }
0x19b6   :  { %4806 = vmatpush.bf16.msrb.mxu2 %v8283_v55  ;;  %4819 = vmatpush.bf16.msrb.mxu3 %v8286_v13 }
0x1a14   :  { %v4583_v9 = vpop.f32.mrf.mxu0  ;;  %v4596_v56 = vpop.f32.mrf.mxu1 }
0x1a15   :  { %v4630_v47 = vrot.slane %v4596_v56, 7 }
0x1a17   :  { %v4633_v60 = vsel %vm633_vm0, %v4583_v9, %v4630_v47 }
0x1a1b   :  { %v4609_v19 = vpop.f32.mrf.mxu2  ;;  %v4622_v18 = vpop.f32.mrf.mxu3 }
0x1a1c   :  { %v4631_v59 = vrot.slane %v4609_v19, 6  ;;  %v4632_v61 = vrot.slane %v4622_v18, 5  ;;  %v4585_v1 = vpop.f32.mrf.mxu0  ;;  %v4598_v21 = vpop.f32.mrf.mxu1 }
0x1a1e   :  { %v4634_v39 = vsel %vm635_vm1, %v4631_v59, %v4632_v61 }
0x1a1f   :  { %v4635_v34 = vsel %vm637_vm2, %v4633_v60, %v4634_v39 }
0x1a20   :  { %v4637_v35 = vadd.f32 %v4635_v34, %v4572_v22 }
0x1a22   :  { %v6431_v51 = vmul.f32 -1.442695, %v4637_v35  ;;  %v4658_v46 = vrot.slane %v4637_v35, 3 }
0x1a23   :  { %v4611_v52 = vpop.f32.mrf.mxu2  ;;  %v4624_v30 = vpop.f32.mrf.mxu3 }
0x1a24   :  { %6863 = vpow2.f32 %v6431_v51 }
0x1a2a   :  { %v6864_v23 = vpop.eup %6863 }
0x1a2b   :  { %v4641_v49 = vadd.f32 1.0, %v6864_v23 }
0x1a2d   :  { %6865 = vrcp.f32 %v4641_v49  ;;  %v4653_v2 = vand.u32 2147483648, %v4641_v49  ;;  %v4651_v36 = vand.u32 2147483647, %v4641_v49  ;;  %vm4647_vm14 = vweird.f32 %v4641_v49 }
0x1a2e   :  { %6867 = vtanh.f32 %v4658_v46 }
0x1a2f   :  { %v4654_v7 = vor.u32 1.1754944e-38, %v4653_v2  ;;  %vm4652_vm3 = vcmp.eq.f32.partialorder %v4651_v36, 8.507059e+37 }
0x1a33   :  { %v6866_v43 = vpop.eup %6865 }
0x1a34   :  { %v4643_v53 = vmul.f32 %v6866_v43, %v4641_v49  ;;  %vm4648_vm13 = vweird.f32 %v6866_v43  ;;  %v6868_v9 = vpop.eup %6867  ;;  %v4672_v49 = vld [vmem:[#allocation3 + $0x24] ss:$8 sm:$0xf] }
0x1a35   :  { %vm4649_vm15 = vmor %vm4647_vm14, %vm4648_vm13 }
0x1a36   :  { %v4644_v62 = vsub.f32 1.0, %v4643_v53 }
0x1a38   :  { %v4645_v37 = vmul.f32 %v6866_v43, %v4644_v62 }
0x1a3a   :  { %v4646_v38 = vadd.f32 %v6866_v43, %v4645_v37 }
0x1a3c   :  { %v4650_v32 = vsel %vm4649_vm15, %v6866_v43, %v4646_v38 }
0x1a3d   :  { %v4655_v24 = vsel %vm4652_vm3, %v4654_v7, %v4650_v32 }
0x1a3e   :  { %v4662_v33 = vrot.slane %v4655_v24, 1  ;;  %v4665_v47 = vmul.f32 %v6868_v9, %v4655_v24  ;;  %v4668_v18 = vrot.slane %v4655_v24, 2 }
0x1a40   :  { %v4664_v56 = vmul.f32 %v4662_v33, %v8763_v12 }
0x1a42   :  { %v8802_v19 = vadd.f32 %v4665_v47, %v4664_v56 }
0x1a44   :  { %6869 = vtanh.f32 %v8802_v19 }
0x1a4a   :  { %v6870_v59 = vpop.eup %6869 }
0x1a4b   :  { %v4670_v61 = vmul.f32 %v6870_v59, %v4668_v18 }
0x1a4d   :  { %v4673_v1 = vpack.c.bf16 %v4670_v61, %v4670_v61  ;;  %4671 = vst [vmem:[#allocation12] sm:$0x1] %v4670_v61 }
0x1a4f   :  { %4682 = vmatmul.bf16.vlgmr.msra.gmra.mxu0 %v4673_v1  ;;  %4695 = vmatmul.bf16.vlgmr.msra.gmra.mxu1 %v4673_v1 }
0x1a50   :  { %4708 = vmatmul.bf16.vlgmr.msra.gmra.mxu2 %v4673_v1  ;;  %4721 = vmatmul.bf16.vlgmr.msra.gmra.mxu3 %v4673_v1 }
0x1a51   :  { %4872 = vmatpush.bf16.msra.mxu0 %v8171_v54  ;;  %4885 = vmatpush.bf16.msra.mxu1 %v8174_v5 }
0x1a52   :  { %4898 = vmatpush.bf16.msra.mxu2 %v8164_v28  ;;  %4911 = vmatpush.bf16.msra.mxu3 %v8168_v42 }
0x1a55   :  { %4873 = vmatpush.bf16.msra.mxu0 %v8191_v31  ;;  %4886 = vmatpush.bf16.msra.mxu1 %v8194_v44 }
0x1a56   :  { %4899 = vmatpush.bf16.msra.mxu2 %v8179_v40  ;;  %4912 = vmatpush.bf16.msra.mxu3 %v8184_v57 }
0x1a59   :  { %4874 = vmatpush.bf16.msra.mxu0 %v8205_v63  ;;  %4887 = vmatpush.bf16.msra.mxu1 %v8208_v41 }
0x1a5a   :  { %4900 = vmatpush.bf16.msra.mxu2 %v8196_v25  ;;  %4913 = vmatpush.bf16.msra.mxu3 %v8200_v29 }
0x1a5d   :  { %4875 = vmatpush.bf16.msra.mxu0 %v8228_v4  ;;  %4888 = vmatpush.bf16.msra.mxu1 %v8230_v6 }
0x1a5e   :  { %4901 = vmatpush.bf16.msra.mxu2 %v8212_v8  ;;  %4914 = vmatpush.bf16.msra.mxu3 %v8226_v58 }
0x1a61   :  { %4876 = vmatpush.bf16.msra.mxu0 %v8248_v0  ;;  %4889 = vmatpush.bf16.msra.mxu1 %v8251_v15 }
0x1a62   :  { %4902 = vmatpush.bf16.msra.mxu2 %v8240_v11  ;;  %4915 = vmatpush.bf16.msra.mxu3 %v8244_v17 }
0x1a65   :  { %4877 = vmatpush.bf16.msra.mxu0 %v8262_v48  ;;  %4890 = vmatpush.bf16.msra.mxu1 %v8268_v10 }
0x1a66   :  { %4903 = vmatpush.bf16.msra.mxu2 %v8253_v3  ;;  %4916 = vmatpush.bf16.msra.mxu3 %v8256_v50 }
0x1a69   :  { %4878 = vmatpush.bf16.msra.mxu0 %v8277_v45  ;;  %4891 = vmatpush.bf16.msra.mxu1 %v8281_v27 }
0x1a6a   :  { %4904 = vmatpush.bf16.msra.mxu2 %v8270_v14  ;;  %4917 = vmatpush.bf16.msra.mxu3 %v8273_v16 }
0x1a6d   :  { %4879 = vmatpush.bf16.msra.mxu0 %v8289_v26  ;;  %4892 = vmatpush.bf16.msra.mxu1 %v8293_v20 }
0x1a6e   :  { %4905 = vmatpush.bf16.msra.mxu2 %v8283_v55  ;;  %4918 = vmatpush.bf16.msra.mxu3 %v8286_v13 }
0x1acc   :  { %v4683_v12 = vpop.f32.mrf.mxu0  ;;  %v4696_v21 = vpop.f32.mrf.mxu1 }
0x1acd   :  { %v4730_v60 = vrot.slane %v4696_v21, 7 }
0x1acf   :  { %v4733_v30 = vsel %vm633_vm0, %v4683_v12, %v4730_v60 }
0x1ad3   :  { %v4709_v39 = vpop.f32.mrf.mxu2  ;;  %v4722_v22 = vpop.f32.mrf.mxu3 }
0x1ad4   :  { %v4731_v34 = vrot.slane %v4709_v39, 6  ;;  %v4732_v35 = vrot.slane %v4722_v22, 5  ;;  %v4685_v51 = vpop.f32.mrf.mxu0  ;;  %v4698_v52 = vpop.f32.mrf.mxu1 }
0x1ad6   :  { %v4734_v23 = vsel %vm635_vm1, %v4731_v34, %v4732_v35 }
0x1ad7   :  { %v4735_v43 = vsel %vm637_vm2, %v4733_v30, %v4734_v23 }
0x1ad8   :  { %v4737_v53 = vadd.f32 %v4735_v43, %v4672_v49 }
0x1ada   :  { %v6432_v46 = vmul.f32 -1.442695, %v4737_v53  ;;  %v4758_v32 = vrot.slane %v4737_v53, 3 }
0x1adb   :  { %v4711_v62 = vpop.f32.mrf.mxu2  ;;  %v4724_v2 = vpop.f32.mrf.mxu3 }
0x1adc   :  { %6871 = vpow2.f32 %v6432_v46 }
0x1ae2   :  { %v6872_v37 = vpop.eup %6871 }
0x1ae3   :  { %v4741_v36 = vadd.f32 1.0, %v6872_v37 }
0x1ae5   :  { %6873 = vrcp.f32 %v4741_v36  ;;  %v4753_v33 = vand.u32 2147483648, %v4741_v36  ;;  %v4751_v56 = vand.u32 2147483647, %v4741_v36  ;;  %vm4747_vm5 = vweird.f32 %v4741_v36 }
0x1ae6   :  { %6875 = vtanh.f32 %v4758_v32 }
0x1ae7   :  { %v4754_v18 = vor.u32 1.1754944e-38, %v4753_v33  ;;  %vm4752_vm7 = vcmp.eq.f32.partialorder %v4751_v56, 8.507059e+37 }
0x1aeb   :  { %v6874_v38 = vpop.eup %6873 }
0x1aec   :  { %v4743_v7 = vmul.f32 %v6874_v38, %v4741_v36  ;;  %vm4748_vm4 = vweird.f32 %v6874_v38  ;;  %v6876_v12 = vpop.eup %6875  ;;  %v4771_v36 = vld [vmem:[#allocation3 + $0x25] ss:$8 sm:$0xf] }
0x1aed   :  { %vm4749_vm6 = vmor %vm4747_vm5, %vm4748_vm4 }
0x1aee   :  { %v4744_v24 = vsub.f32 1.0, %v4743_v7 }
0x1af0   :  { %v4745_v9 = vmul.f32 %v6874_v38, %v4744_v24 }
0x1af2   :  { %v4746_v47 = vadd.f32 %v6874_v38, %v4745_v9 }
0x1af4   :  { %v4750_v59 = vsel %vm4749_vm6, %v6874_v38, %v4746_v47 }
0x1af5   :  { %v4755_v61 = vsel %vm4752_vm7, %v4754_v18, %v4750_v59 }
0x1af6   :  { %v4762_v1 = vrot.slane %v4755_v61, 1  ;;  %v4765_v60 = vmul.f32 %v6876_v12, %v4755_v61  ;;  %v4768_v22 = vrot.slane %v4755_v61, 2 }
0x1af8   :  { %v4764_v21 = vmul.f32 %v4762_v1, %v8802_v19 }
0x1afa   :  { %v8841_v39 = vadd.f32 %v4765_v60, %v4764_v21 }
0x1afc   :  { %6877 = vtanh.f32 %v8841_v39 }
0x1b02   :  { %v6878_v34 = vpop.eup %6877 }
0x1b03   :  { %v4770_v35 = vmul.f32 %v6878_v34, %v4768_v22 }
0x1b05   :  { %v4772_v51 = vpack.c.bf16 %v4770_v35, %v4770_v35 }
0x1b07   :  { %4781 = vmatmul.bf16.vlgmr.msrb.gmra.mxu0 %v4772_v51  ;;  %4794 = vmatmul.bf16.vlgmr.msrb.gmra.mxu1 %v4772_v51 }
0x1b08   :  { %4807 = vmatmul.bf16.vlgmr.msrb.gmra.mxu2 %v4772_v51  ;;  %4820 = vmatmul.bf16.vlgmr.msrb.gmra.mxu3 %v4772_v51 }
0x1b09   :  { %4971 = vmatpush.bf16.msrb.mxu0 %v8171_v54  ;;  %4984 = vmatpush.bf16.msrb.mxu1 %v8174_v5 }
0x1b0a   :  { %4997 = vmatpush.bf16.msrb.mxu2 %v8164_v28  ;;  %5010 = vmatpush.bf16.msrb.mxu3 %v8168_v42 }
0x1b0d   :  { %4972 = vmatpush.bf16.msrb.mxu0 %v8191_v31  ;;  %4985 = vmatpush.bf16.msrb.mxu1 %v8194_v44 }
0x1b0e   :  { %4998 = vmatpush.bf16.msrb.mxu2 %v8179_v40  ;;  %5011 = vmatpush.bf16.msrb.mxu3 %v8184_v57 }
0x1b11   :  { %4973 = vmatpush.bf16.msrb.mxu0 %v8205_v63  ;;  %4986 = vmatpush.bf16.msrb.mxu1 %v8208_v41 }
0x1b12   :  { %4999 = vmatpush.bf16.msrb.mxu2 %v8196_v25  ;;  %5012 = vmatpush.bf16.msrb.mxu3 %v8200_v29 }
0x1b15   :  { %4974 = vmatpush.bf16.msrb.mxu0 %v8228_v4  ;;  %4987 = vmatpush.bf16.msrb.mxu1 %v8230_v6 }
0x1b16   :  { %5000 = vmatpush.bf16.msrb.mxu2 %v8212_v8  ;;  %5013 = vmatpush.bf16.msrb.mxu3 %v8226_v58 }
0x1b19   :  { %4975 = vmatpush.bf16.msrb.mxu0 %v8248_v0  ;;  %4988 = vmatpush.bf16.msrb.mxu1 %v8251_v15 }
0x1b1a   :  { %5001 = vmatpush.bf16.msrb.mxu2 %v8240_v11  ;;  %5014 = vmatpush.bf16.msrb.mxu3 %v8244_v17 }
0x1b1d   :  { %4976 = vmatpush.bf16.msrb.mxu0 %v8262_v48  ;;  %4989 = vmatpush.bf16.msrb.mxu1 %v8268_v10 }
0x1b1e   :  { %5002 = vmatpush.bf16.msrb.mxu2 %v8253_v3  ;;  %5015 = vmatpush.bf16.msrb.mxu3 %v8256_v50 }
0x1b21   :  { %4977 = vmatpush.bf16.msrb.mxu0 %v8277_v45  ;;  %4990 = vmatpush.bf16.msrb.mxu1 %v8281_v27 }
0x1b22   :  { %5003 = vmatpush.bf16.msrb.mxu2 %v8270_v14  ;;  %5016 = vmatpush.bf16.msrb.mxu3 %v8273_v16 }
0x1b25   :  { %4978 = vmatpush.bf16.msrb.mxu0 %v8289_v26  ;;  %4991 = vmatpush.bf16.msrb.mxu1 %v8293_v20 }
0x1b26   :  { %5004 = vmatpush.bf16.msrb.mxu2 %v8283_v55  ;;  %5017 = vmatpush.bf16.msrb.mxu3 %v8286_v13 }
0x1b84   :  { %v4782_v19 = vpop.f32.mrf.mxu0  ;;  %v4795_v52 = vpop.f32.mrf.mxu1 }
0x1b85   :  { %v4829_v30 = vrot.slane %v4795_v52, 7 }
0x1b87   :  { %v4832_v2 = vsel %vm633_vm0, %v4782_v19, %v4829_v30 }
0x1b8b   :  { %v4808_v23 = vpop.f32.mrf.mxu2  ;;  %v4821_v49 = vpop.f32.mrf.mxu3 }
0x1b8c   :  { %v4830_v43 = vrot.slane %v4808_v23, 6  ;;  %v4831_v53 = vrot.slane %v4821_v49, 5  ;;  %v4784_v46 = vpop.f32.mrf.mxu0  ;;  %v4797_v62 = vpop.f32.mrf.mxu1 }
0x1b8e   :  { %v4833_v37 = vsel %vm635_vm1, %v4830_v43, %v4831_v53 }
0x1b8f   :  { %v4834_v38 = vsel %vm637_vm2, %v4832_v2, %v4833_v37 }
0x1b90   :  { %v4836_v7 = vadd.f32 %v4834_v38, %v4771_v36 }
0x1b92   :  { %v6433_v32 = vmul.f32 -1.442695, %v4836_v7  ;;  %v4857_v59 = vrot.slane %v4836_v7, 3 }
0x1b93   :  { %v4810_v24 = vpop.f32.mrf.mxu2  ;;  %v4823_v33 = vpop.f32.mrf.mxu3 }
0x1b94   :  { %6879 = vpow2.f32 %v6433_v32 }
0x1b9a   :  { %v6880_v9 = vpop.eup %6879 }
0x1b9b   :  { %v4840_v56 = vadd.f32 1.0, %v6880_v9 }
0x1b9d   :  { %6881 = vrcp.f32 %v4840_v56  ;;  %v4852_v1 = vand.u32 2147483648, %v4840_v56  ;;  %v4850_v21 = vand.u32 2147483647, %v4840_v56  ;;  %vm4846_vm9 = vweird.f32 %v4840_v56 }
0x1b9e   :  { %6883 = vtanh.f32 %v4857_v59 }
0x1b9f   :  { %v4853_v22 = vor.u32 1.1754944e-38, %v4852_v1  ;;  %vm4851_vm11 = vcmp.eq.f32.partialorder %v4850_v21, 8.507059e+37 }
0x1ba3   :  { %v6882_v47 = vpop.eup %6881 }
0x1ba4   :  { %v4842_v18 = vmul.f32 %v6882_v47, %v4840_v56  ;;  %vm4847_vm8 = vweird.f32 %v6882_v47  ;;  %v6884_v19 = vpop.eup %6883  ;;  %v4870_v56 = vld [vmem:[#allocation3 + $0x26] ss:$8 sm:$0xf] }
0x1ba5   :  { %vm4848_vm10 = vmor %vm4846_vm9, %vm4847_vm8 }
0x1ba6   :  { %v4843_v61 = vsub.f32 1.0, %v4842_v18 }
0x1ba8   :  { %v4844_v12 = vmul.f32 %v6882_v47, %v4843_v61 }
0x1baa   :  { %v4845_v60 = vadd.f32 %v6882_v47, %v4844_v12 }
0x1bac   :  { %v4849_v34 = vsel %vm4848_vm10, %v6882_v47, %v4845_v60 }
0x1bad   :  { %v4854_v35 = vsel %vm4851_vm11, %v4853_v22, %v4849_v34 }
0x1bae   :  { %v4861_v51 = vrot.slane %v4854_v35, 1  ;;  %v4864_v30 = vmul.f32 %v6884_v19, %v4854_v35  ;;  %v4867_v49 = vrot.slane %v4854_v35, 2 }
0x1bb0   :  { %v4863_v52 = vmul.f32 %v4861_v51, %v8841_v39 }
0x1bb2   :  { %v8880_v23 = vadd.f32 %v4864_v30, %v4863_v52 }
0x1bb4   :  { %6885 = vtanh.f32 %v8880_v23 }
0x1bba   :  { %v6886_v43 = vpop.eup %6885 }
0x1bbb   :  { %v4869_v53 = vmul.f32 %v6886_v43, %v4867_v49 }
0x1bbd   :  { %v4871_v46 = vpack.c.bf16 %v4869_v53, %v4869_v53 }
0x1bbf   :  { %4880 = vmatmul.bf16.vlgmr.msra.gmra.mxu0 %v4871_v46  ;;  %4893 = vmatmul.bf16.vlgmr.msra.gmra.mxu1 %v4871_v46 }
0x1bc0   :  { %4906 = vmatmul.bf16.vlgmr.msra.gmra.mxu2 %v4871_v46  ;;  %4919 = vmatmul.bf16.vlgmr.msra.gmra.mxu3 %v4871_v46 }
0x1bc1   :  { %5070 = vmatpush.bf16.msra.mxu0 %v8171_v54  ;;  %5083 = vmatpush.bf16.msra.mxu1 %v8174_v5 }
0x1bc2   :  { %5096 = vmatpush.bf16.msra.mxu2 %v8164_v28  ;;  %5109 = vmatpush.bf16.msra.mxu3 %v8168_v42 }
0x1bc5   :  { %5071 = vmatpush.bf16.msra.mxu0 %v8191_v31  ;;  %5084 = vmatpush.bf16.msra.mxu1 %v8194_v44 }
0x1bc6   :  { %5097 = vmatpush.bf16.msra.mxu2 %v8179_v40  ;;  %5110 = vmatpush.bf16.msra.mxu3 %v8184_v57 }
0x1bc9   :  { %5072 = vmatpush.bf16.msra.mxu0 %v8205_v63  ;;  %5085 = vmatpush.bf16.msra.mxu1 %v8208_v41 }
0x1bca   :  { %5098 = vmatpush.bf16.msra.mxu2 %v8196_v25  ;;  %5111 = vmatpush.bf16.msra.mxu3 %v8200_v29 }
0x1bcd   :  { %5073 = vmatpush.bf16.msra.mxu0 %v8228_v4  ;;  %5086 = vmatpush.bf16.msra.mxu1 %v8230_v6 }
0x1bce   :  { %5099 = vmatpush.bf16.msra.mxu2 %v8212_v8  ;;  %5112 = vmatpush.bf16.msra.mxu3 %v8226_v58 }
0x1bd1   :  { %5074 = vmatpush.bf16.msra.mxu0 %v8248_v0  ;;  %5087 = vmatpush.bf16.msra.mxu1 %v8251_v15 }
0x1bd2   :  { %5100 = vmatpush.bf16.msra.mxu2 %v8240_v11  ;;  %5113 = vmatpush.bf16.msra.mxu3 %v8244_v17 }
0x1bd5   :  { %5075 = vmatpush.bf16.msra.mxu0 %v8262_v48  ;;  %5088 = vmatpush.bf16.msra.mxu1 %v8268_v10 }
0x1bd6   :  { %5101 = vmatpush.bf16.msra.mxu2 %v8253_v3  ;;  %5114 = vmatpush.bf16.msra.mxu3 %v8256_v50 }
0x1bd9   :  { %5076 = vmatpush.bf16.msra.mxu0 %v8277_v45  ;;  %5089 = vmatpush.bf16.msra.mxu1 %v8281_v27 }
0x1bda   :  { %5102 = vmatpush.bf16.msra.mxu2 %v8270_v14  ;;  %5115 = vmatpush.bf16.msra.mxu3 %v8273_v16 }
0x1bdd   :  { %5077 = vmatpush.bf16.msra.mxu0 %v8289_v26  ;;  %5090 = vmatpush.bf16.msra.mxu1 %v8293_v20 }
0x1bde   :  { %5103 = vmatpush.bf16.msra.mxu2 %v8283_v55  ;;  %5116 = vmatpush.bf16.msra.mxu3 %v8286_v13 }
0x1c3c   :  { %v4881_v39 = vpop.f32.mrf.mxu0  ;;  %v4894_v62 = vpop.f32.mrf.mxu1 }
0x1c3d   :  { %v4928_v2 = vrot.slane %v4894_v62, 7 }
0x1c3f   :  { %v4931_v33 = vsel %vm633_vm0, %v4881_v39, %v4928_v2 }
0x1c43   :  { %v4907_v37 = vpop.f32.mrf.mxu2  ;;  %v4920_v36 = vpop.f32.mrf.mxu3 }
0x1c44   :  { %v4929_v38 = vrot.slane %v4907_v37, 6  ;;  %v4930_v7 = vrot.slane %v4920_v36, 5  ;;  %v4883_v32 = vpop.f32.mrf.mxu0  ;;  %v4896_v24 = vpop.f32.mrf.mxu1 }
0x1c46   :  { %v4932_v9 = vsel %vm635_vm1, %v4929_v38, %v4930_v7 }
0x1c47   :  { %v4933_v47 = vsel %vm637_vm2, %v4931_v33, %v4932_v9 }
0x1c48   :  { %v4935_v18 = vadd.f32 %v4933_v47, %v4870_v56 }
0x1c4a   :  { %v6434_v59 = vmul.f32 -1.442695, %v4935_v18  ;;  %v4956_v34 = vrot.slane %v4935_v18, 3 }
0x1c4b   :  { %v4909_v61 = vpop.f32.mrf.mxu2  ;;  %v4922_v1 = vpop.f32.mrf.mxu3 }
0x1c4c   :  { %6887 = vpow2.f32 %v6434_v59 }
0x1c52   :  { %v6888_v12 = vpop.eup %6887 }
0x1c53   :  { %v4939_v21 = vadd.f32 1.0, %v6888_v12 }
0x1c55   :  { %6889 = vrcp.f32 %v4939_v21  ;;  %v4951_v51 = vand.u32 2147483648, %v4939_v21  ;;  %v4949_v52 = vand.u32 2147483647, %v4939_v21  ;;  %vm4945_vm13 = vweird.f32 %v4939_v21 }
0x1c56   :  { %6891 = vtanh.f32 %v4956_v34 }
0x1c57   :  { %v4952_v49 = vor.u32 1.1754944e-38, %v4951_v51  ;;  %vm4950_vm15 = vcmp.eq.f32.partialorder %v4949_v52, 8.507059e+37 }
0x1c5b   :  { %v6890_v60 = vpop.eup %6889 }
0x1c5c   :  { %v4941_v22 = vmul.f32 %v6890_v60, %v4939_v21  ;;  %vm4946_vm12 = vweird.f32 %v6890_v60  ;;  %v6892_v39 = vpop.eup %6891  ;;  %v4969_v21 = vld [vmem:[#allocation3 + $0x27] ss:$8 sm:$0xf] }
0x1c5d   :  { %vm4947_vm14 = vmor %vm4945_vm13, %vm4946_vm12 }
0x1c5e   :  { %v4942_v35 = vsub.f32 1.0, %v4941_v22 }
0x1c60   :  { %v4943_v19 = vmul.f32 %v6890_v60, %v4942_v35 }
0x1c62   :  { %v4944_v30 = vadd.f32 %v6890_v60, %v4943_v19 }
0x1c64   :  { %v4948_v43 = vsel %vm4947_vm14, %v6890_v60, %v4944_v30 }
0x1c65   :  { %v4953_v53 = vsel %vm4950_vm15, %v4952_v49, %v4948_v43 }
0x1c66   :  { %v4960_v46 = vrot.slane %v4953_v53, 1  ;;  %v4963_v2 = vmul.f32 %v6892_v39, %v4953_v53  ;;  %v4966_v36 = vrot.slane %v4953_v53, 2 }
0x1c68   :  { %v4962_v62 = vmul.f32 %v4960_v46, %v8880_v23 }
0x1c6a   :  { %v8919_v37 = vadd.f32 %v4963_v2, %v4962_v62 }
0x1c6c   :  { %6893 = vtanh.f32 %v8919_v37 }
0x1c72   :  { %v6894_v38 = vpop.eup %6893 }
0x1c73   :  { %v4968_v7 = vmul.f32 %v6894_v38, %v4966_v36 }
0x1c75   :  { %v4970_v32 = vpack.c.bf16 %v4968_v7, %v4968_v7 }
0x1c77   :  { %4979 = vmatmul.bf16.vlgmr.msrb.gmra.mxu0 %v4970_v32  ;;  %4992 = vmatmul.bf16.vlgmr.msrb.gmra.mxu1 %v4970_v32 }
0x1c78   :  { %5005 = vmatmul.bf16.vlgmr.msrb.gmra.mxu2 %v4970_v32  ;;  %5018 = vmatmul.bf16.vlgmr.msrb.gmra.mxu3 %v4970_v32 }
0x1c79   :  { %5169 = vmatpush.bf16.msrb.mxu0 %v8171_v54  ;;  %5182 = vmatpush.bf16.msrb.mxu1 %v8174_v5 }
0x1c7a   :  { %5195 = vmatpush.bf16.msrb.mxu2 %v8164_v28  ;;  %5208 = vmatpush.bf16.msrb.mxu3 %v8168_v42 }
0x1c7d   :  { %5170 = vmatpush.bf16.msrb.mxu0 %v8191_v31  ;;  %5183 = vmatpush.bf16.msrb.mxu1 %v8194_v44 }
0x1c7e   :  { %5196 = vmatpush.bf16.msrb.mxu2 %v8179_v40  ;;  %5209 = vmatpush.bf16.msrb.mxu3 %v8184_v57 }
0x1c81   :  { %5171 = vmatpush.bf16.msrb.mxu0 %v8205_v63  ;;  %5184 = vmatpush.bf16.msrb.mxu1 %v8208_v41 }
0x1c82   :  { %5197 = vmatpush.bf16.msrb.mxu2 %v8196_v25  ;;  %5210 = vmatpush.bf16.msrb.mxu3 %v8200_v29 }
0x1c85   :  { %5172 = vmatpush.bf16.msrb.mxu0 %v8228_v4  ;;  %5185 = vmatpush.bf16.msrb.mxu1 %v8230_v6 }
0x1c86   :  { %5198 = vmatpush.bf16.msrb.mxu2 %v8212_v8  ;;  %5211 = vmatpush.bf16.msrb.mxu3 %v8226_v58 }
0x1c89   :  { %5173 = vmatpush.bf16.msrb.mxu0 %v8248_v0  ;;  %5186 = vmatpush.bf16.msrb.mxu1 %v8251_v15 }
0x1c8a   :  { %5199 = vmatpush.bf16.msrb.mxu2 %v8240_v11  ;;  %5212 = vmatpush.bf16.msrb.mxu3 %v8244_v17 }
0x1c8d   :  { %5174 = vmatpush.bf16.msrb.mxu0 %v8262_v48  ;;  %5187 = vmatpush.bf16.msrb.mxu1 %v8268_v10 }
0x1c8e   :  { %5200 = vmatpush.bf16.msrb.mxu2 %v8253_v3  ;;  %5213 = vmatpush.bf16.msrb.mxu3 %v8256_v50 }
0x1c91   :  { %5175 = vmatpush.bf16.msrb.mxu0 %v8277_v45  ;;  %5188 = vmatpush.bf16.msrb.mxu1 %v8281_v27 }
0x1c92   :  { %5201 = vmatpush.bf16.msrb.mxu2 %v8270_v14  ;;  %5214 = vmatpush.bf16.msrb.mxu3 %v8273_v16 }
0x1c95   :  { %5176 = vmatpush.bf16.msrb.mxu0 %v8289_v26  ;;  %5189 = vmatpush.bf16.msrb.mxu1 %v8293_v20 }
0x1c96   :  { %5202 = vmatpush.bf16.msrb.mxu2 %v8283_v55  ;;  %5215 = vmatpush.bf16.msrb.mxu3 %v8286_v13 }
0x1cf4   :  { %v4980_v23 = vpop.f32.mrf.mxu0  ;;  %v4993_v24 = vpop.f32.mrf.mxu1 }
0x1cf5   :  { %v5027_v33 = vrot.slane %v4993_v24, 7 }
0x1cf7   :  { %v5030_v1 = vsel %vm633_vm0, %v4980_v23, %v5027_v33 }
0x1cfb   :  { %v5006_v9 = vpop.f32.mrf.mxu2  ;;  %v5019_v56 = vpop.f32.mrf.mxu3 }
0x1cfc   :  { %v5028_v47 = vrot.slane %v5006_v9, 6  ;;  %v5029_v18 = vrot.slane %v5019_v56, 5  ;;  %v4982_v59 = vpop.f32.mrf.mxu0  ;;  %v4995_v61 = vpop.f32.mrf.mxu1 }
0x1cfe   :  { %v5031_v12 = vsel %vm635_vm1, %v5028_v47, %v5029_v18 }
0x1cff   :  { %v5032_v60 = vsel %vm637_vm2, %v5030_v1, %v5031_v12 }
0x1d00   :  { %v5034_v22 = vadd.f32 %v5032_v60, %v4969_v21 }
0x1d02   :  { %v6435_v34 = vmul.f32 -1.442695, %v5034_v22  ;;  %v5055_v43 = vrot.slane %v5034_v22, 3 }
0x1d03   :  { %v5008_v35 = vpop.f32.mrf.mxu2  ;;  %v5021_v51 = vpop.f32.mrf.mxu3 }
0x1d04   :  { %6895 = vpow2.f32 %v6435_v34 }
0x1d0a   :  { %v6896_v19 = vpop.eup %6895 }
0x1d0b   :  { %v5038_v52 = vadd.f32 1.0, %v6896_v19 }
0x1d0d   :  { %6897 = vrcp.f32 %v5038_v52  ;;  %v5050_v46 = vand.u32 2147483648, %v5038_v52  ;;  %v5048_v62 = vand.u32 2147483647, %v5038_v52  ;;  %vm5044_vm4 = vweird.f32 %v5038_v52 }
0x1d0e   :  { %6899 = vtanh.f32 %v5055_v43 }
0x1d0f   :  { %v5051_v36 = vor.u32 1.1754944e-38, %v5050_v46  ;;  %vm5049_vm6 = vcmp.eq.f32.partialorder %v5048_v62, 8.507059e+37 }
0x1d13   :  { %v6898_v30 = vpop.eup %6897 }
0x1d14   :  { %v5040_v49 = vmul.f32 %v6898_v30, %v5038_v52  ;;  %vm5045_vm3 = vweird.f32 %v6898_v30  ;;  %v6900_v23 = vpop.eup %6899  ;;  %v5068_v52 = vld [vmem:[#allocation3 + $0x40] ss:$8 sm:$0xf] }
0x1d15   :  { %vm5046_vm5 = vmor %vm5044_vm4, %vm5045_vm3 }
0x1d16   :  { %v5041_v53 = vsub.f32 1.0, %v5040_v49 }
0x1d18   :  { %v5042_v39 = vmul.f32 %v6898_v30, %v5041_v53 }
0x1d1a   :  { %v5043_v2 = vadd.f32 %v6898_v30, %v5042_v39 }
0x1d1c   :  { %v5047_v38 = vsel %vm5046_vm5, %v6898_v30, %v5043_v2 }
0x1d1d   :  { %v5052_v7 = vsel %vm5049_vm6, %v5051_v36, %v5047_v38 }
0x1d1e   :  { %v5059_v32 = vrot.slane %v5052_v7, 1  ;;  %v5062_v33 = vmul.f32 %v6900_v23, %v5052_v7  ;;  %v5065_v56 = vrot.slane %v5052_v7, 2 }
0x1d20   :  { %v5061_v24 = vmul.f32 %v5059_v32, %v8919_v37 }
0x1d22   :  { %v8958_v9 = vadd.f32 %v5062_v33, %v5061_v24 }
0x1d24   :  { %6901 = vtanh.f32 %v8958_v9 }
0x1d2a   :  { %v6902_v47 = vpop.eup %6901 }
0x1d2b   :  { %v5067_v18 = vmul.f32 %v6902_v47, %v5065_v56 }
0x1d2d   :  { %v5069_v59 = vpack.c.bf16 %v5067_v18, %v5067_v18 }
0x1d2f   :  { %5078 = vmatmul.bf16.vlgmr.msra.gmra.mxu0 %v5069_v59  ;;  %5091 = vmatmul.bf16.vlgmr.msra.gmra.mxu1 %v5069_v59 }
0x1d30   :  { %5104 = vmatmul.bf16.vlgmr.msra.gmra.mxu2 %v5069_v59  ;;  %5117 = vmatmul.bf16.vlgmr.msra.gmra.mxu3 %v5069_v59 }
0x1d31   :  { %5268 = vmatpush.bf16.msra.mxu0 %v8171_v54  ;;  %5281 = vmatpush.bf16.msra.mxu1 %v8174_v5 }
0x1d32   :  { %5294 = vmatpush.bf16.msra.mxu2 %v8164_v28  ;;  %5307 = vmatpush.bf16.msra.mxu3 %v8168_v42 }
0x1d35   :  { %5269 = vmatpush.bf16.msra.mxu0 %v8191_v31  ;;  %5282 = vmatpush.bf16.msra.mxu1 %v8194_v44 }
0x1d36   :  { %5295 = vmatpush.bf16.msra.mxu2 %v8179_v40  ;;  %5308 = vmatpush.bf16.msra.mxu3 %v8184_v57 }
0x1d39   :  { %5270 = vmatpush.bf16.msra.mxu0 %v8205_v63  ;;  %5283 = vmatpush.bf16.msra.mxu1 %v8208_v41 }
0x1d3a   :  { %5296 = vmatpush.bf16.msra.mxu2 %v8196_v25  ;;  %5309 = vmatpush.bf16.msra.mxu3 %v8200_v29 }
0x1d3d   :  { %5271 = vmatpush.bf16.msra.mxu0 %v8228_v4  ;;  %5284 = vmatpush.bf16.msra.mxu1 %v8230_v6 }
0x1d3e   :  { %5297 = vmatpush.bf16.msra.mxu2 %v8212_v8  ;;  %5310 = vmatpush.bf16.msra.mxu3 %v8226_v58 }
0x1d41   :  { %5272 = vmatpush.bf16.msra.mxu0 %v8248_v0  ;;  %5285 = vmatpush.bf16.msra.mxu1 %v8251_v15 }
0x1d42   :  { %5298 = vmatpush.bf16.msra.mxu2 %v8240_v11  ;;  %5311 = vmatpush.bf16.msra.mxu3 %v8244_v17 }
0x1d45   :  { %5273 = vmatpush.bf16.msra.mxu0 %v8262_v48  ;;  %5286 = vmatpush.bf16.msra.mxu1 %v8268_v10 }
0x1d46   :  { %5299 = vmatpush.bf16.msra.mxu2 %v8253_v3  ;;  %5312 = vmatpush.bf16.msra.mxu3 %v8256_v50 }
0x1d49   :  { %5274 = vmatpush.bf16.msra.mxu0 %v8277_v45  ;;  %5287 = vmatpush.bf16.msra.mxu1 %v8281_v27 }
0x1d4a   :  { %5300 = vmatpush.bf16.msra.mxu2 %v8270_v14  ;;  %5313 = vmatpush.bf16.msra.mxu3 %v8273_v16 }
0x1d4d   :  { %5275 = vmatpush.bf16.msra.mxu0 %v8289_v26  ;;  %5288 = vmatpush.bf16.msra.mxu1 %v8293_v20 }
0x1d4e   :  { %5301 = vmatpush.bf16.msra.mxu2 %v8283_v55  ;;  %5314 = vmatpush.bf16.msra.mxu3 %v8286_v13 }
0x1dac   :  { %v5079_v37 = vpop.f32.mrf.mxu0  ;;  %v5092_v61 = vpop.f32.mrf.mxu1 }
0x1dad   :  { %v5126_v1 = vrot.slane %v5092_v61, 7 }
0x1daf   :  { %v5129_v51 = vsel %vm633_vm0, %v5079_v37, %v5126_v1 }
0x1db3   :  { %v5105_v12 = vpop.f32.mrf.mxu2  ;;  %v5118_v21 = vpop.f32.mrf.mxu3 }
0x1db4   :  { %v5127_v60 = vrot.slane %v5105_v12, 6  ;;  %v5128_v22 = vrot.slane %v5118_v21, 5  ;;  %v5081_v34 = vpop.f32.mrf.mxu0  ;;  %v5094_v35 = vpop.f32.mrf.mxu1 }
0x1db6   :  { %v5130_v19 = vsel %vm635_vm1, %v5127_v60, %v5128_v22 }
0x1db7   :  { %v5131_v30 = vsel %vm637_vm2, %v5129_v51, %v5130_v19 }
0x1db8   :  { %v5133_v49 = vadd.f32 %v5131_v30, %v5068_v52 }
0x1dba   :  { %v6436_v43 = vmul.f32 -1.442695, %v5133_v49  ;;  %v5154_v38 = vrot.slane %v5133_v49, 3 }
0x1dbb   :  { %v5107_v53 = vpop.f32.mrf.mxu2  ;;  %v5120_v46 = vpop.f32.mrf.mxu3 }
0x1dbc   :  { %6903 = vpow2.f32 %v6436_v43 }
0x1dc2   :  { %v6904_v39 = vpop.eup %6903 }
0x1dc3   :  { %v5137_v62 = vadd.f32 1.0, %v6904_v39 }
0x1dc5   :  { %6905 = vrcp.f32 %v5137_v62  ;;  %v5149_v32 = vand.u32 2147483648, %v5137_v62  ;;  %v5147_v24 = vand.u32 2147483647, %v5137_v62  ;;  %vm5143_vm8 = vweird.f32 %v5137_v62 }
0x1dc6   :  { %6907 = vtanh.f32 %v5154_v38 }
0x1dc7   :  { %v5150_v56 = vor.u32 1.1754944e-38, %v5149_v32  ;;  %vm5148_vm10 = vcmp.eq.f32.partialorder %v5147_v24, 8.507059e+37 }
0x1dcb   :  { %v6906_v2 = vpop.eup %6905 }
0x1dcc   :  { %v5139_v36 = vmul.f32 %v6906_v2, %v5137_v62  ;;  %vm5144_vm7 = vweird.f32 %v6906_v2  ;;  %v6908_v37 = vpop.eup %6907  ;;  %v5167_v62 = vld [vmem:[#allocation3 + $0x41] ss:$8 sm:$0xf] }
0x1dcd   :  { %vm5145_vm9 = vmor %vm5143_vm8, %vm5144_vm7 }
0x1dce   :  { %v5140_v7 = vsub.f32 1.0, %v5139_v36 }
0x1dd0   :  { %v5141_v23 = vmul.f32 %v6906_v2, %v5140_v7 }
0x1dd2   :  { %v5142_v33 = vadd.f32 %v6906_v2, %v5141_v23 }
0x1dd4   :  { %v5146_v47 = vsel %vm5145_vm9, %v6906_v2, %v5142_v33 }
0x1dd5   :  { %v5151_v18 = vsel %vm5148_vm10, %v5150_v56, %v5146_v47 }
0x1dd6   :  { %v5158_v59 = vrot.slane %v5151_v18, 1  ;;  %v5161_v1 = vmul.f32 %v6908_v37, %v5151_v18  ;;  %v5164_v21 = vrot.slane %v5151_v18, 2 }
0x1dd8   :  { %v5160_v61 = vmul.f32 %v5158_v59, %v8958_v9 }
0x1dda   :  { %v8997_v12 = vadd.f32 %v5161_v1, %v5160_v61 }
0x1ddc   :  { %6909 = vtanh.f32 %v8997_v12 }
0x1de2   :  { %v6910_v60 = vpop.eup %6909 }
0x1de3   :  { %v5166_v22 = vmul.f32 %v6910_v60, %v5164_v21 }
0x1de5   :  { %v5168_v34 = vpack.c.bf16 %v5166_v22, %v5166_v22 }
0x1de7   :  { %5177 = vmatmul.bf16.vlgmr.msrb.gmra.mxu0 %v5168_v34  ;;  %5190 = vmatmul.bf16.vlgmr.msrb.gmra.mxu1 %v5168_v34 }
0x1de8   :  { %5203 = vmatmul.bf16.vlgmr.msrb.gmra.mxu2 %v5168_v34  ;;  %5216 = vmatmul.bf16.vlgmr.msrb.gmra.mxu3 %v5168_v34 }
0x1de9   :  { %5367 = vmatpush.bf16.msrb.mxu0 %v8171_v54  ;;  %5380 = vmatpush.bf16.msrb.mxu1 %v8174_v5 }
0x1dea   :  { %5393 = vmatpush.bf16.msrb.mxu2 %v8164_v28  ;;  %5406 = vmatpush.bf16.msrb.mxu3 %v8168_v42 }
0x1ded   :  { %5368 = vmatpush.bf16.msrb.mxu0 %v8191_v31  ;;  %5381 = vmatpush.bf16.msrb.mxu1 %v8194_v44 }
0x1dee   :  { %5394 = vmatpush.bf16.msrb.mxu2 %v8179_v40  ;;  %5407 = vmatpush.bf16.msrb.mxu3 %v8184_v57 }
0x1df1   :  { %5369 = vmatpush.bf16.msrb.mxu0 %v8205_v63  ;;  %5382 = vmatpush.bf16.msrb.mxu1 %v8208_v41 }
0x1df2   :  { %5395 = vmatpush.bf16.msrb.mxu2 %v8196_v25  ;;  %5408 = vmatpush.bf16.msrb.mxu3 %v8200_v29 }
0x1df5   :  { %5370 = vmatpush.bf16.msrb.mxu0 %v8228_v4  ;;  %5383 = vmatpush.bf16.msrb.mxu1 %v8230_v6 }
0x1df6   :  { %5396 = vmatpush.bf16.msrb.mxu2 %v8212_v8  ;;  %5409 = vmatpush.bf16.msrb.mxu3 %v8226_v58 }
0x1df9   :  { %5371 = vmatpush.bf16.msrb.mxu0 %v8248_v0  ;;  %5384 = vmatpush.bf16.msrb.mxu1 %v8251_v15 }
0x1dfa   :  { %5397 = vmatpush.bf16.msrb.mxu2 %v8240_v11  ;;  %5410 = vmatpush.bf16.msrb.mxu3 %v8244_v17 }
0x1dfd   :  { %5372 = vmatpush.bf16.msrb.mxu0 %v8262_v48  ;;  %5385 = vmatpush.bf16.msrb.mxu1 %v8268_v10 }
0x1dfe   :  { %5398 = vmatpush.bf16.msrb.mxu2 %v8253_v3  ;;  %5411 = vmatpush.bf16.msrb.mxu3 %v8256_v50 }
0x1e01   :  { %5373 = vmatpush.bf16.msrb.mxu0 %v8277_v45  ;;  %5386 = vmatpush.bf16.msrb.mxu1 %v8281_v27 }
0x1e02   :  { %5399 = vmatpush.bf16.msrb.mxu2 %v8270_v14  ;;  %5412 = vmatpush.bf16.msrb.mxu3 %v8273_v16 }
0x1e05   :  { %5374 = vmatpush.bf16.msrb.mxu0 %v8289_v26  ;;  %5387 = vmatpush.bf16.msrb.mxu1 %v8293_v20 }
0x1e06   :  { %5400 = vmatpush.bf16.msrb.mxu2 %v8283_v55  ;;  %5413 = vmatpush.bf16.msrb.mxu3 %v8286_v13 }
0x1e64   :  { %v5178_v9 = vpop.f32.mrf.mxu0  ;;  %v5191_v35 = vpop.f32.mrf.mxu1 }
0x1e65   :  { %v5225_v51 = vrot.slane %v5191_v35, 7 }
0x1e67   :  { %v5228_v46 = vsel %vm633_vm0, %v5178_v9, %v5225_v51 }
0x1e6b   :  { %v5204_v19 = vpop.f32.mrf.mxu2  ;;  %v5217_v52 = vpop.f32.mrf.mxu3 }
0x1e6c   :  { %v5226_v30 = vrot.slane %v5204_v19, 6  ;;  %v5227_v49 = vrot.slane %v5217_v52, 5  ;;  %v5180_v43 = vpop.f32.mrf.mxu0  ;;  %v5193_v53 = vpop.f32.mrf.mxu1 }
0x1e6e   :  { %v5229_v39 = vsel %vm635_vm1, %v5226_v30, %v5227_v49 }
0x1e6f   :  { %v5230_v2 = vsel %vm637_vm2, %v5228_v46, %v5229_v39 }
0x1e70   :  { %v5232_v36 = vadd.f32 %v5230_v2, %v5167_v62 }
0x1e72   :  { %v6437_v38 = vmul.f32 -1.442695, %v5232_v36  ;;  %v5253_v47 = vrot.slane %v5232_v36, 3 }
0x1e73   :  { %v5206_v7 = vpop.f32.mrf.mxu2  ;;  %v5219_v32 = vpop.f32.mrf.mxu3 }
0x1e74   :  { %6911 = vpow2.f32 %v6437_v38 }
0x1e7a   :  { %v6912_v23 = vpop.eup %6911 }
0x1e7b   :  { %v5236_v24 = vadd.f32 1.0, %v6912_v23 }
0x1e7d   :  { %6913 = vrcp.f32 %v5236_v24  ;;  %v5248_v59 = vand.u32 2147483648, %v5236_v24  ;;  %v5246_v61 = vand.u32 2147483647, %v5236_v24  ;;  %vm5242_vm12 = vweird.f32 %v5236_v24 }
0x1e7e   :  { %6915 = vtanh.f32 %v5253_v47 }
0x1e7f   :  { %v5249_v21 = vor.u32 1.1754944e-38, %v5248_v59  ;;  %vm5247_vm14 = vcmp.eq.f32.partialorder %v5246_v61, 8.507059e+37 }
0x1e83   :  { %v6914_v33 = vpop.eup %6913 }
0x1e84   :  { %v5238_v56 = vmul.f32 %v6914_v33, %v5236_v24  ;;  %vm5243_vm11 = vweird.f32 %v6914_v33  ;;  %v6916_v9 = vpop.eup %6915  ;;  %v5266_v24 = vld [vmem:[#allocation3 + $0x42] ss:$8 sm:$0xf] }
0x1e85   :  { %vm5244_vm13 = vmor %vm5242_vm12, %vm5243_vm11 }
0x1e86   :  { %v5239_v18 = vsub.f32 1.0, %v5238_v56 }
0x1e88   :  { %v5240_v37 = vmul.f32 %v6914_v33, %v5239_v18 }
0x1e8a   :  { %v5241_v1 = vadd.f32 %v6914_v33, %v5240_v37 }
0x1e8c   :  { %v5245_v60 = vsel %vm5244_vm13, %v6914_v33, %v5241_v1 }
0x1e8d   :  { %v5250_v22 = vsel %vm5247_vm14, %v5249_v21, %v5245_v60 }
0x1e8e   :  { %v5257_v34 = vrot.slane %v5250_v22, 1  ;;  %v5260_v51 = vmul.f32 %v6916_v9, %v5250_v22  ;;  %v5263_v52 = vrot.slane %v5250_v22, 2 }
0x1e90   :  { %v5259_v35 = vmul.f32 %v5257_v34, %v8997_v12 }
0x1e92   :  { %v9036_v19 = vadd.f32 %v5260_v51, %v5259_v35 }
0x1e94   :  { %6917 = vtanh.f32 %v9036_v19 }
0x1e9a   :  { %v6918_v30 = vpop.eup %6917 }
0x1e9b   :  { %v5265_v49 = vmul.f32 %v6918_v30, %v5263_v52 }
0x1e9d   :  { %v5267_v43 = vpack.c.bf16 %v5265_v49, %v5265_v49 }
0x1e9f   :  { %5276 = vmatmul.bf16.vlgmr.msra.gmra.mxu0 %v5267_v43  ;;  %5289 = vmatmul.bf16.vlgmr.msra.gmra.mxu1 %v5267_v43 }
0x1ea0   :  { %5302 = vmatmul.bf16.vlgmr.msra.gmra.mxu2 %v5267_v43  ;;  %5315 = vmatmul.bf16.vlgmr.msra.gmra.mxu3 %v5267_v43 }
0x1ea1   :  { %5466 = vmatpush.bf16.msra.mxu0 %v8171_v54  ;;  %5479 = vmatpush.bf16.msra.mxu1 %v8174_v5 }
0x1ea2   :  { %5492 = vmatpush.bf16.msra.mxu2 %v8164_v28  ;;  %5505 = vmatpush.bf16.msra.mxu3 %v8168_v42 }
0x1ea5   :  { %5467 = vmatpush.bf16.msra.mxu0 %v8191_v31  ;;  %5480 = vmatpush.bf16.msra.mxu1 %v8194_v44 }
0x1ea6   :  { %5493 = vmatpush.bf16.msra.mxu2 %v8179_v40  ;;  %5506 = vmatpush.bf16.msra.mxu3 %v8184_v57 }
0x1ea9   :  { %5468 = vmatpush.bf16.msra.mxu0 %v8205_v63  ;;  %5481 = vmatpush.bf16.msra.mxu1 %v8208_v41 }
0x1eaa   :  { %5494 = vmatpush.bf16.msra.mxu2 %v8196_v25  ;;  %5507 = vmatpush.bf16.msra.mxu3 %v8200_v29 }
0x1ead   :  { %5469 = vmatpush.bf16.msra.mxu0 %v8228_v4  ;;  %5482 = vmatpush.bf16.msra.mxu1 %v8230_v6 }
0x1eae   :  { %5495 = vmatpush.bf16.msra.mxu2 %v8212_v8  ;;  %5508 = vmatpush.bf16.msra.mxu3 %v8226_v58 }
0x1eb1   :  { %5470 = vmatpush.bf16.msra.mxu0 %v8248_v0  ;;  %5483 = vmatpush.bf16.msra.mxu1 %v8251_v15 }
0x1eb2   :  { %5496 = vmatpush.bf16.msra.mxu2 %v8240_v11  ;;  %5509 = vmatpush.bf16.msra.mxu3 %v8244_v17 }
0x1eb5   :  { %5471 = vmatpush.bf16.msra.mxu0 %v8262_v48  ;;  %5484 = vmatpush.bf16.msra.mxu1 %v8268_v10 }
0x1eb6   :  { %5497 = vmatpush.bf16.msra.mxu2 %v8253_v3  ;;  %5510 = vmatpush.bf16.msra.mxu3 %v8256_v50 }
0x1eb9   :  { %5472 = vmatpush.bf16.msra.mxu0 %v8277_v45  ;;  %5485 = vmatpush.bf16.msra.mxu1 %v8281_v27 }
0x1eba   :  { %5498 = vmatpush.bf16.msra.mxu2 %v8270_v14  ;;  %5511 = vmatpush.bf16.msra.mxu3 %v8273_v16 }
0x1ebd   :  { %5473 = vmatpush.bf16.msra.mxu0 %v8289_v26  ;;  %5486 = vmatpush.bf16.msra.mxu1 %v8293_v20 }
0x1ebe   :  { %5499 = vmatpush.bf16.msra.mxu2 %v8283_v55  ;;  %5512 = vmatpush.bf16.msra.mxu3 %v8286_v13 }
0x1f1c   :  { %v5277_v12 = vpop.f32.mrf.mxu0  ;;  %v5290_v53 = vpop.f32.mrf.mxu1 }
0x1f1d   :  { %v5324_v46 = vrot.slane %v5290_v53, 7 }
0x1f1f   :  { %v5327_v32 = vsel %vm633_vm0, %v5277_v12, %v5324_v46 }
0x1f23   :  { %v5303_v39 = vpop.f32.mrf.mxu2  ;;  %v5316_v62 = vpop.f32.mrf.mxu3 }
0x1f24   :  { %v5325_v2 = vrot.slane %v5303_v39, 6  ;;  %v5326_v36 = vrot.slane %v5316_v62, 5  ;;  %v5279_v38 = vpop.f32.mrf.mxu0  ;;  %v5292_v7 = vpop.f32.mrf.mxu1 }
0x1f26   :  { %v5328_v23 = vsel %vm635_vm1, %v5325_v2, %v5326_v36 }
0x1f27   :  { %v5329_v33 = vsel %vm637_vm2, %v5327_v32, %v5328_v23 }
0x1f28   :  { %v5331_v56 = vadd.f32 %v5329_v33, %v5266_v24 }
0x1f2a   :  { %v6438_v47 = vmul.f32 -1.442695, %v5331_v56  ;;  %v5352_v60 = vrot.slane %v5331_v56, 3 }
0x1f2b   :  { %v5305_v18 = vpop.f32.mrf.mxu2  ;;  %v5318_v59 = vpop.f32.mrf.mxu3 }
0x1f2c   :  { %6919 = vpow2.f32 %v6438_v47 }
0x1f32   :  { %v6920_v37 = vpop.eup %6919 }
0x1f33   :  { %v5335_v61 = vadd.f32 1.0, %v6920_v37 }
0x1f35   :  { %6921 = vrcp.f32 %v5335_v61  ;;  %v5347_v34 = vand.u32 2147483648, %v5335_v61  ;;  %v5345_v35 = vand.u32 2147483647, %v5335_v61  ;;  %vm5341_vm3 = vweird.f32 %v5335_v61 }
0x1f36   :  { %6923 = vtanh.f32 %v5352_v60 }
0x1f37   :  { %v5348_v52 = vor.u32 1.1754944e-38, %v5347_v34  ;;  %vm5346_vm5 = vcmp.eq.f32.partialorder %v5345_v35, 8.507059e+37 }
0x1f3b   :  { %v6922_v1 = vpop.eup %6921 }
0x1f3c   :  { %v5337_v21 = vmul.f32 %v6922_v1, %v5335_v61  ;;  %vm5342_vm15 = vweird.f32 %v6922_v1  ;;  %v6924_v12 = vpop.eup %6923  ;;  %v5365_v61 = vld [vmem:[#allocation3 + $0x43] ss:$8 sm:$0xf] }
0x1f3d   :  { %vm5343_vm4 = vmor %vm5341_vm3, %vm5342_vm15 }
0x1f3e   :  { %v5338_v22 = vsub.f32 1.0, %v5337_v21 }
0x1f40   :  { %v5339_v9 = vmul.f32 %v6922_v1, %v5338_v22 }
0x1f42   :  { %v5340_v51 = vadd.f32 %v6922_v1, %v5339_v9 }
0x1f44   :  { %v5344_v30 = vsel %vm5343_vm4, %v6922_v1, %v5340_v51 }
0x1f45   :  { %v5349_v49 = vsel %vm5346_vm5, %v5348_v52, %v5344_v30 }
0x1f46   :  { %v5356_v43 = vrot.slane %v5349_v49, 1  ;;  %v5359_v46 = vmul.f32 %v6924_v12, %v5349_v49  ;;  %v5362_v62 = vrot.slane %v5349_v49, 2 }
0x1f48   :  { %v5358_v53 = vmul.f32 %v5356_v43, %v9036_v19 }
0x1f4a   :  { %v9075_v39 = vadd.f32 %v5359_v46, %v5358_v53 }
0x1f4c   :  { %6925 = vtanh.f32 %v9075_v39 }
0x1f52   :  { %v6926_v2 = vpop.eup %6925 }
0x1f53   :  { %v5364_v36 = vmul.f32 %v6926_v2, %v5362_v62 }
0x1f55   :  { %v5366_v38 = vpack.c.bf16 %v5364_v36, %v5364_v36 }
0x1f57   :  { %5375 = vmatmul.bf16.vlgmr.msrb.gmra.mxu0 %v5366_v38  ;;  %5388 = vmatmul.bf16.vlgmr.msrb.gmra.mxu1 %v5366_v38 }
0x1f58   :  { %5401 = vmatmul.bf16.vlgmr.msrb.gmra.mxu2 %v5366_v38  ;;  %5414 = vmatmul.bf16.vlgmr.msrb.gmra.mxu3 %v5366_v38 }
0x1f59   :  { %5565 = vmatpush.bf16.msrb.mxu0 %v8171_v54  ;;  %5578 = vmatpush.bf16.msrb.mxu1 %v8174_v5 }
0x1f5a   :  { %5591 = vmatpush.bf16.msrb.mxu2 %v8164_v28  ;;  %5604 = vmatpush.bf16.msrb.mxu3 %v8168_v42 }
0x1f5d   :  { %5566 = vmatpush.bf16.msrb.mxu0 %v8191_v31  ;;  %5579 = vmatpush.bf16.msrb.mxu1 %v8194_v44 }
0x1f5e   :  { %5592 = vmatpush.bf16.msrb.mxu2 %v8179_v40  ;;  %5605 = vmatpush.bf16.msrb.mxu3 %v8184_v57 }
0x1f61   :  { %5567 = vmatpush.bf16.msrb.mxu0 %v8205_v63  ;;  %5580 = vmatpush.bf16.msrb.mxu1 %v8208_v41 }
0x1f62   :  { %5593 = vmatpush.bf16.msrb.mxu2 %v8196_v25  ;;  %5606 = vmatpush.bf16.msrb.mxu3 %v8200_v29 }
0x1f65   :  { %5568 = vmatpush.bf16.msrb.mxu0 %v8228_v4  ;;  %5581 = vmatpush.bf16.msrb.mxu1 %v8230_v6 }
0x1f66   :  { %5594 = vmatpush.bf16.msrb.mxu2 %v8212_v8  ;;  %5607 = vmatpush.bf16.msrb.mxu3 %v8226_v58 }
0x1f69   :  { %5569 = vmatpush.bf16.msrb.mxu0 %v8248_v0  ;;  %5582 = vmatpush.bf16.msrb.mxu1 %v8251_v15 }
0x1f6a   :  { %5595 = vmatpush.bf16.msrb.mxu2 %v8240_v11  ;;  %5608 = vmatpush.bf16.msrb.mxu3 %v8244_v17 }
0x1f6d   :  { %5570 = vmatpush.bf16.msrb.mxu0 %v8262_v48  ;;  %5583 = vmatpush.bf16.msrb.mxu1 %v8268_v10 }
0x1f6e   :  { %5596 = vmatpush.bf16.msrb.mxu2 %v8253_v3  ;;  %5609 = vmatpush.bf16.msrb.mxu3 %v8256_v50 }
0x1f71   :  { %5571 = vmatpush.bf16.msrb.mxu0 %v8277_v45  ;;  %5584 = vmatpush.bf16.msrb.mxu1 %v8281_v27 }
0x1f72   :  { %5597 = vmatpush.bf16.msrb.mxu2 %v8270_v14  ;;  %5610 = vmatpush.bf16.msrb.mxu3 %v8273_v16 }
0x1f75   :  { %5572 = vmatpush.bf16.msrb.mxu0 %v8289_v26  ;;  %5585 = vmatpush.bf16.msrb.mxu1 %v8293_v20 }
0x1f76   :  { %5598 = vmatpush.bf16.msrb.mxu2 %v8283_v55  ;;  %5611 = vmatpush.bf16.msrb.mxu3 %v8286_v13 }
0x1fd4   :  { %v5376_v19 = vpop.f32.mrf.mxu0  ;;  %v5389_v7 = vpop.f32.mrf.mxu1 }
0x1fd5   :  { %v5423_v32 = vrot.slane %v5389_v7, 7 }
0x1fd7   :  { %v5426_v59 = vsel %vm633_vm0, %v5376_v19, %v5423_v32 }
0x1fdb   :  { %v5402_v23 = vpop.f32.mrf.mxu2  ;;  %v5415_v24 = vpop.f32.mrf.mxu3 }
0x1fdc   :  { %v5424_v33 = vrot.slane %v5402_v23, 6  ;;  %v5425_v56 = vrot.slane %v5415_v24, 5  ;;  %v5378_v47 = vpop.f32.mrf.mxu0  ;;  %v5391_v18 = vpop.f32.mrf.mxu1 }
0x1fde   :  { %v5427_v37 = vsel %vm635_vm1, %v5424_v33, %v5425_v56 }
0x1fdf   :  { %v5428_v1 = vsel %vm637_vm2, %v5426_v59, %v5427_v37 }
0x1fe0   :  { %v5430_v21 = vadd.f32 %v5428_v1, %v5365_v61 }
0x1fe2   :  { %v6439_v60 = vmul.f32 -1.442695, %v5430_v21  ;;  %v5451_v30 = vrot.slane %v5430_v21, 3 }
0x1fe3   :  { %v5404_v22 = vpop.f32.mrf.mxu2  ;;  %v5417_v34 = vpop.f32.mrf.mxu3 }
0x1fe4   :  { %6927 = vpow2.f32 %v6439_v60 }
0x1fea   :  { %v6928_v9 = vpop.eup %6927 }
0x1feb   :  { %v5434_v35 = vadd.f32 1.0, %v6928_v9 }
0x1fed   :  { %6929 = vrcp.f32 %v5434_v35  ;;  %v5446_v43 = vand.u32 2147483648, %v5434_v35  ;;  %v5444_v53 = vand.u32 2147483647, %v5434_v35  ;;  %vm5440_vm7 = vweird.f32 %v5434_v35 }
0x1fee   :  { %6931 = vtanh.f32 %v5451_v30 }
0x1fef   :  { %v5447_v62 = vor.u32 1.1754944e-38, %v5446_v43  ;;  %vm5445_vm9 = vcmp.eq.f32.partialorder %v5444_v53, 8.507059e+37 }
0x1ff3   :  { %v6930_v51 = vpop.eup %6929 }
0x1ff4   :  { %v5436_v52 = vmul.f32 %v6930_v51, %v5434_v35  ;;  %vm5441_vm6 = vweird.f32 %v6930_v51  ;;  %v6932_v19 = vpop.eup %6931  ;;  %v5464_v35 = vld [vmem:[#allocation3 + $0x44] ss:$8 sm:$0xf] }
0x1ff5   :  { %vm5442_vm8 = vmor %vm5440_vm7, %vm5441_vm6 }
0x1ff6   :  { %v5437_v49 = vsub.f32 1.0, %v5436_v52 }
0x1ff8   :  { %v5438_v12 = vmul.f32 %v6930_v51, %v5437_v49 }
0x1ffa   :  { %v5439_v46 = vadd.f32 %v6930_v51, %v5438_v12 }
0x1ffc   :  { %v5443_v2 = vsel %vm5442_vm8, %v6930_v51, %v5439_v46 }
0x1ffd   :  { %v5448_v36 = vsel %vm5445_vm9, %v5447_v62, %v5443_v2 }
0x1ffe   :  { %v5455_v38 = vrot.slane %v5448_v36, 1  ;;  %v5458_v32 = vmul.f32 %v6932_v19, %v5448_v36  ;;  %v5461_v24 = vrot.slane %v5448_v36, 2 }
0x2000   :  { %v5457_v7 = vmul.f32 %v5455_v38, %v9075_v39 }
0x2002   :  { %v9114_v23 = vadd.f32 %v5458_v32, %v5457_v7 }
0x2004   :  { %6933 = vtanh.f32 %v9114_v23 }
0x200a   :  { %v6934_v33 = vpop.eup %6933 }
0x200b   :  { %v5463_v56 = vmul.f32 %v6934_v33, %v5461_v24 }
0x200d   :  { %v5465_v47 = vpack.c.bf16 %v5463_v56, %v5463_v56 }
0x200f   :  { %5474 = vmatmul.bf16.vlgmr.msra.gmra.mxu0 %v5465_v47  ;;  %5487 = vmatmul.bf16.vlgmr.msra.gmra.mxu1 %v5465_v47 }
0x2010   :  { %5500 = vmatmul.bf16.vlgmr.msra.gmra.mxu2 %v5465_v47  ;;  %5513 = vmatmul.bf16.vlgmr.msra.gmra.mxu3 %v5465_v47 }
0x2011   :  { %5664 = vmatpush.bf16.msra.mxu0 %v8171_v54  ;;  %5677 = vmatpush.bf16.msra.mxu1 %v8174_v5 }
0x2012   :  { %5690 = vmatpush.bf16.msra.mxu2 %v8164_v28  ;;  %5703 = vmatpush.bf16.msra.mxu3 %v8168_v42 }
0x2015   :  { %5665 = vmatpush.bf16.msra.mxu0 %v8191_v31  ;;  %5678 = vmatpush.bf16.msra.mxu1 %v8194_v44 }
0x2016   :  { %5691 = vmatpush.bf16.msra.mxu2 %v8179_v40  ;;  %5704 = vmatpush.bf16.msra.mxu3 %v8184_v57 }
0x2019   :  { %5666 = vmatpush.bf16.msra.mxu0 %v8205_v63  ;;  %5679 = vmatpush.bf16.msra.mxu1 %v8208_v41 }
0x201a   :  { %5692 = vmatpush.bf16.msra.mxu2 %v8196_v25  ;;  %5705 = vmatpush.bf16.msra.mxu3 %v8200_v29 }
0x201d   :  { %5667 = vmatpush.bf16.msra.mxu0 %v8228_v4  ;;  %5680 = vmatpush.bf16.msra.mxu1 %v8230_v6 }
0x201e   :  { %5693 = vmatpush.bf16.msra.mxu2 %v8212_v8  ;;  %5706 = vmatpush.bf16.msra.mxu3 %v8226_v58 }
0x2021   :  { %5668 = vmatpush.bf16.msra.mxu0 %v8248_v0  ;;  %5681 = vmatpush.bf16.msra.mxu1 %v8251_v15 }
0x2022   :  { %5694 = vmatpush.bf16.msra.mxu2 %v8240_v11  ;;  %5707 = vmatpush.bf16.msra.mxu3 %v8244_v17 }
0x2025   :  { %5669 = vmatpush.bf16.msra.mxu0 %v8262_v48  ;;  %5682 = vmatpush.bf16.msra.mxu1 %v8268_v10 }
0x2026   :  { %5695 = vmatpush.bf16.msra.mxu2 %v8253_v3  ;;  %5708 = vmatpush.bf16.msra.mxu3 %v8256_v50 }
0x2029   :  { %5670 = vmatpush.bf16.msra.mxu0 %v8277_v45  ;;  %5683 = vmatpush.bf16.msra.mxu1 %v8281_v27 }
0x202a   :  { %5696 = vmatpush.bf16.msra.mxu2 %v8270_v14  ;;  %5709 = vmatpush.bf16.msra.mxu3 %v8273_v16 }
0x202d   :  { %5671 = vmatpush.bf16.msra.mxu0 %v8289_v26  ;;  %5684 = vmatpush.bf16.msra.mxu1 %v8293_v20 }
0x202e   :  { %5697 = vmatpush.bf16.msra.mxu2 %v8283_v55  ;;  %5710 = vmatpush.bf16.msra.mxu3 %v8286_v13 }
0x208c   :  { %v5475_v39 = vpop.f32.mrf.mxu0  ;;  %v5488_v18 = vpop.f32.mrf.mxu1 }
0x208d   :  { %v5522_v59 = vrot.slane %v5488_v18, 7 }
0x208f   :  { %v5525_v34 = vsel %vm633_vm0, %v5475_v39, %v5522_v59 }
0x2093   :  { %v5501_v37 = vpop.f32.mrf.mxu2  ;;  %v5514_v61 = vpop.f32.mrf.mxu3 }
0x2094   :  { %v5523_v1 = vrot.slane %v5501_v37, 6  ;;  %v5524_v21 = vrot.slane %v5514_v61, 5  ;;  %v5477_v60 = vpop.f32.mrf.mxu0  ;;  %v5490_v22 = vpop.f32.mrf.mxu1 }
0x2096   :  { %v5526_v9 = vsel %vm635_vm1, %v5523_v1, %v5524_v21 }
0x2097   :  { %v5527_v51 = vsel %vm637_vm2, %v5525_v34, %v5526_v9 }
0x2098   :  { %v5529_v52 = vadd.f32 %v5527_v51, %v5464_v35 }
0x209a   :  { %v6440_v30 = vmul.f32 -1.442695, %v5529_v52  ;;  %v5550_v2 = vrot.slane %v5529_v52, 3 }
0x209b   :  { %v5503_v49 = vpop.f32.mrf.mxu2  ;;  %v5516_v43 = vpop.f32.mrf.mxu3 }
0x209c   :  { %6935 = vpow2.f32 %v6440_v30 }
0x20a2   :  { %v6936_v12 = vpop.eup %6935 }
0x20a3   :  { %v5533_v53 = vadd.f32 1.0, %v6936_v12 }
0x20a5   :  { %6937 = vrcp.f32 %v5533_v53  ;;  %v5545_v38 = vand.u32 2147483648, %v5533_v53  ;;  %v5543_v7 = vand.u32 2147483647, %v5533_v53  ;;  %vm5539_vm11 = vweird.f32 %v5533_v53 }
0x20a6   :  { %6939 = vtanh.f32 %v5550_v2 }
0x20a7   :  { %v5546_v24 = vor.u32 1.1754944e-38, %v5545_v38  ;;  %vm5544_vm13 = vcmp.eq.f32.partialorder %v5543_v7, 8.507059e+37  ;;  %v5662_v7 = vld [vmem:[#allocation3 + $0x46] ss:$8 sm:$0xf] }
0x20ab   :  { %v6938_v46 = vpop.eup %6937 }
0x20ac   :  { %v5535_v62 = vmul.f32 %v6938_v46, %v5533_v53  ;;  %vm5540_vm10 = vweird.f32 %v6938_v46  ;;  %v6940_v39 = vpop.eup %6939 }
0x20ad   :  { %vm5541_vm12 = vmor %vm5539_vm11, %vm5540_vm10 }
0x20ae   :  { %v5536_v36 = vsub.f32 1.0, %v5535_v62 }
0x20b0   :  { %v5537_v19 = vmul.f32 %v6938_v46, %v5536_v36 }
0x20b2   :  { %v5538_v32 = vadd.f32 %v6938_v46, %v5537_v19 }
0x20b4   :  { %v5542_v33 = vsel %vm5541_vm12, %v6938_v46, %v5538_v32 }
0x20b5   :  { %v5547_v56 = vsel %vm5544_vm13, %v5546_v24, %v5542_v33 }
0x20b6   :  { %v5554_v47 = vrot.slane %v5547_v56, 1  ;;  %v5557_v59 = vmul.f32 %v6940_v39, %v5547_v56  ;;  %v5560_v61 = vrot.slane %v5547_v56, 2 }
0x20b8   :  { %v5556_v18 = vmul.f32 %v5554_v47, %v9114_v23 }
0x20ba   :  { %v9153_v37 = vadd.f32 %v5557_v59, %v5556_v18 }
0x20bc   :  { %6941 = vtanh.f32 %v9153_v37 }
0x20c2   :  { %v6942_v1 = vpop.eup %6941 }
0x20c3   :  { %v5562_v21 = vmul.f32 %v6942_v1, %v5560_v61 }
0x20c5   :  { %v5564_v60 = vpack.c.bf16 %v5562_v21, %v5562_v21 }
0x20c7   :  { %5573 = vmatmul.bf16.vlgmr.msrb.gmra.mxu0 %v5564_v60  ;;  %5586 = vmatmul.bf16.vlgmr.msrb.gmra.mxu1 %v5564_v60 }
0x20c8   :  { %5599 = vmatmul.bf16.vlgmr.msrb.gmra.mxu2 %v5564_v60  ;;  %5612 = vmatmul.bf16.vlgmr.msrb.gmra.mxu3 %v5564_v60 }
0x20c9   :  { %5763 = vmatpush.bf16.msrb.mxu0 %v8171_v54  ;;  %5776 = vmatpush.bf16.msrb.mxu1 %v8174_v5 }
0x20ca   :  { %5789 = vmatpush.bf16.msrb.mxu2 %v8164_v28  ;;  %5802 = vmatpush.bf16.msrb.mxu3 %v8168_v42 }
0x20cd   :  { %5764 = vmatpush.bf16.msrb.mxu0 %v8191_v31  ;;  %5777 = vmatpush.bf16.msrb.mxu1 %v8194_v44 }
0x20ce   :  { %5790 = vmatpush.bf16.msrb.mxu2 %v8179_v40  ;;  %5803 = vmatpush.bf16.msrb.mxu3 %v8184_v57 }
0x20d1   :  { %5765 = vmatpush.bf16.msrb.mxu0 %v8205_v63  ;;  %5778 = vmatpush.bf16.msrb.mxu1 %v8208_v41  ;;  %v5563_v41 = vld [vmem:[#allocation3 + $0x45] ss:$8 sm:$0xf] }
0x20d2   :  { %5791 = vmatpush.bf16.msrb.mxu2 %v8196_v25  ;;  %5804 = vmatpush.bf16.msrb.mxu3 %v8200_v29 }
0x20d5   :  { %5766 = vmatpush.bf16.msrb.mxu0 %v8228_v4  ;;  %5779 = vmatpush.bf16.msrb.mxu1 %v8230_v6 }
0x20d6   :  { %5792 = vmatpush.bf16.msrb.mxu2 %v8212_v8  ;;  %5805 = vmatpush.bf16.msrb.mxu3 %v8226_v58 }
0x20d9   :  { %5767 = vmatpush.bf16.msrb.mxu0 %v8248_v0  ;;  %5780 = vmatpush.bf16.msrb.mxu1 %v8251_v15 }
0x20da   :  { %5793 = vmatpush.bf16.msrb.mxu2 %v8240_v11  ;;  %5806 = vmatpush.bf16.msrb.mxu3 %v8244_v17 }
0x20dd   :  { %5768 = vmatpush.bf16.msrb.mxu0 %v8262_v48  ;;  %5781 = vmatpush.bf16.msrb.mxu1 %v8268_v10 }
0x20de   :  { %5794 = vmatpush.bf16.msrb.mxu2 %v8253_v3  ;;  %5807 = vmatpush.bf16.msrb.mxu3 %v8256_v50 }
0x20e1   :  { %5769 = vmatpush.bf16.msrb.mxu0 %v8277_v45  ;;  %5782 = vmatpush.bf16.msrb.mxu1 %v8281_v27 }
0x20e2   :  { %5795 = vmatpush.bf16.msrb.mxu2 %v8270_v14  ;;  %5808 = vmatpush.bf16.msrb.mxu3 %v8273_v16 }
0x20e5   :  { %5770 = vmatpush.bf16.msrb.mxu0 %v8289_v26  ;;  %5783 = vmatpush.bf16.msrb.mxu1 %v8293_v20 }
0x20e6   :  { %5796 = vmatpush.bf16.msrb.mxu2 %v8283_v55  ;;  %5809 = vmatpush.bf16.msrb.mxu3 %v8286_v13 }
0x2144   :  { %v5574_v28 = vpop.f32.mrf.mxu0  ;;  %v5587_v42 = vpop.f32.mrf.mxu1 }
0x2145   :  { %v5621_v54 = vrot.slane %v5587_v42, 7 }
0x2147   :  { %v5624_v29 = vsel %vm633_vm0, %v5574_v28, %v5621_v54 }
0x214b   :  { %v5600_v5 = vpop.f32.mrf.mxu2  ;;  %v5613_v40 = vpop.f32.mrf.mxu3 }
0x214c   :  { %v5622_v57 = vrot.slane %v5600_v5, 6  ;;  %v5623_v31 = vrot.slane %v5613_v40, 5  ;;  %v5576_v44 = vpop.f32.mrf.mxu0  ;;  %v5589_v25 = vpop.f32.mrf.mxu1 }
0x214e   :  { %v5625_v63 = vsel %vm635_vm1, %v5622_v57, %v5623_v31 }
0x214f   :  { %v5626_v8 = vsel %vm637_vm2, %v5624_v29, %v5625_v63 }
0x2150   :  { %v5628_v58 = vadd.f32 %v5626_v8, %v5563_v41 }
0x2152   :  { %v6441_v4 = vmul.f32 -1.442695, %v5628_v58  ;;  %v5649_v50 = vrot.slane %v5628_v58, 3 }
0x2153   :  { %v5602_v6 = vpop.f32.mrf.mxu2  ;;  %v5615_v11 = vpop.f32.mrf.mxu3 }
0x2154   :  { %6943 = vpow2.f32 %v6441_v4 }
0x215a   :  { %v6944_v17 = vpop.eup %6943 }
0x215b   :  { %v5632_v0 = vadd.f32 1.0, %v6944_v17 }
0x215d   :  { %6945 = vrcp.f32 %v5632_v0  ;;  %v5644_v10 = vand.u32 2147483648, %v5632_v0  ;;  %v5642_v16 = vand.u32 2147483647, %v5632_v0  ;;  %vm5638_vm15 = vweird.f32 %v5632_v0 }
0x215e   :  { %6947 = vtanh.f32 %v5649_v50 }
0x215f   :  { %v5645_v27 = vor.u32 1.1754944e-38, %v5644_v10  ;;  %vm5643_vm4 = vcmp.eq.f32.partialorder %v5642_v16, 8.507059e+37  ;;  %v5761_v16 = vld [vmem:[#allocation3 + $0x47] ss:$8 sm:$0xf] }
0x2163   :  { %v6946_v15 = vpop.eup %6945 }
0x2164   :  { %v5634_v3 = vmul.f32 %v6946_v15, %v5632_v0  ;;  %vm5639_vm14 = vweird.f32 %v6946_v15  ;;  %v6948_v20 = vpop.eup %6947 }
0x2165   :  { %vm5640_vm3 = vmor %vm5638_vm15, %vm5639_vm14 }
0x2166   :  { %v5635_v48 = vsub.f32 1.0, %v5634_v3 }
0x2168   :  { %v5636_v14 = vmul.f32 %v6946_v15, %v5635_v48 }
0x216a   :  { %v5637_v45 = vadd.f32 %v6946_v15, %v5636_v14 }
0x216c   :  { %v5641_v55 = vsel %vm5640_vm3, %v6946_v15, %v5637_v45 }
0x216d   :  { %v5646_v13 = vsel %vm5643_vm4, %v5645_v27, %v5641_v55 }
0x216e   :  { %v5653_v26 = vrot.slane %v5646_v13, 1  ;;  %v5656_v22 = vmul.f32 %v6948_v20, %v5646_v13  ;;  %v5659_v9 = vrot.slane %v5646_v13, 2 }
0x2170   :  { %v5655_v23 = vmul.f32 %v5653_v26, %v9153_v37 }
0x2172   :  { %v5657_v34 = vadd.f32 %v5656_v22, %v5655_v23 }
0x2174   :  { %6949 = vtanh.f32 %v5657_v34 }
0x217a   :  { %v6950_v35 = vpop.eup %6949 }
0x217b   :  { %v5661_v51 = vmul.f32 %v6950_v35, %v5659_v9 }
0x217d   :  { %v5663_v52 = vpack.c.bf16 %v5661_v51, %v5661_v51 }
0x217f   :  { %5672 = vmatmul.bf16.vlgmr.msra.gmra.mxu0 %v5663_v52  ;;  %5685 = vmatmul.bf16.vlgmr.msra.gmra.mxu1 %v5663_v52 }
0x2180   :  { %5698 = vmatmul.bf16.vlgmr.msra.gmra.mxu2 %v5663_v52  ;;  %5711 = vmatmul.bf16.vlgmr.msra.gmra.mxu3 %v5663_v52 }
0x21fc   :  { %v5673_v30 = vpop.f32.mrf.mxu0  ;;  %v5686_v49 = vpop.f32.mrf.mxu1 }
0x21fd   :  { %v5720_v43 = vrot.slane %v5686_v49, 7 }
0x21ff   :  { %v5723_v38 = vsel %vm633_vm0, %v5673_v30, %v5720_v43 }
0x2203   :  { %v5699_v12 = vpop.f32.mrf.mxu2  ;;  %v5712_v53 = vpop.f32.mrf.mxu3 }
0x2204   :  { %v5721_v46 = vrot.slane %v5699_v12, 6  ;;  %v5722_v62 = vrot.slane %v5712_v53, 5  ;;  %v5675_v2 = vpop.f32.mrf.mxu0  ;;  %v5688_v36 = vpop.f32.mrf.mxu1 }
0x2206   :  { %v5724_v19 = vsel %vm635_vm1, %v5721_v46, %v5722_v62 }
0x2207   :  { %v5725_v32 = vsel %vm637_vm2, %v5723_v38, %v5724_v19 }
0x2208   :  { %v5727_v24 = vadd.f32 %v5725_v32, %v5662_v7 }
0x220a   :  { %v6442_v33 = vmul.f32 -1.442695, %v5727_v24  ;;  %v5748_v61 = vrot.slane %v5727_v24, 3 }
0x220b   :  { %v5701_v56 = vpop.f32.mrf.mxu2  ;;  %v5714_v47 = vpop.f32.mrf.mxu3 }
0x220c   :  { %6951 = vpow2.f32 %v6442_v33 }
0x2212   :  { %v6952_v39 = vpop.eup %6951 }
0x2213   :  { %v5731_v18 = vadd.f32 1.0, %v6952_v39 }
0x2215   :  { %6953 = vrcp.f32 %v5731_v18  ;;  %v5743_v21 = vand.u32 2147483648, %v5731_v18  ;;  %v5741_v28 = vand.u32 2147483647, %v5731_v18  ;;  %vm5737_vm6 = vweird.f32 %v5731_v18 }
0x2216   :  { %6955 = vtanh.f32 %v5748_v61 }
0x2217   :  { %v5744_v54 = vor.u32 1.1754944e-38, %v5743_v21  ;;  %vm5742_vm8 = vcmp.eq.f32.partialorder %v5741_v28, 8.507059e+37 }
0x221b   :  { %v6954_v59 = vpop.eup %6953 }
0x221c   :  { %v5733_v37 = vmul.f32 %v6954_v59, %v5731_v18  ;;  %vm5738_vm5 = vweird.f32 %v6954_v59  ;;  %v6956_v31 = vpop.eup %6955 }
0x221d   :  { %vm5739_vm7 = vmor %vm5737_vm6, %vm5738_vm5 }
0x221e   :  { %v5734_v1 = vsub.f32 1.0, %v5733_v37 }
0x2220   :  { %v5735_v60 = vmul.f32 %v6954_v59, %v5734_v1 }
0x2222   :  { %v5736_v42 = vadd.f32 %v6954_v59, %v5735_v60 }
0x2224   :  { %v5740_v5 = vsel %vm5739_vm7, %v6954_v59, %v5736_v42 }
0x2225   :  { %v5745_v40 = vsel %vm5742_vm8, %v5744_v54, %v5740_v5 }
0x2226   :  { %v5752_v57 = vrot.slane %v5745_v40, 1  ;;  %v5755_v25 = vmul.f32 %v6956_v31, %v5745_v40  ;;  %v5758_v63 = vrot.slane %v5745_v40, 2 }
0x2228   :  { %v5754_v44 = vmul.f32 %v5752_v57, %v5657_v34 }
0x222a   :  { %v5756_v29 = vadd.f32 %v5755_v25, %v5754_v44 }
0x222c   :  { %6957 = vtanh.f32 %v5756_v29 }
0x2232   :  { %v6958_v41 = vpop.eup %6957 }
0x2233   :  { %v5760_v8 = vmul.f32 %v6958_v41, %v5758_v63 }
0x2235   :  { %v5762_v58 = vpack.c.bf16 %v5760_v8, %v5760_v8 }
0x2237   :  { %5771 = vmatmul.bf16.vlgmr.msrb.gmra.mxu0 %v5762_v58  ;;  %5784 = vmatmul.bf16.vlgmr.msrb.gmra.mxu1 %v5762_v58 }
0x2238   :  { %5797 = vmatmul.bf16.vlgmr.msrb.gmra.mxu2 %v5762_v58  ;;  %5810 = vmatmul.bf16.vlgmr.msrb.gmra.mxu3 %v5762_v58 }
0x22b4   :  { %v5772_v4 = vpop.f32.mrf.mxu0  ;;  %v5785_v6 = vpop.f32.mrf.mxu1 }
0x22b5   :  { %v5819_v11 = vrot.slane %v5785_v6, 7 }
0x22b7   :  { %v5822_v10 = vsel %vm633_vm0, %v5772_v4, %v5819_v11 }
0x22bb   :  { %v5798_v17 = vpop.f32.mrf.mxu2  ;;  %v5811_v0 = vpop.f32.mrf.mxu3 }
0x22bc   :  { %v5820_v15 = vrot.slane %v5798_v17, 6  ;;  %v5821_v3 = vrot.slane %v5811_v0, 5  ;;  %v5774_v50 = vpop.f32.mrf.mxu0  ;;  %v5787_v48 = vpop.f32.mrf.mxu1 }
0x22be   :  { %v5823_v14 = vsel %vm635_vm1, %v5820_v15, %v5821_v3 }
0x22bf   :  { %v5824_v45 = vsel %vm637_vm2, %v5822_v10, %v5823_v14 }
0x22c0   :  { %v5826_v27 = vadd.f32 %v5824_v45, %v5761_v16 }
0x22c2   :  { %v6443_v55 = vmul.f32 -1.442695, %v5826_v27  ;;  %v5847_v9 = vrot.slane %v5826_v27, 3 }
0x22c3   :  { %v5800_v13 = vpop.f32.mrf.mxu2  ;;  %v5813_v26 = vpop.f32.mrf.mxu3 }
0x22c4   :  { %6959 = vpow2.f32 %v6443_v55 }
0x22ca   :  { %v6960_v20 = vpop.eup %6959 }
0x22cb   :  { %v5830_v23 = vadd.f32 1.0, %v6960_v20 }
0x22cd   :  { %6961 = vrcp.f32 %v5830_v23  ;;  %v5842_v51 = vand.u32 2147483648, %v5830_v23  ;;  %v5840_v30 = vand.u32 2147483647, %v5830_v23  ;;  %vm5836_vm1 = vweird.f32 %v5830_v23 }
0x22ce   :  { %6963 = vtanh.f32 %v5847_v9 }
0x22cf   :  { %v5843_v43 = vor.u32 1.1754944e-38, %v5842_v51  ;;  %vm5841_vm9 = vcmp.eq.f32.partialorder %v5840_v30, 8.507059e+37 }
0x22d3   :  { %v6962_v22 = vpop.eup %6961 }
0x22d4   :  { %v5832_v34 = vmul.f32 %v6962_v22, %v5830_v23  ;;  %vm5837_vm0 = vweird.f32 %v6962_v22  ;;  %v6964_v62 = vpop.eup %6963 }
0x22d5   :  { %vm5838_vm2 = vmor %vm5836_vm1, %vm5837_vm0 }
0x22d6   :  { %v5833_v35 = vsub.f32 1.0, %v5832_v34 }
0x22d8   :  { %v5834_v52 = vmul.f32 %v6962_v22, %v5833_v35 }
0x22da   :  { %v5835_v49 = vadd.f32 %v6962_v22, %v5834_v52 }
0x22dc   :  { %v5839_v12 = vsel %vm5838_vm2, %v6962_v22, %v5835_v49 }
0x22dd   :  { %v5844_v53 = vsel %vm5841_vm9, %v5843_v43, %v5839_v12 }
0x22de   :  { %v5851_v46 = vrot.slane %v5844_v53, 1  ;;  %v5854_v36 = vmul.f32 %v6964_v62, %v5844_v53  ;;  %v5857_v19 = vrot.slane %v5844_v53, 2 }
0x22e0   :  { %v5853_v2 = vmul.f32 %v5851_v46, %v5756_v29 }
0x22e2   :  { %v5855_v38 = vadd.f32 %v5854_v36, %v5853_v2 }
0x22e4   :  { %6965 = vtanh.f32 %v5855_v38 }
0x22ea   :  { %v6966_v7 = vpop.eup %6965 }
0x22eb   :  { %v5859_v32 = vmul.f32 %v6966_v7, %v5857_v19 }
0x22ed   :  { %5860 = vst [vmem:[#allocation12 + $0x1] sm:$0x1] %v5859_v32 }
0x22ee   :  { %5871 = dma.vmem_to_hbm [thread:$0]  %s5867_s3, 32, %s5869_s13, [#allocation6]  }
0x22ef   :  { %7093 = dma.done.wait [#allocation6], 32  }
0x22f0   :  { %7094 = vsyncadd [#allocation6], 4294967264 }
0x22f1   :  { %5876 = vsyncpa [#allocation5], 1 }
0x22f2   :  { %5877 = vsyncpa [#allocation8], 1 }
0x22f3   :  { %5878 = vsyncpa [#allocation11], 1 }
0x22f4   :  { %5879 = vsyncpa [#allocation6], 1 }

</bundles_post_ra>
